<compile_context>
chip_gen: v5e
topology: v5e:2x2
jax: 0.10.0
libtpu: 0.0.40
codegen_flags: <defaults>
</compile_context>

<pallas_src>
import jax
import jax.numpy as jnp
from jax import lax
from jax.experimental import pallas as pl
from jax.experimental.pallas import tpu as pltpu

_BN_EPS = 1e-5
_LANES = 128
_COMPUTE_DTYPE = jnp.bfloat16          # matmul operand dtype (f32 accumulation)
_VMEM_LIMIT = 48 * 1024 * 1024         # raised scoped-VMEM limit, still < v7x's 64 MiB
_VMEM_BUDGET = 36 * 1024 * 1024        # tile-selection budget (headroom for dbl-buffer)


def _round_up(x, m):
    return (x + m - 1) // m * m


# ----------------------- fused 3x3 conv Pallas kernel ------------------------

def _make_conv3x3_kernel(h, w, cin, relu, has_res):
    """o = act( sum_t x[., dy:dy+h, dx:dx+w, :] @ w[t] + bias (+ res) ), one image/step."""
    def kernel(*refs):
        if has_res:
            x_ref, w_ref, b_ref, res_ref, o_ref = refs
        else:
            x_ref, w_ref, b_ref, o_ref = refs
            res_ref = None
        cp = o_ref.shape[-1]
        acc = jnp.zeros((h * w, cp), jnp.float32)
        for t in range(9):                       # unrolled tap loop, in-VMEM im2col
            dy, dx = divmod(t, 3)
            patch = x_ref[0, dy:dy + h, dx:dx + w, :].reshape(h * w, cin)
            acc = acc + jnp.dot(patch, w_ref[t],
                                preferred_element_type=jnp.float32)
        y = acc + b_ref[...]
        if has_res:
            y = y + res_ref[0]
        if relu:
            y = jnp.maximum(y, 0.0)
        o_ref[0] = y.astype(o_ref.dtype)
    return kernel


def _conv3x3_fused(x_nhwc, w9, bias, res_flat, relu, out_dtype, use_pallas):
    """3x3 SAME conv (stride 1), BN scale pre-folded into w9, + bias (+res) (+ReLU).

    x_nhwc: [N,H,W,Cin] ; w9: [9,Cin,Cp] ; bias: [Cp] ; res_flat: [N,H*W,Cp] or None.
    Returns [N, H*W, Cp] in out_dtype.
    """
    n, h, w, cin = x_nhwc.shape
    cp = w9.shape[-1]
    hw = h * w
    xp = jnp.pad(x_nhwc, ((0, 0), (1, 1), (1, 1), (0, 0))).astype(_COMPUTE_DTYPE)
    wq = w9.astype(_COMPUTE_DTYPE)
    b2 = bias.reshape(1, cp).astype(jnp.float32)
    res32 = None if res_flat is None else res_flat.astype(jnp.float32)

    if not use_pallas:                 # pure-JAX path with identical math / epilogue
        acc = jnp.zeros((n, hw, cp), jnp.float32)
        for t in range(9):
            dy, dx = divmod(t, 3)
            patch = xp[:, dy:dy + h, dx:dx + w, :].reshape(n, hw, cin)
            acc = acc + lax.dot_general(
                patch, wq[t], dimension_numbers=(((2,), (0,)), ((), ())),
                preferred_element_type=jnp.float32)
        y = acc + b2
        if res32 is not None:
            y = y + res32
        if relu:
            y = jnp.maximum(y, 0.0)
        return y.astype(out_dtype)

    has_res = res32 is not None
    in_specs = [
        pl.BlockSpec((1, h + 2, w + 2, cin), lambda i: (i, 0, 0, 0)),
        pl.BlockSpec((9, cin, cp), lambda i: (0, 0, 0)),
        pl.BlockSpec((1, cp), lambda i: (0, 0)),
    ]
    args = [xp, wq, b2]
    if has_res:
        in_specs.append(pl.BlockSpec((1, hw, cp), lambda i: (i, 0, 0)))
        args.append(res32)

    out_bytes = hw * cp * jnp.dtype(out_dtype).itemsize
    bytes_accessed = (n * ((h + 2) * (w + 2) * cin * 2 + out_bytes
                           + (hw * cp * 4 if has_res else 0))
                      + 9 * cin * cp * 2 + cp * 4)
    return pl.pallas_call(
        _make_conv3x3_kernel(h, w, cin, relu, has_res),
        out_shape=jax.ShapeDtypeStruct((n, hw, cp), out_dtype),
        grid=(n,),
        in_specs=in_specs,
        out_specs=pl.BlockSpec((1, hw, cp), lambda i: (i, 0, 0)),
        compiler_params=pltpu.CompilerParams(
            dimension_semantics=("parallel",),
            vmem_limit_bytes=_VMEM_LIMIT),
        cost_estimate=pl.CostEstimate(flops=2 * n * hw * 9 * cin * cp,
                                      transcendentals=0,
                                      bytes_accessed=bytes_accessed),
    )(*args)


# ------------------- generic fused (K-tiled) matmul kernel --------------------

def _make_matmul_kernel(relu, has_res):
    """o = act( x @ w + bias (+ res) ), K-tiled with an f32 VMEM accumulator."""
    def kernel(*refs):
        if has_res:
            x_ref, w_ref, b_ref, res_ref, o_ref, acc_ref = refs
        else:
            x_ref, w_ref, b_ref, o_ref, acc_ref = refs
            res_ref = None
        k = pl.program_id(1)

        @pl.when(k == 0)
        def _init():
            acc_ref[...] = jnp.zeros_like(acc_ref)

        acc_ref[...] += jnp.dot(x_ref[...], w_ref[...],
                                preferred_element_type=jnp.float32)

        @pl.when(k == pl.num_programs(1) - 1)
        def _finalize():
            y = acc_ref[...] + b_ref[...]
            if has_res:
                y = y + res_ref[...]
            if relu:
                y = jnp.maximum(y, 0.0)
            o_ref[...] = y.astype(o_ref.dtype)
    return kernel


def _pick_tm(m):
    # Largest M tile (<=512) dividing m that keeps >=2 grid steps on the parallel
    # axis (v7x megacore has 2 TensorCores); fall back to the full extent.
    for t in (512, 256, 128, 64, 32, 16, 8):
        if m % t == 0 and m // t >= 2:
            return t
    return m


def _pick_tk(k):
    for t in (512, 256, 128):
        if k % t == 0:
            return t
    return k


def _shrink_for_vmem(tm, tk, m, k, cp, has_res):
    bpe = jnp.dtype(_COMPUTE_DTYPE).itemsize

    def need(a, b):
        return (2 * (a * b + b * cp) * bpe                 # double-buffered bf16 inputs
                + 2 * a * cp * 4 * (2 if has_res else 1)   # out (+res), double-buffered
                + a * cp * 4)                              # f32 accumulator scratch

    while need(tm, tk) > _VMEM_BUDGET:
        if tk > 128 and k % (tk // 2) == 0:
            tk //= 2
        elif tm > 8 and m % (tm // 2) == 0:
            tm //= 2
        else:
            break
    return tm, tk


def matmul_bias_act(x, w, bias, res=None, relu=False, out_dtype=jnp.float32,
                    use_pallas=True):
    """y = act(x @ w + bias (+ res)).  x:[M,K]  w:[K,Cp]  bias:[Cp]  res:[M,Cp]|None."""
    m, k = x.shape
    cp = w.shape[-1]
    xq = x.astype(_COMPUTE_DTYPE)
    wq = w.astype(_COMPUTE_DTYPE)
    b2 = bias.reshape(1, cp).astype(jnp.float32)
    res32 = None if res is None else res.astype(jnp.float32)

    if not use_pallas:                 # pure-JAX path with identical math / epilogue
        y = jnp.dot(xq, wq, preferred_element_type=jnp.float32) + b2
        if res32 is not None:
            y = y + res32
        if relu:
            y = jnp.maximum(y, 0.0)
        return y.astype(out_dtype)

    has_res = res32 is not None
    tm, tk = _shrink_for_vmem(_pick_tm(m), _pick_tk(k), m, k, cp, has_res)
    in_specs = [
        pl.BlockSpec((tm, tk), lambda i, j: (i, j)),
        pl.BlockSpec((tk, cp), lambda i, j: (j, 0)),
        pl.BlockSpec((1, cp), lambda i, j: (0, 0)),
    ]
    args = [xq, wq, b2]
    if has_res:
        in_specs.append(pl.BlockSpec((tm, cp), lambda i, j: (i, 0)))
        args.append(res32)

    out_bytes = m * cp * jnp.dtype(out_dtype).itemsize
    bytes_accessed = (m * k * 2 + k * cp * 2 + cp * 4 + out_bytes
                      + (m * cp * 4 if has_res else 0))
    return pl.pallas_call(
        _make_matmul_kernel(relu, has_res),
        out_shape=jax.ShapeDtypeStruct((m, cp), out_dtype),
        grid=(m // tm, k // tk),
        in_specs=in_specs,
        out_specs=pl.BlockSpec((tm, cp), lambda i, j: (i, 0)),
        scratch_shapes=[pltpu.VMEM((tm, cp), jnp.float32)],
        compiler_params=pltpu.CompilerParams(
            dimension_semantics=("parallel", "arbitrary"),
            vmem_limit_bytes=_VMEM_LIMIT),
        cost_estimate=pl.CostEstimate(flops=2 * m * k * cp,
                                      transcendentals=0,
                                      bytes_accessed=bytes_accessed),
    )(*args)


# ----------------------------- conv glue / dispatch ---------------------------

def _im2col_3x3(x_nhwc, stride=1):
    """zero-padded 3x3 patches, tap-major: [N,H,W,C] -> [N, H//s, W//s, 9*C]."""
    n, h, w, c = x_nhwc.shape
    xp = jnp.pad(x_nhwc, ((0, 0), (1, 1), (1, 1), (0, 0)))
    cols = []
    for dy in range(3):
        for dx in range(3):
            cols.append(xp[:, dy:dy + h:stride, dx:dx + w:stride, :])
    return jnp.concatenate(cols, axis=-1)


def conv3x3_bias_act(x_nhwc, w9, bias, res_flat=None, relu=False, stride=1,
                     out_dtype=jnp.float32, use_pallas=True):
    """3x3 conv + bias (+res) (+ReLU) -> [N, Ho*Wo, Cp]; w9: [9, Cin, Cp], scale folded."""
    n, h, w, cin = x_nhwc.shape
    cp = w9.shape[-1]
    fused_ok = (stride == 1 and w % 8 == 0
                and (h * w) * cp * 4 * 3 < _VMEM_BUDGET)
    if fused_ok:
        return _conv3x3_fused(x_nhwc, w9, bias, res_flat, relu, out_dtype, use_pallas)
    # TODO(synk): fused path covers stride-1 / moderate images; strided or very large
    # inputs fall back to XLA im2col feeding the K-tiled Pallas matmul.
    ho, wo = h // stride, w // stride
    m = n * ho * wo
    cols = _im2col_3x3(x_nhwc, stride).reshape(m, 9 * cin)
    res2 = None if res_flat is None else res_flat.reshape(m, cp)
    out = matmul_bias_act(cols, w9.reshape(9 * cin, cp), bias, res2, relu,
                          out_dtype, use_pallas)
    return out.reshape(n, ho * wo, cp)


def _fold_bn(gamma, beta, mean=None, var=None):
    """Eval-mode BatchNorm2d folded to per-channel (scale, bias)."""
    mean = jnp.zeros_like(gamma) if mean is None else mean
    var = jnp.ones_like(gamma) if var is None else var
    scale = gamma * lax.rsqrt(var + _BN_EPS)
    return scale, beta - mean * scale


def _pad_last(a, cp):
    pad = cp - a.shape[-1]
    if pad == 0:
        return a
    return jnp.pad(a, [(0, 0)] * (a.ndim - 1) + [(0, pad)])


# ----------------------------- BasicBlockNoLens ------------------------------

def basic_block_nolens(x_nhwc, p, stride, use_pallas=True):
    n, h, w, cin = x_nhwc.shape
    planes = p["w1"].shape[-1]
    cp = _round_up(planes, _LANES)            # lane-dense internal channel count
    ho, wo = h // stride, w // stride
    hw = ho * wo

    s1, b1 = _fold_bn(p["bn1_gamma"], p["bn1_beta"], p.get("bn1_mean"), p.get("bn1_var"))
    s2, b2 = _fold_bn(p["bn2_gamma"], p["bn2_beta"], p.get("bn2_mean"), p.get("bn2_var"))
    w1 = _pad_last(p["w1"] * s1, cp).reshape(9, cin, cp)                 # scale folded
    w2 = _pad_last(jnp.pad(p["w2"], ((0, 0), (0, 0), (0, cp - planes), (0, 0))) * s2,
                   cp).reshape(9, cp, cp)
    b1p = _pad_last(b1, cp)
    b2p = _pad_last(b2, cp)

    # conv1 (3x3, stride) + bn1 + relu  -- bf16 output (only feeds conv2's matmul)
    h1 = conv3x3_bias_act(x_nhwc, w1, b1p, res_flat=None, relu=True, stride=stride,
                          out_dtype=_COMPUTE_DTYPE, use_pallas=use_pallas)
    h1 = h1.reshape(n, ho, wo, cp)

    # residual: 1x1 conv (stride) + bn, or channel-padded identity
    if p.get("ds_w") is not None:
        sd, bd = _fold_bn(p["ds_gamma"], p["ds_beta"], p.get("ds_mean"), p.get("ds_var"))
        dsw = _pad_last(p["ds_w"].reshape(cin, planes) * sd, cp)
        x_s = x_nhwc[:, ::stride, ::stride, :].reshape(n * hw, cin)
        residual = matmul_bias_act(x_s, dsw, _pad_last(bd, cp), res=None, relu=False,
                                   out_dtype=jnp.float32, use_pallas=use_pallas)
        residual = residual.reshape(n, hw, cp)
    else:
        if cin != planes or stride != 1:
            raise ValueError("identity residual requires cin == planes and stride == 1")
        residual = _pad_last(x_nhwc, cp).reshape(n, hw, cp).astype(jnp.float32)

    # conv2 (3x3) + bn2 + residual add + relu (all fused in the Pallas epilogue)
    out = conv3x3_bias_act(h1, w2, b2p, res_flat=residual, relu=True, stride=1,
                           out_dtype=jnp.float32, use_pallas=use_pallas)
    return out.reshape(n, ho, wo, cp), None


# --------------------- neko_spatial_transform_deform_conv_3x3 ----------------

_TAPS = [(dy, dx) for dy in (-1, 0, 1) for dx in (-1, 0, 1)]


def _bilinear_sample_taps(x_nhwc, py, px):
    """x:[N,H,W,C], py/px:[N,H,W,9] absolute fp sample coords; zero outside the image."""
    n, h, w, c = x_nhwc.shape
    y0 = jnp.floor(py)
    x0 = jnp.floor(px)
    wy1 = py - y0
    wx1 = px - x0
    wy0 = 1.0 - wy1
    wx0 = 1.0 - wx1

    def corner(yi, xi, wgt):
        valid = ((yi >= 0) & (yi < h) & (xi >= 0) & (xi < w)).astype(x_nhwc.dtype)
        yc = jnp.clip(yi, 0, h - 1).astype(jnp.int32)
        xc = jnp.clip(xi, 0, w - 1).astype(jnp.int32)
        g = jax.vmap(lambda img, yy, xx: img[yy, xx])(x_nhwc, yc, xc)  # [N,H,W,9,C]
        return g * (valid * wgt)[..., None]

    return (corner(y0, x0, wy0 * wx0) + corner(y0, x0 + 1.0, wy0 * wx1)
            + corner(y0 + 1.0, x0, wy1 * wx0) + corner(y0 + 1.0, x0 + 1.0, wy1 * wx1))


def sd_deform_conv_3x3(x_nhwc, p, planes, use_pallas=True):
    # TODO(synk): exact parameterization of neko_spatial_transform_deform_conv_3x3 is not
    # available; reconstructed as a per-pixel rotation+scale of the 3x3 sampling grid
    # predicted by a small 3x3 conv, followed by a bilinear deformable 3x3 conv.
    n, h, w, cp = x_nhwc.shape
    m = n * h * w

    # field conv (Cout=2): tiny & lane-sparse -> plain XLA (not worth a pallas_call)
    fw = jnp.pad(p["field_w"], ((0, 0), (0, 0), (0, cp - planes), (0, 0)))
    field = lax.conv_general_dilated(
        x_nhwc, fw, window_strides=(1, 1), padding="SAME",
        dimension_numbers=("NHWC", "HWIO", "NHWC")) + p["field_b"]
    theta = jnp.tanh(field[..., 0]) * jnp.pi
    scl = jnp.exp(0.5 * jnp.tanh(field[..., 1]))

    taps = jnp.asarray(_TAPS, jnp.float32)            # [9, 2] (dy, dx)
    dy, dx = taps[:, 0], taps[:, 1]
    cth = jnp.cos(theta)[..., None]
    sth = jnp.sin(theta)[..., None]
    s_ = scl[..., None]
    off_y = s_ * (cth * dy - sth * dx)                # [N,H,W,9]
    off_x = s_ * (sth * dy + cth * dx)
    ii = jnp.arange(h, dtype=jnp.float32)[None, :, None, None]
    jj = jnp.arange(w, dtype=jnp.float32)[None, None, :, None]
    py = ii + off_y
    px = jj + off_x

    # TODO(synk): the bilinear 4-corner gather stays in XLA; dynamic 2-D gathers have no
    # robust Mosaic lowering here, so only the 9-tap matmul is fused below.
    patches = _bilinear_sample_taps(x_nhwc, py, px).reshape(m, 9 * cp)

    dw = jnp.pad(p["deform_w"],
                 ((0, 0), (0, 0), (0, cp - planes), (0, cp - planes))).reshape(9 * cp, cp)
    db = jnp.pad(p["deform_b"], (0, cp - planes))
    out = matmul_bias_act(patches, dw, db, res=None, relu=False,
                          out_dtype=jnp.float32, use_pallas=use_pallas)
    return out.reshape(n, h, w, cp), None


# ----------------------------- neko_reslayer_sd ------------------------------

def neko_reslayer_sd_forward(x_nchw, params, stride=1, use_pallas=True):
    fields = []
    x = jnp.transpose(x_nchw, (0, 2, 3, 1)).astype(jnp.float32)      # NCHW -> NHWC
    planes = params["blk_init"]["w1"].shape[-1]

    feat, f = basic_block_nolens(x, params["blk_init"], stride, use_pallas)
    if f is not None:
        fields.append(f)
    feat, f = sd_deform_conv_3x3(feat, params["sdl"], planes, use_pallas)
    if f is not None:
        fields.append(f)
    # blocks=1 -> no extra BasicBlockNoLens blocks
    feat = feat[..., :planes]                                        # strip lane padding
    return jnp.transpose(feat, (0, 3, 1, 2)), fields                 # NHWC -> NCHW


def init_params(key, in_planes, planes, stride=1):
    ks = jax.random.split(key, 10)
    blk = {
        "w1": 0.1 * jax.random.normal(ks[0], (3, 3, in_planes, planes), jnp.float32),
        "bn1_gamma": 1.0 + 0.1 * jax.random.normal(ks[1], (planes,), jnp.float32),
        "bn1_beta": 0.1 * jax.random.normal(ks[2], (planes,), jnp.float32),
        "w2": 0.1 * jax.random.normal(ks[3], (3, 3, planes, planes), jnp.float32),
        "bn2_gamma": 1.0 + 0.1 * jax.random.normal(ks[4], (planes,), jnp.float32),
        "bn2_beta": 0.1 * jax.random.normal(ks[5], (planes,), jnp.float32),
        "ds_w": None,
    }
    if stride != 1 or in_planes != planes:  # BasicBlockNoLens.expansion == 1
        blk["ds_w"] = 0.1 * jax.random.normal(ks[6], (1, 1, in_planes, planes), jnp.float32)
        blk["ds_gamma"] = 1.0 + 0.1 * jax.random.normal(ks[7], (planes,), jnp.float32)
        blk["ds_beta"] = 0.1 * jax.random.normal(ks[8], (planes,), jnp.float32)
    ks2 = jax.random.split(ks[9], 3)
    sdl = {
        "field_w": 0.01 * jax.random.normal(ks2[0], (3, 3, planes, 2), jnp.float32),
        "field_b": jnp.zeros((2,), jnp.float32),
        "deform_w": 0.1 * jax.random.normal(ks2[1], (3, 3, planes, planes), jnp.float32),
        "deform_b": 0.01 * jax.random.normal(ks2[2], (planes,), jnp.float32),
    }
    return {"blk_init": blk, "sdl": sdl}


if __name__ == "__main__":
    key = jax.random.PRNGKey(0)
    kx, kp = jax.random.split(key)

    N, Cin, H, W = 2, 4, 16, 16
    planes = 8          # in_planes != planes -> downsample branch exercised
    stride = 1

    x = jax.random.normal(kx, (N, Cin, H, W), jnp.float32)
    params = init_params(kp, Cin, planes, stride)

    fwd = jax.jit(neko_reslayer_sd_forward, static_argnames=("stride", "use_pallas"))

    feat, fields = fwd(x, params, stride=stride, use_pallas=True)
    feat = jax.block_until_ready(feat)

    # pure-JAX reference of the same math (identical bf16 quantization / epilogues)
    feat_ref, _ = fwd(x, params, stride=stride, use_pallas=False)
    feat_ref = jax.block_until_ready(feat_ref)

    assert feat.shape == (N, planes, H // stride, W // stride), feat.shape
    assert fields == []
    err = float(jnp.max(jnp.abs(feat - feat_ref)))
    # bf16 operands (f32 accumulation) on both paths -> tolerance covers bf16 rounding
    assert jnp.allclose(feat, feat_ref, atol=5e-3, rtol=5e-3), err
    print("KERNEL_OK")
</pallas_src>

<mosaic_0001>
module attributes {stable_mosaic.version = 11 : i64} {
  func.func @kernel(%arg0: i32, %arg1: memref<1x18x18x4xbf16, #tpu.memory_space<vmem>>, %arg2: memref<9x4x128xbf16, #tpu.memory_space<vmem>>, %arg3: memref<1x128xf32, #tpu.memory_space<vmem>>, %arg4: memref<1x256x128xbf16, #tpu.memory_space<vmem>>) attributes {dimension_semantics = [#tpu.dimension_semantics<parallel>], iteration_bounds = array<i64: 2>, scalar_prefetch = 0 : i64, scratch_operands = 0 : i64, tpu.core_type = #tpu.core_type<tc>, window_params = [{transform_indices = @transform_0, window_bounds = array<i64: 1, 18, 18, 4>}, {pipeline_mode = #tpu.pipeline_mode<synchronous>, transform_indices = @transform_1, window_bounds = array<i64: 9, 4, 128>}, {pipeline_mode = #tpu.pipeline_mode<synchronous>, transform_indices = @transform_2, window_bounds = array<i64: 1, 128>}, {transform_indices = @transform_3, window_bounds = array<i64: 1, 256, 128>}]} {
    %cst = arith.constant 0.000000e+00 : f32
    %0 = vector.broadcast %cst : f32 to vector<256x128xf32>
    %c0 = arith.constant 0 : index
    %c0_0 = arith.constant 0 : index
    %c0_1 = arith.constant 0 : index
    %c0_2 = arith.constant 0 : index
    %1 = vector.load %arg1[%c0, %c0_0, %c0_1, %c0_2] : memref<1x18x18x4xbf16, #tpu.memory_space<vmem>>, vector<1x16x16x4xbf16>
    %2 = vector.shape_cast %1 : vector<1x16x16x4xbf16> to vector<16x16x4xbf16>
    %3 = vector.shape_cast %2 : vector<16x16x4xbf16> to vector<256x4xbf16>
    %c0_3 = arith.constant 0 : index
    %c0_4 = arith.constant 0 : index
    %c0_5 = arith.constant 0 : index
    %4 = vector.load %arg2[%c0_3, %c0_4, %c0_5] : memref<9x4x128xbf16, #tpu.memory_space<vmem>>, vector<1x4x128xbf16>
    %5 = vector.shape_cast %4 : vector<1x4x128xbf16> to vector<4x128xbf16>
    %cst_6 = arith.constant dense<0.000000e+00> : vector<256x128xf32>
    %6 = tpu.matmul %3, %5, %cst_6 {dimension_numbers = #tpu.dot_dimension_numbers<[1], [0], [0], [1], [0, 0, 1, 1], [], []>} : vector<256x4xbf16>, vector<4x128xbf16>, vector<256x128xf32> -> vector<256x128xf32>
    %7 = arith.addf %0, %6 : vector<256x128xf32>
    %c0_7 = arith.constant 0 : index
    %c0_8 = arith.constant 0 : index
    %c1 = arith.constant 1 : index
    %c0_9 = arith.constant 0 : index
    %8 = vector.load %arg1[%c0_7, %c0_8, %c1, %c0_9] : memref<1x18x18x4xbf16, #tpu.memory_space<vmem>>, vector<1x16x16x4xbf16>
    %9 = vector.shape_cast %8 : vector<1x16x16x4xbf16> to vector<16x16x4xbf16>
    %10 = vector.shape_cast %9 : vector<16x16x4xbf16> to vector<256x4xbf16>
    %c1_10 = arith.constant 1 : index
    %c0_11 = arith.constant 0 : index
    %c0_12 = arith.constant 0 : index
    %11 = vector.load %arg2[%c1_10, %c0_11, %c0_12] : memref<9x4x128xbf16, #tpu.memory_space<vmem>>, vector<1x4x128xbf16>
    %12 = vector.shape_cast %11 : vector<1x4x128xbf16> to vector<4x128xbf16>
    %cst_13 = arith.constant dense<0.000000e+00> : vector<256x128xf32>
    %13 = tpu.matmul %10, %12, %cst_13 {dimension_numbers = #tpu.dot_dimension_numbers<[1], [0], [0], [1], [0, 0, 1, 1], [], []>} : vector<256x4xbf16>, vector<4x128xbf16>, vector<256x128xf32> -> vector<256x128xf32>
    %14 = arith.addf %7, %13 : vector<256x128xf32>
    %c0_14 = arith.constant 0 : index
    %c0_15 = arith.constant 0 : index
    %c2 = arith.constant 2 : index
    %c0_16 = arith.constant 0 : index
    %15 = vector.load %arg1[%c0_14, %c0_15, %c2, %c0_16] : memref<1x18x18x4xbf16, #tpu.memory_space<vmem>>, vector<1x16x16x4xbf16>
    %16 = vector.shape_cast %15 : vector<1x16x16x4xbf16> to vector<16x16x4xbf16>
    %17 = vector.shape_cast %16 : vector<16x16x4xbf16> to vector<256x4xbf16>
    %c2_17 = arith.constant 2 : index
    %c0_18 = arith.constant 0 : index
    %c0_19 = arith.constant 0 : index
    %18 = vector.load %arg2[%c2_17, %c0_18, %c0_19] : memref<9x4x128xbf16, #tpu.memory_space<vmem>>, vector<1x4x128xbf16>
    %19 = vector.shape_cast %18 : vector<1x4x128xbf16> to vector<4x128xbf16>
    %cst_20 = arith.constant dense<0.000000e+00> : vector<256x128xf32>
    %20 = tpu.matmul %17, %19, %cst_20 {dimension_numbers = #tpu.dot_dimension_numbers<[1], [0], [0], [1], [0, 0, 1, 1], [], []>} : vector<256x4xbf16>, vector<4x128xbf16>, vector<256x128xf32> -> vector<256x128xf32>
    %21 = arith.addf %14, %20 : vector<256x128xf32>
    %c0_21 = arith.constant 0 : index
    %c1_22 = arith.constant 1 : index
    %c0_23 = arith.constant 0 : index
    %c0_24 = arith.constant 0 : index
    %22 = vector.load %arg1[%c0_21, %c1_22, %c0_23, %c0_24] : memref<1x18x18x4xbf16, #tpu.memory_space<vmem>>, vector<1x16x16x4xbf16>
    %23 = vector.shape_cast %22 : vector<1x16x16x4xbf16> to vector<16x16x4xbf16>
    %24 = vector.shape_cast %23 : vector<16x16x4xbf16> to vector<256x4xbf16>
    %c3 = arith.constant 3 : index
    %c0_25 = arith.constant 0 : index
    %c0_26 = arith.constant 0 : index
    %25 = vector.load %arg2[%c3, %c0_25, %c0_26] : memref<9x4x128xbf16, #tpu.memory_space<vmem>>, vector<1x4x128xbf16>
    %26 = vector.shape_cast %25 : vector<1x4x128xbf16> to vector<4x128xbf16>
    %cst_27 = arith.constant dense<0.000000e+00> : vector<256x128xf32>
    %27 = tpu.matmul %24, %26, %cst_27 {dimension_numbers = #tpu.dot_dimension_numbers<[1], [0], [0], [1], [0, 0, 1, 1], [], []>} : vector<256x4xbf16>, vector<4x128xbf16>, vector<256x128xf32> -> vector<256x128xf32>
    %28 = arith.addf %21, %27 : vector<256x128xf32>
    %c0_28 = arith.constant 0 : index
    %c1_29 = arith.constant 1 : index
    %c1_30 = arith.constant 1 : index
    %c0_31 = arith.constant 0 : index
    %29 = vector.load %arg1[%c0_28, %c1_29, %c1_30, %c0_31] : memref<1x18x18x4xbf16, #tpu.memory_space<vmem>>, vector<1x16x16x4xbf16>
    %30 = vector.shape_cast %29 : vector<1x16x16x4xbf16> to vector<16x16x4xbf16>
    %31 = vector.shape_cast %30 : vector<16x16x4xbf16> to vector<256x4xbf16>
    %c4 = arith.constant 4 : index
    %c0_32 = arith.constant 0 : index
    %c0_33 = arith.constant 0 : index
    %32 = vector.load %arg2[%c4, %c0_32, %c0_33] : memref<9x4x128xbf16, #tpu.memory_space<vmem>>, vector<1x4x128xbf16>
    %33 = vector.shape_cast %32 : vector<1x4x128xbf16> to vector<4x128xbf16>
    %cst_34 = arith.constant dense<0.000000e+00> : vector<256x128xf32>
    %34 = tpu.matmul %31, %33, %cst_34 {dimension_numbers = #tpu.dot_dimension_numbers<[1], [0], [0], [1], [0, 0, 1, 1], [], []>} : vector<256x4xbf16>, vector<4x128xbf16>, vector<256x128xf32> -> vector<256x128xf32>
    %35 = arith.addf %28, %34 : vector<256x128xf32>
    %c0_35 = arith.constant 0 : index
    %c1_36 = arith.constant 1 : index
    %c2_37 = arith.constant 2 : index
    %c0_38 = arith.constant 0 : index
    %36 = vector.load %arg1[%c0_35, %c1_36, %c2_37, %c0_38] : memref<1x18x18x4xbf16, #tpu.memory_space<vmem>>, vector<1x16x16x4xbf16>
    %37 = vector.shape_cast %36 : vector<1x16x16x4xbf16> to vector<16x16x4xbf16>
    %38 = vector.shape_cast %37 : vector<16x16x4xbf16> to vector<256x4xbf16>
    %c5 = arith.constant 5 : index
    %c0_39 = arith.constant 0 : index
    %c0_40 = arith.constant 0 : index
    %39 = vector.load %arg2[%c5, %c0_39, %c0_40] : memref<9x4x128xbf16, #tpu.memory_space<vmem>>, vector<1x4x128xbf16>
    %40 = vector.shape_cast %39 : vector<1x4x128xbf16> to vector<4x128xbf16>
    %cst_41 = arith.constant dense<0.000000e+00> : vector<256x128xf32>
    %41 = tpu.matmul %38, %40, %cst_41 {dimension_numbers = #tpu.dot_dimension_numbers<[1], [0], [0], [1], [0, 0, 1, 1], [], []>} : vector<256x4xbf16>, vector<4x128xbf16>, vector<256x128xf32> -> vector<256x128xf32>
    %42 = arith.addf %35, %41 : vector<256x128xf32>
    %c0_42 = arith.constant 0 : index
    %c2_43 = arith.constant 2 : index
    %c0_44 = arith.constant 0 : index
    %c0_45 = arith.constant 0 : index
    %43 = vector.load %arg1[%c0_42, %c2_43, %c0_44, %c0_45] : memref<1x18x18x4xbf16, #tpu.memory_space<vmem>>, vector<1x16x16x4xbf16>
    %44 = vector.shape_cast %43 : vector<1x16x16x4xbf16> to vector<16x16x4xbf16>
    %45 = vector.shape_cast %44 : vector<16x16x4xbf16> to vector<256x4xbf16>
    %c6 = arith.constant 6 : index
    %c0_46 = arith.constant 0 : index
    %c0_47 = arith.constant 0 : index
    %46 = vector.load %arg2[%c6, %c0_46, %c0_47] : memref<9x4x128xbf16, #tpu.memory_space<vmem>>, vector<1x4x128xbf16>
    %47 = vector.shape_cast %46 : vector<1x4x128xbf16> to vector<4x128xbf16>
    %cst_48 = arith.constant dense<0.000000e+00> : vector<256x128xf32>
    %48 = tpu.matmul %45, %47, %cst_48 {dimension_numbers = #tpu.dot_dimension_numbers<[1], [0], [0], [1], [0, 0, 1, 1], [], []>} : vector<256x4xbf16>, vector<4x128xbf16>, vector<256x128xf32> -> vector<256x128xf32>
    %49 = arith.addf %42, %48 : vector<256x128xf32>
    %c0_49 = arith.constant 0 : index
    %c2_50 = arith.constant 2 : index
    %c1_51 = arith.constant 1 : index
    %c0_52 = arith.constant 0 : index
    %50 = vector.load %arg1[%c0_49, %c2_50, %c1_51, %c0_52] : memref<1x18x18x4xbf16, #tpu.memory_space<vmem>>, vector<1x16x16x4xbf16>
    %51 = vector.shape_cast %50 : vector<1x16x16x4xbf16> to vector<16x16x4xbf16>
    %52 = vector.shape_cast %51 : vector<16x16x4xbf16> to vector<256x4xbf16>
    %c7 = arith.constant 7 : index
    %c0_53 = arith.constant 0 : index
    %c0_54 = arith.constant 0 : index
    %53 = vector.load %arg2[%c7, %c0_53, %c0_54] : memref<9x4x128xbf16, #tpu.memory_space<vmem>>, vector<1x4x128xbf16>
    %54 = vector.shape_cast %53 : vector<1x4x128xbf16> to vector<4x128xbf16>
    %cst_55 = arith.constant dense<0.000000e+00> : vector<256x128xf32>
    %55 = tpu.matmul %52, %54, %cst_55 {dimension_numbers = #tpu.dot_dimension_numbers<[1], [0], [0], [1], [0, 0, 1, 1], [], []>} : vector<256x4xbf16>, vector<4x128xbf16>, vector<256x128xf32> -> vector<256x128xf32>
    %56 = arith.addf %49, %55 : vector<256x128xf32>
    %c0_56 = arith.constant 0 : index
    %c2_57 = arith.constant 2 : index
    %c2_58 = arith.constant 2 : index
    %c0_59 = arith.constant 0 : index
    %57 = vector.load %arg1[%c0_56, %c2_57, %c2_58, %c0_59] : memref<1x18x18x4xbf16, #tpu.memory_space<vmem>>, vector<1x16x16x4xbf16>
    %58 = vector.shape_cast %57 : vector<1x16x16x4xbf16> to vector<16x16x4xbf16>
    %59 = vector.shape_cast %58 : vector<16x16x4xbf16> to vector<256x4xbf16>
    %c8 = arith.constant 8 : index
    %c0_60 = arith.constant 0 : index
    %c0_61 = arith.constant 0 : index
    %60 = vector.load %arg2[%c8, %c0_60, %c0_61] : memref<9x4x128xbf16, #tpu.memory_space<vmem>>, vector<1x4x128xbf16>
    %61 = vector.shape_cast %60 : vector<1x4x128xbf16> to vector<4x128xbf16>
    %cst_62 = arith.constant dense<0.000000e+00> : vector<256x128xf32>
    %62 = tpu.matmul %59, %61, %cst_62 {dimension_numbers = #tpu.dot_dimension_numbers<[1], [0], [0], [1], [0, 0, 1, 1], [], []>} : vector<256x4xbf16>, vector<4x128xbf16>, vector<256x128xf32> -> vector<256x128xf32>
    %63 = arith.addf %56, %62 : vector<256x128xf32>
    %c0_63 = arith.constant 0 : index
    %c0_64 = arith.constant 0 : index
    %64 = vector.load %arg3[%c0_63, %c0_64] : memref<1x128xf32, #tpu.memory_space<vmem>>, vector<1x128xf32>
    %65 = vector.broadcast %64 : vector<1x128xf32> to vector<256x128xf32>
    %66 = arith.addf %63, %65 : vector<256x128xf32>
    %cst_65 = arith.constant 0.000000e+00 : f32
    %67 = vector.broadcast %cst_65 : f32 to vector<256x128xf32>
    %68 = arith.maximumf %66, %67 : vector<256x128xf32>
    %69 = arith.truncf %68 : vector<256x128xf32> to vector<256x128xbf16>
    %c0_66 = arith.constant 0 : index
    %c0_67 = arith.constant 0 : index
    %c0_68 = arith.constant 0 : index
    %70 = vector.load %arg4[%c0_66, %c0_67, %c0_68] : memref<1x256x128xbf16, #tpu.memory_space<vmem>>, vector<1x256x128xbf16>
    %71 = vector.shape_cast %70 : vector<1x256x128xbf16> to vector<256x128xbf16>
    %72 = vector.shape_cast %69 : vector<256x128xbf16> to vector<1x256x128xbf16>
    tpu.vector_store %arg4[%c0_66, %c0_67, %c0_68], %72 {strides = array<i32>} : memref<1x256x128xbf16, #tpu.memory_space<vmem>>, vector<1x256x128xbf16>,
    return
  }
  func.func @transform_0(%arg0: i32) -> (i32, i32, i32, i32) {
    %c0_i32 = arith.constant 0 : i32
    %c0_i32_0 = arith.constant 0 : i32
    %c0_i32_1 = arith.constant 0 : i32
    %c0_i32_2 = arith.constant 0 : i32
    return %arg0, %c0_i32, %c0_i32_0, %c0_i32_1 : i32, i32, i32, i32
  }
  func.func @transform_1(%arg0: i32) -> (i32, i32, i32) {
    %c0_i32 = arith.constant 0 : i32
    %c0_i32_0 = arith.constant 0 : i32
    %c0_i32_1 = arith.constant 0 : i32
    %c0_i32_2 = arith.constant 0 : i32
    return %c0_i32, %c0_i32_0, %c0_i32_1 : i32, i32, i32
  }
  func.func @transform_2(%arg0: i32) -> (i32, i32) {
    %c0_i32 = arith.constant 0 : i32
    %c0_i32_0 = arith.constant 0 : i32
    %c0_i32_1 = arith.constant 0 : i32
    return %c0_i32, %c0_i32_0 : i32, i32
  }
  func.func @transform_3(%arg0: i32) -> (i32, i32, i32) {
    %c0_i32 = arith.constant 0 : i32
    %c0_i32_0 = arith.constant 0 : i32
    %c0_i32_1 = arith.constant 0 : i32
    return %arg0, %c0_i32, %c0_i32_0 : i32, i32, i32
  }
}

module attributes {stable_mosaic.version = 11 : i64} {
  func.func @kernel(%arg0: i32, %arg1: i32, %arg2: memref<256x4xbf16, #tpu.memory_space<vmem>>, %arg3: memref<4x128xbf16, #tpu.memory_space<vmem>>, %arg4: memref<1x128xf32, #tpu.memory_space<vmem>>, %arg5: memref<256x128xf32, #tpu.memory_space<vmem>>, %arg6: memref<256x128xf32, #tpu.memory_space<vmem>>) attributes {dimension_semantics = [#tpu.dimension_semantics<parallel>, #tpu.dimension_semantics<arbitrary>], iteration_bounds = array<i64: 2, 1>, scalar_prefetch = 0 : i64, scratch_operands = 1 : i64, tpu.core_type = #tpu.core_type<tc>, window_params = [{transform_indices = @transform_0, window_bounds = array<i64: 256, 4>}, {transform_indices = @transform_1, window_bounds = array<i64: 4, 128>}, {pipeline_mode = #tpu.pipeline_mode<synchronous>, transform_indices = @transform_2, window_bounds = array<i64: 1, 128>}, {transform_indices = @transform_3, window_bounds = array<i64: 256, 128>}]} {
    %c0_i32 = arith.constant 0 : i32
    %0 = arith.cmpi eq, %arg1, %c0_i32 : i32
    %1 = arith.extui %0 : i1 to i32
    %c0_i32_0 = arith.constant 0 : i32
    %2 = arith.cmpi ne, %1, %c0_i32_0 : i32
    scf.if %2 {
      %cst_10 = arith.constant 0.000000e+00 : f32
      %12 = vector.broadcast %cst_10 : f32 to vector<256x128xf32>
      %c0_11 = arith.constant 0 : index
      %c0_12 = arith.constant 0 : index
      %13 = vector.load %arg6[%c0_11, %c0_12] : memref<256x128xf32, #tpu.memory_space<vmem>>, vector<256x128xf32>
      tpu.vector_store %arg6[%c0_11, %c0_12], %12 {strides = array<i32>} : memref<256x128xf32, #tpu.memory_space<vmem>>, vector<256x128xf32>,
    } else {
    }
    %c0 = arith.constant 0 : index
    %c0_1 = arith.constant 0 : index
    %3 = vector.load %arg6[%c0, %c0_1] : memref<256x128xf32, #tpu.memory_space<vmem>>, vector<256x128xf32>
    %c0_2 = arith.constant 0 : index
    %c0_3 = arith.constant 0 : index
    %4 = vector.load %arg2[%c0_2, %c0_3] : memref<256x4xbf16, #tpu.memory_space<vmem>>, vector<256x4xbf16>
    %c0_4 = arith.constant 0 : index
    %c0_5 = arith.constant 0 : index
    %5 = vector.load %arg3[%c0_4, %c0_5] : memref<4x128xbf16, #tpu.memory_space<vmem>>, vector<4x128xbf16>
    %cst = arith.constant dense<0.000000e+00> : vector<256x128xf32>
    %6 = tpu.matmul %4, %5, %cst {dimension_numbers = #tpu.dot_dimension_numbers<[1], [0], [0], [1], [0, 0, 1, 1], [], []>} : vector<256x4xbf16>, vector<4x128xbf16>, vector<256x128xf32> -> vector<256x128xf32>
    %7 = arith.addf %3, %6 : vector<256x128xf32>
    %c0_6 = arith.constant 0 : index
    %c0_7 = arith.constant 0 : index
    %8 = vector.load %arg6[%c0_6, %c0_7] : memref<256x128xf32, #tpu.memory_space<vmem>>, vector<256x128xf32>
    tpu.vector_store %arg6[%c0_6, %c0_7], %7 {strides = array<i32>} : memref<256x128xf32, #tpu.memory_space<vmem>>, vector<256x128xf32>,
    %c0_i32_8 = arith.constant 0 : i32
    %9 = arith.cmpi eq, %arg1, %c0_i32_8 : i32
    %10 = arith.extui %9 : i1 to i32
    %c0_i32_9 = arith.constant 0 : i32
    %11 = arith.cmpi ne, %10, %c0_i32_9 : i32
    scf.if %11 {
      %c0_10 = arith.constant 0 : index
      %c0_11 = arith.constant 0 : index
      %12 = vector.load %arg6[%c0_10, %c0_11] : memref<256x128xf32, #tpu.memory_space<vmem>>, vector<256x128xf32>
      %c0_12 = arith.constant 0 : index
      %c0_13 = arith.constant 0 : index
      %13 = vector.load %arg4[%c0_12, %c0_13] : memref<1x128xf32, #tpu.memory_space<vmem>>, vector<1x128xf32>
      %14 = vector.broadcast %13 : vector<1x128xf32> to vector<256x128xf32>
      %15 = arith.addf %12, %14 : vector<256x128xf32>
      %c0_14 = arith.constant 0 : index
      %c0_15 = arith.constant 0 : index
      %16 = vector.load %arg5[%c0_14, %c0_15] : memref<256x128xf32, #tpu.memory_space<vmem>>, vector<256x128xf32>
      tpu.vector_store %arg5[%c0_14, %c0_15], %15 {strides = array<i32>} : memref<256x128xf32, #tpu.memory_space<vmem>>, vector<256x128xf32>,
    } else {
    }
    return
  }
  func.func @transform_0(%arg0: i32, %arg1: i32) -> (i32, i32) {
    %c0_i32 = arith.constant 0 : i32
    return %arg0, %arg1 : i32, i32
  }
  func.func @transform_1(%arg0: i32, %arg1: i32) -> (i32, i32) {
    %c0_i32 = arith.constant 0 : i32
    %c0_i32_0 = arith.constant 0 : i32
    return %arg1, %c0_i32 : i32, i32
  }
  func.func @transform_2(%arg0: i32, %arg1: i32) -> (i32, i32) {
    %c0_i32 = arith.constant 0 : i32
    %c0_i32_0 = arith.constant 0 : i32
    %c0_i32_1 = arith.constant 0 : i32
    return %c0_i32, %c0_i32_0 : i32, i32
  }
  func.func @transform_3(%arg0: i32, %arg1: i32) -> (i32, i32) {
    %c0_i32 = arith.constant 0 : i32
    %c0_i32_0 = arith.constant 0 : i32
    return %arg0, %c0_i32 : i32, i32
  }
}

module attributes {stable_mosaic.version = 11 : i64} {
  func.func @kernel(%arg0: i32, %arg1: memref<1x18x18x128xbf16, #tpu.memory_space<vmem>>, %arg2: memref<9x128x128xbf16, #tpu.memory_space<vmem>>, %arg3: memref<1x128xf32, #tpu.memory_space<vmem>>, %arg4: memref<1x256x128xf32, #tpu.memory_space<vmem>>, %arg5: memref<1x256x128xf32, #tpu.memory_space<vmem>>) attributes {dimension_semantics = [#tpu.dimension_semantics<parallel>], iteration_bounds = array<i64: 2>, scalar_prefetch = 0 : i64, scratch_operands = 0 : i64, tpu.core_type = #tpu.core_type<tc>, window_params = [{transform_indices = @transform_0, window_bounds = array<i64: 1, 18, 18, 128>}, {pipeline_mode = #tpu.pipeline_mode<synchronous>, transform_indices = @transform_1, window_bounds = array<i64: 9, 128, 128>}, {pipeline_mode = #tpu.pipeline_mode<synchronous>, transform_indices = @transform_2, window_bounds = array<i64: 1, 128>}, {transform_indices = @transform_3, window_bounds = array<i64: 1, 256, 128>}, {transform_indices = @transform_4, window_bounds = array<i64: 1, 256, 128>}]} {
    %cst = arith.constant 0.000000e+00 : f32
    %0 = vector.broadcast %cst : f32 to vector<256x128xf32>
    %c0 = arith.constant 0 : index
    %c0_0 = arith.constant 0 : index
    %c0_1 = arith.constant 0 : index
    %c0_2 = arith.constant 0 : index
    %1 = vector.load %arg1[%c0, %c0_0, %c0_1, %c0_2] : memref<1x18x18x128xbf16, #tpu.memory_space<vmem>>, vector<1x16x16x128xbf16>
    %2 = vector.shape_cast %1 : vector<1x16x16x128xbf16> to vector<16x16x128xbf16>
    %3 = vector.shape_cast %2 : vector<16x16x128xbf16> to vector<256x128xbf16>
    %c0_3 = arith.constant 0 : index
    %c0_4 = arith.constant 0 : index
    %c0_5 = arith.constant 0 : index
    %4 = vector.load %arg2[%c0_3, %c0_4, %c0_5] : memref<9x128x128xbf16, #tpu.memory_space<vmem>>, vector<1x128x128xbf16>
    %5 = vector.shape_cast %4 : vector<1x128x128xbf16> to vector<128x128xbf16>
    %cst_6 = arith.constant dense<0.000000e+00> : vector<256x128xf32>
    %6 = tpu.matmul %3, %5, %cst_6 {dimension_numbers = #tpu.dot_dimension_numbers<[1], [0], [0], [1], [0, 0, 1, 1], [], []>} : vector<256x128xbf16>, vector<128x128xbf16>, vector<256x128xf32> -> vector<256x128xf32>
    %7 = arith.addf %0, %6 : vector<256x128xf32>
    %c0_7 = arith.constant 0 : index
    %c0_8 = arith.constant 0 : index
    %c1 = arith.constant 1 : index
    %c0_9 = arith.constant 0 : index
    %8 = vector.load %arg1[%c0_7, %c0_8, %c1, %c0_9] : memref<1x18x18x128xbf16, #tpu.memory_space<vmem>>, vector<1x16x16x128xbf16>
    %9 = vector.shape_cast %8 : vector<1x16x16x128xbf16> to vector<16x16x128xbf16>
    %10 = vector.shape_cast %9 : vector<16x16x128xbf16> to vector<256x128xbf16>
    %c1_10 = arith.constant 1 : index
    %c0_11 = arith.constant 0 : index
    %c0_12 = arith.constant 0 : index
    %11 = vector.load %arg2[%c1_10, %c0_11, %c0_12] : memref<9x128x128xbf16, #tpu.memory_space<vmem>>, vector<1x128x128xbf16>
    %12 = vector.shape_cast %11 : vector<1x128x128xbf16> to vector<128x128xbf16>
    %cst_13 = arith.constant dense<0.000000e+00> : vector<256x128xf32>
    %13 = tpu.matmul %10, %12, %cst_13 {dimension_numbers = #tpu.dot_dimension_numbers<[1], [0], [0], [1], [0, 0, 1, 1], [], []>} : vector<256x128xbf16>, vector<128x128xbf16>, vector<256x128xf32> -> vector<256x128xf32>
    %14 = arith.addf %7, %13 : vector<256x128xf32>
    %c0_14 = arith.constant 0 : index
    %c0_15 = arith.constant 0 : index
    %c2 = arith.constant 2 : index
    %c0_16 = arith.constant 0 : index
    %15 = vector.load %arg1[%c0_14, %c0_15, %c2, %c0_16] : memref<1x18x18x128xbf16, #tpu.memory_space<vmem>>, vector<1x16x16x128xbf16>
    %16 = vector.shape_cast %15 : vector<1x16x16x128xbf16> to vector<16x16x128xbf16>
    %17 = vector.shape_cast %16 : vector<16x16x128xbf16> to vector<256x128xbf16>
    %c2_17 = arith.constant 2 : index
    %c0_18 = arith.constant 0 : index
    %c0_19 = arith.constant 0 : index
    %18 = vector.load %arg2[%c2_17, %c0_18, %c0_19] : memref<9x128x128xbf16, #tpu.memory_space<vmem>>, vector<1x128x128xbf16>
    %19 = vector.shape_cast %18 : vector<1x128x128xbf16> to vector<128x128xbf16>
    %cst_20 = arith.constant dense<0.000000e+00> : vector<256x128xf32>
    %20 = tpu.matmul %17, %19, %cst_20 {dimension_numbers = #tpu.dot_dimension_numbers<[1], [0], [0], [1], [0, 0, 1, 1], [], []>} : vector<256x128xbf16>, vector<128x128xbf16>, vector<256x128xf32> -> vector<256x128xf32>
    %21 = arith.addf %14, %20 : vector<256x128xf32>
    %c0_21 = arith.constant 0 : index
    %c1_22 = arith.constant 1 : index
    %c0_23 = arith.constant 0 : index
    %c0_24 = arith.constant 0 : index
    %22 = vector.load %arg1[%c0_21, %c1_22, %c0_23, %c0_24] : memref<1x18x18x128xbf16, #tpu.memory_space<vmem>>, vector<1x16x16x128xbf16>
    %23 = vector.shape_cast %22 : vector<1x16x16x128xbf16> to vector<16x16x128xbf16>
    %24 = vector.shape_cast %23 : vector<16x16x128xbf16> to vector<256x128xbf16>
    %c3 = arith.constant 3 : index
    %c0_25 = arith.constant 0 : index
    %c0_26 = arith.constant 0 : index
    %25 = vector.load %arg2[%c3, %c0_25, %c0_26] : memref<9x128x128xbf16, #tpu.memory_space<vmem>>, vector<1x128x128xbf16>
    %26 = vector.shape_cast %25 : vector<1x128x128xbf16> to vector<128x128xbf16>
    %cst_27 = arith.constant dense<0.000000e+00> : vector<256x128xf32>
    %27 = tpu.matmul %24, %26, %cst_27 {dimension_numbers = #tpu.dot_dimension_numbers<[1], [0], [0], [1], [0, 0, 1, 1], [], []>} : vector<256x128xbf16>, vector<128x128xbf16>, vector<256x128xf32> -> vector<256x128xf32>
    %28 = arith.addf %21, %27 : vector<256x128xf32>
    %c0_28 = arith.constant 0 : index
    %c1_29 = arith.constant 1 : index
    %c1_30 = arith.constant 1 : index
    %c0_31 = arith.constant 0 : index
    %29 = vector.load %arg1[%c0_28, %c1_29, %c1_30, %c0_31] : memref<1x18x18x128xbf16, #tpu.memory_space<vmem>>, vector<1x16x16x128xbf16>
    %30 = vector.shape_cast %29 : vector<1x16x16x128xbf16> to vector<16x16x128xbf16>
    %31 = vector.shape_cast %30 : vector<16x16x128xbf16> to vector<256x128xbf16>
    %c4 = arith.constant 4 : index
    %c0_32 = arith.constant 0 : index
    %c0_33 = arith.constant 0 : index
    %32 = vector.load %arg2[%c4, %c0_32, %c0_33] : memref<9x128x128xbf16, #tpu.memory_space<vmem>>, vector<1x128x128xbf16>
    %33 = vector.shape_cast %32 : vector<1x128x128xbf16> to vector<128x128xbf16>
    %cst_34 = arith.constant dense<0.000000e+00> : vector<256x128xf32>
    %34 = tpu.matmul %31, %33, %cst_34 {dimension_numbers = #tpu.dot_dimension_numbers<[1], [0], [0], [1], [0, 0, 1, 1], [], []>} : vector<256x128xbf16>, vector<128x128xbf16>, vector<256x128xf32> -> vector<256x128xf32>
    %35 = arith.addf %28, %34 : vector<256x128xf32>
    %c0_35 = arith.constant 0 : index
    %c1_36 = arith.constant 1 : index
    %c2_37 = arith.constant 2 : index
    %c0_38 = arith.constant 0 : index
    %36 = vector.load %arg1[%c0_35, %c1_36, %c2_37, %c0_38] : memref<1x18x18x128xbf16, #tpu.memory_space<vmem>>, vector<1x16x16x128xbf16>
    %37 = vector.shape_cast %36 : vector<1x16x16x128xbf16> to vector<16x16x128xbf16>
    %38 = vector.shape_cast %37 : vector<16x16x128xbf16> to vector<256x128xbf16>
    %c5 = arith.constant 5 : index
    %c0_39 = arith.constant 0 : index
    %c0_40 = arith.constant 0 : index
    %39 = vector.load %arg2[%c5, %c0_39, %c0_40] : memref<9x128x128xbf16, #tpu.memory_space<vmem>>, vector<1x128x128xbf16>
    %40 = vector.shape_cast %39 : vector<1x128x128xbf16> to vector<128x128xbf16>
    %cst_41 = arith.constant dense<0.000000e+00> : vector<256x128xf32>
    %41 = tpu.matmul %38, %40, %cst_41 {dimension_numbers = #tpu.dot_dimension_numbers<[1], [0], [0], [1], [0, 0, 1, 1], [], []>} : vector<256x128xbf16>, vector<128x128xbf16>, vector<256x128xf32> -> vector<256x128xf32>
    %42 = arith.addf %35, %41 : vector<256x128xf32>
    %c0_42 = arith.constant 0 : index
    %c2_43 = arith.constant 2 : index
    %c0_44 = arith.constant 0 : index
    %c0_45 = arith.constant 0 : index
    %43 = vector.load %arg1[%c0_42, %c2_43, %c0_44, %c0_45] : memref<1x18x18x128xbf16, #tpu.memory_space<vmem>>, vector<1x16x16x128xbf16>
    %44 = vector.shape_cast %43 : vector<1x16x16x128xbf16> to vector<16x16x128xbf16>
    %45 = vector.shape_cast %44 : vector<16x16x128xbf16> to vector<256x128xbf16>
    %c6 = arith.constant 6 : index
    %c0_46 = arith.constant 0 : index
    %c0_47 = arith.constant 0 : index
    %46 = vector.load %arg2[%c6, %c0_46, %c0_47] : memref<9x128x128xbf16, #tpu.memory_space<vmem>>, vector<1x128x128xbf16>
    %47 = vector.shape_cast %46 : vector<1x128x128xbf16> to vector<128x128xbf16>
    %cst_48 = arith.constant dense<0.000000e+00> : vector<256x128xf32>
    %48 = tpu.matmul %45, %47, %cst_48 {dimension_numbers = #tpu.dot_dimension_numbers<[1], [0], [0], [1], [0, 0, 1, 1], [], []>} : vector<256x128xbf16>, vector<128x128xbf16>, vector<256x128xf32> -> vector<256x128xf32>
    %49 = arith.addf %42, %48 : vector<256x128xf32>
    %c0_49 = arith.constant 0 : index
    %c2_50 = arith.constant 2 : index
    %c1_51 = arith.constant 1 : index
    %c0_52 = arith.constant 0 : index
    %50 = vector.load %arg1[%c0_49, %c2_50, %c1_51, %c0_52] : memref<1x18x18x128xbf16, #tpu.memory_space<vmem>>, vector<1x16x16x128xbf16>
    %51 = vector.shape_cast %50 : vector<1x16x16x128xbf16> to vector<16x16x128xbf16>
    %52 = vector.shape_cast %51 : vector<16x16x128xbf16> to vector<256x128xbf16>
    %c7 = arith.constant 7 : index
    %c0_53 = arith.constant 0 : index
    %c0_54 = arith.constant 0 : index
    %53 = vector.load %arg2[%c7, %c0_53, %c0_54] : memref<9x128x128xbf16, #tpu.memory_space<vmem>>, vector<1x128x128xbf16>
    %54 = vector.shape_cast %53 : vector<1x128x128xbf16> to vector<128x128xbf16>
    %cst_55 = arith.constant dense<0.000000e+00> : vector<256x128xf32>
    %55 = tpu.matmul %52, %54, %cst_55 {dimension_numbers = #tpu.dot_dimension_numbers<[1], [0], [0], [1], [0, 0, 1, 1], [], []>} : vector<256x128xbf16>, vector<128x128xbf16>, vector<256x128xf32> -> vector<256x128xf32>
    %56 = arith.addf %49, %55 : vector<256x128xf32>
    %c0_56 = arith.constant 0 : index
    %c2_57 = arith.constant 2 : index
    %c2_58 = arith.constant 2 : index
    %c0_59 = arith.constant 0 : index
    %57 = vector.load %arg1[%c0_56, %c2_57, %c2_58, %c0_59] : memref<1x18x18x128xbf16, #tpu.memory_space<vmem>>, vector<1x16x16x128xbf16>
    %58 = vector.shape_cast %57 : vector<1x16x16x128xbf16> to vector<16x16x128xbf16>
    %59 = vector.shape_cast %58 : vector<16x16x128xbf16> to vector<256x128xbf16>
    %c8 = arith.constant 8 : index
    %c0_60 = arith.constant 0 : index
    %c0_61 = arith.constant 0 : index
    %60 = vector.load %arg2[%c8, %c0_60, %c0_61] : memref<9x128x128xbf16, #tpu.memory_space<vmem>>, vector<1x128x128xbf16>
    %61 = vector.shape_cast %60 : vector<1x128x128xbf16> to vector<128x128xbf16>
    %cst_62 = arith.constant dense<0.000000e+00> : vector<256x128xf32>
    %62 = tpu.matmul %59, %61, %cst_62 {dimension_numbers = #tpu.dot_dimension_numbers<[1], [0], [0], [1], [0, 0, 1, 1], [], []>} : vector<256x128xbf16>, vector<128x128xbf16>, vector<256x128xf32> -> vector<256x128xf32>
    %63 = arith.addf %56, %62 : vector<256x128xf32>
    %c0_63 = arith.constant 0 : index
    %c0_64 = arith.constant 0 : index
    %64 = vector.load %arg3[%c0_63, %c0_64] : memref<1x128xf32, #tpu.memory_space<vmem>>, vector<1x128xf32>
    %65 = vector.broadcast %64 : vector<1x128xf32> to vector<256x128xf32>
    %66 = arith.addf %63, %65 : vector<256x128xf32>
    %c0_65 = arith.constant 0 : index
    %c0_66 = arith.constant 0 : index
    %c0_67 = arith.constant 0 : index
    %67 = vector.load %arg4[%c0_65, %c0_66, %c0_67] : memref<1x256x128xf32, #tpu.memory_space<vmem>>, vector<1x256x128xf32>
    %68 = vector.shape_cast %67 : vector<1x256x128xf32> to vector<256x128xf32>
    %69 = arith.addf %66, %68 : vector<256x128xf32>
    %cst_68 = arith.constant 0.000000e+00 : f32
    %70 = vector.broadcast %cst_68 : f32 to vector<256x128xf32>
    %71 = arith.maximumf %69, %70 : vector<256x128xf32>
    %c0_69 = arith.constant 0 : index
    %c0_70 = arith.constant 0 : index
    %c0_71 = arith.constant 0 : index
    %72 = vector.load %arg5[%c0_69, %c0_70, %c0_71] : memref<1x256x128xf32, #tpu.memory_space<vmem>>, vector<1x256x128xf32>
    %73 = vector.shape_cast %72 : vector<1x256x128xf32> to vector<256x128xf32>
    %74 = vector.shape_cast %71 : vector<256x128xf32> to vector<1x256x128xf32>
    tpu.vector_store %arg5[%c0_69, %c0_70, %c0_71], %74 {strides = array<i32>} : memref<1x256x128xf32, #tpu.memory_space<vmem>>, vector<1x256x128xf32>,
    return
  }
  func.func @transform_0(%arg0: i32) -> (i32, i32, i32, i32) {
    %c0_i32 = arith.constant 0 : i32
    %c0_i32_0 = arith.constant 0 : i32
    %c0_i32_1 = arith.constant 0 : i32
    %c0_i32_2 = arith.constant 0 : i32
    return %arg0, %c0_i32, %c0_i32_0, %c0_i32_1 : i32, i32, i32, i32
  }
  func.func @transform_1(%arg0: i32) -> (i32, i32, i32) {
    %c0_i32 = arith.constant 0 : i32
    %c0_i32_0 = arith.constant 0 : i32
    %c0_i32_1 = arith.constant 0 : i32
    %c0_i32_2 = arith.constant 0 : i32
    return %c0_i32, %c0_i32_0, %c0_i32_1 : i32, i32, i32
  }
  func.func @transform_2(%arg0: i32) -> (i32, i32) {
    %c0_i32 = arith.constant 0 : i32
    %c0_i32_0 = arith.constant 0 : i32
    %c0_i32_1 = arith.constant 0 : i32
    return %c0_i32, %c0_i32_0 : i32, i32
  }
  func.func @transform_3(%arg0: i32) -> (i32, i32, i32) {
    %c0_i32 = arith.constant 0 : i32
    %c0_i32_0 = arith.constant 0 : i32
    %c0_i32_1 = arith.constant 0 : i32
    return %arg0, %c0_i32, %c0_i32_0 : i32, i32, i32
  }
  func.func @transform_4(%arg0: i32) -> (i32, i32, i32) {
    %c0_i32 = arith.constant 0 : i32
    %c0_i32_0 = arith.constant 0 : i32
    %c0_i32_1 = arith.constant 0 : i32
    return %arg0, %c0_i32, %c0_i32_0 : i32, i32, i32
  }
}

module attributes {stable_mosaic.version = 11 : i64} {
  func.func @kernel(%arg0: i32, %arg1: i32, %arg2: memref<256x128xbf16, #tpu.memory_space<vmem>>, %arg3: memref<128x128xbf16, #tpu.memory_space<vmem>>, %arg4: memref<1x128xf32, #tpu.memory_space<vmem>>, %arg5: memref<256x128xf32, #tpu.memory_space<vmem>>, %arg6: memref<256x128xf32, #tpu.memory_space<vmem>>) attributes {dimension_semantics = [#tpu.dimension_semantics<parallel>, #tpu.dimension_semantics<arbitrary>], iteration_bounds = array<i64: 2, 9>, scalar_prefetch = 0 : i64, scratch_operands = 1 : i64, tpu.core_type = #tpu.core_type<tc>, window_params = [{transform_indices = @transform_0, window_bounds = array<i64: 256, 128>}, {transform_indices = @transform_1, window_bounds = array<i64: 128, 128>}, {pipeline_mode = #tpu.pipeline_mode<synchronous>, transform_indices = @transform_2, window_bounds = array<i64: 1, 128>}, {transform_indices = @transform_3, window_bounds = array<i64: 256, 128>}]} {
    %c0_i32 = arith.constant 0 : i32
    %0 = arith.cmpi eq, %arg1, %c0_i32 : i32
    %1 = arith.extui %0 : i1 to i32
    %c0_i32_0 = arith.constant 0 : i32
    %2 = arith.cmpi ne, %1, %c0_i32_0 : i32
    scf.if %2 {
      %cst_9 = arith.constant 0.000000e+00 : f32
      %12 = vector.broadcast %cst_9 : f32 to vector<256x128xf32>
      %c0_10 = arith.constant 0 : index
      %c0_11 = arith.constant 0 : index
      %13 = vector.load %arg6[%c0_10, %c0_11] : memref<256x128xf32, #tpu.memory_space<vmem>>, vector<256x128xf32>
      tpu.vector_store %arg6[%c0_10, %c0_11], %12 {strides = array<i32>} : memref<256x128xf32, #tpu.memory_space<vmem>>, vector<256x128xf32>,
    } else {
    }
    %c0 = arith.constant 0 : index
    %c0_1 = arith.constant 0 : index
    %3 = vector.load %arg6[%c0, %c0_1] : memref<256x128xf32, #tpu.memory_space<vmem>>, vector<256x128xf32>
    %c0_2 = arith.constant 0 : index
    %c0_3 = arith.constant 0 : index
    %4 = vector.load %arg2[%c0_2, %c0_3] : memref<256x128xbf16, #tpu.memory_space<vmem>>, vector<256x128xbf16>
    %c0_4 = arith.constant 0 : index
    %c0_5 = arith.constant 0 : index
    %5 = vector.load %arg3[%c0_4, %c0_5] : memref<128x128xbf16, #tpu.memory_space<vmem>>, vector<128x128xbf16>
    %cst = arith.constant dense<0.000000e+00> : vector<256x128xf32>
    %6 = tpu.matmul %4, %5, %cst {dimension_numbers = #tpu.dot_dimension_numbers<[1], [0], [0], [1], [0, 0, 1, 1], [], []>} : vector<256x128xbf16>, vector<128x128xbf16>, vector<256x128xf32> -> vector<256x128xf32>
    %7 = arith.addf %3, %6 : vector<256x128xf32>
    %c0_6 = arith.constant 0 : index
    %c0_7 = arith.constant 0 : index
    %8 = vector.load %arg6[%c0_6, %c0_7] : memref<256x128xf32, #tpu.memory_space<vmem>>, vector<256x128xf32>
    tpu.vector_store %arg6[%c0_6, %c0_7], %7 {strides = array<i32>} : memref<256x128xf32, #tpu.memory_space<vmem>>, vector<256x128xf32>,
    %c8_i32 = arith.constant 8 : i32
    %9 = arith.cmpi eq, %arg1, %c8_i32 : i32
    %10 = arith.extui %9 : i1 to i32
    %c0_i32_8 = arith.constant 0 : i32
    %11 = arith.cmpi ne, %10, %c0_i32_8 : i32
    scf.if %11 {
      %c0_9 = arith.constant 0 : index
      %c0_10 = arith.constant 0 : index
      %12 = vector.load %arg6[%c0_9, %c0_10] : memref<256x128xf32, #tpu.memory_space<vmem>>, vector<256x128xf32>
      %c0_11 = arith.constant 0 : index
      %c0_12 = arith.constant 0 : index
      %13 = vector.load %arg4[%c0_11, %c0_12] : memref<1x128xf32, #tpu.memory_space<vmem>>, vector<1x128xf32>
      %14 = vector.broadcast %13 : vector<1x128xf32> to vector<256x128xf32>
      %15 = arith.addf %12, %14 : vector<256x128xf32>
      %c0_13 = arith.constant 0 : index
      %c0_14 = arith.constant 0 : index
      %16 = vector.load %arg5[%c0_13, %c0_14] : memref<256x128xf32, #tpu.memory_space<vmem>>, vector<256x128xf32>
      tpu.vector_store %arg5[%c0_13, %c0_14], %15 {strides = array<i32>} : memref<256x128xf32, #tpu.memory_space<vmem>>, vector<256x128xf32>,
    } else {
    }
    return
  }
  func.func @transform_0(%arg0: i32, %arg1: i32) -> (i32, i32) {
    %c0_i32 = arith.constant 0 : i32
    return %arg0, %arg1 : i32, i32
  }
  func.func @transform_1(%arg0: i32, %arg1: i32) -> (i32, i32) {
    %c0_i32 = arith.constant 0 : i32
    %c0_i32_0 = arith.constant 0 : i32
    return %arg1, %c0_i32 : i32, i32
  }
  func.func @transform_2(%arg0: i32, %arg1: i32) -> (i32, i32) {
    %c0_i32 = arith.constant 0 : i32
    %c0_i32_0 = arith.constant 0 : i32
    %c0_i32_1 = arith.constant 0 : i32
    return %c0_i32, %c0_i32_0 : i32, i32
  }
  func.func @transform_3(%arg0: i32, %arg1: i32) -> (i32, i32) {
    %c0_i32 = arith.constant 0 : i32
    %c0_i32_0 = arith.constant 0 : i32
    return %arg0, %c0_i32 : i32, i32
  }
}

</mosaic_0001>

<bundles_post_ra>
// kernel: neko_reslayer_sd_forward.5
= control target key start
LH: loop header
LB: loop body
LE: loop exit
PB: predicated region body
PF: predicated region fallthrough
CT: control target
= control target key end

     0   :  { %s968_s12 = smov 0   ;;  %s970_s13 = smov 0   ;;  %s1095_s0 = inlined_call_operand.vmem [shape: bf16[512,4], index: 0, kind: input, shape index: {}]   ;;  %s1096_s1 = inlined_call_operand.vmem [shape: bf16[4,128], index: 1, kind: input, shape index: {}]   ;;  %s1097_s2 = inlined_call_operand.vmem [shape: f32[1,128], index: 2, kind: input, shape index: {}]   ;;  %s1098_s3 = inlined_call_operand.vmem [shape: f32[512,128], index: 3, kind: output, shape index: {}]  }
   0x1   :  { %s972_s14 = smov 0  }
   0x2 LB: > { %s25_s15 = sadd.s32 1, %s942_s13  ;;  %p793_p0 = scmp.ge.s32.totalorder %s946_s14, 1  ;;  %s946_s14 = sphi %s972_s14, %s13_s14   ;;  %s942_s13 = sphi %s970_s13, %s1100_s13   ;;  %s938_s12 = sphi %s968_s12, %s1099_s12  }
   0x3   : > { %p27_p1 = scmp.ge.s32.totalorder %s25_s15, 2  ;;  %p164_p2 = scmp.lt.s32.totalorder %s946_s14, 3 }
   0x5   : > { %s1102_s15 = smov (%p27_p1, %s25_s15), 0  ;;  %p165_p3 = pnand %p793_p0, %p164_p2 }
   0x6   : > { %s794_s18 = sshll.u32 (!%p165_p3), %s938_s12, 5 }
   0x7   : > { %168 = sbr.rel (%p165_p3) target bundleno = 210 (0xd2), region = 32  ;;  %p196_p4 = scmp.lt.s32.totalorder (!%p165_p3), %s794_s18, 63 }
   0xc   : > { %v315_v0 = vld [vmem:[%s1096_s1] sm:$0x3]  ;;  %vm445_vm0 = vcmask 1041408   ;;  %s1104_s18 = smov (!%p196_p4, %s794_s18), 63  ;;  %vm396_vm1 = vcmask 31744  }
   0xd   : > { %v447_v1 = vsel %vm445_vm0, %v315_v0, 0  ;;  %s795_s19 = sshll.u32 %s1104_s18, 2  ;;  %s797_s23 = sshll.u32 %s1104_s18, 3  ;;  %v1015_v18 = vld [vmem:[%s1097_s2] ss:$0 sm:$0xff] }
   0xe   : > { %456 = vmatpush.bf16.msra.mxu0 %v447_v1  ;;  %896 = vmatpush.bf16.msra.mxu1 %v447_v1  ;;  %s202_s22 = scalar_lea.vmem %s1095_s0, %s795_s19  ;;  %s1020_s28 = scalar_lea.vmem %s1098_s3, %s797_s23 }
   0xf   : > { %897 = vmatpush.bf16.msra.mxu2 %v447_v1  ;;  %898 = vmatpush.bf16.msra.mxu3 %v447_v1  ;;  %v880_v2 = vld [vmem:[%s202_s22] sm:$0xff]  ;;  %v881_v6 = vld [vmem:[%s202_s22 + $0x8] sm:$0xff]  ;;  %v882_v10 = vld [vmem:[%s202_s22 + $0x10] sm:$0xff] }
  0x10   : > { %v884_v3 = vld [vmem:[%s202_s22 + $0x20] sm:$0xff]  ;;  %v885_v7 = vld [vmem:[%s202_s22 + $0x28] sm:$0xff]  ;;  %v886_v11 = vld [vmem:[%s202_s22 + $0x30] sm:$0xff] }
  0x11   : > { %v888_v4 = vld [vmem:[%s202_s22 + $0x40] sm:$0xff]  ;;  %862 = vmatmul.msk.bf16.vlgmr.msra.gmra.mxu0 %vm396_vm1, %v880_v2  ;;  %866 = vmatmul.msk.bf16.vlgmr.msra.gmra.mxu1 %vm396_vm1, %v884_v3  ;;  %v889_v8 = vld [vmem:[%s202_s22 + $0x48] sm:$0xff]  ;;  %v890_v12 = vld [vmem:[%s202_s22 + $0x50] sm:$0xff] }
  0x12   : > { %v892_v5 = vld [vmem:[%s202_s22 + $0x60] sm:$0xff]  ;;  %870 = vmatmul.msk.bf16.vlgmr.msra.gmra.mxu2 %vm396_vm1, %v888_v4  ;;  %v893_v9 = vld [vmem:[%s202_s22 + $0x68] sm:$0xff]  ;;  %v894_v13 = vld [vmem:[%s202_s22 + $0x70] sm:$0xff] }
  0x13   : > { %874 = vmatmul.msk.bf16.vlgmr.msra.gmra.mxu3 %vm396_vm1, %v892_v5  ;;  %v883_v14 = vld [vmem:[%s202_s22 + $0x18] sm:$0xff] }
  0x14   : > { %v887_v15 = vld [vmem:[%s202_s22 + $0x38] sm:$0xff] }
  0x15   : > { %v891_v16 = vld [vmem:[%s202_s22 + $0x58] sm:$0xff] }
  0x16   : > { %v895_v17 = vld [vmem:[%s202_s22 + $0x78] sm:$0xff] }
  0x21   : > { %863 = vmatmul.msk.bf16.gmra.mxu0 %vm396_vm1, %v881_v6  ;;  %867 = vmatmul.msk.bf16.gmra.mxu1 %vm396_vm1, %v885_v7 }
  0x22   : > { %871 = vmatmul.msk.bf16.gmra.mxu2 %vm396_vm1, %v889_v8 }
  0x23   : > { %875 = vmatmul.msk.bf16.gmra.mxu3 %vm396_vm1, %v893_v9 }
  0x31   : > { %864 = vmatmul.msk.bf16.gmra.mxu0 %vm396_vm1, %v882_v10  ;;  %868 = vmatmul.msk.bf16.gmra.mxu1 %vm396_vm1, %v886_v11 }
  0x32   : > { %872 = vmatmul.msk.bf16.gmra.mxu2 %vm396_vm1, %v890_v12 }
  0x33   : > { %876 = vmatmul.msk.bf16.gmra.mxu3 %vm396_vm1, %v894_v13 }
  0x41   : > { %865 = vmatmul.msk.bf16.gmra.mxu0 %vm396_vm1, %v883_v14  ;;  %869 = vmatmul.msk.bf16.gmra.mxu1 %vm396_vm1, %v887_v15 }
  0x42   : > { %873 = vmatmul.msk.bf16.gmra.mxu2 %vm396_vm1, %v891_v16 }
  0x43   : > { %877 = vmatmul.msk.bf16.gmra.mxu3 %vm396_vm1, %v895_v17 }
  0x8e   : > { %v458_v19 = vpop.f32.mrf.mxu0  ;;  %v478_v20 = vpop.f32.mrf.mxu1 }
  0x8f   : > { %v641_v21 = vadd.f32 %v1015_v18, %v458_v19  ;;  %v649_v22 = vadd.f32 %v1015_v18, %v478_v20 }
  0x91   : > { %673 = vst [vmem:[%s1020_s28] sm:$0xff] %v641_v21 }
  0x92   : > { %681 = vst [vmem:[%s1020_s28 + $0x40] sm:$0xff] %v649_v22 }
  0x95   : > { %v498_v23 = vpop.f32.mrf.mxu2 }
  0x96   : > { %v518_v24 = vpop.f32.mrf.mxu3  ;;  %v657_v25 = vadd.f32 %v1015_v18, %v498_v23  ;;  %v460_v27 = vpop.f32.mrf.mxu0 }
  0x97   : > { %v665_v26 = vadd.f32 %v1015_v18, %v518_v24  ;;  %v480_v28 = vpop.f32.mrf.mxu1  ;;  %v642_v29 = vadd.f32 %v1015_v18, %v460_v27 }
  0x98   : > { %v650_v30 = vadd.f32 %v1015_v18, %v480_v28  ;;  %689 = vst [vmem:[%s1020_s28 + $0x80] sm:$0xff] %v657_v25 }
  0x99   : > { %697 = vst [vmem:[%s1020_s28 + $0xc0] sm:$0xff] %v665_v26 }
  0x9a   : > { %674 = vst [vmem:[%s1020_s28 + $0x8] sm:$0xff] %v642_v29 }
  0x9b   : > { %682 = vst [vmem:[%s1020_s28 + $0x48] sm:$0xff] %v650_v30 }
  0x9d   : > { %v500_v31 = vpop.f32.mrf.mxu2 }
  0x9e   : > { %v520_v32 = vpop.f32.mrf.mxu3  ;;  %v658_v33 = vadd.f32 %v1015_v18, %v500_v31  ;;  %v463_v35 = vpop.f32.mrf.mxu0 }
  0x9f   : > { %v666_v34 = vadd.f32 %v1015_v18, %v520_v32  ;;  %v483_v36 = vpop.f32.mrf.mxu1  ;;  %v643_v37 = vadd.f32 %v1015_v18, %v463_v35 }
  0xa0   : > { %v651_v38 = vadd.f32 %v1015_v18, %v483_v36  ;;  %690 = vst [vmem:[%s1020_s28 + $0x88] sm:$0xff] %v658_v33 }
  0xa1   : > { %698 = vst [vmem:[%s1020_s28 + $0xc8] sm:$0xff] %v666_v34 }
  0xa2   : > { %675 = vst [vmem:[%s1020_s28 + $0x10] sm:$0xff] %v643_v37 }
  0xa3   : > { %683 = vst [vmem:[%s1020_s28 + $0x50] sm:$0xff] %v651_v38 }
  0xa5   : > { %v503_v39 = vpop.f32.mrf.mxu2 }
  0xa6   : > { %v523_v40 = vpop.f32.mrf.mxu3  ;;  %v659_v41 = vadd.f32 %v1015_v18, %v503_v39  ;;  %v465_v43 = vpop.f32.mrf.mxu0 }
  0xa7   : > { %v667_v42 = vadd.f32 %v1015_v18, %v523_v40  ;;  %v485_v44 = vpop.f32.mrf.mxu1  ;;  %v644_v45 = vadd.f32 %v1015_v18, %v465_v43 }
  0xa8   : > { %v652_v46 = vadd.f32 %v1015_v18, %v485_v44  ;;  %691 = vst [vmem:[%s1020_s28 + $0x90] sm:$0xff] %v659_v41 }
  0xa9   : > { %699 = vst [vmem:[%s1020_s28 + $0xd0] sm:$0xff] %v667_v42 }
  0xaa   : > { %676 = vst [vmem:[%s1020_s28 + $0x18] sm:$0xff] %v644_v45 }
  0xab   : > { %684 = vst [vmem:[%s1020_s28 + $0x58] sm:$0xff] %v652_v46 }
  0xad   : > { %v505_v47 = vpop.f32.mrf.mxu2 }
  0xae   : > { %v525_v48 = vpop.f32.mrf.mxu3  ;;  %v660_v49 = vadd.f32 %v1015_v18, %v505_v47  ;;  %v468_v51 = vpop.f32.mrf.mxu0 }
  0xaf   : > { %v668_v50 = vadd.f32 %v1015_v18, %v525_v48  ;;  %v488_v52 = vpop.f32.mrf.mxu1  ;;  %v645_v53 = vadd.f32 %v1015_v18, %v468_v51 }
  0xb0   : > { %v653_v54 = vadd.f32 %v1015_v18, %v488_v52  ;;  %692 = vst [vmem:[%s1020_s28 + $0x98] sm:$0xff] %v660_v49 }
  0xb1   : > { %700 = vst [vmem:[%s1020_s28 + $0xd8] sm:$0xff] %v668_v50 }
  0xb2   : > { %677 = vst [vmem:[%s1020_s28 + $0x20] sm:$0xff] %v645_v53 }
  0xb3   : > { %685 = vst [vmem:[%s1020_s28 + $0x60] sm:$0xff] %v653_v54 }
  0xb5   : > { %v508_v55 = vpop.f32.mrf.mxu2 }
  0xb6   : > { %v528_v56 = vpop.f32.mrf.mxu3  ;;  %v661_v57 = vadd.f32 %v1015_v18, %v508_v55  ;;  %v470_v59 = vpop.f32.mrf.mxu0 }
  0xb7   : > { %v669_v58 = vadd.f32 %v1015_v18, %v528_v56  ;;  %v490_v60 = vpop.f32.mrf.mxu1  ;;  %v646_v61 = vadd.f32 %v1015_v18, %v470_v59 }
  0xb8   : > { %v654_v62 = vadd.f32 %v1015_v18, %v490_v60  ;;  %693 = vst [vmem:[%s1020_s28 + $0xa0] sm:$0xff] %v661_v57 }
  0xb9   : > { %701 = vst [vmem:[%s1020_s28 + $0xe0] sm:$0xff] %v669_v58 }
  0xba   : > { %678 = vst [vmem:[%s1020_s28 + $0x28] sm:$0xff] %v646_v61 }
  0xbb   : > { %686 = vst [vmem:[%s1020_s28 + $0x68] sm:$0xff] %v654_v62 }
  0xbd   : > { %v510_v63 = vpop.f32.mrf.mxu2 }
  0xbe   : > { %v530_v0 = vpop.f32.mrf.mxu3  ;;  %v662_v1 = vadd.f32 %v1015_v18, %v510_v63  ;;  %v473_v3 = vpop.f32.mrf.mxu0 }
  0xbf   : > { %v670_v2 = vadd.f32 %v1015_v18, %v530_v0  ;;  %v493_v4 = vpop.f32.mrf.mxu1  ;;  %v647_v5 = vadd.f32 %v1015_v18, %v473_v3 }
  0xc0   : > { %v655_v6 = vadd.f32 %v1015_v18, %v493_v4  ;;  %694 = vst [vmem:[%s1020_s28 + $0xa8] sm:$0xff] %v662_v1 }
  0xc1   : > { %702 = vst [vmem:[%s1020_s28 + $0xe8] sm:$0xff] %v670_v2 }
  0xc2   : > { %679 = vst [vmem:[%s1020_s28 + $0x30] sm:$0xff] %v647_v5 }
  0xc3   : > { %687 = vst [vmem:[%s1020_s28 + $0x70] sm:$0xff] %v655_v6 }
  0xc5   : > { %v513_v7 = vpop.f32.mrf.mxu2 }
  0xc6   : > { %v533_v8 = vpop.f32.mrf.mxu3  ;;  %v663_v9 = vadd.f32 %v1015_v18, %v513_v7  ;;  %v475_v11 = vpop.f32.mrf.mxu0 }
  0xc7   : > { %v671_v10 = vadd.f32 %v1015_v18, %v533_v8  ;;  %v495_v12 = vpop.f32.mrf.mxu1  ;;  %v648_v13 = vadd.f32 %v1015_v18, %v475_v11 }
  0xc8   : > { %v656_v14 = vadd.f32 %v1015_v18, %v495_v12  ;;  %695 = vst [vmem:[%s1020_s28 + $0xb0] sm:$0xff] %v663_v9 }
  0xc9   : > { %703 = vst [vmem:[%s1020_s28 + $0xf0] sm:$0xff] %v671_v10 }
  0xca   : > { %680 = vst [vmem:[%s1020_s28 + $0x38] sm:$0xff] %v648_v13 }
  0xcb   : > { %688 = vst [vmem:[%s1020_s28 + $0x78] sm:$0xff] %v656_v14 }
  0xcd   : > { %v515_v15 = vpop.f32.mrf.mxu2 }
  0xce   : > { %v535_v16 = vpop.f32.mrf.mxu3  ;;  %v664_v17 = vadd.f32 %v1015_v18, %v515_v15 }
  0xcf   : > { %v672_v19 = vadd.f32 %v1015_v18, %v535_v16 }
  0xd0   : > { %696 = vst [vmem:[%s1020_s28 + $0xb8] sm:$0xff] %v664_v17 }
  0xd1   : > { %704 = vst [vmem:[%s1020_s28 + $0xf8] sm:$0xff] %v672_v19 }
  0xd2 PF: > { %s13_s14 = sadd.s32 1, %s946_s14   ;;  %s1099_s12 = smov %s942_s13 }
  0xd3   : > { %p10_p5 = scmp.ge.s32.totalorder %s13_s14, 4   ;;  %s1100_s13 = smov %s1102_s15 }
  0xd5   :  { %12 = sbr.rel (!%p10_p5) target bundleno = 2 (0x2), region = 73 }

// kernel: neko_reslayer_sd_forward.4
= control target key start
LH: loop header
LB: loop body
LE: loop exit
PB: predicated region body
PF: predicated region fallthrough
CT: control target
= control target key end

     0   :  { %s5100_s12 = smov 0   ;;  %s6489_s0 = inlined_call_operand.vmem [shape: bf16[2,18,18,4], index: 0, kind: input, shape index: {}]   ;;  %s6490_s1 = inlined_call_operand.vmem [shape: bf16[9,4,128], index: 1, kind: input, shape index: {}]   ;;  %s6491_s2 = inlined_call_operand.vmem [shape: f32[1,128], index: 2, kind: input, shape index: {}]   ;;  %s6492_s3 = inlined_call_operand.vmem [shape: bf16[2,256,128], index: 3, kind: output, shape index: {}]  }
   0x1 LB: > { %s4270_s13 = sadd.s32 4294967295, %s5078_s12   ;;  %p4274_p0 = scmp.ge.s32.totalorder %s5078_s12, 1  ;;  %s5078_s12 = sphi %s5100_s12, %s13_s12  }
   0x2   : > { %p137_p1 = scmp.lt.s32.totalorder %s5078_s12, 3 }
   0x4   : > { %p138_p2 = pnand %p4274_p0, %p137_p1 }
   0x6   : > { %141 = sbr.rel (%p138_p2) target bundleno = 760 (0x2f8), region = 32 }
   0xb   : > { %v4278_v0 = vld [vmem:[%s6490_s1 + $0x2] sm:$0x3]  ;;  %vm707_vm0 = vcmask 1041408   ;;  %p161_p3 = scmp.lt.s32.totalorder %s4270_s13, 1  ;;  %v4391_v2 = vld [vmem:[%s6490_s1 + $0x4] sm:$0x3] }
   0xc   : > { %v709_v1 = vsel %vm707_vm0, %v4278_v0, 0  ;;  %v1282_v3 = vsel %vm707_vm0, %v4391_v2, 0  ;;  %v4440_v4 = vld [vmem:[%s6490_s1 + $0x6] sm:$0x3]  ;;  %v204_v5 = vld [vmem:[%s6490_s1] sm:$0x3] }
   0xd   : > { %5008 = vmatpush.bf16.msra.mxu1 %v709_v1  ;;  %5009 = vmatpush.bf16.msra.mxu2 %v709_v1  ;;  %s6502_s13 = smov (!%p161_p3, %s4270_s13), 1  ;;  %v4569_v6 = vld [vmem:[%s6490_s1 + $0x8] sm:$0x3]  ;;  %v1569_v7 = vsel %vm707_vm0, %v4440_v4, 0  ;;  %v929_v8 = vsel %vm707_vm0, %v204_v5, 0  ;;  %vm658_vm4 = vcmask 31744  }
   0xe   : > { %5010 = vmatpush.bf16.msra.mxu3 %v709_v1  ;;  %718 = vmatpush.bf16.msra.mxu0 %v709_v1  ;;  %s5011_s24 = smul.u32 216, %s6502_s13  ;;  %v2223_v9 = vsel %vm707_vm0, %v4569_v6, 0  ;;  %vm221_vm1 = vsmask.f32 3328  ;;  %vm222_vm2 = vsmask.f32 7440 }
   0xf   : > { %vm5146_vm3 = vmor %vm221_vm1, %vm222_vm2  ;;  %vm1068_vm5 = vcmask 1042432   ;;  %vm1069_vm6 = vcmask 1046532   ;;  %s4864_s11 = sshll.u32 %s6502_s13, 7 }
  0x10   : > { %s5134_s27 = scalar_lea.vmem %s6489_s0, %s5011_s24  ;;  %vm5320_vm7 = vmor %vm1068_vm5, %vm1069_vm6  ;;  %s6220_s15 = scalar_lea.vmem %s6492_s3, %s4864_s11 }
  0x11   : > { %1291 = vmatpush.bf16.msrb.mxu2 %v1282_v3  ;;  %938 = vmatpush.bf16.msrb.mxu1 %v929_v8  ;;  %v180_v10 = vld [vmem:[%s5134_s27 + $0x30] sm:$0xf]  ;;  %v181_v11 = vld [vmem:[%s5134_s27 + $0x34] sm:$0xf]  ;;  %v209_v12 = vld [vmem:[%s5134_s27 + $0x38] sm:$0x1] }
  0x12   : > { %1578 = vmatpush.bf16.msrb.mxu3 %v1569_v7  ;;  %2232 = vmatpush.bf16.msrb.mxu0 %v2223_v9  ;;  %v321_v13 = vshrl.u32 %v180_v10, 16  ;;  %v324_v14 = vshll.u32 %v180_v10, 16  ;;  %v330_v15 = vshll.u32 %v181_v11, 16  ;;  %v334_v16 = vshrl.u32 %v181_v11, 16  ;;  %v188_v17 = vld [vmem:[%s5134_s27 + $0x60] sm:$0xf] }
  0x13   : > { %v340_v18 = vshll.u32 %v209_v12, 16  ;;  %v189_v19 = vld [vmem:[%s5134_s27 + $0x64] sm:$0xf]  ;;  %v213_v20 = vld [vmem:[%s5134_s27 + $0x68] sm:$0x1]  ;;  %v417_v21 = vshrl.u32 %v188_v17, 16 }
  0x14   : > { %v323_v22 = vrot.slane %v321_v13, 4  ;;  %v326_v23 = vrot.slane %v324_v14, 5  ;;  %v332_v24 = vrot.slane %v330_v15, 5  ;;  %v336_v25 = vrot.slane %v334_v16, 4  ;;  %v196_v26 = vld [vmem:[%s5134_s27 + $0x90] sm:$0xf] }
  0x15   : > { %v342_v27 = vrot.slane %v340_v18, 5  ;;  %v419_v28 = vrot.slane %v417_v21, 4  ;;  %v420_v29 = vshll.u32 %v188_v17, 16  ;;  %v426_v30 = vshll.u32 %v189_v19, 16  ;;  %v197_v35 = vld [vmem:[%s5134_s27 + $0x94] sm:$0xf] }
  0x16   : > { %v327_v31 = vor.u32 %v326_v23, %v323_v22  ;;  %v337_v32 = vor.u32 %v336_v25, %v332_v24  ;;  %v430_v33 = vshrl.u32 %v189_v19, 16  ;;  %v436_v34 = vshll.u32 %v213_v20, 16  ;;  %v217_v45 = vld [vmem:[%s5134_s27 + $0x98] sm:$0x1]  ;;  %v172_v61 = vld [vmem:[%s5134_s27] sm:$0xf] }
  0x17   : > { %v422_v37 = vrot.slane %v420_v29, 5  ;;  %v428_v38 = vrot.slane %v426_v30, 5  ;;  %v513_v39 = vshrl.u32 %v196_v26, 16  ;;  %v516_v47 = vshll.u32 %v196_v26, 16  ;;  %v5159_v1 = vld [vmem:[%s5134_s27 + $0x4] sm:$0xf] }
  0x18   : > { %v328_v40 = vrot.slane %v327_v31, 4  ;;  %v338_v41 = vrot.slane %v337_v32, 4  ;;  %v432_v42 = vrot.slane %v430_v33, 4  ;;  %v438_v43 = vrot.slane %v436_v34, 5  ;;  %v5162_v2 = vld [vmem:[%s5134_s27 + $0x8] sm:$0x1] }
  0x19   : > { %v423_v44 = vor.u32 %v422_v37, %v419_v28  ;;  %v515_v46 = vrot.slane %v513_v39, 4  ;;  %v522_v48 = vshll.u32 %v197_v35, 16  ;;  %v526_v52 = vshrl.u32 %v197_v35, 16  ;;  %v182_v19 = vld [vmem:[%s5134_s27 + $0x3c] sm:$0xf] }
  0x1a   : > { %v333_v49 = vsel %vm5146_vm3, %v328_v40, %v332_v24  ;;  %v343_v50 = vsel %vm5146_vm3, %v338_v41, %v342_v27  ;;  %v433_v51 = vor.u32 %v432_v42, %v428_v38  ;;  %v518_v56 = vrot.slane %v516_v47, 5  ;;  %v5174_v20 = vld [vmem:[%s5134_s27 + $0x40] sm:$0xf]  ;;  %v5179_v25 = vld [vmem:[%s5134_s27 + $0x44] sm:$0x1] }
  0x1b   : > { %v618_v53 = vunpack.c.l.b16 %v333_v49  ;;  %v619_v54 = vunpack.c.l.b16 %v343_v50  ;;  %v424_v55 = vrot.slane %v423_v44, 4  ;;  %v524_v58 = vrot.slane %v522_v48, 5  ;;  %v190_v33 = vld [vmem:[%s5134_s27 + $0x6c] sm:$0xf]  ;;  %v214_v47 = vld [vmem:[%s5134_s27 + $0x74] sm:$0x1] }
  0x1c   : > { %v434_v57 = vrot.slane %v433_v51, 4  ;;  %v528_v59 = vrot.slane %v526_v52, 4  ;;  %v532_v60 = vshll.u32 %v217_v45, 16  ;;  %v519_v0 = vor.u32 %v518_v56, %v515_v46 }
  0x1d   : > { %v646_v62 = vpack.c.b16 %v619_v54, %v618_v53  ;;  %v429_v63 = vsel %vm5146_vm3, %v424_v55, %v428_v38  ;;  %v225_v9 = vshrl.u32 %v172_v61, 16  ;;  %v228_v10 = vshll.u32 %v172_v61, 16  ;;  %v198_v61 = vld [vmem:[%s5134_s27 + $0x9c] sm:$0xf] }
  0x1e   : > { %v439_v3 = vsel %vm5146_vm3, %v434_v57, %v438_v43  ;;  %v626_v4 = vunpack.c.l.b16 %v429_v63  ;;  %v529_v5 = vor.u32 %v528_v59, %v524_v58  ;;  %v534_v6 = vrot.slane %v532_v60, 5  ;;  %v191_v43 = vld [vmem:[%s5134_s27 + $0x70] sm:$0xf] }
  0x1f   : > { %4283 = vmatmul.msk.bf16.vlgmr.msra.gmra.mxu1 %vm658_vm4, %v646_v62  ;;  %v627_v7 = vunpack.c.l.b16 %v439_v3  ;;  %v520_v8 = vrot.slane %v519_v0, 4  ;;  %v234_v12 = vshll.u32 %v5159_v1, 16  ;;  %v238_v13 = vshrl.u32 %v5159_v1, 16  ;;  %v199_v3 = vld [vmem:[%s5134_s27 + $0xa0] sm:$0xf] }
  0x20   : > { %v530_v11 = vrot.slane %v529_v5, 4  ;;  %v244_v14 = vshll.u32 %v5162_v2, 16  ;;  %v227_v17 = vrot.slane %v225_v9, 4  ;;  %v230_v18 = vrot.slane %v228_v10, 5 }
  0x21   : > { %v650_v15 = vpack.c.b16 %v627_v7, %v626_v4  ;;  %v525_v16 = vsel %vm5146_vm3, %v520_v8, %v524_v58  ;;  %v236_v23 = vrot.slane %v234_v12, 5  ;;  %v240_v24 = vrot.slane %v238_v13, 4  ;;  %v218_v8 = vld [vmem:[%s5134_s27 + $0xa4] sm:$0x1] }
  0x22   : > { %v535_v21 = vsel %vm5146_vm3, %v530_v11, %v534_v6  ;;  %v634_v22 = vunpack.c.l.b16 %v525_v16  ;;  %v231_v27 = vor.u32 %v230_v18, %v227_v17  ;;  %v246_v28 = vrot.slane %v244_v14, 5 }
  0x23   : > { %4287 = vmatmul.msk.bf16.vlgmr.msra.gmra.mxu2 %vm658_vm4, %v650_v15  ;;  %v635_v26 = vunpack.c.l.b16 %v535_v21  ;;  %v241_v29 = vor.u32 %v240_v24, %v236_v23  ;;  %v345_v30 = vshrl.u32 %v182_v19, 16  ;;  %v348_v31 = vshll.u32 %v182_v19, 16 }
  0x24   : > { %v354_v32 = vshll.u32 %v5174_v20, 16  ;;  %v232_v35 = vrot.slane %v231_v27, 4  ;;  %v358_v37 = vshrl.u32 %v5174_v20, 16  ;;  %v364_v38 = vshll.u32 %v5179_v25, 16 }
  0x25   : > { %v654_v34 = vpack.c.b16 %v635_v26, %v634_v22  ;;  %v242_v39 = vrot.slane %v241_v29, 4  ;;  %v347_v40 = vrot.slane %v345_v30, 4  ;;  %v350_v41 = vrot.slane %v348_v31, 5  ;;  %v174_v22 = vld [vmem:[%s5134_s27 + $0xc] sm:$0xf] }
  0x26   : > { %v356_v42 = vrot.slane %v354_v32, 5  ;;  %v237_v44 = vsel %vm5146_vm3, %v232_v35, %v236_v23  ;;  %v360_v45 = vrot.slane %v358_v37, 4  ;;  %v366_v46 = vrot.slane %v364_v38, 5  ;;  %v5208_v32 = vld [vmem:[%s5134_s27 + $0x14] sm:$0x1] }
  0x27   : > { %4291 = vmatmul.msk.bf16.vlgmr.msra.gmra.mxu3 %vm658_vm4, %v654_v34  ;;  %v441_v48 = vshrl.u32 %v190_v33, 16  ;;  %v247_v49 = vsel %vm5146_vm3, %v242_v39, %v246_v28  ;;  %v610_v50 = vunpack.c.l.b16 %v237_v44  ;;  %v351_v51 = vor.u32 %v350_v41, %v347_v40  ;;  %v5205_v28 = vld [vmem:[%s5134_s27 + $0x10] sm:$0xf] }
  0x28   : > { %v444_v52 = vshll.u32 %v190_v33, 16  ;;  %v611_v53 = vunpack.c.l.b16 %v247_v49  ;;  %v361_v54 = vor.u32 %v360_v45, %v356_v42  ;;  %v450_v56 = vshll.u32 %v191_v43, 16 }
  0x29   : > { %v443_v55 = vrot.slane %v441_v48, 4  ;;  %v352_v57 = vrot.slane %v351_v51, 4  ;;  %v454_v59 = vshrl.u32 %v191_v43, 16  ;;  %v460_v60 = vshll.u32 %v214_v47, 16  ;;  %v5218_v47 = vld [vmem:[%s5134_s27 + $0x4c] sm:$0xf] }
  0x2a   : > { %v446_v58 = vrot.slane %v444_v52, 5  ;;  %v642_v62 = vpack.c.b16 %v611_v53, %v610_v50  ;;  %v362_v63 = vrot.slane %v361_v54, 4  ;;  %v452_v0 = vrot.slane %v450_v56, 5  ;;  %v5223_v56 = vld [vmem:[%s5134_s27 + $0x50] sm:$0x1] }
  0x2b   : > { %v357_v4 = vsel %vm5146_vm3, %v352_v57, %v356_v42  ;;  %v456_v6 = vrot.slane %v454_v59, 4  ;;  %v462_v7 = vrot.slane %v460_v60, 5  ;;  %v537_v11 = vshrl.u32 %v198_v61, 16  ;;  %v184_v42 = vld [vmem:[%s5134_s27 + $0x48] sm:$0xf] }
  0x2c   : > { %v447_v5 = vor.u32 %v446_v58, %v443_v55  ;;  %4279 = vmatmul.msk.bf16.vlgmr.msra.gmra.mxu0 %vm658_vm4, %v642_v62  ;;  %v367_v9 = vsel %vm5146_vm3, %v362_v63, %v366_v46  ;;  %v620_v10 = vunpack.c.l.b16 %v357_v4  ;;  %v540_v12 = vshll.u32 %v198_v61, 16 }
  0x2d   : > { %v621_v13 = vunpack.c.l.b16 %v367_v9  ;;  %v457_v15 = vor.u32 %v456_v6, %v452_v0  ;;  %v546_v16 = vshll.u32 %v199_v3, 16  ;;  %v539_v17 = vrot.slane %v537_v11, 4 }
  0x2e   : > { %v448_v14 = vrot.slane %v447_v5, 4  ;;  %v542_v18 = vrot.slane %v540_v12, 5  ;;  %v550_v19 = vshrl.u32 %v199_v3, 16  ;;  %v556_v21 = vshll.u32 %v218_v8, 16  ;;  %v192_v3 = vld [vmem:[%s5134_s27 + $0x78] sm:$0xf] }
  0x2f   : > { %v647_v23 = vpack.c.b16 %v621_v13, %v620_v10  ;;  %v458_v26 = vrot.slane %v457_v15, 4  ;;  %v548_v27 = vrot.slane %v546_v16, 5  ;;  %v249_v35 = vshrl.u32 %v174_v22, 16  ;;  %v193_v8 = vld [vmem:[%s5134_s27 + $0x7c] sm:$0xf] }
  0x30   : > { %v453_v24 = vsel %vm5146_vm3, %v448_v14, %v452_v0  ;;  %v543_v30 = vor.u32 %v542_v18, %v539_v17  ;;  %v552_v31 = vrot.slane %v550_v19, 4  ;;  %v558_v34 = vrot.slane %v556_v21, 5  ;;  %v215_v16 = vld [vmem:[%s5134_s27 + $0x80] sm:$0x1] }
  0x31   : > { %v628_v29 = vunpack.c.l.b16 %v453_v24  ;;  %4284 = vmatmul.msk.bf16.gmra.mxu1 %vm658_vm4, %v647_v23  ;;  %v463_v33 = vsel %vm5146_vm3, %v458_v26, %v462_v7  ;;  %v252_v37 = vshll.u32 %v174_v22, 16  ;;  %v258_v41 = vshll.u32 %v5205_v28, 16 }
  0x32   : > { %v629_v38 = vunpack.c.l.b16 %v463_v33  ;;  %v544_v39 = vrot.slane %v543_v30, 4  ;;  %v553_v40 = vor.u32 %v552_v31, %v548_v27  ;;  %v251_v43 = vrot.slane %v249_v35, 4 }
  0x33   : > { %v254_v44 = vrot.slane %v252_v37, 5  ;;  %v262_v45 = vshrl.u32 %v5205_v28, 16  ;;  %v268_v46 = vshll.u32 %v5208_v32, 16  ;;  %v260_v51 = vrot.slane %v258_v41, 5 }
  0x34   : > { %v651_v48 = vpack.c.b16 %v629_v38, %v628_v29  ;;  %v549_v49 = vsel %vm5146_vm3, %v544_v39, %v548_v27  ;;  %v554_v50 = vrot.slane %v553_v40, 4  ;;  %v369_v58 = vshrl.u32 %v184_v42, 16  ;;  %v201_v39 = vld [vmem:[%s5134_s27 + $0xac] sm:$0xf]  ;;  %v219_v40 = vld [vmem:[%s5134_s27 + $0xb0] sm:$0x1] }
  0x35   : > { %v636_v52 = vunpack.c.l.b16 %v549_v49  ;;  %v255_v53 = vor.u32 %v254_v44, %v251_v43  ;;  %v264_v54 = vrot.slane %v262_v45, 4  ;;  %v270_v55 = vrot.slane %v268_v46, 5 }
  0x36   : > { %4288 = vmatmul.msk.bf16.gmra.mxu2 %vm658_vm4, %v651_v48  ;;  %v559_v57 = vsel %vm5146_vm3, %v554_v50, %v558_v34  ;;  %v372_v59 = vshll.u32 %v184_v42, 16  ;;  %v378_v60 = vshll.u32 %v5218_v47, 16  ;;  %v382_v0 = vshrl.u32 %v5218_v47, 16  ;;  %v200_v34 = vld [vmem:[%s5134_s27 + $0xa8] sm:$0xf] }
  0x37   : > { %v637_v61 = vunpack.c.l.b16 %v559_v57  ;;  %v256_v62 = vrot.slane %v255_v53, 4  ;;  %v265_v63 = vor.u32 %v264_v54, %v260_v51  ;;  %v371_v4 = vrot.slane %v369_v58, 4 }
  0x38   : > { %v374_v5 = vrot.slane %v372_v59, 5  ;;  %v380_v6 = vrot.slane %v378_v60, 5  ;;  %v388_v7 = vshll.u32 %v5223_v56, 16  ;;  %v384_v12 = vrot.slane %v382_v0, 4  ;;  %v176_v59 = vld [vmem:[%s5134_s27 + $0x18] sm:$0xf] }
  0x39   : > { %v655_v9 = vpack.c.b16 %v637_v61, %v636_v52  ;;  %v261_v10 = vsel %vm5146_vm3, %v256_v62, %v260_v51  ;;  %v266_v11 = vrot.slane %v265_v63, 4  ;;  %v465_v17 = vshrl.u32 %v192_v3, 16  ;;  %v5251_v63 = vld [vmem:[%s5134_s27 + $0x1c] sm:$0xf]  ;;  %v5254_v0 = vld [vmem:[%s5134_s27 + $0x20] sm:$0x1] }
  0x3a   : > { %v612_v13 = vunpack.c.l.b16 %v261_v10  ;;  %v375_v14 = vor.u32 %v374_v5, %v371_v4  ;;  %v390_v15 = vrot.slane %v388_v7, 5  ;;  %v385_v19 = vor.u32 %v384_v12, %v380_v6 }
  0x3b   : > { %4292 = vmatmul.msk.bf16.gmra.mxu3 %vm658_vm4, %v655_v9  ;;  %v271_v18 = vsel %vm5146_vm3, %v266_v11, %v270_v55  ;;  %v468_v21 = vshll.u32 %v192_v3, 16  ;;  %v474_v22 = vshll.u32 %v193_v8, 16  ;;  %v467_v26 = vrot.slane %v465_v17, 4 }
  0x3c   : > { %v613_v23 = vunpack.c.l.b16 %v271_v18  ;;  %v376_v24 = vrot.slane %v375_v14, 4  ;;  %v478_v27 = vshrl.u32 %v193_v8, 16  ;;  %v386_v29 = vrot.slane %v385_v19, 4 }
  0x3d   : > { %v470_v30 = vrot.slane %v468_v21, 5  ;;  %v476_v31 = vrot.slane %v474_v22, 5  ;;  %v484_v33 = vshll.u32 %v215_v16, 16  ;;  %v561_v48 = vshrl.u32 %v200_v34, 16  ;;  %v5264_v21 = vld [vmem:[%s5134_s27 + $0x58] sm:$0xf] }
  0x3e   : > { %v643_v35 = vpack.c.b16 %v613_v23, %v612_v13  ;;  %v381_v37 = vsel %vm5146_vm3, %v376_v24, %v380_v6  ;;  %v480_v38 = vrot.slane %v478_v27, 4  ;;  %v391_v41 = vsel %vm5146_vm3, %v386_v29, %v390_v15  ;;  %v186_v15 = vld [vmem:[%s5134_s27 + $0x54] sm:$0xf]  ;;  %v5269_v27 = vld [vmem:[%s5134_s27 + $0x5c] sm:$0x1] }
  0x3f   : > { %v622_v42 = vunpack.c.l.b16 %v381_v37  ;;  %v471_v43 = vor.u32 %v470_v30, %v467_v26  ;;  %v486_v44 = vrot.slane %v484_v33, 5  ;;  %v623_v45 = vunpack.c.l.b16 %v391_v41 }
  0x40   : > { %4280 = vmatmul.msk.bf16.gmra.mxu0 %vm658_vm4, %v643_v35  ;;  %v481_v46 = vor.u32 %v480_v38, %v476_v31  ;;  %v564_v49 = vshll.u32 %v200_v34, 16  ;;  %v570_v51 = vshll.u32 %v201_v39, 16  ;;  %v574_v52 = vshrl.u32 %v201_v39, 16  ;;  %v194_v39 = vld [vmem:[%s5134_s27 + $0x84] sm:$0xf] }
  0x41   : > { %v472_v50 = vrot.slane %v471_v43, 4  ;;  %v580_v53 = vshll.u32 %v219_v40, 16  ;;  %v648_v54 = vpack.c.b16 %v623_v45, %v622_v42  ;;  %v563_v57 = vrot.slane %v561_v48, 4 }
  0x42   : > { %v482_v55 = vrot.slane %v481_v46, 4  ;;  %v566_v58 = vrot.slane %v564_v49, 5  ;;  %v572_v61 = vrot.slane %v570_v51, 5  ;;  %v576_v62 = vrot.slane %v574_v52, 4  ;;  %v195_v49 = vld [vmem:[%s5134_s27 + $0x88] sm:$0xf] }
  0x43   : > { %v477_v60 = vsel %vm5146_vm3, %v472_v50, %v476_v31  ;;  %4285 = vmatmul.msk.bf16.gmra.mxu1 %vm658_vm4, %v648_v54  ;;  %v582_v6 = vrot.slane %v580_v53, 5  ;;  %v273_v9 = vshrl.u32 %v176_v59, 16  ;;  %v276_v10 = vshll.u32 %v176_v59, 16  ;;  %v216_v53 = vld [vmem:[%s5134_s27 + $0x8c] sm:$0x1] }
  0x44   : > { %v487_v3 = vsel %vm5146_vm3, %v482_v55, %v486_v44  ;;  %v630_v4 = vunpack.c.l.b16 %v477_v60  ;;  %v567_v5 = vor.u32 %v566_v58, %v563_v57  ;;  %v577_v8 = vor.u32 %v576_v62, %v572_v61 }
  0x45   : > { %v631_v7 = vunpack.c.l.b16 %v487_v3  ;;  %v282_v12 = vshll.u32 %v5251_v63, 16  ;;  %v286_v13 = vshrl.u32 %v5251_v63, 16  ;;  %v292_v14 = vshll.u32 %v5254_v0, 16 }
  0x46   : > { %v568_v11 = vrot.slane %v567_v5, 4  ;;  %v578_v17 = vrot.slane %v577_v8, 4  ;;  %v275_v18 = vrot.slane %v273_v9, 4  ;;  %v278_v19 = vrot.slane %v276_v10, 5  ;;  %v202_v8 = vld [vmem:[%s5134_s27 + $0xb4] sm:$0xf] }
  0x47   : > { %v652_v16 = vpack.c.b16 %v631_v7, %v630_v4  ;;  %v284_v23 = vrot.slane %v282_v12, 5  ;;  %v288_v24 = vrot.slane %v286_v13, 4  ;;  %v294_v26 = vrot.slane %v292_v14, 5  ;;  %v203_v12 = vld [vmem:[%s5134_s27 + $0xb8] sm:$0xf] }
  0x48   : > { %v573_v22 = vsel %vm5146_vm3, %v568_v11, %v572_v61  ;;  %v583_v29 = vsel %vm5146_vm3, %v578_v17, %v582_v6  ;;  %v279_v31 = vor.u32 %v278_v19, %v275_v18  ;;  %v393_v33 = vshrl.u32 %v186_v15, 16  ;;  %v220_v17 = vld [vmem:[%s5134_s27 + $0xbc] sm:$0x1] }
  0x49   : > { %4289 = vmatmul.msk.bf16.gmra.mxu2 %vm658_vm4, %v652_v16  ;;  %v638_v30 = vunpack.c.l.b16 %v573_v22  ;;  %v639_v34 = vunpack.c.l.b16 %v583_v29  ;;  %v289_v35 = vor.u32 %v288_v24, %v284_v23  ;;  %v396_v37 = vshll.u32 %v186_v15, 16 }
  0x4a   : > { %v402_v38 = vshll.u32 %v5264_v21, 16  ;;  %v280_v40 = vrot.slane %v279_v31, 4  ;;  %v395_v41 = vrot.slane %v393_v33, 4  ;;  %v406_v42 = vshrl.u32 %v5264_v21, 16 }
  0x4b   : > { %v412_v43 = vshll.u32 %v5269_v27, 16  ;;  %v656_v44 = vpack.c.b16 %v639_v34, %v638_v30  ;;  %v290_v45 = vrot.slane %v289_v35, 4  ;;  %v398_v46 = vrot.slane %v396_v37, 5  ;;  %v178_v37 = vld [vmem:[%s5134_s27 + $0x24] sm:$0xf] }
  0x4c   : > { %v404_v48 = vrot.slane %v402_v38, 5  ;;  %v285_v50 = vsel %vm5146_vm3, %v280_v40, %v284_v23  ;;  %v408_v51 = vrot.slane %v406_v42, 4  ;;  %v489_v54 = vshrl.u32 %v194_v39, 16  ;;  %v5297_v42 = vld [vmem:[%s5134_s27 + $0x28] sm:$0xf] }
  0x4d   : > { %v414_v52 = vrot.slane %v412_v43, 5  ;;  %4293 = vmatmul.msk.bf16.gmra.mxu3 %vm658_vm4, %v656_v44  ;;  %v295_v55 = vsel %vm5146_vm3, %v290_v45, %v294_v26  ;;  %v614_v57 = vunpack.c.l.b16 %v285_v50  ;;  %v399_v58 = vor.u32 %v398_v46, %v395_v41 }
  0x4e   : > { %v492_v59 = vshll.u32 %v194_v39, 16  ;;  %v615_v60 = vunpack.c.l.b16 %v295_v55  ;;  %v409_v61 = vor.u32 %v408_v51, %v404_v48  ;;  %v491_v62 = vrot.slane %v489_v54, 4 }
  0x4f   : > { %v498_v3 = vshll.u32 %v195_v49, 16  ;;  %v400_v4 = vrot.slane %v399_v58, 4  ;;  %v502_v6 = vshrl.u32 %v195_v49, 16  ;;  %v508_v7 = vshll.u32 %v216_v53, 16 }
  0x50   : > { %v494_v5 = vrot.slane %v492_v59, 5  ;;  %v644_v9 = vpack.c.b16 %v615_v60, %v614_v57  ;;  %v410_v10 = vrot.slane %v409_v61, 4  ;;  %v585_v22 = vshrl.u32 %v202_v8, 16  ;;  %v1020_v61 = vld [vmem:[%s5134_s27] sm:$0xe] }
  0x51   : > { %v500_v11 = vrot.slane %v498_v3, 5  ;;  %v405_v13 = vsel %vm5146_vm3, %v400_v4, %v404_v48  ;;  %v504_v15 = vrot.slane %v502_v6, 4  ;;  %v510_v16 = vrot.slane %v508_v7, 5  ;;  %v5301_v48 = vld [vmem:[%s5134_s27 + $0x2c] sm:$0x1] }
  0x52   : > { %v495_v14 = vor.u32 %v494_v5, %v491_v62  ;;  %4281 = vmatmul.msk.bf16.gmra.mxu0 %vm658_vm4, %v644_v9  ;;  %v415_v18 = vsel %vm5146_vm3, %v410_v10, %v414_v52  ;;  %v624_v19 = vunpack.c.l.b16 %v405_v13  ;;  %v588_v23 = vshll.u32 %v202_v8, 16  ;;  %v4521_v6 = vld [vmem:[%s5134_s27 + $0xc] sm:$0xf] }
  0x53   : > { %v625_v24 = vunpack.c.l.b16 %v415_v18  ;;  %v505_v29 = vor.u32 %v504_v15, %v500_v11  ;;  %v594_v30 = vshll.u32 %v203_v12, 16  ;;  %v587_v31 = vrot.slane %v585_v22, 4 }
  0x54   : > { %v496_v26 = vrot.slane %v495_v14, 4  ;;  %v590_v33 = vrot.slane %v588_v23, 5  ;;  %v598_v34 = vshrl.u32 %v203_v12, 16  ;;  %v604_v35 = vshll.u32 %v220_v17, 16  ;;  %v4522_v12 = vld [vmem:[%s5134_s27 + $0x10] sm:$0xf] }
  0x55   : > { %v649_v38 = vpack.c.b16 %v625_v24, %v624_v19  ;;  %v506_v40 = vrot.slane %v505_v29, 4  ;;  %v596_v41 = vrot.slane %v594_v30, 5  ;;  %v1076_v43 = vrot.slane %v5162_v2, 5 }
  0x56   : > { %v501_v39 = vsel %vm5146_vm3, %v496_v26, %v500_v11  ;;  %v591_v45 = vor.u32 %v590_v33, %v587_v31  ;;  %v600_v46 = vrot.slane %v598_v34, 4  ;;  %v606_v50 = vrot.slane %v604_v35, 5  ;;  %v4667_v11 = vld [vmem:[%s6490_s1 + $0xc] sm:$0x3] }
  0x57   : > { %v632_v44 = vunpack.c.l.b16 %v501_v39  ;;  %4286 = vmatmul.msk.bf16.gmra.mxu1 %vm658_vm4, %v649_v38  ;;  %v511_v49 = vsel %vm5146_vm3, %v506_v40, %v510_v16  ;;  %v297_v51 = vshrl.u32 %v178_v37, 16  ;;  %v300_v52 = vshll.u32 %v178_v37, 16  ;;  %v4523_v38 = vld [vmem:[%s5134_s27 + $0x14] sm:$0x1] }
  0x58   : > { %v633_v53 = vunpack.c.l.b16 %v511_v49  ;;  %v592_v54 = vrot.slane %v591_v45, 4  ;;  %v601_v55 = vor.u32 %v600_v46, %v596_v41  ;;  %v306_v2 = vshll.u32 %v5297_v42, 16  ;;  %v4796_v45 = vld [vmem:[%s6490_s1 + $0xe] sm:$0x3] }
  0x59   : > { %v299_v57 = vrot.slane %v297_v51, 4  ;;  %v302_v58 = vrot.slane %v300_v52, 5  ;;  %v310_v59 = vshrl.u32 %v5297_v42, 16  ;;  %v316_v60 = vshll.u32 %v5301_v48, 16  ;;  %v4865_v51 = vld [vmem:[%s5134_s27] sm:$0xff] }
  0x5a   : > { %v653_v62 = vpack.c.b16 %v633_v53, %v632_v44  ;;  %v597_v3 = vsel %vm5146_vm3, %v592_v54, %v596_v41  ;;  %v602_v4 = vrot.slane %v601_v55, 4  ;;  %v308_v5 = vrot.slane %v306_v2, 5  ;;  %v4845_v2 = vld [vmem:[%s6490_s1 + $0x10] sm:$0x3] }
  0x5b   : > { %v640_v7 = vunpack.c.l.b16 %v597_v3  ;;  %v303_v8 = vor.u32 %v302_v58, %v299_v57  ;;  %v312_v9 = vrot.slane %v310_v59, 4  ;;  %v318_v10 = vrot.slane %v316_v60, 5 }
  0x5c   : > { %4290 = vmatmul.msk.bf16.gmra.mxu2 %vm658_vm4, %v653_v62  ;;  %v607_v13 = vsel %vm5146_vm3, %v602_v4, %v606_v50  ;;  %v4375_v14 = vrot.slane %v1020_v61, 9  ;;  %v1073_v19 = vrot.slane %v5159_v1, 5  ;;  %v2908_v22 = vsel %vm707_vm0, %v4667_v11, 0  ;;  %v4618_v50 = vld [vmem:[%s6490_s1 + $0xa] sm:$0x3] }
  0x5d   : > { %v641_v15 = vunpack.c.l.b16 %v607_v13  ;;  %v304_v16 = vrot.slane %v303_v8, 4  ;;  %v313_v17 = vor.u32 %v312_v9, %v308_v5  ;;  %v1741_v23 = vshrl.u32 %v4521_v6, 16  ;;  %2917 = vmatpush.bf16.msra.mxu2 %v2908_v22  ;;  %v1021_v8 = vld [vmem:[%s5134_s27 + $0xc] sm:$0xe] }
  0x5e   : > { %v1744_v24 = vshll.u32 %v4521_v6, 16  ;;  %v1750_v26 = vshll.u32 %v4522_v12, 16  ;;  %v1074_v33 = vsel %vm5320_vm7, %v4375_v14, %v1073_v19  ;;  %v1075_v35 = vrot.slane %v1073_v19, 4  ;;  %v4525_v6 = vld [vmem:[%s5134_s27 + $0x1c] sm:$0xf] }
  0x5f   : > { %v657_v29 = vpack.c.b16 %v641_v15, %v640_v7  ;;  %v309_v30 = vsel %vm5146_vm3, %v304_v16, %v308_v5  ;;  %v314_v31 = vrot.slane %v313_v17, 4  ;;  %v1185_v37 = vunpack.c.l.b16 %v1074_v33  ;;  %v4524_v5 = vld [vmem:[%s5134_s27 + $0x18] sm:$0xf]  ;;  %v4881_v15 = vld [vmem:[%s5134_s27 + $0xc] sm:$0xff] }
  0x60   : > { %v616_v34 = vunpack.c.l.b16 %v309_v30  ;;  %v1743_v1 = vrot.slane %v1741_v23, 4  ;;  %v1746_v40 = vrot.slane %v1744_v24, 5  ;;  %v1752_v41 = vrot.slane %v1750_v26, 5  ;;  %v4526_v30 = vld [vmem:[%s5134_s27 + $0x20] sm:$0x1] }
  0x61   : > { %4294 = vmatmul.msk.bf16.gmra.mxu3 %vm658_vm4, %v657_v29  ;;  %v319_v39 = vsel %vm5146_vm3, %v314_v31, %v318_v10  ;;  %v1754_v44 = vshrl.u32 %v4522_v12, 16  ;;  %v1077_v49 = vsel %vm5320_vm7, %v1075_v35, %v1076_v43  ;;  %v1760_v55 = vshll.u32 %v4523_v38, 16  ;;  %v4866_v35 = vld [vmem:[%s5134_s27 + $0xc] sm:$0xff] }
  0x62   : > { %v617_v46 = vunpack.c.l.b16 %v319_v39  ;;  %v1186_v52 = vunpack.c.l.b16 %v1077_v49  ;;  %v1747_v53 = vor.u32 %v1746_v40, %v1743_v1  ;;  %v3562_v58 = vsel %vm707_vm0, %v4796_v45, 0 }
  0x63   : > { %v1756_v54 = vrot.slane %v1754_v44, 4  ;;  %3571 = vmatpush.bf16.msra.mxu3 %v3562_v58  ;;  %v2621_v60 = vsel %vm707_vm0, %v4618_v50, 0  ;;  %v3960_v61 = vsel %vm707_vm0, %v4845_v2, 0  ;;  %v1762_v4 = vrot.slane %v1760_v55, 5  ;;  %v1022_v50 = vld [vmem:[%s5134_s27 + $0x18] sm:$0xe] }
  0x64   : > { %v645_v57 = vpack.c.b16 %v617_v46, %v616_v34  ;;  %v1217_v43 = vpack.c.b16 %v1186_v52, %v1185_v37  ;;  %2630 = vmatpush.bf16.msra.mxu1 %v2621_v60  ;;  %v1748_v62 = vrot.slane %v1747_v53, 4  ;;  %3969 = vmatpush.bf16.msra.mxu0 %v3960_v61  ;;  %v1080_v7 = vrot.slane %v5205_v28, 5  ;;  %v4528_v46 = vld [vmem:[%s5134_s27 + $0x28] sm:$0xf] }
  0x65   : > { %v1757_v59 = vor.u32 %v1756_v54, %v1752_v41  ;;  %v1765_v9 = vshrl.u32 %v4524_v5, 16  ;;  %v1768_v10 = vshll.u32 %v4524_v5, 16  ;;  %v1774_v13 = vshll.u32 %v4525_v6, 16 }
  0x66   : > { %4282 = vmatmul.msk.bf16.gmra.mxu0 %vm658_vm4, %v645_v57  ;;  %v1753_v11 = vsel %vm5146_vm3, %v1748_v62, %v1752_v41  ;;  %v1778_v14 = vshrl.u32 %v4525_v6, 16  ;;  %v4376_v16 = vrot.slane %v1021_v8, 9  ;;  %v1082_v17 = vrot.slane %v1080_v7, 4  ;;  %v4527_v41 = vld [vmem:[%s5134_s27 + $0x24] sm:$0xf] }
  0x67   : > { %4359 = vmatmul.msk.bf16.vlgmr.msrb.gmra.mxu1 %vm658_vm4, %v4865_v51  ;;  %v1758_v3 = vrot.slane %v1757_v59, 4  ;;  %v1083_v28 = vrot.slane %v5208_v32, 5  ;;  %v2126_v19 = vunpack.c.l.b16 %v1753_v11  ;;  %v1767_v23 = vrot.slane %v1765_v9, 4  ;;  %v4529_v6 = vld [vmem:[%s5134_s27 + $0x2c] sm:$0x1] }
  0x68   : > { %v1770_v24 = vrot.slane %v1768_v10, 5  ;;  %v1776_v26 = vrot.slane %v1774_v13, 5  ;;  %v1780_v29 = vrot.slane %v1778_v14, 4  ;;  %v1081_v31 = vsel %vm5320_vm7, %v4376_v16, %v1080_v7 }
  0x69   : > { %v1763_v12 = vsel %vm5146_vm3, %v1758_v3, %v1762_v4  ;;  %v1084_v33 = vsel %vm5320_vm7, %v1082_v17, %v1083_v28  ;;  %v1784_v38 = vshll.u32 %v4526_v30, 16  ;;  %v1187_v1 = vunpack.c.l.b16 %v1081_v31 }
  0x6a   : > { %v2127_v22 = vunpack.c.l.b16 %v1763_v12  ;;  %v1771_v32 = vor.u32 %v1770_v24, %v1767_v23  ;;  %v1781_v37 = vor.u32 %v1780_v29, %v1776_v26  ;;  %v1188_v39 = vunpack.c.l.b16 %v1084_v33  ;;  %v4867_v12 = vld [vmem:[%s5134_s27 + $0x18] sm:$0xff]  ;;  %v1023_v29 = vld [vmem:[%s5134_s27 + $0x24] sm:$0xe] }
  0x6b   : > { %v1786_v45 = vrot.slane %v1784_v38, 5  ;;  %v1087_v51 = vrot.slane %v5251_v63, 5  ;;  %v1789_v52 = vshrl.u32 %v4527_v41, 16  ;;  %v1792_v54 = vshll.u32 %v4527_v41, 16 }
  0x6c   : > { %4392 = vmatmul.msk.bf16.vlgmr.msrb.gmra.mxu2 %vm658_vm4, %v1217_v43  ;;  %v2158_v34 = vpack.c.b16 %v2127_v22, %v2126_v19  ;;  %v1772_v40 = vrot.slane %v1771_v32, 4  ;;  %v1782_v44 = vrot.slane %v1781_v37, 4  ;;  %v1218_v49 = vpack.c.b16 %v1188_v39, %v1187_v1  ;;  %v4882_v43 = vld [vmem:[%s5134_s27 + $0x18] sm:$0xff]  ;;  %v4530_v19 = vld [vmem:[%s5134_s27 + $0x30] sm:$0xf]  ;;  %v4883_v32 = vld [vmem:[%s5134_s27 + $0x24] sm:$0xff] }
  0x6d   : > { %v1798_v55 = vshll.u32 %v4528_v46, 16  ;;  %v1802_v2 = vshrl.u32 %v4528_v46, 16  ;;  %v4377_v58 = vrot.slane %v1022_v50, 9  ;;  %v1089_v60 = vrot.slane %v1087_v51, 4  ;;  %v4531_v22 = vld [vmem:[%s5134_s27 + $0x34] sm:$0xf] }
  0x6e   : > { %v1777_v53 = vsel %vm5146_vm3, %v1772_v40, %v1776_v26  ;;  %v1787_v57 = vsel %vm5146_vm3, %v1782_v44, %v1786_v45  ;;  %v1090_v63 = vrot.slane %v5254_v0, 5  ;;  %v1791_v61 = vrot.slane %v1789_v52, 4  ;;  %v4532_v45 = vld [vmem:[%s5134_s27 + $0x38] sm:$0x1] }
  0x6f   : > { %v2128_v59 = vunpack.c.l.b16 %v1777_v53  ;;  %v2129_v62 = vunpack.c.l.b16 %v1787_v57  ;;  %v1794_v3 = vrot.slane %v1792_v54, 5  ;;  %v1800_v4 = vrot.slane %v1798_v55, 5  ;;  %v4534_v57 = vld [vmem:[%s5134_s27 + $0x40] sm:$0xf] }
  0x70   : > { %v1804_v5 = vrot.slane %v1802_v2, 4  ;;  %v1088_v7 = vsel %vm5320_vm7, %v4377_v58, %v1087_v51  ;;  %v1091_v8 = vsel %vm5320_vm7, %v1089_v60, %v1090_v63  ;;  %v1808_v0 = vshll.u32 %v4529_v6, 16  ;;  %v4533_v2 = vld [vmem:[%s5134_s27 + $0x3c] sm:$0xf]  ;;  %v5021_v63 = vld [vmem:[%s5134_s27 + $0x34] sm:$0xf] }
  0x71   : > { %4505 = vmatmul.msk.bf16.vlgmr.msrb.gmra.mxu3 %vm658_vm4, %v4881_v15  ;;  %v2159_v9 = vpack.c.b16 %v2129_v62, %v2128_v59  ;;  %v1795_v10 = vor.u32 %v1794_v3, %v1791_v61  ;;  %v1189_v13 = vunpack.c.l.b16 %v1088_v7  ;;  %v1190_v14 = vunpack.c.l.b16 %v1091_v8  ;;  %v1024_v62 = vld [vmem:[%s5134_s27 + $0x30] sm:$0xe] }
  0x72   : > { %v1805_v11 = vor.u32 %v1804_v5, %v1800_v4  ;;  %v1810_v17 = vrot.slane %v1808_v0, 5  ;;  %v1094_v23 = vrot.slane %v5297_v42, 5  ;;  %v1813_v30 = vshrl.u32 %v4530_v19, 16  ;;  %v5022_v0 = vld [vmem:[%s5134_s27 + $0x38] sm:$0x1] }
  0x73   : > { %v1796_v15 = vrot.slane %v1795_v10, 4  ;;  %v1219_v28 = vpack.c.b16 %v1190_v14, %v1189_v13  ;;  %v1816_v31 = vshll.u32 %v4530_v19, 16  ;;  %v1822_v33 = vshll.u32 %v4531_v22, 16  ;;  %v4884_v13 = vld [vmem:[%s5134_s27 + $0x30] sm:$0xff] }
  0x74   : > { %v1806_v16 = vrot.slane %v1805_v11, 4  ;;  %v1096_v37 = vrot.slane %v1094_v23, 4  ;;  %v1097_v42 = vrot.slane %v5301_v48, 5  ;;  %v1815_v39 = vrot.slane %v1813_v30, 4  ;;  %v4868_v48 = vld [vmem:[%s5134_s27 + $0x24] sm:$0xff] }
  0x75   : > { %v1801_v24 = vsel %vm5146_vm3, %v1796_v15, %v1800_v4  ;;  %v1818_v40 = vrot.slane %v1816_v31, 5  ;;  %v1824_v41 = vrot.slane %v1822_v33, 5  ;;  %v1832_v53 = vshll.u32 %v4532_v45, 16  ;;  %v4869_v33 = vld [vmem:[%s5134_s27 + $0x30] sm:$0xff] }
  0x76   : > { %4570 = vmatmul.msk.bf16.vlgmr.msrb.gmra.mxu0 %vm658_vm4, %v2158_v34  ;;  %v1811_v26 = vsel %vm5146_vm3, %v1806_v16, %v1810_v17  ;;  %v1826_v34 = vshrl.u32 %v4531_v22, 16  ;;  %v2130_v38 = vunpack.c.l.b16 %v1801_v24  ;;  %v1101_v61 = vrot.slane %v5021_v63, 5  ;;  %v4535_v22 = vld [vmem:[%s5134_s27 + $0x44] sm:$0x1] }
  0x77   : > { %4360 = vmatmul.msk.bf16.gmra.mxu1 %vm658_vm4, %v4866_v35  ;;  %v4378_v35 = vrot.slane %v1023_v29, 9  ;;  %v2131_v1 = vunpack.c.l.b16 %v1811_v26  ;;  %v1819_v51 = vor.u32 %v1818_v40, %v1815_v39  ;;  %v1834_v59 = vrot.slane %v1832_v53, 5  ;;  %v4536_v39 = vld [vmem:[%s5134_s27 + $0x48] sm:$0xf]  ;;  %v4537_v40 = vld [vmem:[%s5134_s27 + $0x4c] sm:$0xf] }
  0x78   : > { %v1828_v44 = vrot.slane %v1826_v34, 4  ;;  %v1837_v3 = vshrl.u32 %v4533_v2, 16  ;;  %v1840_v4 = vshll.u32 %v4533_v2, 16  ;;  %v1846_v5 = vshll.u32 %v4534_v57, 16  ;;  %v4885_v2 = vld [vmem:[%s5134_s27 + $0x3c] sm:$0xff] }
  0x79   : > { %v1095_v46 = vsel %vm5320_vm7, %v4378_v35, %v1094_v23  ;;  %v2160_v50 = vpack.c.b16 %v2131_v1, %v2130_v38  ;;  %v1820_v58 = vrot.slane %v1819_v51, 4  ;;  %v1850_v6 = vshrl.u32 %v4534_v57, 16 }
  0x7a   : > { %v1829_v52 = vor.u32 %v1828_v44, %v1824_v41  ;;  %v1191_v54 = vunpack.c.l.b16 %v1095_v46  ;;  %v4379_v10 = vrot.slane %v1024_v62, 9  ;;  %v1103_v11 = vrot.slane %v1101_v61, 4 }
  0x7b   : > { %v1825_v8 = vsel %vm5146_vm3, %v1820_v58, %v1824_v41  ;;  %v1839_v14 = vrot.slane %v1837_v3, 4  ;;  %v1842_v15 = vrot.slane %v1840_v4, 5  ;;  %v1848_v16 = vrot.slane %v1846_v5, 5  ;;  %v4538_v4 = vld [vmem:[%s5134_s27 + $0x50] sm:$0x1] }
  0x7c   : > { %4393 = vmatmul.msk.bf16.gmra.mxu2 %vm658_vm4, %v1218_v49  ;;  %v1098_v49 = vsel %vm5320_vm7, %v1096_v37, %v1097_v42  ;;  %v1852_v17 = vrot.slane %v1850_v6, 4  ;;  %v1102_v23 = vsel %vm5320_vm7, %v4379_v10, %v1101_v61  ;;  %v1856_v30 = vshll.u32 %v4535_v22, 16 }
  0x7d   : > { %v1192_v55 = vunpack.c.l.b16 %v1098_v49  ;;  %v1843_v26 = vor.u32 %v1842_v15, %v1839_v14  ;;  %v1861_v51 = vshrl.u32 %v4536_v39, 16  ;;  %v1870_v53 = vshll.u32 %v4537_v40, 16 }
  0x7e   : > { %v1853_v29 = vor.u32 %v1852_v17, %v1848_v16  ;;  %v1858_v1 = vrot.slane %v1856_v30, 5 }
  0x7f   : > { %v1220_v60 = vpack.c.b16 %v1192_v55, %v1191_v54  ;;  %v1844_v42 = vrot.slane %v1843_v26, 4  ;;  %v1874_v54 = vshrl.u32 %v4537_v40, 16  ;;  %v1872_v62 = vrot.slane %v1870_v53, 5 }
  0x80   : > { %v1854_v38 = vrot.slane %v1853_v29, 4  ;;  %v1115_v26 = vrot.slane %v5218_v47, 5 }
  0x81   : > { %4506 = vmatmul.msk.bf16.gmra.mxu3 %vm658_vm4, %v4882_v43  ;;  %v1830_v43 = vrot.slane %v1829_v52, 4  ;;  %v1849_v45 = vsel %vm5146_vm3, %v1844_v42, %v1848_v16  ;;  %v1864_v52 = vshll.u32 %v4536_v39, 16  ;;  %v1876_v3 = vrot.slane %v1874_v54, 4  ;;  %v4541_v54 = vld [vmem:[%s5134_s27 + $0x5c] sm:$0x1] }
  0x82   : > { %v1859_v46 = vsel %vm5146_vm3, %v1854_v38, %v1858_v1  ;;  %v2134_v55 = vunpack.c.l.b16 %v1849_v45  ;;  %v4886_v1 = vld [vmem:[%s5134_s27 + $0x48] sm:$0xff]  ;;  %v1117_v40 = vrot.slane %v1115_v26, 4 }
  0x83   : > { %v2135_v57 = vunpack.c.l.b16 %v1859_v46  ;;  %v1866_v61 = vrot.slane %v1864_v52, 5  ;;  %v1877_v10 = vor.u32 %v1876_v3, %v1872_v62 }
  0x85   : > { %v1878_v16 = vrot.slane %v1877_v10, 4 }
  0x86   : > { %4571 = vmatmul.msk.bf16.gmra.mxu0 %vm658_vm4, %v2159_v9  ;;  %v1835_v9 = vsel %vm5146_vm3, %v1830_v43, %v1834_v59 }
  0x87   : > { %4361 = vmatmul.msk.bf16.gmra.mxu1 %vm658_vm4, %v4867_v12  ;;  %v1104_v12 = vrot.slane %v5022_v0, 5  ;;  %v2133_v19 = vunpack.c.l.b16 %v1835_v9 }
  0x89   : > { %v1105_v24 = vsel %vm5320_vm7, %v1103_v11, %v1104_v12  ;;  %v1880_v11 = vshll.u32 %v4538_v4, 16  ;;  %v4870_v12 = vld [vmem:[%s5134_s27 + $0x3c] sm:$0xff] }
  0x8a   : > { %v1194_v35 = vunpack.c.l.b16 %v1105_v24  ;;  %v4540_v24 = vld [vmem:[%s5134_s27 + $0x58] sm:$0xf]  ;;  %v4542_v4 = vld [vmem:[%s5134_s27 + $0x60] sm:$0xf] }
  0x8b   : > { %v1882_v17 = vrot.slane %v1880_v11, 5  ;;  %v1898_v42 = vshrl.u32 %v4540_v24, 16 }
  0x8c   : > { %4394 = vmatmul.msk.bf16.gmra.mxu2 %vm658_vm4, %v1219_v28  ;;  %v2132_v28 = vunpack.c.l.b16 %v1825_v8  ;;  %v2162_v8 = vpack.c.b16 %v2135_v57, %v2134_v55 }
  0x8d   : > { %v1883_v30 = vsel %vm5146_vm3, %v1878_v16, %v1882_v17  ;;  %v1900_v52 = vrot.slane %v1898_v42, 4 }
  0x8e   : > { %v2161_v31 = vpack.c.b16 %v2133_v19, %v2132_v28  ;;  %v2137_v46 = vunpack.c.l.b16 %v1883_v30 }
  0x91   : > { %4507 = vmatmul.msk.bf16.gmra.mxu3 %vm658_vm4, %v4883_v32  ;;  %v1193_v32 = vunpack.c.l.b16 %v1102_v23  ;;  %v4539_v23 = vld [vmem:[%s5134_s27 + $0x54] sm:$0xf] }
  0x93   : > { %v1221_v44 = vpack.c.b16 %v1194_v35, %v1193_v32  ;;  %v1888_v32 = vshll.u32 %v4539_v23, 16  ;;  %v1894_v35 = vshll.u32 %v4540_v24, 16 }
  0x96   : > { %4572 = vmatmul.msk.bf16.gmra.mxu0 %vm658_vm4, %v2160_v50  ;;  %v1108_v50 = vrot.slane %v5174_v20, 5  ;;  %v1863_v20 = vrot.slane %v1861_v51, 4  ;;  %v1896_v51 = vrot.slane %v1894_v35, 5  ;;  %v1125_v35 = vrot.slane %v5269_v27, 5 }
  0x97   : > { %4362 = vmatmul.msk.bf16.gmra.mxu1 %vm658_vm4, %v4868_v48  ;;  %v1025_v48 = vld [vmem:[%s5134_s27 + $0x3c] sm:$0xe] }
  0x98   : > { %v4380_v43 = vrot.slane %v1025_v48, 9  ;;  %v1110_v59 = vrot.slane %v1108_v50, 4  ;;  %v1890_v48 = vrot.slane %v1888_v32, 5 }
  0x9a   : > { %v1109_v5 = vsel %vm5320_vm7, %v4380_v43, %v1108_v50  ;;  %v4871_v43 = vld [vmem:[%s5134_s27 + $0x48] sm:$0xff] }
  0x9c   : > { %v5415_v7 = vpop.f32.mrf.mxu1  ;;  %4395 = vmatmul.msk.bf16.gmra.mxu2 %vm658_vm4, %v1220_v60  ;;  %v1111_v60 = vrot.slane %v5179_v25, 5  ;;  %v1867_v25 = vor.u32 %v1866_v61, %v1863_v20  ;;  %v1904_v20 = vshll.u32 %v4541_v54, 16  ;;  %v4872_v54 = vld [vmem:[%s5134_s27 + $0x54] sm:$0xff] }
  0x9e   : > { %v1112_v6 = vsel %vm5320_vm7, %v1110_v59, %v1111_v60  ;;  %v1868_v15 = vrot.slane %v1867_v25, 4  ;;  %v1901_v60 = vor.u32 %v1900_v52, %v1896_v51  ;;  %v1906_v10 = vrot.slane %v1904_v20, 5 }
  0x9f   : > { %v1196_v14 = vunpack.c.l.b16 %v1112_v6 }
  0xa0   : > { %v1873_v29 = vsel %vm5146_vm3, %v1868_v15, %v1872_v62  ;;  %v1902_v25 = vrot.slane %v1901_v60, 4  ;;  %v1122_v15 = vrot.slane %v5264_v21, 5 }
  0xa1   : > { %4508 = vmatmul.msk.bf16.gmra.mxu3 %vm658_vm4, %v4884_v13  ;;  %v1195_v13 = vunpack.c.l.b16 %v1109_v5  ;;  %v2136_v45 = vunpack.c.l.b16 %v1873_v29  ;;  %v4543_v5 = vld [vmem:[%s5134_s27 + $0x64] sm:$0xf] }
  0xa2   : > { %v1922_v16 = vshrl.u32 %v4543_v5, 16  ;;  %v1907_v24 = vsel %vm5146_vm3, %v1902_v25, %v1906_v10  ;;  %v1124_v32 = vrot.slane %v1122_v15, 4  ;;  %v5023_v10 = vld [vmem:[%s5134_s27 + $0x64] sm:$0xf] }
  0xa3   : > { %v1222_v19 = vpack.c.b16 %v1196_v14, %v1195_v13  ;;  %v2163_v57 = vpack.c.b16 %v2137_v46, %v2136_v45  ;;  %v1912_v13 = vshll.u32 %v4542_v4, 16  ;;  %v1918_v14 = vshll.u32 %v4543_v5, 16 }
  0xa4   : > { %v5431_v34 = vpop.f32.mrf.mxu1  ;;  %v1924_v42 = vrot.slane %v1922_v16, 4 }
  0xa5   : > { %v1914_v30 = vrot.slane %v1912_v13, 5  ;;  %v1028_v13 = vld [vmem:[%s5134_s27 + $0x60] sm:$0xe] }
  0xa6   : > { %v5433_v37 = vpop.f32.mrf.mxu2  ;;  %4573 = vmatmul.msk.bf16.gmra.mxu0 %vm658_vm4, %v2161_v31  ;;  %v1026_v31 = vld [vmem:[%s5134_s27 + $0x48] sm:$0xe] }
  0xa7   : > { %4363 = vmatmul.msk.bf16.gmra.mxu1 %vm658_vm4, %v4869_v33  ;;  %v1885_v33 = vshrl.u32 %v4539_v23, 16  ;;  %v4381_v47 = vrot.slane %v1026_v31, 9  ;;  %v1920_v31 = vrot.slane %v1918_v14, 5 }
  0xa9   : > { %v5439_v41 = vpop.f32.mrf.mxu0  ;;  %v1887_v50 = vrot.slane %v1885_v33, 4  ;;  %v4887_v33 = vld [vmem:[%s5134_s27 + $0x54] sm:$0xff]  ;;  %v1925_v27 = vor.u32 %v1924_v42, %v1920_v31 }
  0xaa   : > { %v5445_v49 = vpop.f32.mrf.mxu3 }
  0xab   : > { %v1891_v59 = vor.u32 %v1890_v48, %v1887_v50  ;;  %v1126_v48 = vsel %vm5320_vm7, %v1124_v32, %v1125_v35  ;;  %v1926_v60 = vrot.slane %v1925_v27, 4 }
  0xac   : > { %4396 = vmatmul.msk.bf16.gmra.mxu2 %vm658_vm4, %v1221_v44  ;;  %v1118_v44 = vrot.slane %v5223_v56, 5 }
  0xae   : > { %v5451_v58 = vpop.f32.mrf.mxu1  ;;  %v5454_v63 = vpop.f32.mrf.mxu2  ;;  %v1119_v56 = vsel %vm5320_vm7, %v1117_v40, %v1118_v44  ;;  %v4544_v40 = vld [vmem:[%s5134_s27 + $0x68] sm:$0x1] }
  0xaf   : > { %v1198_v62 = vunpack.c.l.b16 %v1119_v56 }
  0xb1   : > { %4509 = vmatmul.msk.bf16.gmra.mxu3 %vm658_vm4, %v4885_v2  ;;  %v5462_v9 = vpop.f32.mrf.mxu0  ;;  %v1116_v2 = vsel %vm5320_vm7, %v4381_v47, %v1115_v26  ;;  %v2139_v47 = vunpack.c.l.b16 %v1907_v24 }
  0xb2   : > { %v5464_v0 = vpop.f32.mrf.mxu3  ;;  %v1197_v61 = vunpack.c.l.b16 %v1116_v2 }
  0xb4   : > { %v1223_v11 = vpack.c.b16 %v1198_v62, %v1197_v61  ;;  %v4545_v61 = vld [vmem:[%s5134_s27 + $0x6c] sm:$0xf]  ;;  %v4546_v62 = vld [vmem:[%s5134_s27 + $0x70] sm:$0xf] }
  0xb5   : > { %v1933_v14 = vshrl.u32 %v4545_v61, 16  ;;  %v1942_v16 = vshll.u32 %v4546_v62, 16 }
  0xb6   : > { %4574 = vmatmul.msk.bf16.gmra.mxu0 %vm658_vm4, %v2162_v8  ;;  %v5468_v28 = vpop.f32.mrf.mxu1  ;;  %v1892_v8 = vrot.slane %v1891_v59, 4 }
  0xb7   : > { %4364 = vmatmul.msk.bf16.gmra.mxu1 %vm658_vm4, %v4870_v12  ;;  %v1909_v12 = vshrl.u32 %v4542_v4, 16  ;;  %v1935_v35 = vrot.slane %v1933_v14, 4  ;;  %v4549_v14 = vld [vmem:[%s5134_s27 + $0x7c] sm:$0xf] }
  0xb8   : > { %v1897_v23 = vsel %vm5146_vm3, %v1892_v8, %v1896_v51  ;;  %v1928_v51 = vshll.u32 %v4544_v40, 16 }
  0xb9   : > { %v5471_v22 = vpop.f32.mrf.mxu2  ;;  %v1911_v29 = vrot.slane %v1909_v12, 4 }
  0xba   : > { %v1930_v20 = vrot.slane %v1928_v51, 5 }
  0xbb   : > { %v1915_v46 = vor.u32 %v1914_v30, %v1911_v29  ;;  %v4888_v30 = vld [vmem:[%s5134_s27 + $0x60] sm:$0xff] }
  0xbc   : > { %4397 = vmatmul.msk.bf16.gmra.mxu2 %vm658_vm4, %v1222_v19  ;;  %v1027_v19 = vld [vmem:[%s5134_s27 + $0x54] sm:$0xe]  ;;  %v1931_v25 = vsel %vm5146_vm3, %v1926_v60, %v1930_v20 }
  0xbd   : > { %v5481_v38 = vpop.f32.mrf.mxu0  ;;  %v4382_v21 = vrot.slane %v1027_v19, 9  ;;  %v1916_v59 = vrot.slane %v1915_v46, 4  ;;  %v1946_v19 = vshrl.u32 %v4546_v62, 16  ;;  %v4547_v46 = vld [vmem:[%s5134_s27 + $0x74] sm:$0x1] }
  0xbe   : > { %v5485_v39 = vpop.f32.mrf.mxu3 }
  0xbf   : > { %v1123_v50 = vsel %vm5320_vm7, %v4382_v21, %v1122_v15  ;;  %v1921_v8 = vsel %vm5146_vm3, %v1916_v59, %v1920_v31  ;;  %v1936_v15 = vshll.u32 %v4545_v61, 16  ;;  %v4383_v21 = vrot.slane %v1028_v13, 9  ;;  %v4548_v13 = vld [vmem:[%s5134_s27 + $0x78] sm:$0xf] }
  0xc0   : > { %v5488_v53 = vpop.f32.mrf.mxu1  ;;  %v1199_v56 = vunpack.c.l.b16 %v1123_v50  ;;  %v2140_v31 = vunpack.c.l.b16 %v1921_v8 }
  0xc1   : > { %4510 = vmatmul.msk.bf16.gmra.mxu3 %vm658_vm4, %v4886_v1  ;;  %v5492_v55 = vpop.f32.mrf.mxu2  ;;  %v2138_v1 = vunpack.c.l.b16 %v1897_v23  ;;  %v5024_v23 = vld [vmem:[%s5134_s27 + $0x68] sm:$0x1]  ;;  %v1938_v42 = vrot.slane %v1936_v15, 5  ;;  %v5025_v15 = vld [vmem:[%s5134_s27 + $0x70] sm:$0xf] }
  0xc2   : > { %v1132_v24 = vrot.slane %v5024_v23, 5  ;;  %v1029_v23 = vld [vmem:[%s5134_s27 + $0x6c] sm:$0xe] }
  0xc3   : > { %v2164_v52 = vpack.c.b16 %v2139_v47, %v2138_v1  ;;  %v1944_v1 = vrot.slane %v1942_v16, 5  ;;  %v1948_v47 = vrot.slane %v1946_v19, 4  ;;  %v1939_v51 = vor.u32 %v1938_v42, %v1935_v35  ;;  %v5026_v42 = vld [vmem:[%s5134_s27 + $0x74] sm:$0x1] }
  0xc4   : > { %v1136_v16 = vrot.slane %v5025_v15, 5 }
  0xc5   : > { %v5499_v3 = vpop.f32.mrf.mxu0 }
  0xc6   : > { %4575 = vmatmul.msk.bf16.gmra.mxu0 %vm658_vm4, %v2163_v57  ;;  %v5504_v6 = vpop.f32.mrf.mxu3  ;;  %v1200_v57 = vunpack.c.l.b16 %v1126_v48 }
  0xc7   : > { %4365 = vmatmul.msk.bf16.gmra.mxu1 %vm658_vm4, %v4871_v43 }
  0xc8   : > { %v5508_v17 = vpop.f32.mrf.mxu1  ;;  %v1224_v4 = vpack.c.b16 %v1200_v57, %v1199_v56  ;;  %v4873_v57 = vld [vmem:[%s5134_s27 + $0x60] sm:$0xff] }
  0xcc   : > { %v5515_v26 = vpop.f32.mrf.mxu2  ;;  %4398 = vmatmul.msk.bf16.gmra.mxu2 %vm658_vm4, %v1223_v11  ;;  %v1129_v11 = vrot.slane %v5023_v10, 5 }
  0xce   : > { %v1131_v32 = vrot.slane %v1129_v11, 4  ;;  %v1130_v50 = vsel %vm5320_vm7, %v4383_v21, %v1129_v11  ;;  %v1970_v21 = vshrl.u32 %v4549_v14, 16 }
  0xcf   : > { %v5521_v44 = vpop.f32.mrf.mxu0  ;;  %v1201_v20 = vunpack.c.l.b16 %v1130_v50  ;;  %v4384_v50 = vrot.slane %v1029_v23, 9 }
  0xd0   : > { %v5523_v45 = vpop.f32.mrf.mxu3  ;;  %v1133_v48 = vsel %vm5320_vm7, %v1131_v32, %v1132_v24 }
  0xd1   : > { %4511 = vmatmul.msk.bf16.gmra.mxu3 %vm658_vm4, %v4887_v33  ;;  %v2141_v33 = vunpack.c.l.b16 %v1931_v25  ;;  %v1202_v61 = vunpack.c.l.b16 %v1133_v48  ;;  %v1138_v48 = vrot.slane %v1136_v16, 4 }
  0xd3   : > { %v2165_v27 = vpack.c.b16 %v2141_v33, %v2140_v31  ;;  %v1225_v11 = vpack.c.b16 %v1202_v61, %v1201_v20  ;;  %v1960_v31 = vshll.u32 %v4548_v13, 16  ;;  %v1966_v33 = vshll.u32 %v4549_v14, 16 }
  0xd4   : > { %v5531_v2 = vpop.f32.mrf.mxu1  ;;  %v5533_v43 = vpop.f32.mrf.mxu2  ;;  %v1972_v20 = vrot.slane %v1970_v21, 4 }
  0xd6   : > { %4576 = vmatmul.msk.bf16.gmra.mxu0 %vm658_vm4, %v2164_v52  ;;  %v1949_v52 = vor.u32 %v1948_v47, %v1944_v1  ;;  %v1139_v47 = vrot.slane %v5026_v42, 5 }
  0xd7   : > { %4366 = vmatmul.msk.bf16.gmra.mxu1 %vm658_vm4, %v4872_v54  ;;  %v5539_v5 = vpop.f32.mrf.mxu0  ;;  %v1952_v54 = vshll.u32 %v4547_v46, 16  ;;  %v4889_v46 = vld [vmem:[%s5134_s27 + $0x6c] sm:$0xff] }
  0xd8   : > { %v5546_v12 = vpop.f32.mrf.mxu3  ;;  %v1950_v8 = vrot.slane %v1949_v52, 4 }
  0xd9   : > { %v1954_v25 = vrot.slane %v1952_v54, 5 }
  0xdc   : > { %4399 = vmatmul.msk.bf16.gmra.mxu2 %vm658_vm4, %v1224_v4  ;;  %v5551_v29 = vpop.f32.mrf.mxu1  ;;  %v1940_v4 = vrot.slane %v1939_v51, 4 }
  0xde   : > { %v1945_v19 = vsel %vm5146_vm3, %v1940_v4, %v1944_v1  ;;  %v4550_v4 = vld [vmem:[%s5134_s27 + $0x80] sm:$0x1] }
  0xdf   : > { %v5554_v40 = vpop.f32.mrf.mxu2 }
  0xe1   : > { %4512 = vmatmul.msk.bf16.gmra.mxu3 %vm658_vm4, %v4888_v30  ;;  %v1957_v30 = vshrl.u32 %v4548_v13, 16  ;;  %v4874_v13 = vld [vmem:[%s5134_s27 + $0x6c] sm:$0xff] }
  0xe3   : > { %v5562_v56 = vpop.f32.mrf.mxu0  ;;  %v1959_v54 = vrot.slane %v1957_v30, 4 }
  0xe4   : > { %v5565_v59 = vpop.f32.mrf.mxu3  ;;  %v940_v60 = vpop.f32.mrf.mxu1 }
  0xe5   : > { %v941_v62 = vadd.f32 %v940_v60, %v5439_v41  ;;  %v1955_v41 = vsel %vm5146_vm3, %v1950_v8, %v1954_v25  ;;  %v1968_v60 = vrot.slane %v1966_v33, 5  ;;  %v1137_v8 = vsel %vm5320_vm7, %v4384_v50, %v1136_v16 }
  0xe6   : > { %4577 = vmatmul.msk.bf16.gmra.mxu0 %vm658_vm4, %v2165_v27  ;;  %v2142_v27 = vunpack.c.l.b16 %v1945_v19  ;;  %v2143_v51 = vunpack.c.l.b16 %v1955_v41  ;;  %v1976_v19 = vshll.u32 %v4550_v4, 16 }
  0xe7   : > { %v5569_v10 = vpop.f32.mrf.mxu2  ;;  %4367 = vmatmul.msk.bf16.gmra.mxu1 %vm658_vm4, %v4873_v57  ;;  %v1962_v57 = vrot.slane %v1960_v31, 5  ;;  %v1973_v15 = vor.u32 %v1972_v20, %v1968_v60 }
  0xe8   : > { %v2166_v25 = vpack.c.b16 %v2143_v51, %v2142_v27  ;;  %v1978_v42 = vrot.slane %v1976_v19, 5  ;;  %v4552_v27 = vld [vmem:[%s5134_s27 + $0x88] sm:$0xf]  ;;  %v5027_v51 = vld [vmem:[%s5134_s27 + $0x7c] sm:$0xf] }
  0xe9   : > { %v1963_v14 = vor.u32 %v1962_v57, %v1959_v54  ;;  %v1030_v54 = vld [vmem:[%s5134_s27 + $0x78] sm:$0xe] }
  0xeb   : > { %v5580_v24 = vpop.f32.mrf.mxu0  ;;  %v1964_v21 = vrot.slane %v1963_v14, 4 }
  0xec   : > { %v5582_v32 = vpop.f32.mrf.mxu3  ;;  %4400 = vmatmul.msk.bf16.gmra.mxu2 %vm658_vm4, %v1225_v11  ;;  %v942_v35 = vpop.f32.mrf.mxu1 }
  0xed   : > { %v943_v1 = vadd.f32 %v942_v35, %v5462_v9  ;;  %v1140_v9 = vsel %vm5320_vm7, %v1138_v48, %v1139_v47  ;;  %v1974_v35 = vrot.slane %v1973_v15, 4  ;;  %v4551_v47 = vld [vmem:[%s5134_s27 + $0x84] sm:$0xf]  ;;  %v4890_v15 = vld [vmem:[%s5134_s27 + $0x78] sm:$0xff] }
  0xee   : > { %v1204_v30 = vunpack.c.l.b16 %v1140_v9  ;;  %v1984_v57 = vshll.u32 %v4551_v47, 16  ;;  %v1994_v9 = vshrl.u32 %v4552_v27, 16 }
  0xef   : > { %v1293_v52 = vpop.f32.mrf.mxu2  ;;  %v1979_v4 = vsel %vm5146_vm3, %v1974_v35, %v1978_v42 }
  0xf0   : > { %v1373_v61 = vadd.f32 %v1293_v52, %v941_v62  ;;  %v1203_v62 = vunpack.c.l.b16 %v1137_v8  ;;  %v1143_v52 = vrot.slane %v5027_v51, 5  ;;  %v1990_v8 = vshll.u32 %v4552_v27, 16 }
  0xf1   : > { %4513 = vmatmul.msk.bf16.gmra.mxu3 %vm658_vm4, %v4889_v46  ;;  %v1996_v35 = vrot.slane %v1994_v9, 4 }
  0xf2   : > { %v1226_v48 = vpack.c.b16 %v1204_v30, %v1203_v62 }
  0xf3   : > { %v2234_v11 = vpop.f32.mrf.mxu0 }
  0xf4   : > { %v1580_v41 = vpop.f32.mrf.mxu3  ;;  %v945_v23 = vpop.f32.mrf.mxu1 }
  0xf5   : > { %v1660_v31 = vadd.f32 %v1580_v41, %v1373_v61  ;;  %v946_v16 = vadd.f32 %v945_v23, %v5481_v38  ;;  %v1981_v38 = vshrl.u32 %v4551_v47, 16  ;;  %v1969_v61 = vsel %vm5146_vm3, %v1964_v21, %v1968_v60 }
  0xf6   : > { %4578 = vmatmul.msk.bf16.gmra.mxu0 %vm658_vm4, %v2166_v25  ;;  %v5028_v25 = vld [vmem:[%s5134_s27 + $0x80] sm:$0x1]  ;;  %v4385_v41 = vrot.slane %v1030_v54, 9  ;;  %v1145_v23 = vrot.slane %v1143_v52, 4  ;;  %v2144_v62 = vunpack.c.l.b16 %v1969_v61  ;;  %v2145_v60 = vunpack.c.l.b16 %v1979_v4 }
  0xf7   : > { %v1295_v33 = vpop.f32.mrf.mxu2  ;;  %4368 = vmatmul.msk.bf16.gmra.mxu1 %vm658_vm4, %v4874_v13  ;;  %v5599_v46 = vadd.f32 %v2234_v11, %v1660_v31  ;;  %v1146_v11 = vrot.slane %v5028_v25, 5  ;;  %v1983_v30 = vrot.slane %v1981_v38, 4  ;;  %v1986_v31 = vrot.slane %v1984_v57, 5  ;;  %v4875_v38 = vld [vmem:[%s5134_s27 + $0x78] sm:$0xff] }
  0xf8   : > { %v1374_v50 = vadd.f32 %v1295_v33, %v943_v1  ;;  %v1992_v21 = vrot.slane %v1990_v8, 5  ;;  %v2167_v27 = vpack.c.b16 %v2145_v60, %v2144_v62  ;;  %v4555_v62 = vld [vmem:[%s5134_s27 + $0x94] sm:$0xf]  ;;  %v5029_v60 = vld [vmem:[%s5134_s27 + $0x88] sm:$0xf] }
  0xf9   : > { %v1987_v51 = vor.u32 %v1986_v31, %v1983_v30  ;;  %v1150_v30 = vrot.slane %v5029_v60, 5  ;;  %v1031_v31 = vld [vmem:[%s5134_s27 + $0x84] sm:$0xe] }
  0xfa   : > { %v1997_v57 = vor.u32 %v1996_v35, %v1992_v21 }
  0xfb   : > { %v2236_v20 = vpop.f32.mrf.mxu0  ;;  %v1988_v25 = vrot.slane %v1987_v51, 4 }
  0xfc   : > { %v1582_v1 = vpop.f32.mrf.mxu3  ;;  %4401 = vmatmul.msk.bf16.gmra.mxu2 %vm658_vm4, %v1226_v48  ;;  %v947_v13 = vpop.f32.mrf.mxu1  ;;  %v4553_v48 = vld [vmem:[%s5134_s27 + $0x8c] sm:$0x1] }
  0xfd   : > { %v1661_v14 = vadd.f32 %v1582_v1, %v1374_v50  ;;  %v948_v19 = vadd.f32 %v947_v13, %v5499_v3  ;;  %v1144_v50 = vsel %vm5320_vm7, %v4385_v41, %v1143_v52  ;;  %v1147_v3 = vsel %vm5320_vm7, %v1145_v23, %v1146_v11 }
  0xfe   : > { %v2000_v61 = vshll.u32 %v4553_v48, 16  ;;  %v1206_v8 = vunpack.c.l.b16 %v1147_v3  ;;  %v1998_v1 = vrot.slane %v1997_v57, 4  ;;  %v2018_v3 = vshrl.u32 %v4555_v62, 16  ;;  %v4891_v57 = vld [vmem:[%s5134_s27 + $0x84] sm:$0xff] }
  0xff   : > { %v1298_v33 = vpop.f32.mrf.mxu2  ;;  %v5612_v42 = vadd.f32 %v2236_v20, %v1661_v14  ;;  %v4554_v14 = vld [vmem:[%s5134_s27 + $0x90] sm:$0xf] }
 0x100   : > { %v1375_v47 = vadd.f32 %v1298_v33, %v946_v16  ;;  %v1205_v16 = vunpack.c.l.b16 %v1144_v50  ;;  %v2002_v13 = vrot.slane %v2000_v61, 5  ;;  %v2005_v33 = vshrl.u32 %v4554_v14, 16 }
 0x101   : > { %4514 = vmatmul.msk.bf16.gmra.mxu3 %vm658_vm4, %v4890_v15  ;;  %v2008_v48 = vshll.u32 %v4554_v14, 16  ;;  %v2014_v50 = vshll.u32 %v4555_v62, 16  ;;  %v4386_v61 = vrot.slane %v1031_v31, 9 }
 0x102   : > { %v1227_v23 = vpack.c.b16 %v1206_v8, %v1205_v16  ;;  %v2007_v8 = vrot.slane %v2005_v33, 4 }
 0x103   : > { %v2239_v54 = vpop.f32.mrf.mxu0 }
 0x104   : > { %v1585_v4 = vpop.f32.mrf.mxu3  ;;  %v950_v20 = vpop.f32.mrf.mxu1 }
 0x105   : > { %v1662_v9 = vadd.f32 %v1585_v4, %v1375_v47  ;;  %v951_v52 = vadd.f32 %v950_v20, %v5521_v44  ;;  %v1993_v44 = vsel %vm5146_vm3, %v1988_v25, %v1992_v21  ;;  %v2003_v47 = vsel %vm5146_vm3, %v1998_v1, %v2002_v13 }
 0x106   : > { %4579 = vmatmul.msk.bf16.gmra.mxu0 %vm658_vm4, %v2167_v27  ;;  %v5030_v27 = vld [vmem:[%s5134_s27 + $0x8c] sm:$0x1]  ;;  %v1152_v4 = vrot.slane %v1150_v30, 4  ;;  %v2146_v20 = vunpack.c.l.b16 %v1993_v44  ;;  %v2147_v16 = vunpack.c.l.b16 %v2003_v47  ;;  %v2010_v25 = vrot.slane %v2008_v48, 5  ;;  %v4876_v44 = vld [vmem:[%s5134_s27 + $0x84] sm:$0xff] }
 0x107   : > { %v1300_v11 = vpop.f32.mrf.mxu2  ;;  %4369 = vmatmul.msk.bf16.gmra.mxu1 %vm658_vm4, %v4875_v38  ;;  %v5625_v15 = vadd.f32 %v2239_v54, %v1662_v9  ;;  %v1153_v51 = vrot.slane %v5030_v27, 5  ;;  %v2020_v1 = vrot.slane %v2018_v3, 4 }
 0x108   : > { %v1376_v41 = vadd.f32 %v1300_v11, %v948_v19  ;;  %v2016_v11 = vrot.slane %v2014_v50, 5  ;;  %v2168_v62 = vpack.c.b16 %v2147_v16, %v2146_v20  ;;  %v2011_v31 = vor.u32 %v2010_v25, %v2007_v8  ;;  %v4558_v20 = vld [vmem:[%s5134_s27 + $0xa0] sm:$0xf]  ;;  %v5031_v16 = vld [vmem:[%s5134_s27 + $0x94] sm:$0xf] }
 0x109   : > { %v1157_v8 = vrot.slane %v5031_v16, 5 }
 0x10a   : > { %v2021_v33 = vor.u32 %v2020_v1, %v2016_v11 }
 0x10b   : > { %v2241_v35 = vpop.f32.mrf.mxu0 }
 0x10c   : > { %v1587_v19 = vpop.f32.mrf.mxu3  ;;  %4402 = vmatmul.msk.bf16.gmra.mxu2 %vm658_vm4, %v1227_v23  ;;  %v952_v54 = vpop.f32.mrf.mxu1  ;;  %v4556_v23 = vld [vmem:[%s5134_s27 + $0x98] sm:$0x1] }
 0x10d   : > { %v1663_v38 = vadd.f32 %v1587_v19, %v1376_v41  ;;  %v953_v21 = vadd.f32 %v952_v54, %v5539_v5  ;;  %v1151_v41 = vsel %vm5320_vm7, %v4386_v61, %v1150_v30  ;;  %v1154_v5 = vsel %vm5320_vm7, %v1152_v4, %v1153_v51 }
 0x10e   : > { %v2024_v47 = vshll.u32 %v4556_v23, 16  ;;  %v1208_v50 = vunpack.c.l.b16 %v1154_v5  ;;  %v2012_v51 = vrot.slane %v2011_v31, 4  ;;  %v2022_v19 = vrot.slane %v2021_v33, 4  ;;  %v4892_v33 = vld [vmem:[%s5134_s27 + $0x90] sm:$0xff] }
 0x10f   : > { %v1303_v9 = vpop.f32.mrf.mxu2  ;;  %v5638_v13 = vadd.f32 %v2241_v35, %v1663_v38  ;;  %v4557_v38 = vld [vmem:[%s5134_s27 + $0x9c] sm:$0xf]  ;;  %v2042_v5 = vshrl.u32 %v4558_v20, 16 }
 0x110   : > { %v1377_v14 = vadd.f32 %v1303_v9, %v951_v52  ;;  %v1207_v52 = vunpack.c.l.b16 %v1151_v41  ;;  %v2026_v54 = vrot.slane %v2024_v47, 5  ;;  %v1032_v9 = vld [vmem:[%s5134_s27 + $0x90] sm:$0xe]  ;;  %v2032_v25 = vshll.u32 %v4557_v38, 16 }
 0x111   : > { %4515 = vmatmul.msk.bf16.gmra.mxu3 %vm658_vm4, %v4891_v57  ;;  %v2038_v41 = vshll.u32 %v4558_v20, 16 }
 0x112   : > { %v1228_v4 = vpack.c.b16 %v1208_v50, %v1207_v52  ;;  %v2027_v23 = vsel %vm5146_vm3, %v2022_v19, %v2026_v54  ;;  %v2044_v19 = vrot.slane %v2042_v5, 4 }
 0x113   : > { %v2244_v60 = vpop.f32.mrf.mxu0 }
 0x114   : > { %v1590_v48 = vpop.f32.mrf.mxu3  ;;  %v955_v35 = vpop.f32.mrf.mxu1 }
 0x115   : > { %v1664_v3 = vadd.f32 %v1590_v48, %v1377_v14  ;;  %v956_v30 = vadd.f32 %v955_v35, %v5562_v56  ;;  %v2029_v56 = vshrl.u32 %v4557_v38, 16  ;;  %v2017_v14 = vsel %vm5146_vm3, %v2012_v51, %v2016_v11 }
 0x116   : > { %4580 = vmatmul.msk.bf16.gmra.mxu0 %vm658_vm4, %v2168_v62  ;;  %v5032_v62 = vld [vmem:[%s5134_s27 + $0x98] sm:$0x1]  ;;  %v4387_v48 = vrot.slane %v1032_v9, 9  ;;  %v1159_v35 = vrot.slane %v1157_v8, 4  ;;  %v2148_v52 = vunpack.c.l.b16 %v2017_v14  ;;  %v2149_v11 = vunpack.c.l.b16 %v2027_v23 }
 0x117   : > { %v1305_v27 = vpop.f32.mrf.mxu2  ;;  %4370 = vmatmul.msk.bf16.gmra.mxu1 %vm658_vm4, %v4876_v44  ;;  %v5651_v57 = vadd.f32 %v2244_v60, %v1664_v3  ;;  %v1160_v60 = vrot.slane %v5032_v62, 5  ;;  %v2031_v50 = vrot.slane %v2029_v56, 4  ;;  %v2034_v3 = vrot.slane %v2032_v25, 5  ;;  %v4877_v56 = vld [vmem:[%s5134_s27 + $0x90] sm:$0xff] }
 0x118   : > { %v1378_v61 = vadd.f32 %v1305_v27, %v953_v21  ;;  %v2040_v51 = vrot.slane %v2038_v41, 5  ;;  %v2169_v20 = vpack.c.b16 %v2149_v11, %v2148_v52  ;;  %v4561_v11 = vld [vmem:[%s5134_s27 + $0xac] sm:$0xf] }
 0x119   : > { %v2035_v16 = vor.u32 %v2034_v3, %v2031_v50  ;;  %v1033_v50 = vld [vmem:[%s5134_s27 + $0x9c] sm:$0xe] }
 0x11a   : > { %v2045_v25 = vor.u32 %v2044_v19, %v2040_v51 }
 0x11b   : > { %v2246_v1 = vpop.f32.mrf.mxu0 }
 0x11c   : > { %v1592_v21 = vpop.f32.mrf.mxu3  ;;  %4403 = vmatmul.msk.bf16.gmra.mxu2 %vm658_vm4, %v1228_v4  ;;  %v957_v44 = vpop.f32.mrf.mxu1  ;;  %v4559_v4 = vld [vmem:[%s5134_s27 + $0xa4] sm:$0x1] }
 0x11d   : > { %v1665_v31 = vadd.f32 %v1592_v21, %v1378_v61  ;;  %v958_v47 = vadd.f32 %v957_v44, %v5580_v24  ;;  %v1158_v61 = vsel %vm5320_vm7, %v4387_v48, %v1157_v8  ;;  %v1161_v24 = vsel %vm5320_vm7, %v1159_v35, %v1160_v60  ;;  %v4560_v44 = vld [vmem:[%s5134_s27 + $0xa8] sm:$0xf]  ;;  %v5033_v35 = vld [vmem:[%s5134_s27 + $0xa0] sm:$0xf] }
 0x11e   : > { %v2048_v14 = vshll.u32 %v4559_v4, 16  ;;  %v1210_v41 = vunpack.c.l.b16 %v1161_v24  ;;  %v2036_v8 = vrot.slane %v2035_v16, 4  ;;  %v2046_v60 = vrot.slane %v2045_v25, 4 }
 0x11f   : > { %v1308_v27 = vpop.f32.mrf.mxu2  ;;  %v5664_v54 = vadd.f32 %v2246_v1, %v1665_v31  ;;  %v1164_v52 = vrot.slane %v5033_v35, 5  ;;  %v2056_v19 = vshll.u32 %v4560_v44, 16  ;;  %v2066_v24 = vshrl.u32 %v4561_v11, 16 }
 0x120   : > { %v1379_v38 = vadd.f32 %v1308_v27, %v956_v30  ;;  %v1209_v30 = vunpack.c.l.b16 %v1158_v61  ;;  %v2050_v21 = vrot.slane %v2048_v14, 5  ;;  %v2041_v3 = vsel %vm5146_vm3, %v2036_v8, %v2040_v51 }
 0x121   : > { %4516 = vmatmul.msk.bf16.gmra.mxu3 %vm658_vm4, %v4892_v33  ;;  %v2053_v27 = vshrl.u32 %v4560_v44, 16  ;;  %v2062_v61 = vshll.u32 %v4561_v11, 16  ;;  %v1166_v25 = vrot.slane %v1164_v52, 4  ;;  %v2150_v51 = vunpack.c.l.b16 %v2041_v3  ;;  %v4562_v11 = vld [vmem:[%s5134_s27 + $0xb0] sm:$0x1]  ;;  %v4878_v3 = vld [vmem:[%s5134_s27 + $0x9c] sm:$0xff] }
 0x122   : > { %v1229_v48 = vpack.c.b16 %v1210_v41, %v1209_v30  ;;  %v2051_v4 = vsel %vm5146_vm3, %v2046_v60, %v2050_v21  ;;  %v2058_v8 = vrot.slane %v2056_v19, 5  ;;  %v2068_v21 = vrot.slane %v2066_v24, 4 }
 0x123   : > { %v2249_v9 = vpop.f32.mrf.mxu0  ;;  %v2151_v41 = vunpack.c.l.b16 %v2051_v4  ;;  %v2064_v60 = vrot.slane %v2062_v61, 5  ;;  %v2072_v4 = vshll.u32 %v4562_v11, 16 }
 0x124   : > { %v1595_v1 = vpop.f32.mrf.mxu3  ;;  %v960_v23 = vpop.f32.mrf.mxu1 }
 0x125   : > { %v1666_v5 = vadd.f32 %v1595_v1, %v1379_v38  ;;  %v4893_v1 = vld [vmem:[%s5134_s27 + $0x9c] sm:$0xff]  ;;  %v961_v30 = vadd.f32 %v960_v23, %v5415_v7  ;;  %v2170_v7 = vpack.c.b16 %v2151_v41, %v2150_v51  ;;  %v2074_v51 = vrot.slane %v2072_v4, 5 }
 0x126   : > { %4581 = vmatmul.msk.bf16.gmra.mxu0 %vm658_vm4, %v2169_v20  ;;  %v5034_v20 = vld [vmem:[%s5134_s27 + $0xa4] sm:$0x1] }
 0x127   : > { %v1310_v62 = vpop.f32.mrf.mxu2  ;;  %4371 = vmatmul.msk.bf16.gmra.mxu1 %vm658_vm4, %v4877_v56  ;;  %v5676_v31 = vadd.f32 %v2249_v9, %v1666_v5  ;;  %v1167_v16 = vrot.slane %v5034_v20, 5  ;;  %v4388_v56 = vrot.slane %v1033_v50, 9  ;;  %v2055_v5 = vrot.slane %v2053_v27, 4 }
 0x128   : > { %v1380_v33 = vadd.f32 %v1310_v62, %v958_v47 }
 0x129   : > { %v2059_v23 = vor.u32 %v2058_v8, %v2055_v5 }
 0x12b   : > { %v2251_v38 = vpop.f32.mrf.mxu0 }
 0x12c   : > { %v1597_v47 = vpop.f32.mrf.mxu3  ;;  %4404 = vmatmul.msk.bf16.gmra.mxu2 %vm658_vm4, %v1229_v48  ;;  %v962_v9 = vpop.f32.mrf.mxu1  ;;  %v1165_v48 = vsel %vm5320_vm7, %v4388_v56, %v1164_v52  ;;  %v4563_v52 = vld [vmem:[%s5134_s27 + $0xb4] sm:$0xf]  ;;  %v2060_v56 = vrot.slane %v2059_v23, 4 }
 0x12d   : > { %v1667_v14 = vadd.f32 %v1597_v47, %v1380_v33  ;;  %v1168_v33 = vsel %vm5320_vm7, %v1166_v25, %v1167_v16  ;;  %v1211_v27 = vunpack.c.l.b16 %v1165_v48  ;;  %v4564_v47 = vld [vmem:[%s5134_s27 + $0xb8] sm:$0xf]  ;;  %v963_v16 = vadd.f32 %v962_v9, %v5431_v34 }
 0x12e   : > { %v1212_v19 = vunpack.c.l.b16 %v1168_v33  ;;  %v2077_v5 = vshrl.u32 %v4563_v52, 16  ;;  %v2080_v8 = vshll.u32 %v4563_v52, 16  ;;  %v2090_v48 = vshrl.u32 %v4564_v47, 16  ;;  %v1034_v33 = vld [vmem:[%s5134_s27 + $0xa8] sm:$0xe] }
 0x12f   : > { %v1313_v62 = vpop.f32.mrf.mxu2  ;;  %v5689_v44 = vadd.f32 %v2251_v38, %v1667_v14  ;;  %v2069_v38 = vor.u32 %v2068_v21, %v2064_v60  ;;  %v5035_v21 = vld [vmem:[%s5134_s27 + $0xac] sm:$0xf]  ;;  %v2065_v9 = vsel %vm5146_vm3, %v2060_v56, %v2064_v60 }
 0x130   : > { %v1381_v35 = vadd.f32 %v1313_v62, %v961_v30  ;;  %v1230_v14 = vpack.c.b16 %v1212_v19, %v1211_v27  ;;  %v2086_v62 = vshll.u32 %v4564_v47, 16  ;;  %v2079_v27 = vrot.slane %v2077_v5, 4 }
 0x131   : > { %4517 = vmatmul.msk.bf16.gmra.mxu3 %vm658_vm4, %v4893_v1  ;;  %v2070_v1 = vrot.slane %v2069_v38, 4  ;;  %v2082_v19 = vrot.slane %v2080_v8, 5  ;;  %v2092_v47 = vrot.slane %v2090_v48, 4  ;;  %v4879_v48 = vld [vmem:[%s5134_s27 + $0xa8] sm:$0xff] }
 0x132   : > { %v2088_v38 = vrot.slane %v2086_v62, 5 }
 0x133   : > { %v2254_v50 = vpop.f32.mrf.mxu0  ;;  %v2075_v11 = vsel %vm5146_vm3, %v2070_v1, %v2074_v51 }
 0x134   : > { %v1600_v61 = vpop.f32.mrf.mxu3  ;;  %v965_v24 = vpop.f32.mrf.mxu1  ;;  %v2153_v56 = vunpack.c.l.b16 %v2075_v11  ;;  %v2093_v8 = vor.u32 %v2092_v47, %v2088_v38 }
 0x135   : > { %v1668_v20 = vadd.f32 %v1600_v61, %v1381_v35  ;;  %v1171_v35 = vrot.slane %v5035_v21, 5  ;;  %v4894_v61 = vld [vmem:[%s5134_s27 + $0xa8] sm:$0xff]  ;;  %v966_v60 = vadd.f32 %v965_v24, %v5451_v58 }
 0x136   : > { %4582 = vmatmul.msk.bf16.gmra.mxu0 %vm658_vm4, %v2170_v7  ;;  %v5036_v7 = vld [vmem:[%s5134_s27 + $0xb0] sm:$0x1] }
 0x137   : > { %v1315_v25 = vpop.f32.mrf.mxu2  ;;  %4372 = vmatmul.msk.bf16.gmra.mxu1 %vm658_vm4, %v4878_v3  ;;  %v5703_v30 = vadd.f32 %v2254_v50, %v1668_v20  ;;  %v1174_v23 = vrot.slane %v5036_v7, 5  ;;  %v4389_v20 = vrot.slane %v1034_v33, 9  ;;  %v1173_v52 = vrot.slane %v1171_v35, 4 }
 0x138   : > { %v1382_v41 = vadd.f32 %v1315_v25, %v963_v16  ;;  %v2152_v16 = vunpack.c.l.b16 %v2065_v9  ;;  %v4565_v25 = vld [vmem:[%s5134_s27 + $0xbc] sm:$0x1] }
 0x139   : > { %v1175_v5 = vsel %vm5320_vm7, %v1173_v52, %v1174_v23  ;;  %v2096_v58 = vshll.u32 %v4565_v25, 16  ;;  %v4567_v52 = vld [vmem:[%s5134_s27 + $0xc4] sm:$0xf] }
 0x13a   : > { %v2171_v24 = vpack.c.b16 %v2153_v56, %v2152_v16  ;;  %v1214_v11 = vunpack.c.l.b16 %v1175_v5  ;;  %v1035_v16 = vld [vmem:[%s5134_s27 + $0xb4] sm:$0xe]  ;;  %v5038_v56 = vld [vmem:[%s5134_s27 + $0xb8] sm:$0xf]  ;;  %v2114_v5 = vshrl.u32 %v4567_v52, 16 }
 0x13b   : > { %v2256_v34 = vpop.f32.mrf.mxu0  ;;  %v1178_v25 = vrot.slane %v5038_v56, 5 }
 0x13c   : > { %v1602_v50 = vpop.f32.mrf.mxu3  ;;  %4405 = vmatmul.msk.bf16.gmra.mxu2 %vm658_vm4, %v1230_v14  ;;  %v967_v3 = vpop.f32.mrf.mxu1  ;;  %v2083_v14 = vor.u32 %v2082_v19, %v2079_v27  ;;  %v2098_v27 = vrot.slane %v2096_v58, 5  ;;  %v4566_v19 = vld [vmem:[%s5134_s27 + $0xc0] sm:$0xf]  ;;  %v5039_v58 = vld [vmem:[%s5134_s27 + $0x14] sm:$0x1] }
 0x13d   : > { %v1669_v4 = vadd.f32 %v1602_v50, %v1382_v41  ;;  %v1172_v41 = vsel %vm5320_vm7, %v4389_v20, %v1171_v35  ;;  %v2094_v35 = vrot.slane %v2093_v8, 4  ;;  %v968_v23 = vadd.f32 %v967_v3, %v5468_v28 }
 0x13e   : > { %v1213_v9 = vunpack.c.l.b16 %v1172_v41  ;;  %v2084_v50 = vrot.slane %v2083_v14, 4  ;;  %v2101_v3 = vshrl.u32 %v4566_v19, 16  ;;  %v2104_v14 = vshll.u32 %v4566_v19, 16  ;;  %v4895_v19 = vld [vmem:[%s5134_s27 + $0xb4] sm:$0xff] }
 0x13f   : > { %v1318_v1 = vpop.f32.mrf.mxu2  ;;  %v5716_v51 = vadd.f32 %v2256_v34, %v1669_v4  ;;  %v5037_v4 = vld [vmem:[%s5134_s27 + $0x10] sm:$0xf]  ;;  %v2099_v28 = vsel %vm5146_vm3, %v2094_v35, %v2098_v27  ;;  %v2110_v41 = vshll.u32 %v4567_v52, 16  ;;  %v1180_v35 = vrot.slane %v1178_v25, 4  ;;  %v4586_v27 = vld [vmem:[%s5134_s27 + $0xc] sm:$0xe] }
 0x140   : > { %v1383_v21 = vadd.f32 %v1318_v1, %v966_v60  ;;  %v1231_v60 = vpack.c.b16 %v1214_v11, %v1213_v9  ;;  %v5040_v9 = vld [vmem:[%s5134_s27 + $0xbc] sm:$0x1]  ;;  %v4602_v52 = vrot.slane %v4586_v27, 9 }
 0x141   : > { %4518 = vmatmul.msk.bf16.gmra.mxu3 %vm658_vm4, %v4894_v61  ;;  %v2412_v61 = vrot.slane %v5037_v4, 5  ;;  %v2103_v4 = vrot.slane %v2101_v3, 4 }
 0x143   : > { %v2259_v62 = vpop.f32.mrf.mxu0  ;;  %v2414_v8 = vrot.slane %v2412_v61, 4 }
 0x144   : > { %v1605_v33 = vpop.f32.mrf.mxu3  ;;  %v970_v34 = vpop.f32.mrf.mxu1 }
 0x145   : > { %v1670_v7 = vadd.f32 %v1605_v33, %v1383_v21  ;;  %v2089_v21 = vsel %vm5146_vm3, %v2084_v50, %v2088_v38  ;;  %v4390_v33 = vrot.slane %v1035_v16, 9  ;;  %v971_v56 = vadd.f32 %v970_v34, %v5488_v53 }
 0x146   : > { %4583 = vmatmul.msk.bf16.gmra.mxu0 %vm658_vm4, %v2171_v24  ;;  %v2415_v24 = vrot.slane %v5039_v58, 5  ;;  %v2154_v38 = vunpack.c.l.b16 %v2089_v21  ;;  %v2112_v16 = vrot.slane %v2110_v41, 5  ;;  %v2116_v58 = vrot.slane %v2114_v5, 4  ;;  %v4568_v21 = vld [vmem:[%s5134_s27 + $0xc8] sm:$0x1] }
 0x147   : > { %v1320_v20 = vpop.f32.mrf.mxu2  ;;  %4373 = vmatmul.msk.bf16.gmra.mxu1 %vm658_vm4, %v4879_v48  ;;  %v5732_v1 = vadd.f32 %v2259_v62, %v1670_v7  ;;  %v1181_v62 = vrot.slane %v5040_v9, 5  ;;  %v2155_v7 = vunpack.c.l.b16 %v2099_v28  ;;  %v2413_v28 = vsel %vm5320_vm7, %v4602_v52, %v2412_v61  ;;  %v4748_v41 = vld [vmem:[%s5134_s27 + $0x18] sm:$0xf] }
 0x148   : > { %v1384_v47 = vadd.f32 %v1320_v20, %v968_v23  ;;  %v2106_v20 = vrot.slane %v2104_v14, 5  ;;  %v2524_v53 = vunpack.c.l.b16 %v2413_v28  ;;  %v2120_v27 = vshll.u32 %v4568_v21, 16 }
 0x149   : > { %v1182_v14 = vsel %vm5320_vm7, %v1180_v35, %v1181_v62  ;;  %v2172_v5 = vpack.c.b16 %v2155_v7, %v2154_v38  ;;  %v3080_v62 = vshrl.u32 %v4748_v41, 16  ;;  %v3083_v35 = vshll.u32 %v4748_v41, 16 }
 0x14b   : > { %v2261_v48 = vpop.f32.mrf.mxu0  ;;  %v3082_v21 = vrot.slane %v3080_v62, 4 }
 0x14c   : > { %v1607_v11 = vpop.f32.mrf.mxu3  ;;  %4406 = vmatmul.msk.bf16.gmra.mxu2 %vm658_vm4, %v1231_v60  ;;  %v972_v50 = vpop.f32.mrf.mxu1  ;;  %v1179_v60 = vsel %vm5320_vm7, %v4390_v33, %v1178_v25  ;;  %v5756_v25 = vld [vmem:[%s5134_s27 + $0x1c] sm:$0xf]  ;;  %v2117_v33 = vor.u32 %v2116_v58, %v2112_v16 }
 0x14d   : > { %v1671_v23 = vadd.f32 %v1607_v11, %v1384_v47  ;;  %v2416_v47 = vsel %vm5320_vm7, %v2414_v8, %v2415_v24  ;;  %v2107_v11 = vor.u32 %v2106_v20, %v2103_v4  ;;  %v4880_v24 = vld [vmem:[%s5134_s27 + $0xb4] sm:$0xff]  ;;  %v3093_v38 = vshrl.u32 %v5756_v25, 16 }
 0x14e   : > { %v2525_v34 = vunpack.c.l.b16 %v2416_v47  ;;  %v973_v4 = vadd.f32 %v972_v50, %v5508_v17 }
 0x14f   : > { %v1323_v9 = vpop.f32.mrf.mxu2  ;;  %v5760_v52 = vadd.f32 %v2261_v48, %v1671_v23  ;;  %v2108_v48 = vrot.slane %v2107_v11, 4  ;;  %v2118_v23 = vrot.slane %v2117_v33, 4  ;;  %v3095_v41 = vrot.slane %v3093_v38, 4 }
 0x150   : > { %v1385_v3 = vadd.f32 %v1323_v9, %v971_v56  ;;  %v5758_v61 = vpack.c.b16 %v2525_v34, %v2524_v53  ;;  %v1215_v56 = vunpack.c.l.b16 %v1179_v60  ;;  %v1216_v9 = vunpack.c.l.b16 %v1182_v14 }
 0x151   : > { %4519 = vmatmul.msk.bf16.gmra.mxu3 %vm658_vm4, %v4895_v19  ;;  %6497 = vst [vmem:[#allocation2_spill] sm:$0xff] %v5760_v52  ;;  %v3089_v19 = vshll.u32 %v5756_v25, 16  ;;  %v2122_v60 = vrot.slane %v2120_v27, 5  ;;  %v3085_v14 = vrot.slane %v3083_v35, 5  ;;  %v2113_v17 = vsel %vm5146_vm3, %v2108_v48, %v2112_v16  ;;  %v4813_v48 = vld [vmem:[%s5134_s27 + $0x18] sm:$0xe] }
 0x152   : > { %v1232_v58 = vpack.c.b16 %v1216_v9, %v1215_v56  ;;  %v4896_v9 = vld [vmem:[%s5134_s27 + $0xc0] sm:$0xff]  ;;  %v2156_v16 = vunpack.c.l.b16 %v2113_v17 }
 0x153   : > { %v2264_v8 = vpop.f32.mrf.mxu0  ;;  %v3091_v34 = vrot.slane %v3089_v19, 5  ;;  %v2123_v50 = vsel %vm5146_vm3, %v2118_v23, %v2122_v60  ;;  %v3086_v27 = vor.u32 %v3085_v14, %v3082_v21  ;;  %v4751_v23 = vld [vmem:[%s5134_s27 + $0x24] sm:$0xf]  ;;  %v5786_v60 = vld [vmem:[%s5134_s27 + $0x28] sm:$0xf] }
 0x154   : > { %v1610_v28 = vpop.f32.mrf.mxu3  ;;  %v975_v47 = vpop.f32.mrf.mxu1  ;;  %v2157_v35 = vunpack.c.l.b16 %v2123_v50 }
 0x155   : > { %v1672_v7 = vadd.f32 %v1610_v28, %v1385_v3  ;;  %v5771_v3 = vld [vmem:[%s5134_s27 + $0x20] sm:$0x1]  ;;  %v976_v62 = vadd.f32 %v975_v47, %v5531_v2  ;;  %v3087_v38 = vrot.slane %v3086_v27, 4  ;;  %v5041_v47 = vld [vmem:[%s5134_s27 + $0x1c] sm:$0xf] }
 0x156   : > { %4584 = vmatmul.msk.bf16.gmra.mxu0 %vm658_vm4, %v2172_v5  ;;  %v2419_v14 = vrot.slane %v5041_v47, 5  ;;  %v4587_v27 = vld [vmem:[%s5134_s27 + $0x18] sm:$0xe] }
 0x157   : > { %v1325_v20 = vpop.f32.mrf.mxu2  ;;  %4374 = vmatmul.msk.bf16.gmra.mxu1 %vm658_vm4, %v4880_v24  ;;  %v5768_v52 = vadd.f32 %v2264_v8, %v1672_v7  ;;  %v3096_v24 = vor.u32 %v3095_v41, %v3091_v34  ;;  %v3099_v8 = vshll.u32 %v5771_v3, 16  ;;  %v3092_v17 = vsel %vm5146_vm3, %v3087_v38, %v3091_v34 }
 0x158   : > { %v1386_v53 = vadd.f32 %v1325_v20, %v973_v4  ;;  %v2173_v20 = vpack.c.b16 %v2157_v35, %v2156_v16  ;;  %v3754_v34 = vrot.slane %v5771_v3, 5  ;;  %v5042_v16 = vld [vmem:[%s5134_s27 + $0x20] sm:$0x1]  ;;  %v4603_v38 = vrot.slane %v4587_v27, 9 }
 0x159   : > { %v3097_v7 = vrot.slane %v3096_v24, 4  ;;  %v3101_v4 = vrot.slane %v3099_v8, 5  ;;  %v3104_v24 = vshrl.u32 %v4751_v23, 16  ;;  %v3107_v8 = vshll.u32 %v4751_v23, 16 }
 0x15a   : > { %v2422_v35 = vrot.slane %v5042_v16, 5  ;;  %v2420_v27 = vsel %vm5320_vm7, %v4603_v38, %v2419_v14  ;;  %v4754_v38 = vld [vmem:[%s5134_s27 + $0x30] sm:$0xf] }
 0x15b   : > { %v2266_v5 = vpop.f32.mrf.mxu0  ;;  %v3102_v50 = vsel %vm5146_vm3, %v3097_v7, %v3101_v4  ;;  %v2421_v7 = vrot.slane %v2419_v14, 4  ;;  %v3109_v3 = vrot.slane %v3107_v8, 5 }
 0x15c   : > { %v1612_v11 = vpop.f32.mrf.mxu3  ;;  %4407 = vmatmul.msk.bf16.gmra.mxu2 %vm658_vm4, %v1232_v58  ;;  %v977_v33 = vpop.f32.mrf.mxu1  ;;  %v3751_v58 = vrot.slane %v5756_v25, 5  ;;  %v3466_v23 = vunpack.c.l.b16 %v3102_v50 }
 0x15d   : > { %v1673_v56 = vadd.f32 %v1612_v11, %v1386_v53  ;;  %v4829_v11 = vrot.slane %v4813_v48, 9  ;;  %v4897_v48 = vld [vmem:[%s5134_s27 + $0x18] sm:$0xff]  ;;  %v2423_v50 = vsel %vm5320_vm7, %v2421_v7, %v2422_v35  ;;  %v5826_v7 = vld [vmem:[%s5134_s27 + $0x34] sm:$0xf] }
 0x15f   : > { %v1328_v28 = vpop.f32.mrf.mxu2  ;;  %v5788_v21 = vadd.f32 %v2266_v5, %v1673_v56  ;;  %v3113_v5 = vshll.u32 %v5786_v60, 16  ;;  %v3117_v56 = vshrl.u32 %v5786_v60, 16 }
 0x160   : > { %v1387_v19 = vadd.f32 %v1328_v28, %v976_v62  ;;  %v3753_v62 = vrot.slane %v3751_v58, 4 }
 0x161   : > { %4520 = vmatmul.msk.bf16.gmra.mxu3 %vm658_vm4, %v4896_v9  ;;  %v978_v9 = vadd.f32 %v977_v33, %v5551_v29  ;;  %v3106_v33 = vrot.slane %v3104_v24, 4  ;;  %v5809_v47 = vrot.slane %v3113_v5, 5 }
 0x163   : > { %v2269_v2 = vpop.f32.mrf.mxu0  ;;  %v3110_v5 = vor.u32 %v3109_v3, %v3106_v33  ;;  %v4814_v33 = vld [vmem:[%s5134_s27 + $0x24] sm:$0xe] }
 0x164   : > { %v1615_v53 = vpop.f32.mrf.mxu3  ;;  %v980_v41 = vpop.f32.mrf.mxu1 }
 0x165   : > { %v1674_v25 = vadd.f32 %v1615_v53, %v1387_v19  ;;  %v3465_v19 = vunpack.c.l.b16 %v3092_v17  ;;  %v3119_v53 = vrot.slane %v3117_v56, 4  ;;  %v981_v14 = vadd.f32 %v980_v41, %v5433_v37 }
 0x166   : > { %4585 = vmatmul.msk.bf16.gmra.mxu0 %vm658_vm4, %v2173_v20  ;;  %v3752_v20 = vsel %vm5320_vm7, %v4829_v11, %v3751_v58  ;;  %v3758_v37 = vrot.slane %v5786_v60, 5 }
 0x167   : > { %v1330_v28 = vpop.f32.mrf.mxu2  ;;  %4619 = vmatmul.msk.bf16.vlgmr.msra.gmra.mxu1 %vm658_vm4, %v5758_v61  ;;  %v5807_v29 = vadd.f32 %v2269_v2, %v1674_v25  ;;  %v3755_v61 = vsel %vm5320_vm7, %v3753_v62, %v3754_v34  ;;  %v3497_v2 = vpack.c.b16 %v3466_v23, %v3465_v19  ;;  %v3863_v11 = vunpack.c.l.b16 %v3752_v20 }
 0x168   : > { %v1388_v4 = vadd.f32 %v1330_v28, %v978_v9  ;;  %v5818_v9 = vld [vmem:[%s5134_s27 + $0x2c] sm:$0x1]  ;;  %v3864_v8 = vunpack.c.l.b16 %v3755_v61  ;;  %v3120_v56 = vor.u32 %v3119_v53, %v5809_v47  ;;  %v2526_v62 = vunpack.c.l.b16 %v2420_v27 }
 0x169   : > { %v2527_v34 = vunpack.c.l.b16 %v2423_v50  ;;  %v3123_v16 = vshll.u32 %v5818_v9, 16  ;;  %v3128_v53 = vshrl.u32 %v4754_v38, 16  ;;  %v3131_v61 = vshll.u32 %v4754_v38, 16 }
 0x16a   : > { %v3895_v19 = vpack.c.b16 %v3864_v8, %v3863_v11  ;;  %v3137_v27 = vshll.u32 %v5826_v7, 16  ;;  %v3141_v50 = vshrl.u32 %v5826_v7, 16  ;;  %v5043_v11 = vld [vmem:[%s5134_s27 + $0x28] sm:$0xf]  ;;  %v3761_v60 = vrot.slane %v5818_v9, 5 }
 0x16b   : > { %v2271_v17 = vpop.f32.mrf.mxu0  ;;  %v2557_v23 = vpack.c.b16 %v2527_v34, %v2526_v62  ;;  %v3125_v20 = vrot.slane %v3123_v16, 5  ;;  %v2426_v8 = vrot.slane %v5043_v11, 5  ;;  %v4830_v62 = vrot.slane %v4814_v33, 9  ;;  %v4898_v11 = vld [vmem:[%s5134_s27 + $0x24] sm:$0xff] }
 0x16c   : > { %v1617_v58 = vpop.f32.mrf.mxu3  ;;  %4732 = vmatmul.msk.bf16.vlgmr.msra.gmra.mxu2 %vm658_vm4, %v4897_v48  ;;  %v982_v24 = vpop.f32.mrf.mxu1  ;;  %v3121_v48 = vrot.slane %v3120_v56, 4  ;;  %v3133_v33 = vrot.slane %v3131_v61, 5  ;;  %v5847_v9 = vrot.slane %v3137_v27, 5 }
 0x16d   : > { %v1675_v25 = vadd.f32 %v1617_v58, %v1388_v4  ;;  %v3111_v4 = vrot.slane %v3110_v5, 4  ;;  %v5044_v5 = vld [vmem:[%s5134_s27 + $0x2c] sm:$0x1] }
 0x16e   : > { %v2429_v56 = vrot.slane %v5044_v5, 5  ;;  %v3126_v16 = vsel %vm5146_vm3, %v3121_v48, %v3125_v20  ;;  %v3759_v20 = vsel %vm5320_vm7, %v4830_v62, %v3758_v37 }
 0x16f   : > { %v1333_v35 = vpop.f32.mrf.mxu2  ;;  %v5831_v41 = vadd.f32 %v2271_v17, %v1675_v25  ;;  %v4588_v17 = vld [vmem:[%s5134_s27 + $0x24] sm:$0xe]  ;;  %v983_v25 = vadd.f32 %v982_v24, %v5454_v63  ;;  %v3116_v34 = vsel %vm5146_vm3, %v3111_v4, %v5809_v47  ;;  %v2428_v24 = vrot.slane %v2426_v8, 4 }
 0x170   : > { %v1389_v28 = vadd.f32 %v1333_v35, %v981_v14  ;;  %v3760_v35 = vrot.slane %v3758_v37, 4  ;;  %v4604_v63 = vrot.slane %v4588_v17, 9  ;;  %v3467_v47 = vunpack.c.l.b16 %v3116_v34 }
 0x171   : > { %4797 = vmatmul.msk.bf16.vlgmr.msra.gmra.mxu3 %vm658_vm4, %v3497_v2  ;;  %6498 = vst [vmem:[#allocation3_spill] sm:$0xff] %v5831_v41  ;;  %v3468_v4 = vunpack.c.l.b16 %v3126_v16  ;;  %v5853_v41 = vld [vmem:[%s5134_s27 + $0x38] sm:$0x1] }
 0x172   : > { %v3147_v37 = vshll.u32 %v5853_v41, 16 }
 0x173   : > { %v2274_v3 = vpop.f32.mrf.mxu0  ;;  %v3498_v17 = vpack.c.b16 %v3468_v4, %v3467_v47  ;;  %v5045_v4 = vld [vmem:[%s5134_s27 + $0x34] sm:$0xf] }
 0x174   : > { %v1620_v58 = vpop.f32.mrf.mxu3  ;;  %v985_v2 = vpop.f32.mrf.mxu1 }
 0x175   : > { %v1676_v14 = vadd.f32 %v1620_v58, %v1389_v28  ;;  %v3130_v28 = vrot.slane %v3128_v53, 4  ;;  %v3143_v58 = vrot.slane %v3141_v50, 4  ;;  %v2430_v50 = vsel %vm5320_vm7, %v2428_v24, %v2429_v56  ;;  %v5872_v24 = vld [vmem:[%s5134_s27 + $0x40] sm:$0xf] }
 0x176   : > { %4846 = vmatmul.msk.bf16.vlgmr.msra.gmra.mxu0 %vm658_vm4, %v3895_v19 }
 0x177   : > { %v1335_v38 = vpop.f32.mrf.mxu2  ;;  %4620 = vmatmul.msk.bf16.gmra.mxu1 %vm658_vm4, %v2557_v23  ;;  %v5850_v5 = vadd.f32 %v2274_v3, %v1676_v14  ;;  %v3762_v23 = vsel %vm5320_vm7, %v3760_v35, %v3761_v60  ;;  %v3134_v53 = vor.u32 %v3133_v33, %v3130_v28  ;;  %v2427_v3 = vsel %vm5320_vm7, %v4604_v63, %v2426_v8 }
 0x178   : > { %v1390_v19 = vadd.f32 %v1335_v38, %v983_v25  ;;  %v3144_v14 = vor.u32 %v3143_v58, %v5847_v9  ;;  %v986_v60 = vadd.f32 %v985_v2, %v5471_v22  ;;  %v3865_v25 = vunpack.c.l.b16 %v3759_v20  ;;  %v4815_v58 = vld [vmem:[%s5134_s27 + $0x30] sm:$0xe] }
 0x179   : > { %v3866_v34 = vunpack.c.l.b16 %v3762_v23  ;;  %v2528_v35 = vunpack.c.l.b16 %v2427_v3  ;;  %v2529_v8 = vunpack.c.l.b16 %v2430_v50  ;;  %v3135_v28 = vrot.slane %v3134_v53, 4 }
 0x17a   : > { %v3145_v56 = vrot.slane %v3144_v14, 4  ;;  %v3149_v33 = vrot.slane %v3147_v37, 5  ;;  %v3765_v63 = vrot.slane %v5826_v7, 5  ;;  %v2433_v20 = vrot.slane %v5045_v4, 5  ;;  %v4589_v7 = vld [vmem:[%s5134_s27 + $0x30] sm:$0xe] }
 0x17b   : > { %v2276_v48 = vpop.f32.mrf.mxu0  ;;  %v2558_v47 = vpack.c.b16 %v2529_v8, %v2528_v35  ;;  %v4831_v50 = vrot.slane %v4815_v58, 9 }
 0x17c   : > { %v1622_v61 = vpop.f32.mrf.mxu3  ;;  %4733 = vmatmul.msk.bf16.gmra.mxu2 %vm658_vm4, %v4898_v11  ;;  %v987_v27 = vpop.f32.mrf.mxu1  ;;  %v4757_v11 = vld [vmem:[%s5134_s27 + $0x3c] sm:$0xf]  ;;  %v3150_v3 = vsel %vm5146_vm3, %v3145_v56, %v3149_v33  ;;  %v4899_v33 = vld [vmem:[%s5134_s27 + $0x30] sm:$0xff] }
 0x17d   : > { %v1677_v62 = vadd.f32 %v1622_v61, %v1390_v19  ;;  %v3896_v19 = vpack.c.b16 %v3866_v34, %v3865_v25  ;;  %v3140_v61 = vsel %vm5146_vm3, %v3135_v28, %v5847_v9  ;;  %v3152_v14 = vshrl.u32 %v4757_v11, 16  ;;  %v5046_v34 = vld [vmem:[%s5134_s27 + $0x38] sm:$0x1] }
 0x17e   : > { %v3767_v25 = vrot.slane %v3765_v63, 4  ;;  %v3768_v9 = vrot.slane %v5853_v41, 5  ;;  %v3469_v8 = vunpack.c.l.b16 %v3140_v61  ;;  %v2435_v28 = vrot.slane %v2433_v20, 4 }
 0x17f   : > { %v1338_v16 = vpop.f32.mrf.mxu2  ;;  %v5874_v22 = vadd.f32 %v2276_v48, %v1677_v62  ;;  %v3155_v48 = vshll.u32 %v4757_v11, 16  ;;  %v3161_v62 = vshll.u32 %v5872_v24, 16  ;;  %v3470_v58 = vunpack.c.l.b16 %v3150_v3 }
 0x180   : > { %v1391_v38 = vadd.f32 %v1338_v16, %v986_v60  ;;  %v988_v60 = vadd.f32 %v987_v27, %v5492_v55  ;;  %v2436_v16 = vrot.slane %v5046_v34, 5  ;;  %v3766_v11 = vsel %vm5320_vm7, %v4831_v50, %v3765_v63 }
 0x181   : > { %4798 = vmatmul.msk.bf16.gmra.mxu3 %vm658_vm4, %v3498_v17  ;;  %v3165_v17 = vshrl.u32 %v5872_v24, 16  ;;  %v3154_v55 = vrot.slane %v3152_v14, 4  ;;  %v3157_v27 = vrot.slane %v3155_v48, 5  ;;  %v5895_v41 = vrot.slane %v3161_v62, 5 }
 0x182   : > { %v2437_v3 = vsel %vm5320_vm7, %v2435_v28, %v2436_v16  ;;  %v3867_v50 = vunpack.c.l.b16 %v3766_v11  ;;  %v4816_v11 = vld [vmem:[%s5134_s27 + $0x3c] sm:$0xe] }
 0x183   : > { %v2279_v2 = vpop.f32.mrf.mxu0  ;;  %v3167_v4 = vrot.slane %v3165_v17, 4  ;;  %v3158_v62 = vor.u32 %v3157_v27, %v3154_v55 }
 0x184   : > { %v1625_v23 = vpop.f32.mrf.mxu3  ;;  %v990_v53 = vpop.f32.mrf.mxu1 }
 0x185   : > { %v1678_v37 = vadd.f32 %v1625_v23, %v1391_v38  ;;  %v4605_v38 = vrot.slane %v4589_v7, 9  ;;  %v5904_v7 = vld [vmem:[%s5134_s27 + $0x44] sm:$0x1]  ;;  %v3168_v17 = vor.u32 %v3167_v4, %v5895_v41  ;;  %v3159_v28 = vrot.slane %v3158_v62, 4 }
 0x186   : > { %4847 = vmatmul.msk.bf16.gmra.mxu0 %vm658_vm4, %v3896_v19 }
 0x187   : > { %v1340_v35 = vpop.f32.mrf.mxu2  ;;  %4621 = vmatmul.msk.bf16.gmra.mxu1 %vm658_vm4, %v2558_v47  ;;  %v5893_v19 = vadd.f32 %v2279_v2, %v1678_v37  ;;  %v3769_v47 = vsel %vm5320_vm7, %v3767_v25, %v3768_v9  ;;  %v2434_v61 = vsel %vm5320_vm7, %v4605_v38, %v2433_v20  ;;  %v3499_v2 = vpack.c.b16 %v3470_v58, %v3469_v8  ;;  %v5912_v38 = vld [vmem:[%s5134_s27 + $0x4c] sm:$0xf] }
 0x188   : > { %v1392_v56 = vadd.f32 %v1340_v35, %v988_v60  ;;  %v3868_v48 = vunpack.c.l.b16 %v3769_v47  ;;  %v991_v20 = vadd.f32 %v990_v53, %v5515_v26  ;;  %v2530_v60 = vunpack.c.l.b16 %v2434_v61  ;;  %v4760_v35 = vld [vmem:[%s5134_s27 + $0x48] sm:$0xf] }
 0x189   : > { %v2531_v25 = vunpack.c.l.b16 %v2437_v3  ;;  %v3171_v9 = vshll.u32 %v5904_v7, 16  ;;  %v3772_v26 = vrot.slane %v5872_v24, 5  ;;  %v3176_v27 = vshrl.u32 %v4760_v35, 16 }
 0x18a   : > { %v3897_v8 = vpack.c.b16 %v3868_v48, %v3867_v50  ;;  %v3179_v4 = vshll.u32 %v4760_v35, 16  ;;  %v3185_v47 = vshll.u32 %v5912_v38, 16  ;;  %v3189_v61 = vshrl.u32 %v5912_v38, 16  ;;  %v5048_v48 = vld [vmem:[%s5134_s27 + $0x44] sm:$0x1] }
 0x18b   : > { %v2281_v23 = vpop.f32.mrf.mxu0  ;;  %v3173_v58 = vrot.slane %v3171_v9, 5  ;;  %v2443_v62 = vrot.slane %v5048_v48, 5  ;;  %v3775_v24 = vrot.slane %v5904_v7, 5  ;;  %v3774_v9 = vrot.slane %v3772_v26, 4  ;;  %v5939_v48 = vld [vmem:[%s5134_s27 + $0x50] sm:$0x1] }
 0x18c   : > { %v1627_v63 = vpop.f32.mrf.mxu3  ;;  %4734 = vmatmul.msk.bf16.gmra.mxu2 %vm658_vm4, %v4899_v33  ;;  %v992_v14 = vpop.f32.mrf.mxu1  ;;  %v2559_v33 = vpack.c.b16 %v2531_v25, %v2530_v60  ;;  %v3164_v60 = vsel %vm5146_vm3, %v3159_v28, %v5895_v41  ;;  %v3181_v35 = vrot.slane %v3179_v4, 5  ;;  %v5933_v7 = vrot.slane %v3185_v47, 5 }
 0x18d   : > { %v1679_v37 = vadd.f32 %v1627_v63, %v1392_v56  ;;  %v3169_v56 = vrot.slane %v3168_v17, 4  ;;  %v3471_v41 = vunpack.c.l.b16 %v3164_v60 }
 0x18f   : > { %v1343_v34 = vpop.f32.mrf.mxu2  ;;  %v5917_v53 = vadd.f32 %v2281_v23, %v1679_v37  ;;  %v4590_v23 = vld [vmem:[%s5134_s27 + $0x3c] sm:$0xe]  ;;  %v993_v37 = vadd.f32 %v992_v14, %v5533_v43  ;;  %v3174_v25 = vsel %vm5146_vm3, %v3169_v56, %v3173_v58 }
 0x190   : > { %v1393_v16 = vadd.f32 %v1343_v34, %v991_v20  ;;  %v4832_v20 = vrot.slane %v4816_v11, 9  ;;  %v3191_v11 = vrot.slane %v3189_v61, 4  ;;  %v4606_v43 = vrot.slane %v4590_v23, 9 }
 0x191   : > { %4799 = vmatmul.msk.bf16.gmra.mxu3 %vm658_vm4, %v3499_v2  ;;  %v5047_v2 = vld [vmem:[%s5134_s27 + $0x40] sm:$0xf]  ;;  %v3472_v28 = vunpack.c.l.b16 %v3174_v25 }
 0x192   : > { %v2440_v50 = vrot.slane %v5047_v2, 5  ;;  %v3773_v58 = vsel %vm5320_vm7, %v4832_v20, %v3772_v26  ;;  %v3195_v26 = vshll.u32 %v5939_v48, 16 }
 0x193   : > { %v2284_v55 = vpop.f32.mrf.mxu0  ;;  %v3500_v23 = vpack.c.b16 %v3472_v28, %v3471_v41  ;;  %v5049_v28 = vld [vmem:[%s5134_s27 + $0x4c] sm:$0xf] }
 0x194   : > { %v1630_v3 = vpop.f32.mrf.mxu3  ;;  %v995_v63 = vpop.f32.mrf.mxu1  ;;  %v2442_v14 = vrot.slane %v2440_v50, 4 }
 0x195   : > { %v1680_v17 = vadd.f32 %v1630_v3, %v1393_v16  ;;  %v3178_v16 = vrot.slane %v3176_v27, 4  ;;  %v4900_v3 = vld [vmem:[%s5134_s27 + $0x3c] sm:$0xff] }
 0x196   : > { %4848 = vmatmul.msk.bf16.gmra.mxu0 %vm658_vm4, %v3897_v8  ;;  %v2444_v61 = vsel %vm5320_vm7, %v2442_v14, %v2443_v62  ;;  %v5958_v14 = vld [vmem:[%s5134_s27 + $0x58] sm:$0xf] }
 0x197   : > { %v1345_v34 = vpop.f32.mrf.mxu2  ;;  %4622 = vmatmul.msk.bf16.gmra.mxu1 %vm658_vm4, %v2559_v33  ;;  %v5936_v2 = vadd.f32 %v2284_v55, %v1680_v17  ;;  %v3776_v33 = vsel %vm5320_vm7, %v3774_v9, %v3775_v24  ;;  %v3182_v27 = vor.u32 %v3181_v35, %v3178_v16  ;;  %v2441_v55 = vsel %vm5320_vm7, %v4606_v43, %v2440_v50 }
 0x198   : > { %v1394_v8 = vadd.f32 %v1345_v34, %v993_v37  ;;  %v3192_v17 = vor.u32 %v3191_v11, %v5933_v7  ;;  %v996_v24 = vadd.f32 %v995_v63, %v5554_v40  ;;  %v3869_v37 = vunpack.c.l.b16 %v3773_v58  ;;  %v4817_v11 = vld [vmem:[%s5134_s27 + $0x48] sm:$0xe] }
 0x199   : > { %v3870_v60 = vunpack.c.l.b16 %v3776_v33  ;;  %v2532_v9 = vunpack.c.l.b16 %v2441_v55  ;;  %v2533_v50 = vunpack.c.l.b16 %v2444_v61  ;;  %v3183_v16 = vrot.slane %v3182_v27, 4 }
 0x19a   : > { %v3193_v62 = vrot.slane %v3192_v17, 4  ;;  %v3197_v35 = vrot.slane %v3195_v26, 5  ;;  %v3779_v43 = vrot.slane %v5912_v38, 5  ;;  %v2447_v58 = vrot.slane %v5049_v28, 5  ;;  %v4591_v38 = vld [vmem:[%s5134_s27 + $0x48] sm:$0xe] }
 0x19b   : > { %v2286_v56 = vpop.f32.mrf.mxu0  ;;  %v2560_v41 = vpack.c.b16 %v2533_v50, %v2532_v9  ;;  %v4833_v61 = vrot.slane %v4817_v11, 9 }
 0x19c   : > { %v1632_v4 = vpop.f32.mrf.mxu3  ;;  %4735 = vmatmul.msk.bf16.gmra.mxu2 %vm658_vm4, %v4900_v3  ;;  %v997_v47 = vpop.f32.mrf.mxu1  ;;  %v4763_v3 = vld [vmem:[%s5134_s27 + $0x54] sm:$0xf]  ;;  %v3198_v55 = vsel %vm5146_vm3, %v3193_v62, %v3197_v35  ;;  %v4901_v35 = vld [vmem:[%s5134_s27 + $0x48] sm:$0xff] }
 0x19d   : > { %v1681_v20 = vadd.f32 %v1632_v4, %v1394_v8  ;;  %v3898_v8 = vpack.c.b16 %v3870_v60, %v3869_v37  ;;  %v3188_v4 = vsel %vm5146_vm3, %v3183_v16, %v5933_v7  ;;  %v3200_v17 = vshrl.u32 %v4763_v3, 16  ;;  %v5050_v60 = vld [vmem:[%s5134_s27 + $0x50] sm:$0x1] }
 0x19e   : > { %v3781_v37 = vrot.slane %v3779_v43, 4  ;;  %v3782_v7 = vrot.slane %v5939_v48, 5  ;;  %v3473_v50 = vunpack.c.l.b16 %v3188_v4  ;;  %v2449_v16 = vrot.slane %v2447_v58, 4 }
 0x19f   : > { %v1348_v25 = vpop.f32.mrf.mxu2  ;;  %v5960_v40 = vadd.f32 %v2286_v56, %v1681_v20  ;;  %v3203_v56 = vshll.u32 %v4763_v3, 16  ;;  %v3209_v20 = vshll.u32 %v5958_v14, 16  ;;  %v3474_v11 = vunpack.c.l.b16 %v3198_v55 }
 0x1a0   : > { %v1395_v34 = vadd.f32 %v1348_v25, %v996_v24  ;;  %v998_v24 = vadd.f32 %v997_v47, %v5569_v10  ;;  %v2450_v25 = vrot.slane %v5050_v60, 5  ;;  %v3780_v3 = vsel %vm5320_vm7, %v4833_v61, %v3779_v43 }
 0x1a1   : > { %4800 = vmatmul.msk.bf16.gmra.mxu3 %vm658_vm4, %v3500_v23  ;;  %v3213_v23 = vshrl.u32 %v5958_v14, 16  ;;  %v3202_v10 = vrot.slane %v3200_v17, 4  ;;  %v3205_v47 = vrot.slane %v3203_v56, 5  ;;  %v5981_v48 = vrot.slane %v3209_v20, 5 }
 0x1a2   : > { %v2451_v55 = vsel %vm5320_vm7, %v2449_v16, %v2450_v25  ;;  %v3871_v61 = vunpack.c.l.b16 %v3780_v3  ;;  %v4818_v3 = vld [vmem:[%s5134_s27 + $0x54] sm:$0xe] }
 0x1a3   : > { %v2289_v63 = vpop.f32.mrf.mxu0  ;;  %v3215_v28 = vrot.slane %v3213_v23, 4  ;;  %v3206_v20 = vor.u32 %v3205_v47, %v3202_v10 }
 0x1a4   : > { %v1635_v33 = vpop.f32.mrf.mxu3  ;;  %v1000_v27 = vpop.f32.mrf.mxu1 }
 0x1a5   : > { %v1682_v26 = vadd.f32 %v1635_v33, %v1395_v34  ;;  %v4607_v34 = vrot.slane %v4591_v38, 9  ;;  %v5990_v38 = vld [vmem:[%s5134_s27 + $0x5c] sm:$0x1]  ;;  %v3216_v23 = vor.u32 %v3215_v28, %v5981_v48  ;;  %v3207_v16 = vrot.slane %v3206_v20, 4 }
 0x1a6   : > { %4849 = vmatmul.msk.bf16.gmra.mxu0 %vm658_vm4, %v3898_v8 }
 0x1a7   : > { %v1350_v9 = vpop.f32.mrf.mxu2  ;;  %4623 = vmatmul.msk.bf16.gmra.mxu1 %vm658_vm4, %v2560_v41  ;;  %v5979_v8 = vadd.f32 %v2289_v63, %v1682_v26  ;;  %v3783_v41 = vsel %vm5320_vm7, %v3781_v37, %v3782_v7  ;;  %v2448_v4 = vsel %vm5320_vm7, %v4607_v34, %v2447_v58  ;;  %v3501_v63 = vpack.c.b16 %v3474_v11, %v3473_v50  ;;  %v5998_v34 = vld [vmem:[%s5134_s27 + $0x64] sm:$0xf] }
 0x1a8   : > { %v1396_v62 = vadd.f32 %v1350_v9, %v998_v24  ;;  %v3872_v56 = vunpack.c.l.b16 %v3783_v41  ;;  %v1001_v58 = vadd.f32 %v1000_v27, %v5445_v49  ;;  %v2534_v24 = vunpack.c.l.b16 %v2448_v4  ;;  %v4766_v9 = vld [vmem:[%s5134_s27 + $0x60] sm:$0xf] }
 0x1a9   : > { %v2535_v37 = vunpack.c.l.b16 %v2451_v55  ;;  %v3219_v7 = vshll.u32 %v5990_v38, 16  ;;  %v3786_v49 = vrot.slane %v5958_v14, 5  ;;  %v3224_v47 = vshrl.u32 %v4766_v9, 16 }
 0x1aa   : > { %v3899_v50 = vpack.c.b16 %v3872_v56, %v3871_v61  ;;  %v3227_v28 = vshll.u32 %v4766_v9, 16  ;;  %v3233_v41 = vshll.u32 %v5998_v34, 16  ;;  %v3237_v4 = vshrl.u32 %v5998_v34, 16  ;;  %v5052_v56 = vld [vmem:[%s5134_s27 + $0x5c] sm:$0x1] }
 0x1ab   : > { %v2291_v33 = vpop.f32.mrf.mxu0  ;;  %v3221_v11 = vrot.slane %v3219_v7, 5  ;;  %v2457_v20 = vrot.slane %v5052_v56, 5  ;;  %v3789_v14 = vrot.slane %v5990_v38, 5  ;;  %v3788_v7 = vrot.slane %v3786_v49, 4  ;;  %v6025_v56 = vld [vmem:[%s5134_s27 + $0x68] sm:$0x1] }
 0x1ac   : > { %v1637_v43 = vpop.f32.mrf.mxu3  ;;  %4736 = vmatmul.msk.bf16.gmra.mxu2 %vm658_vm4, %v4901_v35  ;;  %v1002_v17 = vpop.f32.mrf.mxu1  ;;  %v2561_v35 = vpack.c.b16 %v2535_v37, %v2534_v24  ;;  %v3212_v24 = vsel %vm5146_vm3, %v3207_v16, %v5981_v48  ;;  %v3229_v9 = vrot.slane %v3227_v28, 5  ;;  %v6019_v38 = vrot.slane %v3233_v41, 5 }
 0x1ad   : > { %v1683_v26 = vadd.f32 %v1637_v43, %v1396_v62  ;;  %v3217_v62 = vrot.slane %v3216_v23, 4  ;;  %v3475_v48 = vunpack.c.l.b16 %v3212_v24 }
 0x1af   : > { %v1353_v60 = vpop.f32.mrf.mxu2  ;;  %v6003_v27 = vadd.f32 %v2291_v33, %v1683_v26  ;;  %v4592_v33 = vld [vmem:[%s5134_s27 + $0x54] sm:$0xe]  ;;  %v1003_v26 = vadd.f32 %v1002_v17, %v5464_v0  ;;  %v3222_v37 = vsel %vm5146_vm3, %v3217_v62, %v3221_v11 }
 0x1b0   : > { %v1397_v25 = vadd.f32 %v1353_v60, %v1001_v58  ;;  %v4834_v58 = vrot.slane %v4818_v3, 9  ;;  %v3239_v3 = vrot.slane %v3237_v4, 4  ;;  %v4608_v0 = vrot.slane %v4592_v33, 9 }
 0x1b1   : > { %4801 = vmatmul.msk.bf16.gmra.mxu3 %vm658_vm4, %v3501_v63  ;;  %v5051_v63 = vld [vmem:[%s5134_s27 + $0x58] sm:$0xf]  ;;  %v3476_v16 = vunpack.c.l.b16 %v3222_v37 }
 0x1b2   : > { %v2454_v61 = vrot.slane %v5051_v63, 5  ;;  %v3787_v11 = vsel %vm5320_vm7, %v4834_v58, %v3786_v49  ;;  %v3243_v49 = vshll.u32 %v6025_v56, 16 }
 0x1b3   : > { %v2294_v10 = vpop.f32.mrf.mxu0  ;;  %v3502_v33 = vpack.c.b16 %v3476_v16, %v3475_v48 }
 0x1b4   : > { %v1640_v55 = vpop.f32.mrf.mxu3  ;;  %v1005_v43 = vpop.f32.mrf.mxu1  ;;  %v2456_v17 = vrot.slane %v2454_v61, 4 }
 0x1b5   : > { %v1684_v23 = vadd.f32 %v1640_v55, %v1397_v25  ;;  %v3226_v25 = vrot.slane %v3224_v47, 4  ;;  %v4902_v55 = vld [vmem:[%s5134_s27 + $0x54] sm:$0xff] }
 0x1b6   : > { %4850 = vmatmul.msk.bf16.gmra.mxu0 %vm658_vm4, %v3899_v50  ;;  %v2458_v4 = vsel %vm5320_vm7, %v2456_v17, %v2457_v20  ;;  %v3245_v20 = vrot.slane %v3243_v49, 5  ;;  %v6044_v17 = vld [vmem:[%s5134_s27 + $0x70] sm:$0xf]  ;;  %v4593_v49 = vld [vmem:[%s5134_s27 + $0x60] sm:$0xe] }
 0x1b7   : > { %v1355_v60 = vpop.f32.mrf.mxu2  ;;  %4624 = vmatmul.msk.bf16.gmra.mxu1 %vm658_vm4, %v2561_v35  ;;  %v6022_v63 = vadd.f32 %v2294_v10, %v1684_v23  ;;  %v3790_v35 = vsel %vm5320_vm7, %v3788_v7, %v3789_v14  ;;  %v3230_v47 = vor.u32 %v3229_v9, %v3226_v25  ;;  %v2455_v10 = vsel %vm5320_vm7, %v4608_v0, %v2454_v61 }
 0x1b8   : > { %v1398_v50 = vadd.f32 %v1355_v60, %v1003_v26  ;;  %v3240_v23 = vor.u32 %v3239_v3, %v6019_v38  ;;  %v1006_v14 = vadd.f32 %v1005_v43, %v5485_v39  ;;  %v3873_v26 = vunpack.c.l.b16 %v3787_v11  ;;  %v4769_v3 = vld [vmem:[%s5134_s27 + $0x6c] sm:$0xf] }
 0x1b9   : > { %v3874_v24 = vunpack.c.l.b16 %v3790_v35  ;;  %v2536_v7 = vunpack.c.l.b16 %v2455_v10  ;;  %v2537_v60 = vunpack.c.l.b16 %v2458_v4  ;;  %v3231_v25 = vrot.slane %v3230_v47, 4  ;;  %v5053_v10 = vld [vmem:[%s5134_s27 + $0x64] sm:$0xf] }
 0x1ba   : > { %v3241_v9 = vrot.slane %v3240_v23, 4  ;;  %v3793_v0 = vrot.slane %v5998_v34, 5  ;;  %v2461_v4 = vrot.slane %v5053_v10, 5  ;;  %v3248_v34 = vshrl.u32 %v4769_v3, 16 }
 0x1bb   : > { %v2296_v62 = vpop.f32.mrf.mxu0  ;;  %v2562_v48 = vpack.c.b16 %v2537_v60, %v2536_v7  ;;  %v3236_v47 = vsel %vm5146_vm3, %v3231_v25, %v6019_v38  ;;  %v3796_v38 = vrot.slane %v6025_v56, 5 }
 0x1bc   : > { %v1642_v28 = vpop.f32.mrf.mxu3  ;;  %4737 = vmatmul.msk.bf16.gmra.mxu2 %vm658_vm4, %v4902_v55  ;;  %v1007_v41 = vpop.f32.mrf.mxu1  ;;  %v4819_v55 = vld [vmem:[%s5134_s27 + $0x60] sm:$0xe]  ;;  %v3477_v60 = vunpack.c.l.b16 %v3236_v47  ;;  %v6072_v47 = vld [vmem:[%s5134_s27 + $0x74] sm:$0x1] }
 0x1bd   : > { %v1685_v58 = vadd.f32 %v1642_v28, %v1398_v50  ;;  %v3900_v50 = vpack.c.b16 %v3874_v24, %v3873_v26  ;;  %v4835_v16 = vrot.slane %v4819_v55, 9  ;;  %v3246_v28 = vsel %vm5146_vm3, %v3241_v9, %v3245_v20  ;;  %v5054_v24 = vld [vmem:[%s5134_s27 + $0x68] sm:$0x1]  ;;  %v4903_v20 = vld [vmem:[%s5134_s27 + $0x60] sm:$0xff] }
 0x1be   : > { %v3795_v26 = vrot.slane %v3793_v0, 4  ;;  %v4609_v55 = vrot.slane %v4593_v49, 9 }
 0x1bf   : > { %v1358_v37 = vpop.f32.mrf.mxu2  ;;  %v6046_v39 = vadd.f32 %v2296_v62, %v1685_v58  ;;  %v3251_v62 = vshll.u32 %v4769_v3, 16  ;;  %v3257_v58 = vshll.u32 %v6044_v17, 16  ;;  %v3794_v25 = vsel %vm5320_vm7, %v4835_v16, %v3793_v0 }
 0x1c0   : > { %v1399_v61 = vadd.f32 %v1358_v37, %v1006_v14  ;;  %v1008_v14 = vadd.f32 %v1007_v41, %v5504_v6  ;;  %v2464_v37 = vrot.slane %v5054_v24, 5  ;;  %v2463_v3 = vrot.slane %v2461_v4, 4 }
 0x1c1   : > { %4802 = vmatmul.msk.bf16.gmra.mxu3 %vm658_vm4, %v3502_v33  ;;  %v3261_v33 = vshrl.u32 %v6044_v17, 16  ;;  %v3250_v6 = vrot.slane %v3248_v34, 4  ;;  %v3253_v41 = vrot.slane %v3251_v62, 5  ;;  %v6067_v56 = vrot.slane %v3257_v58, 5 }
 0x1c2   : > { %v3797_v10 = vsel %vm5320_vm7, %v3795_v26, %v3796_v38  ;;  %v3875_v16 = vunpack.c.l.b16 %v3794_v25  ;;  %v2462_v34 = vsel %vm5320_vm7, %v4609_v55, %v2461_v4  ;;  %v3267_v26 = vshll.u32 %v6072_v47, 16  ;;  %v6084_v25 = vld [vmem:[%s5134_s27 + $0x7c] sm:$0xf]  ;;  %v4820_v55 = vld [vmem:[%s5134_s27 + $0x6c] sm:$0xe] }
 0x1c3   : > { %v2299_v43 = vpop.f32.mrf.mxu0  ;;  %v3876_v62 = vunpack.c.l.b16 %v3797_v10  ;;  %v3254_v58 = vor.u32 %v3253_v41, %v3250_v6  ;;  %v2538_v24 = vunpack.c.l.b16 %v2462_v34  ;;  %v3281_v10 = vshll.u32 %v6084_v25, 16 }
 0x1c4   : > { %v1645_v11 = vpop.f32.mrf.mxu3  ;;  %v1010_v35 = vpop.f32.mrf.mxu1 }
 0x1c5   : > { %v1686_v23 = vadd.f32 %v1645_v11, %v1399_v61  ;;  %v3478_v61 = vunpack.c.l.b16 %v3246_v28  ;;  %v3263_v11 = vrot.slane %v3261_v33, 4  ;;  %v3901_v4 = vpack.c.b16 %v3876_v62, %v3875_v16  ;;  %v4594_v16 = vld [vmem:[%s5134_s27 + $0x6c] sm:$0xe] }
 0x1c6   : > { %4851 = vmatmul.msk.bf16.gmra.mxu0 %vm658_vm4, %v3900_v50 }
 0x1c7   : > { %v1360_v7 = vpop.f32.mrf.mxu2  ;;  %4625 = vmatmul.msk.bf16.gmra.mxu1 %vm658_vm4, %v2562_v48  ;;  %v6065_v50 = vadd.f32 %v2299_v43, %v1686_v23  ;;  %v3503_v0 = vpack.c.b16 %v3478_v61, %v3477_v60  ;;  %v2465_v23 = vsel %vm5320_vm7, %v2463_v3, %v2464_v37  ;;  %v3264_v33 = vor.u32 %v3263_v11, %v6067_v56  ;;  %v4772_v60 = vld [vmem:[%s5134_s27 + $0x78] sm:$0xf] }
 0x1c8   : > { %v1400_v9 = vadd.f32 %v1360_v7, %v1008_v14  ;;  %v1011_v14 = vadd.f32 %v1010_v35, %v5523_v45  ;;  %v2539_v7 = vunpack.c.l.b16 %v2465_v23  ;;  %v3255_v37 = vrot.slane %v3254_v58, 4  ;;  %v5055_v23 = vld [vmem:[%s5134_s27 + $0x70] sm:$0xf] }
 0x1c9   : > { %v3800_v45 = vrot.slane %v6044_v17, 5  ;;  %v3272_v35 = vshrl.u32 %v4772_v60, 16  ;;  %v3275_v11 = vshll.u32 %v4772_v60, 16  ;;  %v2468_v62 = vrot.slane %v5055_v23, 5 }
 0x1ca   : > { %v2563_v41 = vpack.c.b16 %v2539_v7, %v2538_v24  ;;  %v3260_v17 = vsel %vm5146_vm3, %v3255_v37, %v6067_v56  ;;  %v4610_v7 = vrot.slane %v4594_v16, 9  ;;  %v3283_v56 = vrot.slane %v3281_v10, 5 }
 0x1cb   : > { %v2301_v48 = vpop.f32.mrf.mxu0  ;;  %v3277_v60 = vrot.slane %v3275_v11, 5 }
 0x1cc   : > { %v1647_v28 = vpop.f32.mrf.mxu3  ;;  %4738 = vmatmul.msk.bf16.gmra.mxu2 %vm658_vm4, %v4903_v20  ;;  %v1012_v43 = vpop.f32.mrf.mxu1  ;;  %v3269_v20 = vrot.slane %v3267_v26, 5  ;;  %v3802_v26 = vrot.slane %v3800_v45, 4 }
 0x1cd   : > { %v1687_v49 = vadd.f32 %v1647_v28, %v1400_v9  ;;  %v3265_v9 = vrot.slane %v3264_v33, 4  ;;  %v3285_v28 = vshrl.u32 %v6084_v25, 16  ;;  %v1013_v33 = vadd.f32 %v1012_v43, %v5546_v12 }
 0x1ce   : > { %v3479_v12 = vunpack.c.l.b16 %v3260_v17 }
 0x1cf   : > { %v1363_v38 = vpop.f32.mrf.mxu2  ;;  %v6089_v3 = vadd.f32 %v2301_v48, %v1687_v49  ;;  %v4836_v48 = vrot.slane %v4820_v55, 9  ;;  %v3803_v49 = vrot.slane %v6072_v47, 5  ;;  %v4904_v55 = vld [vmem:[%s5134_s27 + $0x6c] sm:$0xff]  ;;  %v2470_v47 = vrot.slane %v2468_v62, 4 }
 0x1d0   : > { %v1401_v61 = vadd.f32 %v1363_v38, %v1011_v14  ;;  %v3270_v14 = vsel %vm5146_vm3, %v3265_v9, %v3269_v20  ;;  %v3274_v38 = vrot.slane %v3272_v35, 4  ;;  %v6109_v9 = vld [vmem:[%s5134_s27 + $0x80] sm:$0x1] }
 0x1d1   : > { %4803 = vmatmul.msk.bf16.gmra.mxu3 %vm658_vm4, %v3503_v0  ;;  %v3480_v43 = vunpack.c.l.b16 %v3270_v14  ;;  %v3801_v35 = vsel %vm5320_vm7, %v4836_v48, %v3800_v45  ;;  %v3291_v17 = vshll.u32 %v6109_v9, 16 }
 0x1d2   : > { %v3278_v11 = vor.u32 %v3277_v60, %v3274_v38 }
 0x1d3   : > { %v2304_v6 = vpop.f32.mrf.mxu0  ;;  %v3504_v48 = vpack.c.b16 %v3480_v43, %v3479_v12  ;;  %v3807_v12 = vrot.slane %v6084_v25, 5 }
 0x1d4   : > { %v1650_v0 = vpop.f32.mrf.mxu3  ;;  %v1015_v34 = vpop.f32.mrf.mxu1 }
 0x1d5   : > { %v1688_v58 = vadd.f32 %v1650_v0, %v1401_v61  ;;  %v3287_v61 = vrot.slane %v3285_v28, 4  ;;  %v5056_v0 = vld [vmem:[%s5134_s27 + $0x74] sm:$0x1] }
 0x1d6   : > { %4852 = vmatmul.msk.bf16.gmra.mxu0 %vm658_vm4, %v3901_v4  ;;  %v2471_v4 = vrot.slane %v5056_v0, 5 }
 0x1d7   : > { %v1365_v24 = vpop.f32.mrf.mxu2  ;;  %4626 = vmatmul.msk.bf16.gmra.mxu1 %vm658_vm4, %v2563_v41  ;;  %v6106_v23 = vadd.f32 %v2304_v6, %v1688_v58  ;;  %v3804_v41 = vsel %vm5320_vm7, %v3802_v26, %v3803_v49  ;;  %v2469_v6 = vsel %vm5320_vm7, %v4610_v7, %v2468_v62  ;;  %v3288_v58 = vor.u32 %v3287_v61, %v3283_v56  ;;  %v4775_v61 = vld [vmem:[%s5134_s27 + $0x84] sm:$0xf] }
 0x1d8   : > { %v1402_v37 = vadd.f32 %v1365_v24, %v1013_v33  ;;  %v2472_v16 = vsel %vm5320_vm7, %v2470_v47, %v2471_v4  ;;  %v1016_v49 = vadd.f32 %v1015_v34, %v5565_v59  ;;  %v3877_v33 = vunpack.c.l.b16 %v3801_v35  ;;  %v4821_v4 = vld [vmem:[%s5134_s27 + $0x78] sm:$0xe] }
 0x1d9   : > { %v3878_v14 = vunpack.c.l.b16 %v3804_v41  ;;  %v2540_v38 = vunpack.c.l.b16 %v2469_v6  ;;  %v2541_v24 = vunpack.c.l.b16 %v2472_v16  ;;  %v3279_v62 = vrot.slane %v3278_v11, 4  ;;  %v5057_v6 = vld [vmem:[%s5134_s27 + $0x7c] sm:$0xf] }
 0x1da   : > { %v3289_v7 = vrot.slane %v3288_v58, 4  ;;  %v2475_v16 = vrot.slane %v5057_v6, 5  ;;  %v3296_v58 = vshrl.u32 %v4775_v61, 16 }
 0x1db   : > { %v2306_v20 = vpop.f32.mrf.mxu0  ;;  %v3902_v47 = vpack.c.b16 %v3878_v14, %v3877_v33  ;;  %v2564_v34 = vpack.c.b16 %v2541_v24, %v2540_v38  ;;  %v3284_v41 = vsel %vm5146_vm3, %v3279_v62, %v3283_v56  ;;  %v4837_v56 = vrot.slane %v4821_v4, 9  ;;  %v4905_v62 = vld [vmem:[%s5134_s27 + $0x78] sm:$0xff] }
 0x1dc   : > { %v1652_v10 = vpop.f32.mrf.mxu3  ;;  %4739 = vmatmul.msk.bf16.gmra.mxu2 %vm658_vm4, %v4904_v55  ;;  %v1017_v28 = vpop.f32.mrf.mxu1  ;;  %v3293_v55 = vrot.slane %v3291_v17, 5  ;;  %v3299_v17 = vshll.u32 %v4775_v61, 16  ;;  %v3481_v14 = vunpack.c.l.b16 %v3284_v41  ;;  %v3809_v38 = vrot.slane %v3807_v12, 4 }
 0x1dd   : > { %v1689_v45 = vadd.f32 %v1652_v10, %v1402_v37  ;;  %v6125_v37 = vld [vmem:[%s5134_s27 + $0x88] sm:$0xf]  ;;  %v4595_v10 = vld [vmem:[%s5134_s27 + $0x78] sm:$0xe] }
 0x1de   : > { %v3294_v11 = vsel %vm5146_vm3, %v3289_v7, %v3293_v55  ;;  %v3309_v25 = vshrl.u32 %v6125_v37, 16  ;;  %v4611_v24 = vrot.slane %v4595_v10, 9  ;;  %v2477_v7 = vrot.slane %v2475_v16, 4  ;;  %v5058_v55 = vld [vmem:[%s5134_s27 + $0x80] sm:$0x1] }
 0x1df   : > { %v1368_v26 = vpop.f32.mrf.mxu2  ;;  %v6127_v0 = vadd.f32 %v2306_v20, %v1689_v45  ;;  %v3305_v45 = vshll.u32 %v6125_v37, 16  ;;  %v2478_v61 = vrot.slane %v5058_v55, 5  ;;  %v4778_v55 = vld [vmem:[%s5134_s27 + $0x90] sm:$0xf] }
 0x1e0   : > { %v1403_v60 = vadd.f32 %v1368_v26, %v1016_v49  ;;  %v3810_v49 = vrot.slane %v6109_v9, 5  ;;  %v3482_v26 = vunpack.c.l.b16 %v3294_v11  ;;  %v3311_v4 = vrot.slane %v3309_v25, 4  ;;  %v6148_v9 = vld [vmem:[%s5134_s27 + $0x8c] sm:$0x1] }
 0x1e1   : > { %4804 = vmatmul.msk.bf16.gmra.mxu3 %vm658_vm4, %v3504_v48  ;;  %v1018_v48 = vadd.f32 %v1017_v28, %v5582_v32  ;;  %v3301_v32 = vrot.slane %v3299_v17, 5  ;;  %v3307_v28 = vrot.slane %v3305_v45, 5 }
 0x1e2   : > { %v3811_v41 = vsel %vm5320_vm7, %v3809_v38, %v3810_v49  ;;  %v3505_v10 = vpack.c.b16 %v3482_v26, %v3481_v14 }
 0x1e3   : > { %v2309_v59 = vpop.f32.mrf.mxu0  ;;  %v3312_v45 = vor.u32 %v3311_v4, %v3307_v28 }
 0x1e4   : > { %v1655_v43 = vpop.f32.mrf.mxu3  ;;  %v2632_v35 = vpop.f32.mrf.mxu1 }
 0x1e5   : > { %v1690_v20 = vadd.f32 %v1655_v43, %v1403_v60  ;;  %v2712_v26 = vadd.f32 %v2632_v35, %v5599_v46  ;;  %v3313_v38 = vrot.slane %v3312_v45, 4 }
 0x1e6   : > { %4853 = vmatmul.msk.bf16.gmra.mxu0 %vm658_vm4, %v3902_v47  ;;  %v3298_v47 = vrot.slane %v3296_v58, 4  ;;  %v2479_v58 = vsel %vm5320_vm7, %v2477_v7, %v2478_v61  ;;  %v3814_v7 = vrot.slane %v6125_v37, 5 }
 0x1e7   : > { %v1370_v33 = vpop.f32.mrf.mxu2  ;;  %4627 = vmatmul.msk.bf16.gmra.mxu1 %vm658_vm4, %v2564_v34  ;;  %v6145_v43 = vadd.f32 %v2309_v59, %v1690_v20  ;;  %v3808_v34 = vsel %vm5320_vm7, %v4837_v56, %v3807_v12  ;;  %v2476_v59 = vsel %vm5320_vm7, %v4611_v24, %v2475_v16  ;;  %v3315_v12 = vshll.u32 %v6148_v9, 16 }
 0x1e8   : > { %v1404_v60 = vadd.f32 %v1370_v33, %v1018_v48  ;;  %v3302_v17 = vor.u32 %v3301_v32, %v3298_v47  ;;  %v3879_v25 = vunpack.c.l.b16 %v3808_v34  ;;  %v3880_v56 = vunpack.c.l.b16 %v3811_v41  ;;  %v5059_v34 = vld [vmem:[%s5134_s27 + $0x88] sm:$0xf] }
 0x1e9   : > { %v2542_v33 = vunpack.c.l.b16 %v2476_v59  ;;  %v2543_v14 = vunpack.c.l.b16 %v2479_v58  ;;  %v3317_v24 = vrot.slane %v3315_v12, 5  ;;  %v2482_v41 = vrot.slane %v5059_v34, 5  ;;  %v4596_v58 = vld [vmem:[%s5134_s27 + $0x84] sm:$0xe] }
 0x1ea   : > { %v3303_v16 = vrot.slane %v3302_v17, 4  ;;  %v3817_v59 = vrot.slane %v6148_v9, 5  ;;  %v3323_v17 = vshll.u32 %v4778_v55, 16  ;;  %v3816_v12 = vrot.slane %v3814_v7, 4 }
 0x1eb   : > { %v2311_v6 = vpop.f32.mrf.mxu0  ;;  %v2565_v4 = vpack.c.b16 %v2543_v14, %v2542_v33  ;;  %v2484_v33 = vrot.slane %v2482_v41, 4  ;;  %v5060_v14 = vld [vmem:[%s5134_s27 + $0x8c] sm:$0x1] }
 0x1ec   : > { %v1657_v11 = vpop.f32.mrf.mxu3  ;;  %4740 = vmatmul.msk.bf16.gmra.mxu2 %vm658_vm4, %v4905_v62  ;;  %v2634_v48 = vpop.f32.mrf.mxu1  ;;  %v3903_v62 = vpack.c.b16 %v3880_v56, %v3879_v25  ;;  %v3308_v37 = vsel %vm5146_vm3, %v3303_v16, %v3307_v28  ;;  %v4612_v28 = vrot.slane %v4596_v58, 9  ;;  %v4906_v16 = vld [vmem:[%s5134_s27 + $0x84] sm:$0xff] }
 0x1ed   : > { %v1691_v20 = vadd.f32 %v1657_v11, %v1404_v60  ;;  %v4822_v60 = vld [vmem:[%s5134_s27 + $0x84] sm:$0xe]  ;;  %v6169_v11 = vld [vmem:[%s5134_s27 + $0x94] sm:$0xf]  ;;  %v2713_v45 = vadd.f32 %v2634_v48, %v5612_v42 }
 0x1ee   : > { %v3329_v25 = vshll.u32 %v6169_v11, 16  ;;  %v3333_v9 = vshrl.u32 %v6169_v11, 16 }
 0x1ef   : > { %v2919_v49 = vpop.f32.mrf.mxu2  ;;  %v6165_v61 = vadd.f32 %v2311_v6, %v1691_v20  ;;  %v3318_v6 = vsel %vm5146_vm3, %v3313_v38, %v3317_v24  ;;  %v3320_v20 = vshrl.u32 %v4778_v55, 16  ;;  %v3483_v38 = vunpack.c.l.b16 %v3308_v37  ;;  %v6200_v37 = vld [vmem:[%s5134_s27 + $0x98] sm:$0x1] }
 0x1f0   : > { %v2999_v32 = vadd.f32 %v2919_v49, %v2712_v26  ;;  %v2485_v26 = vrot.slane %v5060_v14, 5  ;;  %v3484_v48 = vunpack.c.l.b16 %v3318_v6  ;;  %v3818_v55 = vsel %vm5320_vm7, %v3816_v12, %v3817_v59 }
 0x1f1   : > { %4805 = vmatmul.msk.bf16.gmra.mxu3 %vm658_vm4, %v3505_v10  ;;  %v4838_v10 = vrot.slane %v4822_v60, 9  ;;  %v3322_v60 = vrot.slane %v3320_v20, 4 }
 0x1f3   : > { %v3971_v47 = vpop.f32.mrf.mxu0  ;;  %v3815_v24 = vsel %vm5320_vm7, %v4838_v10, %v3814_v7  ;;  %v2483_v7 = vsel %vm5320_vm7, %v4612_v28, %v2482_v41  ;;  %v2486_v10 = vsel %vm5320_vm7, %v2484_v33, %v2485_v26 }
 0x1f4   : > { %v3573_v46 = vpop.f32.mrf.mxu3  ;;  %v2637_v35 = vpop.f32.mrf.mxu1  ;;  %v3881_v6 = vunpack.c.l.b16 %v3815_v24  ;;  %v4781_v24 = vld [vmem:[%s5134_s27 + $0x9c] sm:$0xf] }
 0x1f5   : > { %v3653_v56 = vadd.f32 %v3573_v46, %v2999_v32  ;;  %v6188_v32 = vrot.slane %v3329_v25, 5  ;;  %v6193_v46 = vld [vmem:[%s6491_s2] ss:$0 sm:$0xff]  ;;  %v2544_v25 = vunpack.c.l.b16 %v2483_v7  ;;  %v2714_v26 = vadd.f32 %v2637_v35, %v5625_v15 }
 0x1f6   : > { %4854 = vmatmul.msk.bf16.gmra.mxu0 %vm658_vm4, %v3903_v62  ;;  %v3325_v62 = vrot.slane %v3323_v17, 5  ;;  %v3506_v17 = vpack.c.b16 %v3484_v48, %v3483_v38 }
 0x1f7   : > { %v2921_v49 = vpop.f32.mrf.mxu2  ;;  %4628 = vmatmul.msk.bf16.gmra.mxu1 %vm658_vm4, %v2565_v4  ;;  %v3335_v4 = vrot.slane %v3333_v9, 4  ;;  %v4051_v34 = vadd.f32 %v3971_v47, %v3653_v56  ;;  %v2545_v9 = vunpack.c.l.b16 %v2486_v10  ;;  %v3339_v56 = vshll.u32 %v6200_v37, 16 }
 0x1f8   : > { %v3000_v42 = vadd.f32 %v2921_v49, %v2713_v45  ;;  %v3882_v45 = vunpack.c.l.b16 %v3818_v55  ;;  %v3326_v12 = vor.u32 %v3325_v62, %v3322_v60  ;;  %v4823_v55 = vld [vmem:[%s5134_s27 + $0x90] sm:$0xe] }
 0x1f9   : > { %v3336_v41 = vor.u32 %v3335_v4, %v6188_v32  ;;  %v4087_v49 = vadd.f32 %v6193_v46, %v4051_v34  ;;  %v2566_v48 = vpack.c.b16 %v2545_v9, %v2544_v25  ;;  %v3341_v62 = vrot.slane %v3339_v56, 5 }
 0x1fa   : > { %v3327_v38 = vrot.slane %v3326_v12, 4  ;;  %v3821_v4 = vrot.slane %v6169_v11, 5  ;;  %v4839_v9 = vrot.slane %v4823_v55, 9  ;;  %v5062_v55 = vld [vmem:[%s5134_s27 + $0x98] sm:$0x1] }
 0x1fb   : > { %v3973_v58 = vpop.f32.mrf.mxu0  ;;  %v3337_v60 = vrot.slane %v3336_v41, 4  ;;  %v4119_v34 = vmax.f32 %v4087_v49, 0.0  ;;  %v3824_v41 = vrot.slane %v6200_v37, 5 }
 0x1fc   : > { %v3575_v59 = vpop.f32.mrf.mxu3  ;;  %4741 = vmatmul.msk.bf16.gmra.mxu2 %vm658_vm4, %v4906_v16  ;;  %v2639_v47 = vpop.f32.mrf.mxu1  ;;  %v3904_v16 = vpack.c.b16 %v3882_v45, %v3881_v6  ;;  %v3347_v45 = vshll.u32 %v4781_v24, 16  ;;  %v3332_v49 = vsel %vm5146_vm3, %v3327_v38, %v6188_v32 }
 0x1fd   : > { %v3654_v20 = vadd.f32 %v3575_v59, %v3000_v42  ;;  %v6212_v42 = vld [vmem:[%s5134_s27 + $0xa0] sm:$0xf]  ;;  %v5061_v59 = vld [vmem:[%s5134_s27 + $0x94] sm:$0xf]  ;;  %v2715_v56 = vadd.f32 %v2639_v47, %v5638_v13 }
 0x1fe   : > { %v2489_v15 = vrot.slane %v5061_v59, 5  ;;  %v3353_v12 = vshll.u32 %v6212_v42, 16  ;;  %v3357_v11 = vshrl.u32 %v6212_v42, 16  ;;  %v3349_v47 = vrot.slane %v3347_v45, 5 }
 0x1ff   : > { %v4052_v28 = vadd.f32 %v3973_v58, %v3654_v20  ;;  %v2924_v33 = vpop.f32.mrf.mxu2  ;;  %v4597_v20 = vld [vmem:[%s5134_s27 + $0x90] sm:$0xe]  ;;  %v3485_v59 = vunpack.c.l.b16 %v3332_v49 }
 0x200   : > { %v3001_v10 = vadd.f32 %v2924_v33, %v2714_v26  ;;  %v3823_v33 = vrot.slane %v3821_v4, 4  ;;  %v2491_v37 = vrot.slane %v2489_v15, 4  ;;  %v3359_v32 = vrot.slane %v3357_v11, 4 }
 0x201   : > { %v4088_v14 = vadd.f32 %v6193_v46, %v4052_v28  ;;  %4806 = vmatmul.msk.bf16.gmra.mxu3 %vm658_vm4, %v3506_v17  ;;  %v3344_v17 = vshrl.u32 %v4781_v24, 16  ;;  %v3342_v28 = vsel %vm5146_vm3, %v3337_v60, %v3341_v62  ;;  %v4613_v24 = vrot.slane %v4597_v20, 9 }
 0x202   : > { %v3486_v60 = vunpack.c.l.b16 %v3342_v28  ;;  %v3822_v62 = vsel %vm5320_vm7, %v4839_v9, %v3821_v4  ;;  %v3825_v20 = vsel %vm5320_vm7, %v3823_v33, %v3824_v41 }
 0x203   : > { %v4120_v58 = vmax.f32 %v4088_v14, 0.0  ;;  %v3976_v7 = vpop.f32.mrf.mxu0  ;;  %v3346_v13 = vrot.slane %v3344_v17, 4  ;;  %v2490_v17 = vsel %vm5320_vm7, %v4613_v24, %v2489_v15  ;;  %v3883_v41 = vunpack.c.l.b16 %v3822_v62  ;;  %v4784_v24 = vld [vmem:[%s5134_s27 + $0xa8] sm:$0xf] }
 0x204   : > { %v3578_v35 = vpop.f32.mrf.mxu3  ;;  %v2642_v6 = vpop.f32.mrf.mxu1  ;;  %v3884_v49 = vunpack.c.l.b16 %v3825_v20  ;;  %v2546_v15 = vunpack.c.l.b16 %v2490_v17  ;;  %v3368_v62 = vshrl.u32 %v4784_v24, 16 }
 0x205   : > { %v4916_v25 = vpack.c.bf16 %v4120_v58, %v4119_v34  ;;  %v3655_v14 = vadd.f32 %v3578_v35, %v3001_v10  ;;  %v4907_v34 = vld [vmem:[%s5134_s27 + $0x90] sm:$0xff]  ;;  %v6237_v58 = vrot.slane %v3353_v12, 5  ;;  %v6242_v10 = vld [vmem:[%s5134_s27 + $0xa4] sm:$0x1] }
 0x206   : > { %4855 = vmatmul.msk.bf16.gmra.mxu0 %vm658_vm4, %v3904_v16  ;;  %v2492_v16 = vrot.slane %v5062_v55, 5 }
 0x207   : > { %4917 = vst [vmem:[%s6220_s15] sm:$0xff] %v4916_v25   ;;  %v2926_v26 = vpop.f32.mrf.mxu2  ;;  %4629 = vmatmul.msk.bf16.gmra.mxu1 %vm658_vm4, %v2566_v48  ;;  %v4053_v35 = vadd.f32 %v3976_v7, %v3655_v14  ;;  %v3350_v25 = vor.u32 %v3349_v47, %v3346_v13  ;;  %v3360_v4 = vor.u32 %v3359_v32, %v6237_v58  ;;  %v4824_v47 = vld [vmem:[%s5134_s27 + $0x9c] sm:$0xe]  ;;  %v3828_v32 = vrot.slane %v6212_v42, 5 }
 0x208   : > { %v3002_v38 = vadd.f32 %v2926_v26, %v2715_v56  ;;  %v2493_v45 = vsel %vm5320_vm7, %v2491_v37, %v2492_v16  ;;  %v3507_v7 = vpack.c.b16 %v3486_v60, %v3485_v59  ;;  %v3363_v56 = vshll.u32 %v6242_v10, 16 }
 0x209   : > { %v2547_v28 = vunpack.c.l.b16 %v2493_v45  ;;  %v4089_v33 = vadd.f32 %v6193_v46, %v4053_v35  ;;  %v3351_v37 = vrot.slane %v3350_v25, 4  ;;  %v3361_v55 = vrot.slane %v3360_v4, 4 }
 0x20a   : > { %v3365_v13 = vrot.slane %v3363_v56, 5  ;;  %v3905_v59 = vpack.c.b16 %v3884_v49, %v3883_v41  ;;  %v3371_v35 = vshll.u32 %v4784_v24, 16  ;;  %v4840_v4 = vrot.slane %v4824_v47, 9 }
 0x20b   : > { %v3978_v48 = vpop.f32.mrf.mxu0  ;;  %v2567_v60 = vpack.c.b16 %v2547_v28, %v2546_v15  ;;  %v3356_v41 = vsel %vm5146_vm3, %v3351_v37, %v6237_v58  ;;  %v3830_v15 = vrot.slane %v3828_v32, 4 }
 0x20c   : > { %v3580_v12 = vpop.f32.mrf.mxu3  ;;  %4742 = vmatmul.msk.bf16.gmra.mxu2 %vm658_vm4, %v4907_v34  ;;  %v2644_v11 = vpop.f32.mrf.mxu1  ;;  %v2716_v34 = vadd.f32 %v2642_v6, %v5651_v57  ;;  %v3366_v49 = vsel %vm5146_vm3, %v3361_v55, %v3365_v13  ;;  %v4908_v55 = vld [vmem:[%s5134_s27 + $0x9c] sm:$0xff] }
 0x20d   : > { %v3656_v9 = vadd.f32 %v3580_v12, %v3002_v38  ;;  %v6261_v38 = vld [vmem:[%s5134_s27 + $0xac] sm:$0xf]  ;;  %v5063_v12 = vld [vmem:[%s5134_s27 + $0xa0] sm:$0xf]  ;;  %v2717_v28 = vadd.f32 %v2644_v11, %v5664_v54  ;;  %v3488_v54 = vunpack.c.l.b16 %v3366_v49  ;;  %v6280_v11 = vld [vmem:[%s5134_s27 + $0xb0] sm:$0x1] }
 0x20e   : > { %v2496_v25 = vrot.slane %v5063_v12, 5  ;;  %v3381_v42 = vshrl.u32 %v6261_v38, 16 }
 0x20f   : > { %v4054_v14 = vadd.f32 %v3978_v48, %v3656_v9  ;;  %v2929_v26 = vpop.f32.mrf.mxu2  ;;  %v4121_v48 = vmax.f32 %v4089_v33, 0.0  ;;  %v4598_v9 = vld [vmem:[%s5134_s27 + $0x9c] sm:$0xe]  ;;  %v3831_v33 = vrot.slane %v6242_v10, 5  ;;  %v3829_v10 = vsel %vm5320_vm7, %v4840_v4, %v3828_v32 }
 0x210   : > { %v3003_v45 = vadd.f32 %v2929_v26, %v2716_v34  ;;  %v3373_v26 = vrot.slane %v3371_v35, 5  ;;  %v4614_v58 = vrot.slane %v4598_v9, 9  ;;  %v2498_v37 = vrot.slane %v2496_v25, 4  ;;  %v5064_v34 = vld [vmem:[%s5134_s27 + $0xa4] sm:$0x1] }
 0x211   : > { %v4090_v16 = vadd.f32 %v6193_v46, %v4054_v14  ;;  %4807 = vmatmul.msk.bf16.gmra.mxu3 %vm658_vm4, %v3507_v7  ;;  %v3377_v7 = vshll.u32 %v6261_v38, 16  ;;  %v3370_v14 = vrot.slane %v3368_v62, 4  ;;  %v2499_v47 = vrot.slane %v5064_v34, 5 }
 0x212   : > { %v2497_v12 = vsel %vm5320_vm7, %v4614_v58, %v2496_v25  ;;  %v3387_v32 = vshll.u32 %v6280_v11, 16  ;;  %v3835_v58 = vrot.slane %v6261_v38, 5 }
 0x213   : > { %v4122_v20 = vmax.f32 %v4090_v16, 0.0  ;;  %v3981_v17 = vpop.f32.mrf.mxu0  ;;  %v3379_v13 = vrot.slane %v3377_v7, 5  ;;  %v3374_v62 = vor.u32 %v3373_v26, %v3370_v14  ;;  %v2548_v49 = vunpack.c.l.b16 %v2497_v12  ;;  %v4825_v26 = vld [vmem:[%s5134_s27 + $0xa8] sm:$0xe] }
 0x214   : > { %v3583_v57 = vpop.f32.mrf.mxu3  ;;  %v2647_v6 = vpop.f32.mrf.mxu1 }
 0x215   : > { %v4921_v56 = vpack.c.bf16 %v4122_v20, %v4121_v48  ;;  %v3657_v24 = vadd.f32 %v3583_v57, %v3003_v45  ;;  %v3383_v48 = vrot.slane %v3381_v42, 4  ;;  %v3487_v20 = vunpack.c.l.b16 %v3356_v41 }
 0x216   : > { %4856 = vmatmul.msk.bf16.gmra.mxu0 %vm658_vm4, %v3905_v59  ;;  %v2500_v57 = vsel %vm5320_vm7, %v2498_v37, %v2499_v47  ;;  %v2718_v34 = vadd.f32 %v2647_v6, %v5676_v31  ;;  %v4787_v47 = vld [vmem:[%s5134_s27 + $0xb4] sm:$0xf] }
 0x217   : > { %4993 = vst [vmem:[%s6220_s15 + $0x8] sm:$0xff] %v4921_v56   ;;  %v2931_v16 = vpop.f32.mrf.mxu2  ;;  %4630 = vmatmul.msk.bf16.gmra.mxu1 %vm658_vm4, %v2567_v60  ;;  %v4055_v35 = vadd.f32 %v3981_v17, %v3657_v24  ;;  %v3832_v60 = vsel %vm5320_vm7, %v3830_v15, %v3831_v33  ;;  %v3384_v42 = vor.u32 %v3383_v48, %v3379_v13  ;;  %v3885_v56 = vunpack.c.l.b16 %v3829_v10 }
 0x218   : > { %v3004_v59 = vadd.f32 %v2931_v16, %v2717_v28  ;;  %v3508_v17 = vpack.c.b16 %v3488_v54, %v3487_v20  ;;  %v3886_v41 = vunpack.c.l.b16 %v3832_v60  ;;  %v2549_v15 = vunpack.c.l.b16 %v2500_v57  ;;  %v6302_v54 = vld [vmem:[%s5134_s27 + $0xb8] sm:$0xf] }
 0x219   : > { %v3375_v28 = vrot.slane %v3374_v62, 4  ;;  %v4091_v25 = vadd.f32 %v6193_v46, %v4055_v35  ;;  %v3385_v24 = vrot.slane %v3384_v42, 4  ;;  %v3389_v16 = vrot.slane %v3387_v32, 5 }
 0x21a   : > { %v2568_v48 = vpack.c.b16 %v2549_v15, %v2548_v49  ;;  %v4841_v20 = vrot.slane %v4825_v26, 9  ;;  %v3837_v57 = vrot.slane %v3835_v58, 4  ;;  %v3392_v42 = vshrl.u32 %v4787_v47, 16 }
 0x21b   : > { %v3983_v45 = vpop.f32.mrf.mxu0  ;;  %v4123_v10 = vmax.f32 %v4091_v25, 0.0  ;;  %v3390_v12 = vsel %vm5146_vm3, %v3385_v24, %v3389_v16 }
 0x21c   : > { %v3585_v9 = vpop.f32.mrf.mxu3  ;;  %4743 = vmatmul.msk.bf16.gmra.mxu2 %vm658_vm4, %v4908_v55  ;;  %v2649_v7 = vpop.f32.mrf.mxu1  ;;  %v3906_v55 = vpack.c.b16 %v3886_v41, %v3885_v56  ;;  %v3405_v56 = vshrl.u32 %v6302_v54, 16  ;;  %v3490_v24 = vunpack.c.l.b16 %v3390_v12  ;;  %v3836_v16 = vsel %vm5320_vm7, %v4841_v20, %v3835_v58 }
 0x21d   : > { %v3658_v4 = vadd.f32 %v3585_v9, %v3004_v59  ;;  %v3380_v59 = vsel %vm5146_vm3, %v3375_v28, %v3379_v13  ;;  %v4599_v9 = vld [vmem:[%s5134_s27 + $0xa8] sm:$0xe]  ;;  %v3395_v13 = vshll.u32 %v4787_v47, 16  ;;  %v2719_v41 = vadd.f32 %v2649_v7, %v5689_v44 }
 0x21e   : > { %v3489_v49 = vunpack.c.l.b16 %v3380_v59  ;;  %v4615_v25 = vrot.slane %v4599_v9, 9  ;;  %v6324_v59 = vld [vmem:[%s5134_s27 + $0xbc] sm:$0x1]  ;;  %v3887_v20 = vunpack.c.l.b16 %v3836_v16 }
 0x21f   : > { %v4056_v33 = vadd.f32 %v3983_v45, %v3658_v4  ;;  %v2934_v14 = vpop.f32.mrf.mxu2  ;;  %v5065_v45 = vld [vmem:[%s5134_s27 + $0xac] sm:$0xf]  ;;  %v3838_v4 = vrot.slane %v6280_v11, 5 }
 0x220   : > { %v3005_v38 = vadd.f32 %v2934_v14, %v2718_v34  ;;  %v2503_v60 = vrot.slane %v5065_v45, 5  ;;  %v5066_v14 = vld [vmem:[%s5134_s27 + $0xb0] sm:$0x1]  ;;  %v4909_v11 = vld [vmem:[%s5134_s27 + $0xa8] sm:$0xff]  ;;  %v3397_v34 = vrot.slane %v3395_v13, 5  ;;  %v3509_v9 = vpack.c.b16 %v3490_v24, %v3489_v49 }
 0x221   : > { %v4092_v37 = vadd.f32 %v6193_v46, %v4056_v33  ;;  %4808 = vmatmul.msk.bf16.gmra.mxu3 %vm658_vm4, %v3508_v17  ;;  %v3401_v17 = vshll.u32 %v6302_v54, 16  ;;  %v2506_v26 = vrot.slane %v5066_v14, 5  ;;  %v3839_v44 = vsel %vm5320_vm7, %v3837_v57, %v3838_v4 }
 0x222   : > { %v2505_v33 = vrot.slane %v2503_v60, 4  ;;  %v3888_v45 = vunpack.c.l.b16 %v3839_v44  ;;  %v3842_v24 = vrot.slane %v6302_v54, 5 }
 0x223   : > { %v4124_v62 = vmax.f32 %v4092_v37, 0.0  ;;  %v3986_v35 = vpop.f32.mrf.mxu0  ;;  %v3394_v37 = vrot.slane %v3392_v42, 4  ;;  %v6321_v7 = vrot.slane %v3401_v17, 5  ;;  %v3411_v42 = vshll.u32 %v6324_v59, 16 }
 0x224   : > { %v3588_v31 = vpop.f32.mrf.mxu3  ;;  %v2652_v6 = vpop.f32.mrf.mxu1 }
 0x225   : > { %v4926_v32 = vpack.c.bf16 %v4124_v62, %v4123_v10  ;;  %v3659_v15 = vadd.f32 %v3588_v31, %v3005_v38  ;;  %v2504_v62 = vsel %vm5320_vm7, %v4615_v25, %v2503_v60  ;;  %v2507_v38 = vsel %vm5320_vm7, %v2505_v33, %v2506_v26 }
 0x226   : > { %4857 = vmatmul.msk.bf16.gmra.mxu0 %vm658_vm4, %v3906_v55  ;;  %v3407_v55 = vrot.slane %v3405_v56, 4  ;;  %v3398_v12 = vor.u32 %v3397_v34, %v3394_v37  ;;  %v2550_v60 = vunpack.c.l.b16 %v2504_v62  ;;  %v2551_v13 = vunpack.c.l.b16 %v2507_v38  ;;  %v4790_v56 = vld [vmem:[%s5134_s27 + $0xc0] sm:$0xf] }
 0x227   : > { %4994 = vst [vmem:[%s6220_s15 + $0x10] sm:$0xff] %v4926_v32   ;;  %v2936_v28 = vpop.f32.mrf.mxu2  ;;  %4631 = vmatmul.msk.bf16.gmra.mxu1 %vm658_vm4, %v2568_v48  ;;  %v4057_v48 = vadd.f32 %v3986_v35, %v3659_v15  ;;  %v2720_v49 = vadd.f32 %v2652_v6, %v5703_v30  ;;  %v3413_v14 = vrot.slane %v3411_v42, 5  ;;  %v3416_v16 = vshrl.u32 %v4790_v56, 16 }
 0x228   : > { %v3006_v47 = vadd.f32 %v2936_v28, %v2719_v41  ;;  %v3408_v35 = vor.u32 %v3407_v55, %v6321_v7  ;;  %v3907_v41 = vpack.c.b16 %v3888_v45, %v3887_v20  ;;  %v3399_v15 = vrot.slane %v3398_v12, 4  ;;  %v6336_v28 = vld [vmem:[%s5134_s27 + $0xc4] sm:$0xf]  ;;  %v4600_v45 = vld [vmem:[%s5134_s27 + $0xb4] sm:$0xe] }
 0x229   : > { %v4093_v32 = vadd.f32 %v6193_v46, %v4057_v48  ;;  %v2569_v26 = vpack.c.b16 %v2551_v13, %v2550_v60  ;;  %v3419_v37 = vshll.u32 %v4790_v56, 16  ;;  %v3425_v48 = vshll.u32 %v6336_v28, 16 }
 0x22a   : > { %v3409_v33 = vrot.slane %v3408_v35, 4  ;;  %v3429_v38 = vshrl.u32 %v6336_v28, 16  ;;  %v3404_v54 = vsel %vm5146_vm3, %v3399_v15, %v6321_v7  ;;  %v3418_v35 = vrot.slane %v3416_v16, 4 }
 0x22b   : > { %v3988_v10 = vpop.f32.mrf.mxu0  ;;  %v4125_v34 = vmax.f32 %v4093_v32, 0.0  ;;  %v3421_v7 = vrot.slane %v3419_v37, 5  ;;  %v6357_v32 = vrot.slane %v3425_v48, 5 }
 0x22c   : > { %v3590_v58 = vpop.f32.mrf.mxu3  ;;  %4744 = vmatmul.msk.bf16.gmra.mxu2 %vm658_vm4, %v4909_v11  ;;  %v2654_v31 = vpop.f32.mrf.mxu1  ;;  %v4826_v11 = vld [vmem:[%s5134_s27 + $0xb4] sm:$0xe]  ;;  %v3414_v12 = vsel %vm5146_vm3, %v3409_v33, %v3413_v14  ;;  %v6362_v14 = vld [vmem:[%s5134_s27 + $0xc8] sm:$0x1] }
 0x22d   : > { %v3660_v57 = vadd.f32 %v3590_v58, %v3006_v47  ;;  %v4842_v20 = vrot.slane %v4826_v11, 9  ;;  %v2721_v60 = vadd.f32 %v2654_v31, %v5716_v51  ;;  %v3492_v33 = vunpack.c.l.b16 %v3414_v12 }
 0x22f   : > { %v4058_v4 = vadd.f32 %v3988_v10, %v3660_v57  ;;  %v2939_v17 = vpop.f32.mrf.mxu2  ;;  %v5067_v10 = vld [vmem:[%s5134_s27 + $0xb8] sm:$0xf]  ;;  %v3844_v57 = vrot.slane %v3842_v24, 4  ;;  %v3843_v51 = vsel %vm5320_vm7, %v4842_v20, %v3842_v24  ;;  %v3435_v24 = vshll.u32 %v6362_v14, 16 }
 0x230   : > { %v3007_v55 = vadd.f32 %v2939_v17, %v2720_v49  ;;  %v2510_v62 = vrot.slane %v5067_v10, 5  ;;  %v4616_v17 = vrot.slane %v4600_v45, 9  ;;  %v3889_v10 = vunpack.c.l.b16 %v3843_v51 }
 0x231   : > { %v4094_v25 = vadd.f32 %v6193_v46, %v4058_v4  ;;  %4809 = vmatmul.msk.bf16.gmra.mxu3 %vm658_vm4, %v3509_v9  ;;  %v3845_v9 = vrot.slane %v6324_v59, 5  ;;  %v4910_v4 = vld [vmem:[%s5134_s27 + $0xb4] sm:$0xff]  ;;  %v3491_v59 = vunpack.c.l.b16 %v3404_v54 }
 0x232   : > { %v2512_v56 = vrot.slane %v2510_v62, 4 }
 0x233   : > { %v4126_v47 = vmax.f32 %v4094_v25, 0.0  ;;  %v3991_v44 = vpop.f32.mrf.mxu0  ;;  %v3431_v25 = vrot.slane %v3429_v38, 4  ;;  %v3846_v31 = vsel %vm5320_vm7, %v3844_v57, %v3845_v9 }
 0x234   : > { %v3593_v30 = vpop.f32.mrf.mxu3  ;;  %v2657_v6 = vpop.f32.mrf.mxu1  ;;  %v3890_v38 = vunpack.c.l.b16 %v3846_v31 }
 0x235   : > { %v4931_v58 = vpack.c.bf16 %v4126_v47, %v4125_v34  ;;  %v3661_v42 = vadd.f32 %v3593_v30, %v3007_v55  ;;  %v2511_v34 = vsel %vm5320_vm7, %v4616_v17, %v2510_v62  ;;  %v3422_v55 = vor.u32 %v3421_v7, %v3418_v35 }
 0x236   : > { %4858 = vmatmul.msk.bf16.gmra.mxu0 %vm658_vm4, %v3907_v41  ;;  %v5068_v41 = vld [vmem:[%s5134_s27 + $0xbc] sm:$0x1]  ;;  %v3510_v30 = vpack.c.b16 %v3492_v33, %v3491_v59  ;;  %v2552_v45 = vunpack.c.l.b16 %v2511_v34  ;;  %v2722_v35 = vadd.f32 %v2657_v6, %v5732_v1  ;;  %v3908_v7 = vpack.c.b16 %v3890_v38, %v3889_v10  ;;  %v4601_v34 = vld [vmem:[%s5134_s27 + $0xc0] sm:$0xe] }
 0x237   : > { %4995 = vst [vmem:[%s6220_s15 + $0x18] sm:$0xff] %v4931_v58   ;;  %v2941_v13 = vpop.f32.mrf.mxu2  ;;  %4632 = vmatmul.msk.bf16.gmra.mxu1 %vm658_vm4, %v2569_v26  ;;  %v2513_v15 = vrot.slane %v5068_v41, 5  ;;  %v4059_v11 = vadd.f32 %v3991_v44, %v3661_v42  ;;  %v3432_v44 = vor.u32 %v3431_v25, %v6357_v32  ;;  %v3423_v12 = vrot.slane %v3422_v55, 4  ;;  %v4793_v25 = vld [vmem:[%s5134_s27 + $0xcc] sm:$0xf]  ;;  %v4911_v38 = vld [vmem:[%s5134_s27 + $0xc0] sm:$0xff] }
 0x238   : > { %v3008_v49 = vadd.f32 %v2941_v13, %v2721_v60  ;;  %v3437_v42 = vrot.slane %v3435_v24, 5  ;;  %v4827_v60 = vld [vmem:[%s5134_s27 + $0xc0] sm:$0xe]  ;;  %v3849_v13 = vrot.slane %v6336_v28, 5  ;;  %v3443_v55 = vshll.u32 %v4793_v25, 16 }
 0x239   : > { %v2514_v47 = vsel %vm5320_vm7, %v2512_v56, %v2513_v15  ;;  %v4095_v58 = vadd.f32 %v6193_v46, %v4059_v11  ;;  %v3433_v57 = vrot.slane %v3432_v44, 4  ;;  %v3428_v6 = vsel %vm5146_vm3, %v3423_v12, %v6357_v32  ;;  %v5069_v11 = vld [vmem:[%s5134_s27 + $0xc4] sm:$0xf] }
 0x23a   : > { %v2553_v62 = vunpack.c.l.b16 %v2514_v47  ;;  %v4843_v33 = vrot.slane %v4827_v60, 9  ;;  %v2517_v28 = vrot.slane %v5069_v11, 5  ;;  %v3851_v31 = vrot.slane %v3849_v13, 4 }
 0x23b   : > { %v3993_v16 = vpop.f32.mrf.mxu0  ;;  %v3438_v51 = vsel %vm5146_vm3, %v3433_v57, %v3437_v42  ;;  %v3440_v47 = vshrl.u32 %v4793_v25, 16 }
 0x23c   : > { %v3595_v26 = vpop.f32.mrf.mxu3  ;;  %4745 = vmatmul.msk.bf16.gmra.mxu2 %vm658_vm4, %v4910_v4  ;;  %v2659_v37 = vpop.f32.mrf.mxu1  ;;  %v4127_v4 = vmax.f32 %v4095_v58, 0.0  ;;  %v2570_v15 = vpack.c.b16 %v2553_v62, %v2552_v45  ;;  %v4617_v58 = vrot.slane %v4601_v34, 9  ;;  %v3494_v12 = vunpack.c.l.b16 %v3438_v51 }
 0x23d   : > { %v3662_v48 = vadd.f32 %v3595_v26, %v3008_v49  ;;  %v6383_v49 = vld [vmem:[%s5134_s27 + $0xd0] sm:$0xf]  ;;  %v3852_v26 = vrot.slane %v6362_v14, 5  ;;  %v3493_v14 = vunpack.c.l.b16 %v3428_v6  ;;  %v3850_v57 = vsel %vm5320_vm7, %v4843_v33, %v3849_v13 }
 0x23e   : > { %v3449_v44 = vshll.u32 %v6383_v49, 16  ;;  %v3453_v32 = vshrl.u32 %v6383_v49, 16  ;;  %v2518_v25 = vsel %vm5320_vm7, %v4617_v58, %v2517_v28  ;;  %v3891_v33 = vunpack.c.l.b16 %v3850_v57 }
 0x23f   : > { %v4060_v54 = vadd.f32 %v3993_v16, %v3662_v48  ;;  %v2944_v20 = vpop.f32.mrf.mxu2  ;;  %v3511_v6 = vpack.c.b16 %v3494_v12, %v3493_v14 }
 0x240   : > { %v3009_v41 = vadd.f32 %v2944_v20, %v2722_v35  ;;  %v5070_v20 = vld [vmem:[%s5134_s27 + $0xc8] sm:$0x1]  ;;  %v3442_v35 = vrot.slane %v3440_v47, 4  ;;  %v3451_v42 = vrot.slane %v3449_v44, 5  ;;  %v3455_v60 = vrot.slane %v3453_v32, 4 }
 0x241   : > { %v4096_v9 = vadd.f32 %v6193_v46, %v4060_v54  ;;  %4810 = vmatmul.msk.bf16.gmra.mxu3 %vm658_vm4, %v3510_v30  ;;  %v6499_v30 = vld [vmem:[#allocation2_spill] sm:$0xff]  ;;  %v2519_v54 = vrot.slane %v2517_v28, 4  ;;  %v2520_v45 = vrot.slane %v5070_v20, 5  ;;  %v2554_v47 = vunpack.c.l.b16 %v2518_v25 }
 0x242   : > { %v2723_v24 = vadd.f32 %v2659_v37, %v6499_v30  ;;  %v3445_v37 = vrot.slane %v3443_v55, 5  ;;  %v3456_v51 = vor.u32 %v3455_v60, %v3451_v42 }
 0x243   : > { %v4128_v17 = vmax.f32 %v4096_v9, 0.0  ;;  %v3996_v56 = vpop.f32.mrf.mxu0  ;;  %v3853_v9 = vsel %vm5320_vm7, %v3851_v31, %v3852_v26  ;;  %v2521_v13 = vsel %vm5320_vm7, %v2519_v54, %v2520_v45  ;;  %v4828_v45 = vld [vmem:[%s5134_s27 + $0xcc] sm:$0xe] }
 0x244   : > { %v3598_v59 = vpop.f32.mrf.mxu3  ;;  %v2662_v1 = vpop.f32.mrf.mxu1  ;;  %v3892_v11 = vunpack.c.l.b16 %v3853_v9  ;;  %v2555_v55 = vunpack.c.l.b16 %v2521_v13  ;;  %v3457_v30 = vrot.slane %v3456_v51, 4  ;;  %v4844_v9 = vrot.slane %v4828_v45, 9 }
 0x245   : > { %v4936_v16 = vpack.c.bf16 %v4128_v17, %v4127_v4  ;;  %v3663_v48 = vadd.f32 %v3598_v59, %v3009_v41  ;;  %v4795_v17 = vld [vmem:[%s5134_s27 + $0xd4] sm:$0x1]  ;;  %v2724_v28 = vadd.f32 %v2662_v1, %v5768_v52 }
 0x246   : > { %4859 = vmatmul.msk.bf16.gmra.mxu0 %vm658_vm4, %v3908_v7  ;;  %v3459_v31 = vshll.u32 %v4795_v17, 16  ;;  %v3909_v32 = vpack.c.b16 %v3892_v11, %v3891_v33  ;;  %v2571_v20 = vpack.c.b16 %v2555_v55, %v2554_v47 }
 0x247   : > { %4996 = vst [vmem:[%s6220_s15 + $0x20] sm:$0xff] %v4936_v16   ;;  %v2946_v10 = vpop.f32.mrf.mxu2  ;;  %4633 = vmatmul.msk.bf16.gmra.mxu1 %vm658_vm4, %v2570_v15  ;;  %v4061_v7 = vadd.f32 %v3996_v56, %v3663_v48  ;;  %v3446_v16 = vor.u32 %v3445_v37, %v3442_v35 }
 0x248   : > { %v3010_v62 = vadd.f32 %v2946_v10, %v2723_v24  ;;  %v3461_v24 = vrot.slane %v3459_v31, 5  ;;  %v3856_v10 = vrot.slane %v6383_v49, 5 }
 0x249   : > { %v4097_v56 = vadd.f32 %v6193_v46, %v4061_v7  ;;  %v3447_v48 = vrot.slane %v3446_v16, 4  ;;  %v3859_v7 = vrot.slane %v4795_v17, 5 }
 0x24a   : > { %v3462_v1 = vsel %vm5146_vm3, %v3457_v30, %v3461_v24  ;;  %v3858_v60 = vrot.slane %v3856_v10, 4  ;;  %v3857_v36 = vsel %vm5320_vm7, %v4844_v9, %v3856_v10  ;;  %v6500_v10 = vld [vmem:[#allocation3_spill] sm:$0xff] }
 0x24b   : > { %v3998_v4 = vpop.f32.mrf.mxu0  ;;  %v3452_v52 = vsel %vm5146_vm3, %v3447_v48, %v3451_v42  ;;  %v3496_v13 = vunpack.c.l.b16 %v3462_v1  ;;  %v3893_v16 = vunpack.c.l.b16 %v3857_v36 }
 0x24c   : > { %v3600_v41 = vpop.f32.mrf.mxu3  ;;  %4746 = vmatmul.msk.bf16.gmra.mxu2 %vm658_vm4, %v4911_v38  ;;  %v2664_v15 = vpop.f32.mrf.mxu1  ;;  %v4129_v38 = vmax.f32 %v4097_v56, 0.0  ;;  %v3495_v25 = vunpack.c.l.b16 %v3452_v52  ;;  %v3860_v42 = vsel %vm5320_vm7, %v3858_v60, %v3859_v7 }
 0x24d   : > { %v3664_v59 = vadd.f32 %v3600_v41, %v3010_v62  ;;  %v2725_v35 = vadd.f32 %v2664_v15, %v5788_v21  ;;  %v3894_v17 = vunpack.c.l.b16 %v3860_v42 }
 0x24e   : > { %v3512_v11 = vpack.c.b16 %v3496_v13, %v3495_v25 }
 0x24f   : > { %v4062_v26 = vadd.f32 %v3998_v4, %v3664_v59  ;;  %v2949_v34 = vpop.f32.mrf.mxu2  ;;  %v4912_v4 = vld [vmem:[%s5134_s27 + $0xcc] sm:$0xff]  ;;  %v3910_v18 = vpack.c.b16 %v3894_v17, %v3893_v16 }
 0x250   : > { %v3011_v54 = vadd.f32 %v2949_v34, %v2724_v28 }
 0x251   : > { %v4098_v44 = vadd.f32 %v6193_v46, %v4062_v26  ;;  %4811 = vmatmul.msk.bf16.gmra.mxu3 %vm658_vm4, %v3511_v6 }
 0x253   : > { %v4130_v14 = vmax.f32 %v4098_v44, 0.0  ;;  %v4001_v58 = vpop.f32.mrf.mxu0 }
 0x254   : > { %v3603_v62 = vpop.f32.mrf.mxu3  ;;  %v2667_v12 = vpop.f32.mrf.mxu1 }
 0x255   : > { %v4941_v57 = vpack.c.bf16 %v4130_v14, %v4129_v38  ;;  %v3665_v49 = vadd.f32 %v3603_v62, %v3011_v54  ;;  %v2726_v34 = vadd.f32 %v2667_v12, %v5807_v29 }
 0x256   : > { %4860 = vmatmul.msk.bf16.gmra.mxu0 %vm658_vm4, %v3909_v32 }
 0x257   : > { %4997 = vst [vmem:[%s6220_s15 + $0x28] sm:$0xff] %v4941_v57   ;;  %v2951_v37 = vpop.f32.mrf.mxu2  ;;  %4634 = vmatmul.msk.bf16.gmra.mxu1 %vm658_vm4, %v2571_v20  ;;  %v4063_v59 = vadd.f32 %v4001_v58, %v3665_v49 }
 0x258   : > { %v3012_v41 = vadd.f32 %v2951_v37, %v2725_v35 }
 0x259   : > { %v4099_v51 = vadd.f32 %v6193_v46, %v4063_v59 }
 0x25b   : > { %v4003_v6 = vpop.f32.mrf.mxu0  ;;  %v4131_v47 = vmax.f32 %v4099_v51, 0.0 }
 0x25c   : > { %v3605_v33 = vpop.f32.mrf.mxu3  ;;  %4747 = vmatmul.msk.bf16.gmra.mxu2 %vm658_vm4, %v4912_v4  ;;  %v2669_v21 = vpop.f32.mrf.mxu1 }
 0x25d   : > { %v3666_v15 = vadd.f32 %v3605_v33, %v3012_v41  ;;  %v2727_v38 = vadd.f32 %v2669_v21, %v6500_v10 }
 0x25f   : > { %v4064_v31 = vadd.f32 %v4003_v6, %v3666_v15  ;;  %v2954_v56 = vpop.f32.mrf.mxu2 }
 0x260   : > { %v3013_v28 = vadd.f32 %v2954_v56, %v2726_v34 }
 0x261   : > { %v4100_v26 = vadd.f32 %v6193_v46, %v4064_v31  ;;  %4812 = vmatmul.msk.bf16.gmra.mxu3 %vm658_vm4, %v3512_v11 }
 0x263   : > { %v4132_v55 = vmax.f32 %v4100_v26, 0.0  ;;  %v4006_v44 = vpop.f32.mrf.mxu0 }
 0x264   : > { %v3608_v32 = vpop.f32.mrf.mxu3  ;;  %v2672_v48 = vpop.f32.mrf.mxu1 }
 0x265   : > { %v4946_v30 = vpack.c.bf16 %v4132_v55, %v4131_v47  ;;  %v3667_v24 = vadd.f32 %v3608_v32, %v3013_v28  ;;  %v2728_v9 = vadd.f32 %v2672_v48, %v5850_v5 }
 0x266   : > { %4861 = vmatmul.msk.bf16.gmra.mxu0 %vm658_vm4, %v3910_v18 }
 0x267   : > { %4998 = vst [vmem:[%s6220_s15 + $0x30] sm:$0xff] %v4946_v30   ;;  %v2956_v14 = vpop.f32.mrf.mxu2  ;;  %v4065_v54 = vadd.f32 %v4006_v44, %v3667_v24 }
 0x268   : > { %v3014_v58 = vadd.f32 %v2956_v14, %v2727_v38 }
 0x269   : > { %v4101_v12 = vadd.f32 %v6193_v46, %v4065_v54 }
 0x26b   : > { %v4008_v29 = vpop.f32.mrf.mxu0  ;;  %v4133_v49 = vmax.f32 %v4101_v12, 0.0 }
 0x26c   : > { %v3610_v20 = vpop.f32.mrf.mxu3  ;;  %v2674_v45 = vpop.f32.mrf.mxu1 }
 0x26d   : > { %v3668_v62 = vadd.f32 %v3610_v20, %v3014_v58  ;;  %v2729_v13 = vadd.f32 %v2674_v45, %v5874_v22 }
 0x26f   : > { %v4066_v57 = vadd.f32 %v4008_v29, %v3668_v62  ;;  %v2959_v52 = vpop.f32.mrf.mxu2 }
 0x270   : > { %v3015_v60 = vadd.f32 %v2959_v52, %v2728_v9 }
 0x271   : > { %v4102_v1 = vadd.f32 %v6193_v46, %v4066_v57 }
 0x273   : > { %v4134_v35 = vmax.f32 %v4102_v1, 0.0  ;;  %v4011_v37 = vpop.f32.mrf.mxu0 }
 0x274   : > { %v3613_v7 = vpop.f32.mrf.mxu3  ;;  %v2677_v4 = vpop.f32.mrf.mxu1 }
 0x275   : > { %v4951_v41 = vpack.c.bf16 %v4134_v35, %v4133_v49  ;;  %v3669_v25 = vadd.f32 %v3613_v7, %v3015_v60  ;;  %v2730_v51 = vadd.f32 %v2677_v4, %v5893_v19 }
 0x277   : > { %4999 = vst [vmem:[%s6220_s15 + $0x38] sm:$0xff] %v4951_v41   ;;  %v2961_v59 = vpop.f32.mrf.mxu2  ;;  %v4067_v36 = vadd.f32 %v4011_v37, %v3669_v25 }
 0x278   : > { %v3016_v6 = vadd.f32 %v2961_v59, %v2729_v13 }
 0x279   : > { %v4103_v5 = vadd.f32 %v6193_v46, %v4067_v36 }
 0x27b   : > { %v4013_v42 = vpop.f32.mrf.mxu0  ;;  %v4135_v31 = vmax.f32 %v4103_v5, 0.0 }
 0x27c   : > { %v3615_v33 = vpop.f32.mrf.mxu3  ;;  %v2679_v21 = vpop.f32.mrf.mxu1 }
 0x27d   : > { %v3670_v15 = vadd.f32 %v3615_v33, %v3016_v6  ;;  %v2731_v44 = vadd.f32 %v2679_v21, %v5917_v53 }
 0x27f   : > { %v4068_v11 = vadd.f32 %v4013_v42, %v3670_v15  ;;  %v2964_v16 = vpop.f32.mrf.mxu2 }
 0x280   : > { %v3017_v22 = vadd.f32 %v2964_v16, %v2730_v51 }
 0x281   : > { %v4104_v17 = vadd.f32 %v6193_v46, %v4068_v11 }
 0x283   : > { %v4136_v56 = vmax.f32 %v4104_v17, 0.0  ;;  %v4016_v26 = vpop.f32.mrf.mxu0 }
 0x284   : > { %v3618_v34 = vpop.f32.mrf.mxu3  ;;  %v2682_v18 = vpop.f32.mrf.mxu1 }
 0x285   : > { %v4956_v47 = vpack.c.bf16 %v4136_v56, %v4135_v31  ;;  %v3671_v55 = vadd.f32 %v3618_v34, %v3017_v22  ;;  %v2732_v29 = vadd.f32 %v2682_v18, %v5936_v2 }
 0x287   : > { %5000 = vst [vmem:[%s6220_s15 + $0x40] sm:$0xff] %v4956_v47   ;;  %v2966_v28 = vpop.f32.mrf.mxu2  ;;  %v4069_v48 = vadd.f32 %v4016_v26, %v3671_v55 }
 0x288   : > { %v3018_v32 = vadd.f32 %v2966_v28, %v2731_v44 }
 0x289   : > { %v4105_v19 = vadd.f32 %v6193_v46, %v4069_v48 }
 0x28b   : > { %v4018_v30 = vpop.f32.mrf.mxu0  ;;  %v4137_v20 = vmax.f32 %v4105_v19, 0.0 }
 0x28c   : > { %v3620_v24 = vpop.f32.mrf.mxu3  ;;  %v2684_v10 = vpop.f32.mrf.mxu1 }
 0x28d   : > { %v3672_v38 = vadd.f32 %v3620_v24, %v3018_v32  ;;  %v2733_v9 = vadd.f32 %v2684_v10, %v5960_v40 }
 0x28f   : > { %v4070_v14 = vadd.f32 %v4018_v30, %v3672_v38  ;;  %v2969_v58 = vpop.f32.mrf.mxu2 }
 0x290   : > { %v3019_v53 = vadd.f32 %v2969_v58, %v2732_v29 }
 0x291   : > { %v4106_v54 = vadd.f32 %v6193_v46, %v4070_v14 }
 0x293   : > { %v4138_v45 = vmax.f32 %v4106_v54, 0.0  ;;  %v4021_v62 = vpop.f32.mrf.mxu0 }
 0x294   : > { %v3623_v12 = vpop.f32.mrf.mxu3  ;;  %v2687_v57 = vpop.f32.mrf.mxu1 }
 0x295   : > { %v4961_v52 = vpack.c.bf16 %v4138_v45, %v4137_v20  ;;  %v3673_v1 = vadd.f32 %v3623_v12, %v3019_v53  ;;  %v2734_v6 = vadd.f32 %v2687_v57, %v5979_v8  ;;  %v6461_v8 = vld [vmem:[%s6491_s2] ss:$0 sm:$0xff] }
 0x297   : > { %5001 = vst [vmem:[%s6220_s15 + $0x48] sm:$0xff] %v4961_v52   ;;  %v2971_v49 = vpop.f32.mrf.mxu2  ;;  %v4071_v37 = vadd.f32 %v4021_v62, %v3673_v1 }
 0x298   : > { %v3020_v35 = vadd.f32 %v2971_v49, %v2733_v9 }
 0x299   : > { %v4107_v2 = vadd.f32 %v6193_v46, %v4071_v37 }
 0x29b   : > { %v4023_v60 = vpop.f32.mrf.mxu0  ;;  %v4139_v36 = vmax.f32 %v4107_v2, 0.0 }
 0x29c   : > { %v3625_v7 = vpop.f32.mrf.mxu3  ;;  %v2689_v4 = vpop.f32.mrf.mxu1 }
 0x29d   : > { %v3674_v41 = vadd.f32 %v3625_v7, %v3020_v35  ;;  %v2735_v16 = vadd.f32 %v2689_v4, %v6003_v27 }
 0x29f   : > { %v4072_v25 = vadd.f32 %v4023_v60, %v3674_v41  ;;  %v2974_v13 = vpop.f32.mrf.mxu2 }
 0x2a0   : > { %v3021_v40 = vadd.f32 %v2974_v13, %v2734_v6 }
 0x2a1   : > { %v4108_v59 = vadd.f32 %v6193_v46, %v4072_v25 }
 0x2a3   : > { %v4140_v42 = vmax.f32 %v4108_v59, 0.0  ;;  %v4026_v33 = vpop.f32.mrf.mxu0 }
 0x2a4   : > { %v3628_v21 = vpop.f32.mrf.mxu3  ;;  %v2692_v15 = vpop.f32.mrf.mxu1 }
 0x2a5   : > { %v4966_v5 = vpack.c.bf16 %v4140_v42, %v4139_v36  ;;  %v3675_v11 = vadd.f32 %v3628_v21, %v3021_v40  ;;  %v2736_v27 = vadd.f32 %v2692_v15, %v6022_v63 }
 0x2a7   : > { %5002 = vst [vmem:[%s6220_s15 + $0x50] sm:$0xff] %v4966_v5   ;;  %v2976_v17 = vpop.f32.mrf.mxu2  ;;  %v4073_v31 = vadd.f32 %v4026_v33, %v3675_v11 }
 0x2a8   : > { %v3022_v51 = vadd.f32 %v2976_v17, %v2735_v16 }
 0x2a9   : > { %v4109_v34 = vadd.f32 %v6461_v8, %v4073_v31 }
 0x2ab   : > { %v4028_v56 = vpop.f32.mrf.mxu0  ;;  %v4141_v44 = vmax.f32 %v4109_v34, 0.0 }
 0x2ac   : > { %v3630_v26 = vpop.f32.mrf.mxu3  ;;  %v2694_v46 = vpop.f32.mrf.mxu1 }
 0x2ad   : > { %v3676_v22 = vadd.f32 %v3630_v26, %v3022_v51  ;;  %v2737_v19 = vadd.f32 %v2694_v46, %v6046_v39 }
 0x2af   : > { %v4074_v18 = vadd.f32 %v4028_v56, %v3676_v22  ;;  %v2979_v47 = vpop.f32.mrf.mxu2 }
 0x2b0   : > { %v3023_v48 = vadd.f32 %v2979_v47, %v2736_v27 }
 0x2b1   : > { %v4110_v55 = vadd.f32 %v6461_v8, %v4074_v18 }
 0x2b3   : > { %v4142_v28 = vmax.f32 %v4110_v55, 0.0  ;;  %v4031_v32 = vpop.f32.mrf.mxu0 }
 0x2b4   : > { %v3633_v30 = vpop.f32.mrf.mxu3  ;;  %v2697_v24 = vpop.f32.mrf.mxu1 }
 0x2b5   : > { %v4971_v10 = vpack.c.bf16 %v4142_v28, %v4141_v44  ;;  %v3677_v38 = vadd.f32 %v3633_v30, %v3023_v48  ;;  %v2738_v52 = vadd.f32 %v2697_v24, %v6065_v50 }
 0x2b7   : > { %5003 = vst [vmem:[%s6220_s15 + $0x58] sm:$0xff] %v4971_v10   ;;  %v2981_v14 = vpop.f32.mrf.mxu2  ;;  %v4075_v54 = vadd.f32 %v4031_v32, %v3677_v38 }
 0x2b8   : > { %v3024_v58 = vadd.f32 %v2981_v14, %v2737_v19 }
 0x2b9   : > { %v4111_v63 = vadd.f32 %v6461_v8, %v4075_v54 }
 0x2bb   : > { %v4033_v29 = vpop.f32.mrf.mxu0  ;;  %v4143_v1 = vmax.f32 %v4111_v63, 0.0 }
 0x2bc   : > { %v3635_v20 = vpop.f32.mrf.mxu3  ;;  %v2699_v45 = vpop.f32.mrf.mxu1 }
 0x2bd   : > { %v3678_v62 = vadd.f32 %v3635_v20, %v3024_v58  ;;  %v2739_v4 = vadd.f32 %v2699_v45, %v6089_v3 }
 0x2bf   : > { %v4076_v53 = vadd.f32 %v4033_v29, %v3678_v62  ;;  %v2984_v12 = vpop.f32.mrf.mxu2 }
 0x2c0   : > { %v3025_v39 = vadd.f32 %v2984_v12, %v2738_v52 }
 0x2c1   : > { %v4112_v57 = vadd.f32 %v6461_v8, %v4076_v53 }
 0x2c3   : > { %v4144_v9 = vmax.f32 %v4112_v57, 0.0  ;;  %v4036_v49 = vpop.f32.mrf.mxu0 }
 0x2c4   : > { %v3638_v35 = vpop.f32.mrf.mxu3  ;;  %v2702_v60 = vpop.f32.mrf.mxu1 }
 0x2c5   : > { %v4976_v37 = vpack.c.bf16 %v4144_v9, %v4143_v1  ;;  %v3679_v7 = vadd.f32 %v3638_v35, %v3025_v39  ;;  %v2740_v21 = vadd.f32 %v2702_v60, %v6106_v23 }
 0x2c7   : > { %5004 = vst [vmem:[%s6220_s15 + $0x60] sm:$0xff] %v4976_v37   ;;  %v2986_v41 = vpop.f32.mrf.mxu2  ;;  %v4077_v25 = vadd.f32 %v4036_v49, %v3679_v7 }
 0x2c8   : > { %v3026_v2 = vadd.f32 %v2986_v41, %v2739_v4 }
 0x2c9   : > { %v4113_v50 = vadd.f32 %v6461_v8, %v4077_v25 }
 0x2cb   : > { %v4038_v13 = vpop.f32.mrf.mxu0  ;;  %v4145_v15 = vmax.f32 %v4113_v50, 0.0 }
 0x2cc   : > { %v3640_v59 = vpop.f32.mrf.mxu3  ;;  %v2704_v33 = vpop.f32.mrf.mxu1 }
 0x2cd   : > { %v3680_v6 = vadd.f32 %v3640_v59, %v3026_v2  ;;  %v2741_v31 = vadd.f32 %v2704_v33, %v6127_v0 }
 0x2cf   : > { %v4078_v36 = vadd.f32 %v4038_v13, %v3680_v6  ;;  %v2989_v42 = vpop.f32.mrf.mxu2 }
 0x2d0   : > { %v3027_v3 = vadd.f32 %v2989_v42, %v2740_v21 }
 0x2d1   : > { %v4114_v40 = vadd.f32 %v6461_v8, %v4078_v36 }
 0x2d3   : > { %v4146_v5 = vmax.f32 %v4114_v40, 0.0  ;;  %v4041_v11 = vpop.f32.mrf.mxu0 }
 0x2d4   : > { %v3643_v16 = vpop.f32.mrf.mxu3  ;;  %v2707_v46 = vpop.f32.mrf.mxu1 }
 0x2d5   : > { %v4981_v17 = vpack.c.bf16 %v4146_v5, %v4145_v15  ;;  %v3681_v51 = vadd.f32 %v3643_v16, %v3027_v3  ;;  %v2742_v28 = vadd.f32 %v2707_v46, %v6145_v43 }
 0x2d7   : > { %5005 = vst [vmem:[%s6220_s15 + $0x68] sm:$0xff] %v4981_v17   ;;  %v2991_v56 = vpop.f32.mrf.mxu2  ;;  %v4079_v22 = vadd.f32 %v4041_v11, %v3681_v51 }
 0x2d8   : > { %v3028_v26 = vadd.f32 %v2991_v56, %v2741_v31 }
 0x2d9   : > { %v4115_v23 = vadd.f32 %v6461_v8, %v4079_v22 }
 0x2db   : > { %v4043_v34 = vpop.f32.mrf.mxu0  ;;  %v4147_v32 = vmax.f32 %v4115_v23, 0.0 }
 0x2dc   : > { %v3645_v18 = vpop.f32.mrf.mxu3  ;;  %v2709_v0 = vpop.f32.mrf.mxu1 }
 0x2dd   : > { %v3682_v47 = vadd.f32 %v3645_v18, %v3028_v26  ;;  %v2743_v14 = vadd.f32 %v2709_v0, %v6165_v61 }
 0x2df   : > { %v4080_v55 = vadd.f32 %v4043_v34, %v3682_v47  ;;  %v2994_v27 = vpop.f32.mrf.mxu2 }
 0x2e0   : > { %v3029_v30 = vadd.f32 %v2994_v27, %v2742_v28 }
 0x2e1   : > { %v4116_v44 = vadd.f32 %v6461_v8, %v4080_v55 }
 0x2e3   : > { %v4148_v48 = vmax.f32 %v4116_v44, 0.0  ;;  %v4046_v24 = vpop.f32.mrf.mxu0 }
 0x2e4   : > { %v3648_v10 = vpop.f32.mrf.mxu3 }
 0x2e5   : > { %v4986_v38 = vpack.c.bf16 %v4148_v48, %v4147_v32  ;;  %v3683_v19 = vadd.f32 %v3648_v10, %v3029_v30 }
 0x2e7   : > { %5006 = vst [vmem:[%s6220_s15 + $0x70] sm:$0xff] %v4986_v38   ;;  %v2996_v58 = vpop.f32.mrf.mxu2  ;;  %v4081_v29 = vadd.f32 %v4046_v24, %v3683_v19 }
 0x2e8   : > { %v3030_v54 = vadd.f32 %v2996_v58, %v2743_v14 }
 0x2e9   : > { %v4117_v43 = vadd.f32 %v6461_v8, %v4081_v29 }
 0x2eb   : > { %v4048_v62 = vpop.f32.mrf.mxu0  ;;  %v4149_v12 = vmax.f32 %v4117_v43, 0.0 }
 0x2ec   : > { %v3650_v20 = vpop.f32.mrf.mxu3 }
 0x2ed   : > { %v3684_v45 = vadd.f32 %v3650_v20, %v3030_v54 }
 0x2ef   : > { %v4082_v63 = vadd.f32 %v4048_v62, %v3684_v45 }
 0x2f1   : > { %v4118_v53 = vadd.f32 %v6461_v8, %v4082_v63 }
 0x2f3   : > { %v4150_v57 = vmax.f32 %v4118_v53, 0.0 }
 0x2f5   : > { %v4991_v52 = vpack.c.bf16 %v4150_v57, %v4149_v12 }
 0x2f7   : > { %5007 = vst [vmem:[%s6220_s15 + $0x78] sm:$0xff] %v4991_v52  }
 0x2f8 PF: > { %s13_s12 = sadd.s32 1, %s5078_s12  }
 0x2f9   : > { %p10_p4 = scmp.ge.s32.totalorder %s13_s12, 4  }
 0x2fb   :  { %12 = sbr.rel (!%p10_p4) target bundleno = 1 (0x1), region = 72 }

// kernel: neko_reslayer_sd_forward.6
= control target key start
LH: loop header
LB: loop body
LE: loop exit
PB: predicated region body
PF: predicated region fallthrough
CT: control target
= control target key end

     0   :  { %s5713_s15 = smov 0   ;;  %s7227_s0 = inlined_call_operand.vmem [shape: bf16[2,18,18,128], index: 0, kind: input, shape index: {}]   ;;  %s7228_s1 = inlined_call_operand.vmem [shape: bf16[9,128,128], index: 1, kind: input, shape index: {}]   ;;  %s7229_s2 = inlined_call_operand.vmem [shape: f32[1,128], index: 2, kind: input, shape index: {}]   ;;  %s7230_s3 = inlined_call_operand.vmem [shape: f32[2,256,128], index: 3, kind: input, shape index: {}]   ;;  %s7231_s4 = inlined_call_operand.vmem [shape: f32[2,256,128], index: 4, kind: output, shape index: {}]  }
   0x1 LB: > { %s4610_s16 = sadd.s32 4294967295, %s5686_s15   ;;  %p4614_p0 = scmp.ge.s32.totalorder %s5686_s15, 1  ;;  %s5686_s15 = sphi %s5713_s15, %s14_s15  }
   0x2   : > { %p172_p1 = scmp.lt.s32.totalorder %s5686_s15, 3 }
   0x4   : > { %p173_p2 = pnand %p4614_p0, %p172_p1 }
   0x6   : > { %176 = sbr.rel (%p173_p2) target bundleno = 760 (0x2f8), region = 36 }
   0xb   : > { %v5503_v0 = vld [vmem:[%s7228_s1 + $0x78] sm:$0xff]  ;;  %p203_p3 = scmp.lt.s32.totalorder %s4610_s16, 1  ;;  %v5502_v1 = vld [vmem:[%s7228_s1 + $0x70] sm:$0xff]  ;;  %v5501_v2 = vld [vmem:[%s7228_s1 + $0x68] sm:$0xff]  ;;  %vm282_vm0 = vsmask.f32 3328 }
   0xc   : > { %5592 = vmatpush.bf16.msra.mxu1 %v5503_v0  ;;  %5593 = vmatpush.bf16.msra.mxu2 %v5503_v0  ;;  %vm283_vm1 = vsmask.f32 7440  ;;  %v5500_v6 = vld [vmem:[%s7228_s1 + $0x60] sm:$0xff]  ;;  %v5499_v35 = vld [vmem:[%s7228_s1 + $0x58] sm:$0xff]  ;;  %v5498_v54 = vld [vmem:[%s7228_s1 + $0x50] sm:$0xff]  ;;  %vm1168_vm3 = vcmask 1042432  }
   0xd   : > { %s7241_s16 = smov (!%p203_p3, %s4610_s16), 1  ;;  %5594 = vmatpush.bf16.msra.mxu3 %v5503_v0  ;;  %798 = vmatpush.bf16.msra.mxu0 %v5503_v0  ;;  %vm5751_vm2 = vmor %vm282_vm0, %vm283_vm1  ;;  %vm1169_vm4 = vcmask 1046532  }
   0xe   : > { %s5616_s21 = smul.u32 216, %s7241_s16  ;;  %vm6051_vm5 = vmor %vm1168_vm3, %vm1169_vm4  ;;  %s5470_s27 = sshll.u32 %s7241_s16, 8 }
   0xf   : > { %s6887_s30 = scalar_lea.vmem %s7230_s3, %s5470_s27  ;;  %s6917_s9 = scalar_lea.vmem %s7231_s4, %s5470_s27 }
  0x10   : > { %5595 = vmatpush.bf16.msra.mxu1 %v5502_v1  ;;  %5596 = vmatpush.bf16.msra.mxu2 %v5502_v1  ;;  %s5736_s26 = scalar_lea.vmem %s7227_s0, %s5616_s21 }
  0x11   : > { %5597 = vmatpush.bf16.msra.mxu3 %v5502_v1  ;;  %799 = vmatpush.bf16.msra.mxu0 %v5502_v1  ;;  %v226_v3 = vld [vmem:[%s5736_s26 + $0x30] sm:$0xf]  ;;  %v227_v4 = vld [vmem:[%s5736_s26 + $0x34] sm:$0xf]  ;;  %v270_v5 = vld [vmem:[%s5736_s26 + $0x38] sm:$0x1] }
  0x12   : > { %v382_v7 = vshrl.u32 %v226_v3, 16  ;;  %v385_v8 = vshll.u32 %v226_v3, 16  ;;  %v391_v9 = vshll.u32 %v227_v4, 16  ;;  %v395_v10 = vshrl.u32 %v227_v4, 16  ;;  %v234_v11 = vld [vmem:[%s5736_s26 + $0x60] sm:$0xf] }
  0x13   : > { %v401_v12 = vshll.u32 %v270_v5, 16  ;;  %v235_v13 = vld [vmem:[%s5736_s26 + $0x64] sm:$0xf]  ;;  %v274_v14 = vld [vmem:[%s5736_s26 + $0x68] sm:$0x1]  ;;  %v478_v15 = vshrl.u32 %v234_v11, 16 }
  0x14   : > { %5598 = vmatpush.bf16.msra.mxu1 %v5501_v2  ;;  %5599 = vmatpush.bf16.msra.mxu2 %v5501_v2  ;;  %v384_v16 = vrot.slane %v382_v7, 4  ;;  %v387_v17 = vrot.slane %v385_v8, 5  ;;  %v393_v18 = vrot.slane %v391_v9, 5  ;;  %v397_v19 = vrot.slane %v395_v10, 4  ;;  %v242_v20 = vld [vmem:[%s5736_s26 + $0x90] sm:$0xf] }
  0x15   : > { %5600 = vmatpush.bf16.msra.mxu3 %v5501_v2  ;;  %800 = vmatpush.bf16.msra.mxu0 %v5501_v2  ;;  %v403_v21 = vrot.slane %v401_v12, 5  ;;  %v480_v22 = vrot.slane %v478_v15, 4  ;;  %v481_v23 = vshll.u32 %v234_v11, 16  ;;  %v487_v24 = vshll.u32 %v235_v13, 16  ;;  %v243_v29 = vld [vmem:[%s5736_s26 + $0x94] sm:$0xf] }
  0x16   : > { %v388_v25 = vor.u32 %v387_v17, %v384_v16  ;;  %v398_v26 = vor.u32 %v397_v19, %v393_v18  ;;  %v491_v27 = vshrl.u32 %v235_v13, 16  ;;  %v497_v28 = vshll.u32 %v274_v14, 16  ;;  %v278_v41 = vld [vmem:[%s5736_s26 + $0x98] sm:$0x1]  ;;  %v218_v49 = vld [vmem:[%s5736_s26] sm:$0xf] }
  0x17   : > { %v483_v31 = vrot.slane %v481_v23, 5  ;;  %v489_v32 = vrot.slane %v487_v24, 5  ;;  %v574_v33 = vshrl.u32 %v242_v20, 16  ;;  %v577_v34 = vshll.u32 %v242_v20, 16  ;;  %v5776_v62 = vld [vmem:[%s5736_s26 + $0x4] sm:$0xf] }
  0x18   : > { %5601 = vmatpush.bf16.msra.mxu1 %v5500_v6  ;;  %5602 = vmatpush.bf16.msra.mxu2 %v5500_v6  ;;  %v389_v36 = vrot.slane %v388_v25, 4  ;;  %v399_v37 = vrot.slane %v398_v26, 4  ;;  %v493_v38 = vrot.slane %v491_v27, 4  ;;  %v499_v39 = vrot.slane %v497_v28, 5  ;;  %v5783_v4 = vld [vmem:[%s5736_s26 + $0x8] sm:$0x1] }
  0x19   : > { %5603 = vmatpush.bf16.msra.mxu3 %v5500_v6  ;;  %801 = vmatpush.bf16.msra.mxu0 %v5500_v6  ;;  %v484_v40 = vor.u32 %v483_v31, %v480_v22  ;;  %v576_v42 = vrot.slane %v574_v33, 4  ;;  %v579_v43 = vrot.slane %v577_v34, 5  ;;  %v583_v44 = vshll.u32 %v243_v29, 16  ;;  %v228_v5 = vld [vmem:[%s5736_s26 + $0x3c] sm:$0xf]  ;;  %v5497_v10 = vld [vmem:[%s7228_s1 + $0x48] sm:$0xff] }
  0x1a   : > { %v394_v45 = vsel %vm5751_vm2, %v389_v36, %v393_v18  ;;  %v404_v46 = vsel %vm5751_vm2, %v399_v37, %v403_v21  ;;  %v494_v47 = vor.u32 %v493_v38, %v489_v32  ;;  %v587_v48 = vshrl.u32 %v243_v29, 16  ;;  %v229_v15 = vld [vmem:[%s5736_s26 + $0x40] sm:$0xf]  ;;  %v271_v19 = vld [vmem:[%s5736_s26 + $0x44] sm:$0x1]  ;;  %v5511_v37 = vld [vmem:[%s7228_s1 + $0xb8] sm:$0xff] }
  0x1b   : > { %v5764_v50 = vunpack.c.l.b16 %v394_v45  ;;  %v5766_v51 = vunpack.c.l.b16 %v404_v46  ;;  %v485_v52 = vrot.slane %v484_v40, 4  ;;  %v580_v53 = vor.u32 %v579_v43, %v576_v42  ;;  %v236_v25 = vld [vmem:[%s5736_s26 + $0x6c] sm:$0xf]  ;;  %v5496_v31 = vld [vmem:[%s7228_s1 + $0x40] sm:$0xff]  ;;  %v237_v40 = vld [vmem:[%s5736_s26 + $0x70] sm:$0xf] }
  0x1c   : > { %5604 = vmatpush.bf16.msra.mxu1 %v5499_v35  ;;  %5605 = vmatpush.bf16.msra.mxu2 %v5499_v35  ;;  %v495_v55 = vrot.slane %v494_v47, 4  ;;  %v585_v56 = vrot.slane %v583_v44, 5  ;;  %v589_v57 = vrot.slane %v587_v48, 4  ;;  %v593_v58 = vshll.u32 %v278_v41, 16  ;;  %v5535_v43 = vld [vmem:[%s7228_s1 + $0xf8] sm:$0xff] }
  0x1d   : > { %5606 = vmatpush.bf16.msra.mxu3 %v5499_v35  ;;  %802 = vmatpush.bf16.msra.mxu0 %v5499_v35  ;;  %v722_v59 = vpack.c.b16 %v5766_v51, %v5764_v50  ;;  %v490_v60 = vsel %vm5751_vm2, %v485_v52, %v489_v32  ;;  %v581_v61 = vrot.slane %v580_v53, 4  ;;  %v286_v63 = vshrl.u32 %v218_v49, 16  ;;  %v275_v47 = vld [vmem:[%s5736_s26 + $0x74] sm:$0x1] }
  0x1e   : > { %v500_v0 = vsel %vm5751_vm2, %v495_v55, %v499_v39  ;;  %v5780_v1 = vunpack.c.l.b16 %v490_v60  ;;  %v590_v2 = vor.u32 %v589_v57, %v585_v56  ;;  %v595_v3 = vrot.slane %v593_v58, 5  ;;  %v5495_v57 = vld [vmem:[%s7228_s1 + $0x38] sm:$0xff] }
  0x1f   : > { %v5786_v6 = vunpack.c.l.b16 %v500_v0  ;;  %v586_v7 = vsel %vm5751_vm2, %v581_v61, %v585_v56  ;;  %v288_v8 = vrot.slane %v286_v63, 4  ;;  %v289_v9 = vshll.u32 %v218_v49, 16  ;;  %v5510_v63 = vld [vmem:[%s7228_s1 + $0xb0] sm:$0xff] }
  0x20   : > { %5607 = vmatpush.bf16.msra.mxu1 %v5498_v54  ;;  %5608 = vmatpush.bf16.msra.mxu2 %v5498_v54  ;;  %v591_v11 = vrot.slane %v590_v2, 4  ;;  %v5793_v12 = vunpack.c.l.b16 %v586_v7  ;;  %v295_v13 = vshll.u32 %v5776_v62, 16  ;;  %v299_v14 = vshrl.u32 %v5776_v62, 16 }
  0x21   : > { %5609 = vmatpush.bf16.msra.mxu3 %v5498_v54  ;;  %803 = vmatpush.bf16.msra.mxu0 %v5498_v54  ;;  %v726_v16 = vpack.c.b16 %v5786_v6, %v5780_v1  ;;  %v291_v17 = vrot.slane %v289_v9, 5  ;;  %v305_v18 = vshll.u32 %v5783_v4, 16  ;;  %v406_v20 = vshrl.u32 %v228_v5, 16  ;;  %v244_v54 = vld [vmem:[%s5736_s26 + $0x9c] sm:$0xf] }
  0x22   : > { %v596_v21 = vsel %vm5751_vm2, %v591_v11, %v595_v3  ;;  %v297_v22 = vrot.slane %v295_v13, 5  ;;  %v301_v23 = vrot.slane %v299_v14, 4  ;;  %v409_v24 = vshll.u32 %v228_v5, 16  ;;  %v5534_v3 = vld [vmem:[%s7228_s1 + $0xf0] sm:$0xff]  ;;  %v5543_v11 = vld [vmem:[%s7228_s1 + $0x138] sm:$0xff] }
  0x23   : > { %v711_v26 = vunpack.c.l.b16 %v596_v21  ;;  %v292_v27 = vor.u32 %v291_v17, %v288_v8  ;;  %v307_v28 = vrot.slane %v305_v18, 5  ;;  %v408_v29 = vrot.slane %v406_v20, 4  ;;  %v245_v8 = vld [vmem:[%s5736_s26 + $0xa0] sm:$0xf]  ;;  %v220_v17 = vld [vmem:[%s5736_s26 + $0xc] sm:$0xf] }
  0x24   : > { %5610 = vmatpush.bf16.msra.mxu1 %v5497_v10  ;;  %5611 = vmatpush.bf16.msra.mxu2 %v5497_v10  ;;  %v302_v32 = vor.u32 %v301_v23, %v297_v22  ;;  %v411_v33 = vrot.slane %v409_v24, 5  ;;  %v415_v34 = vshll.u32 %v229_v15, 16  ;;  %v419_v35 = vshrl.u32 %v229_v15, 16  ;;  %v279_v15 = vld [vmem:[%s5736_s26 + $0xa4] sm:$0x1]  ;;  %v5494_v18 = vld [vmem:[%s7228_s1 + $0x30] sm:$0xff] }
  0x25   : > { %5612 = vmatpush.bf16.msra.mxu3 %v5497_v10  ;;  %804 = vmatpush.bf16.msra.mxu0 %v5497_v10  ;;  %v730_v36 = vpack.c.b16 %v711_v26, %v5793_v12  ;;  %v293_v38 = vrot.slane %v292_v27, 4  ;;  %v425_v39 = vshll.u32 %v271_v19, 16  ;;  %v502_v41 = vshrl.u32 %v236_v25, 16  ;;  %v5509_v23 = vld [vmem:[%s7228_s1 + $0xa8] sm:$0xff]  ;;  %v5855_v27 = vld [vmem:[%s5736_s26 + $0x10] sm:$0xf] }
  0x26   : > { %v303_v42 = vrot.slane %v302_v32, 4  ;;  %v412_v44 = vor.u32 %v411_v33, %v408_v29  ;;  %v417_v45 = vrot.slane %v415_v34, 5  ;;  %v421_v46 = vrot.slane %v419_v35, 4  ;;  %v5533_v29 = vld [vmem:[%s7228_s1 + $0xe8] sm:$0xff]  ;;  %v5865_v35 = vld [vmem:[%s5736_s26 + $0x14] sm:$0x1] }
  0x27   : > { %v298_v48 = vsel %vm5751_vm2, %v293_v38, %v297_v22  ;;  %v427_v49 = vrot.slane %v425_v39, 5  ;;  %v504_v52 = vrot.slane %v502_v41, 4  ;;  %v505_v53 = vshll.u32 %v236_v25, 16  ;;  %v5493_v41 = vld [vmem:[%s7228_s1 + $0x28] sm:$0xff] }
  0x28   : > { %5613 = vmatpush.bf16.msra.mxu1 %v5496_v31  ;;  %5614 = vmatpush.bf16.msra.mxu2 %v5496_v31  ;;  %v308_v55 = vsel %vm5751_vm2, %v303_v42, %v307_v28  ;;  %v686_v56 = vunpack.c.l.b16 %v298_v48  ;;  %v413_v58 = vrot.slane %v412_v44, 4  ;;  %v422_v60 = vor.u32 %v421_v46, %v417_v45  ;;  %v230_v46 = vld [vmem:[%s5736_s26 + $0x48] sm:$0xf] }
  0x29   : > { %5615 = vmatpush.bf16.msra.mxu3 %v5496_v31  ;;  %805 = vmatpush.bf16.msra.mxu0 %v5496_v31  ;;  %v687_v61 = vunpack.c.l.b16 %v308_v55  ;;  %v507_v0 = vrot.slane %v505_v53, 5  ;;  %v511_v1 = vshll.u32 %v237_v40, 16  ;;  %v515_v2 = vshrl.u32 %v237_v40, 16  ;;  %v5508_v53 = vld [vmem:[%s7228_s1 + $0xa0] sm:$0xff] }
  0x2a   : > { %v418_v5 = vsel %vm5751_vm2, %v413_v58, %v417_v45  ;;  %v423_v6 = vrot.slane %v422_v60, 4  ;;  %v521_v7 = vshll.u32 %v275_v47, 16  ;;  %v598_v9 = vshrl.u32 %v244_v54, 16  ;;  %v5541_v60 = vld [vmem:[%s7228_s1 + $0x128] sm:$0xff] }
  0x2b   : > { %826 = vmatmul.bf16.vlgmr.msra.gmra.mxu1 %v722_v59  ;;  %846 = vmatmul.bf16.vlgmr.msra.gmra.mxu2 %v726_v16  ;;  %v718_v10 = vpack.c.b16 %v687_v61, %v686_v56  ;;  %v5840_v12 = vunpack.c.l.b16 %v418_v5  ;;  %v508_v13 = vor.u32 %v507_v0, %v504_v52  ;;  %v513_v14 = vrot.slane %v511_v1, 5  ;;  %v5492_v61 = vld [vmem:[%s7228_s1 + $0x20] sm:$0xff] }
  0x2c   : > { %1412 = vmatpush.bf16.msrb.mxu2 %v5511_v37  ;;  %866 = vmatmul.bf16.vlgmr.msra.gmra.mxu3 %v730_v36  ;;  %v428_v50 = vsel %vm5751_vm2, %v423_v6, %v427_v49  ;;  %v517_v51 = vrot.slane %v515_v2, 4  ;;  %v523_v59 = vrot.slane %v521_v7, 5  ;;  %v600_v16 = vrot.slane %v598_v9, 4  ;;  %v5542_v36 = vld [vmem:[%s7228_s1 + $0x130] sm:$0xff]  ;;  %v5894_v2 = vld [vmem:[%s5736_s26 + $0x4c] sm:$0xf] }
  0x2d   : > { %1727 = vmatpush.bf16.msrb.mxu3 %v5535_v43  ;;  %1031 = vmatpush.bf16.msrb.mxu1 %v5495_v57  ;;  %v5849_v19 = vunpack.c.l.b16 %v428_v50  ;;  %v509_v20 = vrot.slane %v508_v13, 4  ;;  %v601_v21 = vshll.u32 %v244_v54, 16  ;;  %v607_v22 = vshll.u32 %v245_v8, 16  ;;  %v5532_v54 = vld [vmem:[%s7228_s1 + $0xe0] sm:$0xff] }
  0x2e   : > { %806 = vmatmul.bf16.vlgmr.msra.gmra.mxu0 %v718_v10  ;;  %v518_v24 = vor.u32 %v517_v51, %v513_v14  ;;  %v611_v25 = vshrl.u32 %v245_v8, 16  ;;  %v617_v26 = vshll.u32 %v279_v15, 16  ;;  %v310_v28 = vshrl.u32 %v220_v17, 16  ;;  %v272_v8 = vld [vmem:[%s5736_s26 + $0x50] sm:$0x1] }
  0x2f   : > { %2409 = vmatpush.bf16.msrb.mxu0 %v5543_v11  ;;  %v723_v31 = vpack.c.b16 %v5849_v19, %v5840_v12  ;;  %v514_v32 = vsel %vm5751_vm2, %v509_v20, %v513_v14  ;;  %v603_v33 = vrot.slane %v601_v21, 5  ;;  %v609_v34 = vrot.slane %v607_v22, 5  ;;  %v238_v10 = vld [vmem:[%s5736_s26 + $0x78] sm:$0xf] }
  0x30   : > { %1413 = vmatpush.bf16.msrb.mxu2 %v5510_v63  ;;  %v519_v37 = vrot.slane %v518_v24, 4  ;;  %v5870_v38 = vunpack.c.l.b16 %v514_v32  ;;  %v613_v39 = vrot.slane %v611_v25, 4  ;;  %v619_v40 = vrot.slane %v617_v26, 5  ;;  %v5540_v24 = vld [vmem:[%s7228_s1 + $0x120] sm:$0xff]  ;;  %v239_v32 = vld [vmem:[%s5736_s26 + $0x7c] sm:$0xf] }
  0x31   : > { %1728 = vmatpush.bf16.msrb.mxu3 %v5534_v3  ;;  %1032 = vmatpush.bf16.msrb.mxu1 %v5494_v18  ;;  %v604_v42 = vor.u32 %v603_v33, %v600_v16  ;;  %v312_v43 = vrot.slane %v310_v28, 4  ;;  %v313_v44 = vshll.u32 %v220_v17, 16  ;;  %v319_v45 = vshll.u32 %v5855_v27, 16  ;;  %v5507_v17 = vld [vmem:[%s7228_s1 + $0x98] sm:$0xff]  ;;  %v276_v33 = vld [vmem:[%s5736_s26 + $0x80] sm:$0x1] }
  0x32   : > { %v524_v47 = vsel %vm5751_vm2, %v519_v37, %v523_v59  ;;  %v614_v48 = vor.u32 %v613_v39, %v609_v34  ;;  %v323_v49 = vshrl.u32 %v5855_v27, 16  ;;  %v329_v52 = vshll.u32 %v5865_v35, 16  ;;  %v5531_v18 = vld [vmem:[%s7228_s1 + $0xd8] sm:$0xff] }
  0x33   : > { %v705_v55 = vunpack.c.l.b16 %v524_v47  ;;  %v605_v56 = vrot.slane %v604_v42, 4  ;;  %v315_v57 = vrot.slane %v313_v44, 5  ;;  %v321_v58 = vrot.slane %v319_v45, 5  ;;  %2410 = vmatpush.bf16.msrb.mxu0 %v5542_v36  ;;  %v5530_v42 = vld [vmem:[%s7228_s1 + $0xd0] sm:$0xff] }
  0x34   : > { %1414 = vmatpush.bf16.msrb.mxu2 %v5509_v23  ;;  %v615_v63 = vrot.slane %v614_v48, 4  ;;  %v325_v0 = vrot.slane %v323_v49, 4  ;;  %v331_v1 = vrot.slane %v329_v52, 5  ;;  %v430_v3 = vshrl.u32 %v230_v46, 16 }
  0x35   : > { %1729 = vmatpush.bf16.msrb.mxu3 %v5533_v29  ;;  %1033 = vmatpush.bf16.msrb.mxu1 %v5493_v41  ;;  %v727_v5 = vpack.c.b16 %v705_v55, %v5870_v38  ;;  %v610_v6 = vsel %vm5751_vm2, %v605_v56, %v609_v34  ;;  %v316_v7 = vor.u32 %v315_v57, %v312_v43  ;;  %v433_v9 = vshll.u32 %v230_v46, 16  ;;  %v5491_v34 = vld [vmem:[%s7228_s1 + $0x18] sm:$0xff]  ;;  %v5506_v41 = vld [vmem:[%s7228_s1 + $0x90] sm:$0xff] }
  0x36   : > { %v620_v11 = vsel %vm5751_vm2, %v615_v63, %v619_v40  ;;  %v712_v13 = vunpack.c.l.b16 %v610_v6  ;;  %v326_v14 = vor.u32 %v325_v0, %v321_v58  ;;  %v432_v15 = vrot.slane %v430_v3, 4  ;;  %v246_v40 = vld [vmem:[%s5736_s26 + $0xa8] sm:$0xf]  ;;  %v5490_v56 = vld [vmem:[%s7228_s1 + $0x10] sm:$0xff]  ;;  %v222_v6 = vld [vmem:[%s5736_s26 + $0x18] sm:$0xf] }
  0x37   : > { %v713_v50 = vunpack.c.l.b16 %v620_v11  ;;  %v317_v51 = vrot.slane %v316_v7, 4  ;;  %2411 = vmatpush.bf16.msrb.mxu0 %v5541_v60  ;;  %v435_v59 = vrot.slane %v433_v9, 5  ;;  %v439_v16 = vshll.u32 %v5894_v2, 16  ;;  %v280_v63 = vld [vmem:[%s5736_s26 + $0xb0] sm:$0x1] }
  0x38   : > { %1415 = vmatpush.bf16.msrb.mxu2 %v5508_v53  ;;  %v327_v20 = vrot.slane %v326_v14, 4  ;;  %v443_v21 = vshrl.u32 %v5894_v2, 16  ;;  %v449_v22 = vshll.u32 %v272_v8, 16  ;;  %v526_v23 = vshrl.u32 %v238_v10, 16  ;;  %v5539_v53 = vld [vmem:[%s7228_s1 + $0x118] sm:$0xff] }
  0x39   : > { %1730 = vmatpush.bf16.msrb.mxu3 %v5532_v54  ;;  %1034 = vmatpush.bf16.msrb.mxu1 %v5492_v61  ;;  %v731_v25 = vpack.c.b16 %v713_v50, %v712_v13  ;;  %v322_v26 = vsel %vm5751_vm2, %v317_v51, %v321_v58  ;;  %v436_v28 = vor.u32 %v435_v59, %v432_v15  ;;  %v441_v29 = vrot.slane %v439_v16, 5  ;;  %v5952_v59 = vld [vmem:[%s5736_s26 + $0x1c] sm:$0xf] }
  0x3a   : > { %v332_v36 = vsel %vm5751_vm2, %v327_v20, %v331_v1  ;;  %v688_v37 = vunpack.c.l.b16 %v322_v26  ;;  %v445_v38 = vrot.slane %v443_v21, 4  ;;  %v451_v39 = vrot.slane %v449_v22, 5 }
  0x3b   : > { %831 = vmatmul.bf16.gmra.mxu1 %v723_v31  ;;  %851 = vmatmul.bf16.gmra.mxu2 %v727_v5  ;;  %v689_v43 = vunpack.c.l.b16 %v332_v36  ;;  %v437_v44 = vrot.slane %v436_v28, 4  ;;  %v528_v45 = vrot.slane %v526_v23, 4  ;;  %v529_v46 = vshll.u32 %v238_v10, 16  ;;  %v247_v31 = vld [vmem:[%s5736_s26 + $0xac] sm:$0xf] }
  0x3c   : > { %1416 = vmatpush.bf16.msrb.mxu2 %v5507_v17  ;;  %871 = vmatmul.bf16.gmra.mxu3 %v731_v25  ;;  %v446_v47 = vor.u32 %v445_v38, %v441_v29  ;;  %v535_v48 = vshll.u32 %v239_v32, 16  ;;  %v539_v49 = vshrl.u32 %v239_v32, 16  ;;  %v545_v52 = vshll.u32 %v276_v33, 16  ;;  %v5505_v17 = vld [vmem:[%s7228_s1 + $0x88] sm:$0xff]  ;;  %v232_v25 = vld [vmem:[%s5736_s26 + $0x54] sm:$0xf] }
  0x3d   : > { %1731 = vmatpush.bf16.msrb.mxu3 %v5531_v18  ;;  %2412 = vmatpush.bf16.msrb.mxu0 %v5540_v24  ;;  %v719_v54 = vpack.c.b16 %v689_v43, %v688_v37  ;;  %v442_v12 = vsel %vm5751_vm2, %v437_v44, %v441_v29  ;;  %v531_v19 = vrot.slane %v529_v46, 5  ;;  %v622_v55 = vshrl.u32 %v246_v40, 16  ;;  %v5958_v24 = vld [vmem:[%s5736_s26 + $0x20] sm:$0x1]  ;;  %v5529_v38 = vld [vmem:[%s7228_s1 + $0xc8] sm:$0xff] }
  0x3e   : > { %1035 = vmatpush.bf16.msrb.mxu1 %v5491_v34  ;;  %v447_v57 = vrot.slane %v446_v47, 4  ;;  %v5942_v58 = vunpack.c.l.b16 %v442_v12  ;;  %v537_v60 = vrot.slane %v535_v48, 5  ;;  %v541_v61 = vrot.slane %v539_v49, 4 }
  0x3f   : > { %811 = vmatmul.bf16.gmra.mxu0 %v719_v54  ;;  %v532_v0 = vor.u32 %v531_v19, %v528_v45  ;;  %v547_v1 = vrot.slane %v545_v52, 5  ;;  %v624_v3 = vrot.slane %v622_v55, 4  ;;  %v625_v5 = vshll.u32 %v246_v40, 16  ;;  %v5489_v40 = vld [vmem:[%s7228_s1 + $0x8] sm:$0xff]  ;;  %v5504_v45 = vld [vmem:[%s7228_s1 + $0x80] sm:$0xff] }
  0x40   : > { %1417 = vmatpush.bf16.msrb.mxu2 %v5506_v41  ;;  %v452_v7 = vsel %vm5751_vm2, %v447_v57, %v451_v39  ;;  %v542_v8 = vor.u32 %v541_v61, %v537_v60  ;;  %v631_v9 = vshll.u32 %v247_v31, 16  ;;  %v635_v10 = vshrl.u32 %v247_v31, 16  ;;  %v5538_v39 = vld [vmem:[%s7228_s1 + $0x110] sm:$0xff]  ;;  %v5981_v52 = vld [vmem:[%s5736_s26 + $0x58] sm:$0xf]  ;;  %v5537_v57 = vld [vmem:[%s7228_s1 + $0x108] sm:$0xff] }
  0x41   : > { %1732 = vmatpush.bf16.msrb.mxu3 %v5530_v42  ;;  %2413 = vmatpush.bf16.msrb.mxu0 %v5539_v53  ;;  %v699_v11 = vunpack.c.l.b16 %v452_v7  ;;  %v533_v13 = vrot.slane %v532_v0, 4  ;;  %v627_v14 = vrot.slane %v625_v5, 5  ;;  %v641_v15 = vshll.u32 %v280_v63, 16  ;;  %v5984_v53 = vld [vmem:[%s5736_s26 + $0x5c] sm:$0x1]  ;;  %v5488_v0 = vld [vmem:[%s7228_s1] sm:$0xff] }
  0x42   : > { %1036 = vmatpush.bf16.msrb.mxu1 %v5490_v56  ;;  %v543_v18 = vrot.slane %v542_v8, 4  ;;  %v633_v50 = vrot.slane %v631_v9, 5  ;;  %v637_v51 = vrot.slane %v635_v10, 4  ;;  %v334_v16 = vshrl.u32 %v222_v6, 16  ;;  %v240_v55 = vld [vmem:[%s5736_s26 + $0x84] sm:$0xf] }
  0x43   : > { %v724_v20 = vpack.c.b16 %v699_v11, %v5942_v58  ;;  %v538_v21 = vsel %vm5751_vm2, %v533_v13, %v537_v60  ;;  %v628_v22 = vor.u32 %v627_v14, %v624_v3  ;;  %v643_v23 = vrot.slane %v641_v15, 5  ;;  %v5528_v56 = vld [vmem:[%s7228_s1 + $0xc0] sm:$0xff]  ;;  %v241_v10 = vld [vmem:[%s5736_s26 + $0x88] sm:$0xf] }
  0x44   : > { %1418 = vmatpush.bf16.msrb.mxu2 %v5505_v17  ;;  %v548_v26 = vsel %vm5751_vm2, %v543_v18, %v547_v1  ;;  %v706_v28 = vunpack.c.l.b16 %v538_v21  ;;  %v638_v29 = vor.u32 %v637_v51, %v633_v50  ;;  %v336_v32 = vrot.slane %v334_v16, 4  ;;  %v5536_v18 = vld [vmem:[%s7228_s1 + $0x100] sm:$0xff]  ;;  %v277_v16 = vld [vmem:[%s5736_s26 + $0x8c] sm:$0x1] }
  0x45   : > { %v707_v33 = vunpack.c.l.b16 %v548_v26  ;;  %v629_v34 = vrot.slane %v628_v22, 4  ;;  %v337_v36 = vshll.u32 %v222_v6, 16  ;;  %v343_v37 = vshll.u32 %v5952_v59, 16  ;;  %1733 = vmatpush.bf16.msrb.mxu3 %v5529_v38  ;;  %2414 = vmatpush.bf16.msrb.mxu0 %v5538_v39  ;;  %v248_v22 = vld [vmem:[%s5736_s26 + $0xb4] sm:$0xf] }
  0x46   : > { %v639_v41 = vrot.slane %v638_v29, 4  ;;  %v347_v42 = vshrl.u32 %v5952_v59, 16  ;;  %v353_v43 = vshll.u32 %v5958_v24, 16  ;;  %v454_v44 = vshrl.u32 %v232_v25, 16  ;;  %1037 = vmatpush.bf16.msrb.mxu1 %v5489_v40  ;;  %v249_v39 = vld [vmem:[%s5736_s26 + $0xb8] sm:$0xf] }
  0x47   : > { %v728_v46 = vpack.c.b16 %v707_v33, %v706_v28  ;;  %v634_v47 = vsel %vm5751_vm2, %v629_v34, %v633_v50  ;;  %v339_v48 = vrot.slane %v337_v36, 5  ;;  %v345_v49 = vrot.slane %v343_v37, 5 }
  0x48   : > { %v644_v54 = vsel %vm5751_vm2, %v639_v41, %v643_v23  ;;  %v714_v12 = vunpack.c.l.b16 %v634_v47  ;;  %v349_v19 = vrot.slane %v347_v42, 4  ;;  %v355_v31 = vrot.slane %v353_v43, 5  ;;  %1419 = vmatpush.bf16.msrb.mxu2 %v5504_v45  ;;  %v281_v45 = vld [vmem:[%s5736_s26 + $0xbc] sm:$0x1] }
  0x49   : > { %v715_v58 = vunpack.c.l.b16 %v644_v54  ;;  %v340_v60 = vor.u32 %v339_v48, %v336_v32  ;;  %v456_v61 = vrot.slane %v454_v44, 4  ;;  %v457_v63 = vshll.u32 %v232_v25, 16  ;;  %1734 = vmatpush.bf16.msrb.mxu3 %v5528_v56  ;;  %2415 = vmatpush.bf16.msrb.mxu0 %v5537_v57  ;;  %v5575_v47 = vld [vmem:[%s7228_s1 + $0x1b8] sm:$0xff] }
  0x4a   : > { %v350_v1 = vor.u32 %v349_v19, %v345_v49  ;;  %v463_v3 = vshll.u32 %v5981_v52, 16  ;;  %v467_v5 = vshrl.u32 %v5981_v52, 16  ;;  %v473_v6 = vshll.u32 %v5984_v53, 16  ;;  %1038 = vmatpush.bf16.msrb.mxu1 %v5488_v0 }
  0x4b   : > { %836 = vmatmul.bf16.gmra.mxu1 %v724_v20  ;;  %856 = vmatmul.bf16.gmra.mxu2 %v728_v46  ;;  %v732_v7 = vpack.c.b16 %v715_v58, %v714_v12  ;;  %v341_v8 = vrot.slane %v340_v60, 4  ;;  %v459_v9 = vrot.slane %v457_v63, 5  ;;  %v550_v11 = vshrl.u32 %v240_v55, 16  ;;  %v224_v46 = vld [vmem:[%s5736_s26 + $0x24] sm:$0xf] }
  0x4c   : > { %v351_v13 = vrot.slane %v350_v1, 4  ;;  %v465_v14 = vrot.slane %v463_v3, 5  ;;  %v469_v15 = vrot.slane %v467_v5, 4  ;;  %v475_v17 = vrot.slane %v473_v6, 5  ;;  %3150 = vmatpush.bf16.msra.mxu2 %v5575_v47  ;;  %v5583_v6 = vld [vmem:[%s7228_s1 + $0x1f8] sm:$0xff] }
  0x4d   : > { %876 = vmatmul.bf16.gmra.mxu3 %v732_v7  ;;  %v346_v50 = vsel %vm5751_vm2, %v341_v8, %v345_v49  ;;  %v460_v51 = vor.u32 %v459_v9, %v456_v61  ;;  %v552_v20 = vrot.slane %v550_v11, 4  ;;  %v553_v21 = vshll.u32 %v240_v55, 16  ;;  %2416 = vmatpush.bf16.msrb.mxu0 %v5536_v18  ;;  %v6022_v61 = vld [vmem:[%s5736_s26 + $0x28] sm:$0xf]  ;;  %v5551_v7 = vld [vmem:[%s7228_s1 + $0x178] sm:$0xff] }
  0x4e   : > { %v356_v23 = vsel %vm5751_vm2, %v351_v13, %v355_v31  ;;  %v690_v25 = vunpack.c.l.b16 %v346_v50  ;;  %v470_v26 = vor.u32 %v469_v15, %v465_v14  ;;  %v559_v28 = vshll.u32 %v241_v10, 16  ;;  %v5591_v8 = vld [vmem:[%s7228_s1 + $0x238] sm:$0xff]  ;;  %3832 = vmatpush.bf16.msra.mxu3 %v5583_v6  ;;  %2835 = vmatpush.bf16.msra.mxu1 %v5551_v7 }
  0x4f   : > { %v691_v29 = vunpack.c.l.b16 %v356_v23  ;;  %v461_v32 = vrot.slane %v460_v51, 4  ;;  %v555_v33 = vrot.slane %v553_v21, 5  ;;  %v563_v34 = vshrl.u32 %v241_v10, 16 }
  0x50   : > { %v471_v36 = vrot.slane %v470_v26, 4  ;;  %v561_v37 = vrot.slane %v559_v28, 5  ;;  %v569_v38 = vshll.u32 %v277_v16, 16  ;;  %v646_v40 = vshrl.u32 %v248_v22, 16  ;;  %v1120_v26 = vld [vmem:[%s5736_s26] sm:$0xe] }
  0x51   : > { %v720_v41 = vpack.c.b16 %v691_v29, %v690_v25  ;;  %v466_v42 = vsel %vm5751_vm2, %v461_v32, %v465_v14  ;;  %v556_v43 = vor.u32 %v555_v33, %v552_v20  ;;  %v565_v44 = vrot.slane %v563_v34, 4  ;;  %v6036_v14 = vld [vmem:[%s5736_s26 + $0x2c] sm:$0x1]  ;;  %4258 = vmatpush.bf16.msra.mxu0 %v5591_v8 }
  0x52   : > { %v476_v48 = vsel %vm5751_vm2, %v471_v36, %v475_v17  ;;  %v700_v49 = vunpack.c.l.b16 %v466_v42  ;;  %v571_v54 = vrot.slane %v569_v38, 5  ;;  %v648_v12 = vrot.slane %v646_v40, 4  ;;  %v4972_v38 = vld [vmem:[%s5736_s26 + $0xc] sm:$0xf] }
  0x53   : > { %816 = vmatmul.bf16.gmra.mxu0 %v720_v41  ;;  %v701_v19 = vunpack.c.l.b16 %v476_v48  ;;  %v557_v31 = vrot.slane %v556_v43, 4  ;;  %v566_v55 = vor.u32 %v565_v44, %v561_v37  ;;  %v649_v56 = vshll.u32 %v248_v22, 16 }
  0x54   : > { %v655_v57 = vshll.u32 %v249_v39, 16  ;;  %v659_v58 = vshrl.u32 %v249_v39, 16  ;;  %v665_v60 = vshll.u32 %v281_v45, 16  ;;  %v358_v63 = vshrl.u32 %v224_v46, 16  ;;  %v4973_v39 = vld [vmem:[%s5736_s26 + $0x10] sm:$0xf] }
  0x55   : > { %v725_v0 = vpack.c.b16 %v701_v19, %v700_v49  ;;  %v562_v1 = vsel %vm5751_vm2, %v557_v31, %v561_v37  ;;  %v567_v3 = vrot.slane %v566_v55, 4  ;;  %v651_v5 = vrot.slane %v649_v56, 5 }
  0x56   : > { %v708_v9 = vunpack.c.l.b16 %v562_v1  ;;  %v657_v10 = vrot.slane %v655_v57, 5  ;;  %v661_v11 = vrot.slane %v659_v58, 4  ;;  %v667_v13 = vrot.slane %v665_v60, 5  ;;  %v4974_v58 = vld [vmem:[%s5736_s26 + $0x14] sm:$0x1] }
  0x57   : > { %v572_v15 = vsel %vm5751_vm2, %v567_v3, %v571_v54  ;;  %v652_v17 = vor.u32 %v651_v5, %v648_v12  ;;  %v360_v18 = vrot.slane %v358_v63, 4  ;;  %v361_v50 = vshll.u32 %v224_v46, 16 }
  0x58   : > { %v709_v51 = vunpack.c.l.b16 %v572_v15  ;;  %v662_v16 = vor.u32 %v661_v11, %v657_v10  ;;  %v367_v20 = vshll.u32 %v6022_v61, 16  ;;  %v371_v21 = vshrl.u32 %v6022_v61, 16 }
  0x59   : > { %v653_v22 = vrot.slane %v652_v17, 4  ;;  %v363_v23 = vrot.slane %v361_v50, 5  ;;  %v377_v25 = vshll.u32 %v6036_v14, 16  ;;  %v4764_v44 = vrot.slane %v1120_v26, 9  ;;  %v4975_v50 = vld [vmem:[%s5736_s26 + $0x18] sm:$0xf] }
  0x5a   : > { %v729_v28 = vpack.c.b16 %v709_v51, %v708_v9  ;;  %v663_v29 = vrot.slane %v662_v16, 4  ;;  %v369_v32 = vrot.slane %v367_v20, 5  ;;  %v373_v33 = vrot.slane %v371_v21, 4  ;;  %v5472_v51 = vld [vmem:[%s5736_s26] sm:$0xff]  ;;  %v4976_v16 = vld [vmem:[%s5736_s26 + $0x1c] sm:$0xf] }
  0x5b   : > { %841 = vmatmul.bf16.gmra.mxu1 %v725_v0  ;;  %v658_v34 = vsel %vm5751_vm2, %v653_v22, %v657_v10  ;;  %v364_v36 = vor.u32 %v363_v23, %v360_v18  ;;  %v379_v37 = vrot.slane %v377_v25, 5  ;;  %v1173_v47 = vrot.slane %v5776_v62, 5  ;;  %v1121_v21 = vld [vmem:[%s5736_s26 + $0xc] sm:$0xe] }
  0x5c   : > { %861 = vmatmul.bf16.gmra.mxu2 %v729_v28  ;;  %v668_v40 = vsel %vm5751_vm2, %v663_v29, %v667_v13  ;;  %v716_v41 = vunpack.c.l.b16 %v658_v34  ;;  %v374_v42 = vor.u32 %v373_v33, %v369_v32  ;;  %v1176_v48 = vrot.slane %v5783_v4, 5  ;;  %v5512_v34 = vld [vmem:[%s5736_s26 + $0xc] sm:$0xff] }
  0x5d   : > { %v717_v45 = vunpack.c.l.b16 %v668_v40  ;;  %v365_v46 = vrot.slane %v364_v36, 4  ;;  %v1897_v54 = vshrl.u32 %v4972_v38, 16  ;;  %v1900_v12 = vshll.u32 %v4972_v38, 16 }
  0x5e   : > { %v375_v49 = vrot.slane %v374_v42, 4  ;;  %v1906_v19 = vshll.u32 %v4973_v39, 16  ;;  %v1174_v56 = vsel %vm6051_vm5, %v4764_v44, %v1173_v47  ;;  %v1175_v57 = vrot.slane %v1173_v47, 4  ;;  %v4977_v44 = vld [vmem:[%s5736_s26 + $0x20] sm:$0x1] }
  0x5f   : > { %v733_v31 = vpack.c.b16 %v717_v45, %v716_v41  ;;  %v370_v55 = vsel %vm5751_vm2, %v365_v46, %v369_v32  ;;  %v1300_v62 = vunpack.c.l.b16 %v1174_v56  ;;  %v1899_v0 = vrot.slane %v1897_v54, 4  ;;  %v5550_v56 = vld [vmem:[%s7228_s1 + $0x170] sm:$0xff] }
  0x60   : > { %v380_v60 = vsel %vm5751_vm2, %v375_v49, %v379_v37  ;;  %v692_v63 = vunpack.c.l.b16 %v370_v55  ;;  %v1177_v1 = vsel %vm6051_vm5, %v1175_v57, %v1176_v48  ;;  %v1902_v3 = vrot.slane %v1900_v12, 5  ;;  %v5574_v48 = vld [vmem:[%s7228_s1 + $0x1b0] sm:$0xff]  ;;  %2836 = vmatpush.bf16.msra.mxu1 %v5550_v56 }
  0x61   : > { %881 = vmatmul.bf16.gmra.mxu3 %v733_v31  ;;  %v693_v4 = vunpack.c.l.b16 %v380_v60  ;;  %v1301_v5 = vunpack.c.l.b16 %v1177_v1  ;;  %v1908_v6 = vrot.slane %v1906_v19, 5  ;;  %v1910_v7 = vshrl.u32 %v4973_v39, 16  ;;  %3151 = vmatpush.bf16.msra.mxu2 %v5574_v48  ;;  %v4978_v31 = vld [vmem:[%s5736_s26 + $0x24] sm:$0xf]  ;;  %v5582_v55 = vld [vmem:[%s7228_s1 + $0x1f0] sm:$0xff] }
  0x62   : > { %v1916_v8 = vshll.u32 %v4974_v58, 16  ;;  %v1903_v10 = vor.u32 %v1902_v3, %v1899_v0  ;;  %v1180_v22 = vrot.slane %v5855_v27, 5  ;;  %v1921_v23 = vshrl.u32 %v4975_v50, 16  ;;  %v5590_v57 = vld [vmem:[%s7228_s1 + $0x230] sm:$0xff]  ;;  %3833 = vmatpush.bf16.msra.mxu3 %v5582_v55  ;;  %v1123_v48 = vld [vmem:[%s5736_s26 + $0x24] sm:$0xe] }
  0x63   : > { %v721_v9 = vpack.c.b16 %v693_v4, %v692_v63  ;;  %v1332_v11 = vpack.c.b16 %v1301_v5, %v1300_v62  ;;  %v1912_v13 = vrot.slane %v1910_v7, 4  ;;  %v1924_v25 = vshll.u32 %v4975_v50, 16  ;;  %v4979_v62 = vld [vmem:[%s5736_s26 + $0x28] sm:$0xf]  ;;  %v5473_v0 = vld [vmem:[%s5736_s26 + $0xc] sm:$0xff]  ;;  %4259 = vmatpush.bf16.msra.mxu0 %v5590_v57 }
  0x64   : > { %v1904_v15 = vrot.slane %v1903_v10, 4  ;;  %v1918_v18 = vrot.slane %v1916_v8, 5  ;;  %v1930_v29 = vshll.u32 %v4976_v16, 16  ;;  %v1934_v32 = vshrl.u32 %v4976_v16, 16 }
  0x65   : > { %821 = vmatmul.bf16.gmra.mxu0 %v721_v9  ;;  %v1913_v17 = vor.u32 %v1912_v13, %v1908_v6  ;;  %v4765_v33 = vrot.slane %v1121_v21, 9  ;;  %v1182_v38 = vrot.slane %v1180_v22, 4  ;;  %v1183_v27 = vrot.slane %v5865_v35, 5  ;;  %v4980_v21 = vld [vmem:[%s5736_s26 + $0x2c] sm:$0x1] }
  0x66   : > { %v1909_v26 = vsel %vm5751_vm2, %v1904_v15, %v1908_v6  ;;  %v1923_v39 = vrot.slane %v1921_v23, 4  ;;  %v1926_v40 = vrot.slane %v1924_v25, 5  ;;  %v1932_v41 = vrot.slane %v1930_v29, 5  ;;  %v1122_v6 = vld [vmem:[%s5736_s26 + $0x18] sm:$0xe] }
  0x67   : > { %v1914_v20 = vrot.slane %v1913_v17, 4  ;;  %v2297_v36 = vunpack.c.l.b16 %v1909_v26  ;;  %v1936_v42 = vrot.slane %v1934_v32, 4  ;;  %v1181_v46 = vsel %vm6051_vm5, %v4765_v33, %v1180_v22 }
  0x68   : > { %v1184_v47 = vsel %vm6051_vm5, %v1182_v38, %v1183_v27  ;;  %v1927_v35 = vor.u32 %v1926_v40, %v1923_v39  ;;  %v1940_v54 = vshll.u32 %v4977_v44, 16  ;;  %v1302_v12 = vunpack.c.l.b16 %v1181_v46  ;;  %v4982_v38 = vld [vmem:[%s5736_s26 + $0x34] sm:$0xf]  ;;  %v5474_v27 = vld [vmem:[%s5736_s26 + $0x18] sm:$0xff] }
  0x69   : > { %v1919_v28 = vsel %vm5751_vm2, %v1914_v20, %v1918_v18  ;;  %v1937_v49 = vor.u32 %v1936_v42, %v1932_v41  ;;  %v1303_v19 = vunpack.c.l.b16 %v1184_v47  ;;  %v1187_v1 = vrot.slane %v5952_v59, 5  ;;  %v5513_v18 = vld [vmem:[%s5736_s26 + $0x18] sm:$0xff] }
  0x6a   : > { %v2298_v37 = vunpack.c.l.b16 %v1919_v28  ;;  %v1928_v58 = vrot.slane %v1927_v35, 4  ;;  %v1942_v63 = vrot.slane %v1940_v54, 5  ;;  %v1945_v3 = vshrl.u32 %v4978_v31, 16 }
  0x6b   : > { %1039 = vmatmul.bf16.vlgmr.msrb.gmra.mxu1 %v5472_v51  ;;  %v1938_v60 = vrot.slane %v1937_v49, 4  ;;  %v1333_v4 = vpack.c.b16 %v1303_v19, %v1302_v12  ;;  %v1948_v5 = vshll.u32 %v4978_v31, 16  ;;  %v1954_v7 = vshll.u32 %v4979_v62, 16  ;;  %v5514_v31 = vld [vmem:[%s5736_s26 + $0x24] sm:$0xff] }
  0x6c   : > { %1420 = vmatmul.bf16.vlgmr.msrb.gmra.mxu2 %v1332_v11  ;;  %v2329_v45 = vpack.c.b16 %v2298_v37, %v2297_v36  ;;  %v1958_v8 = vshrl.u32 %v4979_v62, 16  ;;  %v1933_v9 = vsel %vm5751_vm2, %v1928_v58, %v1932_v41  ;;  %v1190_v11 = vrot.slane %v5958_v24, 5  ;;  %v4981_v37 = vld [vmem:[%s5736_s26 + $0x30] sm:$0xf] }
  0x6d   : > { %v1943_v10 = vsel %vm5751_vm2, %v1938_v60, %v1942_v63  ;;  %v4766_v13 = vrot.slane %v1122_v6, 9  ;;  %v1189_v59 = vrot.slane %v1187_v1, 4  ;;  %v1947_v15 = vrot.slane %v1945_v3, 4  ;;  %v4984_v6 = vld [vmem:[%s5736_s26 + $0x3c] sm:$0xf] }
  0x6e   : > { %v1950_v17 = vrot.slane %v1948_v5, 5  ;;  %v2299_v50 = vunpack.c.l.b16 %v1933_v9  ;;  %v2300_v51 = vunpack.c.l.b16 %v1943_v10  ;;  %v1956_v16 = vrot.slane %v1954_v7, 5  ;;  %v4985_v7 = vld [vmem:[%s5736_s26 + $0x40] sm:$0xf] }
  0x6f   : > { %v1960_v20 = vrot.slane %v1958_v8, 4  ;;  %v1188_v22 = vsel %vm6051_vm5, %v4766_v13, %v1187_v1  ;;  %v1191_v25 = vsel %vm6051_vm5, %v1189_v59, %v1190_v11  ;;  %v1964_v28 = vshll.u32 %v4980_v21, 16  ;;  %v5573_v1 = vld [vmem:[%s7228_s1 + $0x1a8] sm:$0xff]  ;;  %v5626_v21 = vld [vmem:[%s5736_s26 + $0x34] sm:$0xf] }
  0x70   : > { %v1951_v23 = vor.u32 %v1950_v17, %v1947_v15  ;;  %v2330_v24 = vpack.c.b16 %v2300_v51, %v2299_v50  ;;  %v1304_v29 = vunpack.c.l.b16 %v1188_v22  ;;  %v1305_v32 = vunpack.c.l.b16 %v1191_v25  ;;  %3152 = vmatpush.bf16.msra.mxu2 %v5573_v1  ;;  %v5581_v11 = vld [vmem:[%s7228_s1 + $0x1e8] sm:$0xff]  ;;  %v1125_v1 = vld [vmem:[%s5736_s26 + $0x3c] sm:$0xe] }
  0x71   : > { %1735 = vmatmul.bf16.vlgmr.msrb.gmra.mxu3 %v5512_v34  ;;  %v1961_v26 = vor.u32 %v1960_v20, %v1956_v16  ;;  %v1966_v36 = vrot.slane %v1964_v28, 5  ;;  %v1969_v41 = vshrl.u32 %v4981_v37, 16  ;;  %v1972_v42 = vshll.u32 %v4981_v37, 16  ;;  %v5549_v13 = vld [vmem:[%s7228_s1 + $0x168] sm:$0xff]  ;;  %v5627_v37 = vld [vmem:[%s5736_s26 + $0x38] sm:$0x1] }
  0x72   : > { %v1952_v33 = vrot.slane %v1951_v23, 4  ;;  %v1334_v39 = vpack.c.b16 %v1305_v32, %v1304_v29  ;;  %v1978_v46 = vshll.u32 %v4982_v38, 16  ;;  %v1982_v47 = vshrl.u32 %v4982_v38, 16  ;;  %v5589_v59 = vld [vmem:[%s7228_s1 + $0x228] sm:$0xff]  ;;  %3834 = vmatpush.bf16.msra.mxu3 %v5581_v11  ;;  %2837 = vmatpush.bf16.msra.mxu1 %v5549_v13  ;;  %v5629_v13 = vld [vmem:[%s5736_s26 + $0x44] sm:$0x1] }
  0x73   : > { %v1962_v34 = vrot.slane %v1961_v26, 4  ;;  %v1197_v54 = vrot.slane %v6036_v14, 5  ;;  %v1971_v12 = vrot.slane %v1969_v41, 4  ;;  %v1974_v19 = vrot.slane %v1972_v42, 5  ;;  %v5475_v15 = vld [vmem:[%s5736_s26 + $0x24] sm:$0xff]  ;;  %4260 = vmatpush.bf16.msra.mxu0 %v5589_v59 }
  0x74   : > { %v1957_v40 = vsel %vm5751_vm2, %v1952_v33, %v1956_v16  ;;  %v4767_v55 = vrot.slane %v1123_v48, 9  ;;  %v1980_v57 = vrot.slane %v1978_v46, 5  ;;  %v1984_v58 = vrot.slane %v1982_v47, 4  ;;  %v5515_v33 = vld [vmem:[%s5736_s26 + $0x30] sm:$0xff] }
  0x75   : > { %2417 = vmatmul.bf16.vlgmr.msrb.gmra.mxu0 %v2329_v45  ;;  %v1967_v44 = vsel %vm5751_vm2, %v1962_v34, %v1966_v36  ;;  %v1194_v45 = vrot.slane %v6022_v61, 5  ;;  %v2301_v35 = vunpack.c.l.b16 %v1957_v40  ;;  %v4983_v61 = vld [vmem:[%s5736_s26 + $0x38] sm:$0x1]  ;;  %v1975_v63 = vor.u32 %v1974_v19, %v1971_v12  ;;  %v4987_v12 = vld [vmem:[%s5736_s26 + $0x48] sm:$0xf] }
  0x76   : > { %v2302_v49 = vunpack.c.l.b16 %v1967_v44  ;;  %v1985_v14 = vor.u32 %v1984_v58, %v1980_v57  ;;  %v1993_v17 = vshrl.u32 %v4984_v6, 16  ;;  %v2002_v51 = vshll.u32 %v4985_v7, 16  ;;  %v4988_v19 = vld [vmem:[%s5736_s26 + $0x4c] sm:$0xf] }
  0x77   : > { %v1196_v56 = vrot.slane %v1194_v45, 4  ;;  %v1195_v62 = vsel %vm6051_vm5, %v4767_v55, %v1194_v45  ;;  %v1976_v8 = vrot.slane %v1975_v63, 4  ;;  %v1201_v22 = vrot.slane %v5626_v21, 5 }
  0x78   : > { %v2331_v60 = vpack.c.b16 %v2302_v49, %v2301_v35  ;;  %v1306_v3 = vunpack.c.l.b16 %v1195_v62  ;;  %v1986_v9 = vrot.slane %v1985_v14, 4  ;;  %v2006_v23 = vshrl.u32 %v4985_v7, 16  ;;  %v5628_v62 = vld [vmem:[%s5736_s26 + $0x40] sm:$0xf] }
  0x79   : > { %v1981_v16 = vsel %vm5751_vm2, %v1976_v8, %v1980_v57  ;;  %v1995_v25 = vrot.slane %v1993_v17, 4  ;;  %v2004_v32 = vrot.slane %v2002_v51, 5  ;;  %v1203_v36 = vrot.slane %v1201_v22, 4 }
  0x7a   : > { %v2303_v28 = vunpack.c.l.b16 %v1981_v16  ;;  %v1204_v38 = vrot.slane %v5627_v37, 5  ;;  %v2017_v58 = vshrl.u32 %v4987_v12, 16  ;;  %v2030_v14 = vshrl.u32 %v4988_v19, 16  ;;  %v4991_v37 = vld [vmem:[%s5736_s26 + $0x58] sm:$0xf] }
  0x7b   : > { %1044 = vmatmul.bf16.gmra.mxu1 %v5473_v0  ;;  %v1198_v0 = vsel %vm6051_vm5, %v1196_v56, %v1197_v54  ;;  %v1211_v59 = vrot.slane %v5629_v13, 5 }
  0x7c   : > { %1425 = vmatmul.bf16.gmra.mxu2 %v1333_v4  ;;  %v1988_v4 = vshll.u32 %v4983_v61, 16  ;;  %v1307_v5 = vunpack.c.l.b16 %v1198_v0  ;;  %v1205_v44 = vsel %vm6051_vm5, %v1203_v36, %v1204_v38  ;;  %v2020_v61 = vshll.u32 %v4987_v12, 16  ;;  %v5580_v38 = vld [vmem:[%s7228_s1 + $0x1e0] sm:$0xff] }
  0x7d   : > { %v1309_v35 = vunpack.c.l.b16 %v1205_v44  ;;  %v1208_v0 = vrot.slane %v5628_v62, 5  ;;  %3835 = vmatpush.bf16.msra.mxu3 %v5580_v38  ;;  %v2054_v12 = vshrl.u32 %v4991_v37, 16 }
  0x7e   : > { %v1990_v10 = vrot.slane %v1988_v4, 5  ;;  %v1335_v50 = vpack.c.b16 %v1307_v5, %v1306_v3  ;;  %v2022_v7 = vrot.slane %v2020_v61, 5 }
  0x7f   : > { %v1210_v11 = vrot.slane %v1208_v0, 4 }
  0x80   : > { %v1991_v20 = vsel %vm5751_vm2, %v1986_v9, %v1990_v10  ;;  %v5516_v9 = vld [vmem:[%s5736_s26 + $0x3c] sm:$0xff]  ;;  %v4769_v10 = vrot.slane %v1125_v1, 9 }
  0x81   : > { %1740 = vmatmul.bf16.gmra.mxu3 %v5513_v18  ;;  %v1996_v18 = vshll.u32 %v4984_v6, 16  ;;  %v2304_v29 = vunpack.c.l.b16 %v1991_v20  ;;  %v2019_v6 = vrot.slane %v2017_v58, 4 }
  0x82   : > { %v1209_v21 = vsel %vm6051_vm5, %v4769_v10, %v1208_v0 }
  0x83   : > { %v1998_v26 = vrot.slane %v1996_v18, 5  ;;  %v2332_v41 = vpack.c.b16 %v2304_v29, %v2303_v28  ;;  %v4989_v18 = vld [vmem:[%s5736_s26 + $0x50] sm:$0x1]  ;;  %v2023_v20 = vor.u32 %v2022_v7, %v2019_v6  ;;  %v1310_v28 = vunpack.c.l.b16 %v1209_v21 }
  0x85   : > { %2422 = vmatmul.bf16.gmra.mxu0 %v2330_v24  ;;  %v1124_v24 = vld [vmem:[%s5736_s26 + $0x30] sm:$0xe]  ;;  %v1999_v40 = vor.u32 %v1998_v26, %v1995_v25  ;;  %v5572_v25 = vld [vmem:[%s7228_s1 + $0x1a0] sm:$0xff] }
  0x86   : > { %v4768_v34 = vrot.slane %v1124_v24, 9  ;;  %v2036_v24 = vshll.u32 %v4989_v18, 16  ;;  %3153 = vmatpush.bf16.msra.mxu2 %v5572_v25 }
  0x87   : > { %v2000_v47 = vrot.slane %v1999_v40, 4 }
  0x88   : > { %v1202_v42 = vsel %vm6051_vm5, %v4768_v34, %v1201_v22  ;;  %v1212_v22 = vsel %vm6051_vm5, %v1210_v11, %v1211_v59  ;;  %v2038_v36 = vrot.slane %v2036_v24, 5 }
  0x89   : > { %v1308_v48 = vunpack.c.l.b16 %v1202_v42  ;;  %v2005_v55 = vsel %vm5751_vm2, %v2000_v47, %v2004_v32  ;;  %v1311_v29 = vunpack.c.l.b16 %v1212_v22  ;;  %v2050_v47 = vshll.u32 %v4991_v37, 16  ;;  %v4993_v22 = vld [vmem:[%s5736_s26 + $0x60] sm:$0xf] }
  0x8a   : > { %v2305_v3 = vunpack.c.l.b16 %v2005_v55  ;;  %v2068_v37 = vshll.u32 %v4993_v22, 16 }
  0x8b   : > { %1049 = vmatmul.bf16.gmra.mxu1 %v5474_v27  ;;  %v2008_v27 = vrot.slane %v2006_v23, 4  ;;  %v1336_v57 = vpack.c.b16 %v1309_v35, %v1308_v48  ;;  %v5588_v48 = vld [vmem:[%s7228_s1 + $0x220] sm:$0xff] }
  0x8c   : > { %1430 = vmatmul.bf16.gmra.mxu2 %v1334_v39  ;;  %v4986_v39 = vld [vmem:[%s5736_s26 + $0x44] sm:$0x1]  ;;  %4261 = vmatpush.bf16.msra.mxu0 %v5588_v48 }
  0x8d   : > { %v2009_v45 = vor.u32 %v2008_v27, %v2004_v32  ;;  %v2012_v46 = vshll.u32 %v4986_v39, 16  ;;  %v2024_v32 = vrot.slane %v2023_v20, 4  ;;  %v5548_v27 = vld [vmem:[%s7228_s1 + $0x160] sm:$0xff] }
  0x8e   : > { %2838 = vmatpush.bf16.msra.mxu1 %v5548_v27 }
  0x8f   : > { %v2010_v49 = vrot.slane %v2009_v45, 4  ;;  %v2014_v54 = vrot.slane %v2012_v46, 5  ;;  %v1337_v46 = vpack.c.b16 %v1311_v29, %v1310_v28  ;;  %v5478_v29 = vld [vmem:[%s5736_s26 + $0x48] sm:$0xff] }
  0x91   : > { %1745 = vmatmul.bf16.gmra.mxu3 %v5514_v31  ;;  %v5476_v31 = vld [vmem:[%s5736_s26 + $0x30] sm:$0xff]  ;;  %v2015_v63 = vsel %vm5751_vm2, %v2010_v49, %v2014_v54  ;;  %v1215_v54 = vrot.slane %v5894_v2, 5 }
  0x92   : > { %v2306_v5 = vunpack.c.l.b16 %v2015_v63  ;;  %v5517_v63 = vld [vmem:[%s5736_s26 + $0x48] sm:$0xff] }
  0x93   : > { %v1217_v0 = vrot.slane %v1215_v54, 4 }
  0x94   : > { %v2333_v51 = vpack.c.b16 %v2306_v5, %v2305_v3  ;;  %v2056_v3 = vrot.slane %v2054_v12, 4  ;;  %v4992_v5 = vld [vmem:[%s5736_s26 + $0x5c] sm:$0x1] }
  0x95   : > { %2427 = vmatmul.bf16.gmra.mxu0 %v2331_v60  ;;  %v2026_v60 = vshll.u32 %v4988_v19, 16  ;;  %v1126_v19 = vld [vmem:[%s5736_s26 + $0x48] sm:$0xe]  ;;  %v2060_v59 = vshll.u32 %v4992_v5, 16  ;;  %v5571_v5 = vld [vmem:[%s7228_s1 + $0x198] sm:$0xff] }
  0x96   : > { %v4770_v62 = vrot.slane %v1126_v19, 9  ;;  %3154 = vmatpush.bf16.msra.mxu2 %v5571_v5 }
  0x97   : > { %v2028_v8 = vrot.slane %v2026_v60, 5  ;;  %v2052_v60 = vrot.slane %v2050_v47, 5  ;;  %v2062_v21 = vrot.slane %v2060_v59, 5  ;;  %v4996_v59 = vld [vmem:[%s5736_s26 + $0x6c] sm:$0xf] }
  0x98   : > { %v1216_v10 = vsel %vm6051_vm5, %v4770_v62, %v1215_v54  ;;  %v5518_v54 = vld [vmem:[%s5736_s26 + $0x54] sm:$0xff] }
  0x99   : > { %v2029_v35 = vsel %vm5751_vm2, %v2024_v32, %v2028_v8  ;;  %v2057_v13 = vor.u32 %v2056_v3, %v2052_v60  ;;  %v1312_v18 = vunpack.c.l.b16 %v1216_v10 }
  0x9a   : > { %v2307_v58 = vunpack.c.l.b16 %v2029_v35  ;;  %v2070_v35 = vrot.slane %v2068_v37, 5  ;;  %v5631_v37 = vld [vmem:[%s5736_s26 + $0x64] sm:$0xf] }
  0x9b   : > { %1054 = vmatmul.bf16.gmra.mxu1 %v5475_v15  ;;  %v2032_v15 = vrot.slane %v2030_v14, 4  ;;  %v5630_v14 = vld [vmem:[%s5736_s26 + $0x50] sm:$0x1]  ;;  %v2058_v20 = vrot.slane %v2057_v13, 4 }
  0x9c   : > { %1435 = vmatmul.bf16.gmra.mxu2 %v1335_v50  ;;  %v1218_v1 = vrot.slane %v5630_v14, 5 }
  0x9d   : > { %v2033_v23 = vor.u32 %v2032_v15, %v2028_v8  ;;  %v2063_v27 = vsel %vm5751_vm2, %v2058_v20, %v2062_v21  ;;  %v5479_v20 = vld [vmem:[%s5736_s26 + $0x54] sm:$0xff]  ;;  %v4997_v21 = vld [vmem:[%s5736_s26 + $0x70] sm:$0xf] }
  0x9e   : > { %v1219_v11 = vsel %vm6051_vm5, %v1217_v0, %v1218_v1  ;;  %v2310_v47 = vunpack.c.l.b16 %v2063_v27  ;;  %v2092_v27 = vshll.u32 %v4996_v59, 16 }
  0x9f   : > { %v2034_v34 = vrot.slane %v2033_v23, 4  ;;  %v4994_v23 = vld [vmem:[%s5736_s26 + $0x64] sm:$0xf] }
  0xa0   : > { %v2074_v38 = vshll.u32 %v4994_v23, 16 }
  0xa1   : > { %1750 = vmatmul.bf16.gmra.mxu3 %v5515_v33  ;;  %v4990_v33 = vld [vmem:[%s5736_s26 + $0x54] sm:$0xf]  ;;  %v2039_v49 = vsel %vm5751_vm2, %v2034_v34, %v2038_v36  ;;  %v2065_v36 = vshrl.u32 %v4993_v22, 16 }
  0xa2   : > { %v2041_v42 = vshrl.u32 %v4990_v33, 16  ;;  %v2044_v44 = vshll.u32 %v4990_v33, 16  ;;  %v2308_v61 = vunpack.c.l.b16 %v2039_v49  ;;  %v2076_v49 = vrot.slane %v2074_v38, 5 }
  0xa3   : > { %v2067_v48 = vrot.slane %v2065_v36, 4  ;;  %v1229_v38 = vrot.slane %v5631_v37, 5 }
  0xa4   : > { %v2046_v55 = vrot.slane %v2044_v44, 5  ;;  %v2334_v8 = vpack.c.b16 %v2308_v61, %v2307_v58  ;;  %v1127_v44 = vld [vmem:[%s5736_s26 + $0x54] sm:$0xe]  ;;  %v4995_v61 = vld [vmem:[%s5736_s26 + $0x68] sm:$0x1] }
  0xa5   : > { %2432 = vmatmul.bf16.gmra.mxu0 %v2332_v41  ;;  %v5477_v41 = vld [vmem:[%s5736_s26 + $0x3c] sm:$0xff]  ;;  %v4771_v12 = vrot.slane %v1127_v44, 9  ;;  %v2071_v62 = vor.u32 %v2070_v35, %v2067_v48  ;;  %v2084_v3 = vshll.u32 %v4995_v61, 16  ;;  %v2098_v44 = vshll.u32 %v4997_v21, 16 }
  0xa6   : > { %v2094_v61 = vrot.slane %v2092_v27, 5  ;;  %v5480_v27 = vld [vmem:[%s5736_s26 + $0x60] sm:$0xff] }
  0xa7   : > { %v2072_v10 = vrot.slane %v2071_v62, 4  ;;  %v2086_v13 = vrot.slane %v2084_v3, 5 }
  0xa8   : > { %v6159_v56 = vpop.f32.mrf.mxu1 }
  0xab   : > { %v6164_v4 = vpop.f32.mrf.mxu0  ;;  %1059 = vmatmul.bf16.gmra.mxu1 %v5476_v31  ;;  %v2043_v31 = vrot.slane %v2041_v42, 4  ;;  %v2078_v42 = vshrl.u32 %v4994_v23, 16 }
  0xac   : > { %1440 = vmatmul.bf16.gmra.mxu2 %v1336_v57 }
  0xad   : > { %v2047_v7 = vor.u32 %v2046_v55, %v2043_v31  ;;  %v1225_v31 = vrot.slane %v5984_v53, 5  ;;  %v2080_v55 = vrot.slane %v2078_v42, 4  ;;  %v1128_v42 = vld [vmem:[%s5736_s26 + $0x60] sm:$0xe] }
  0xae   : > { %v6169_v17 = vpop.f32.mrf.mxu2 }
  0xaf   : > { %v6172_v50 = vpop.f32.mrf.mxu3  ;;  %v2048_v15 = vrot.slane %v2047_v7, 4  ;;  %v2081_v1 = vor.u32 %v2080_v55, %v2076_v49 }
  0xb0   : > { %v6174_v16 = vpop.f32.mrf.mxu1 }
  0xb1   : > { %1755 = vmatmul.bf16.gmra.mxu3 %v5516_v9  ;;  %v2053_v32 = vsel %vm5751_vm2, %v2048_v15, %v2052_v60  ;;  %v5579_v15 = vld [vmem:[%s7228_s1 + $0x1d8] sm:$0xff] }
  0xb2   : > { %3836 = vmatpush.bf16.msra.mxu3 %v5579_v15 }
  0xb3   : > { %v6183_v26 = vpop.f32.mrf.mxu0 }
  0xb5   : > { %2437 = vmatmul.bf16.gmra.mxu0 %v2333_v51  ;;  %v1313_v51 = vunpack.c.l.b16 %v1219_v11  ;;  %v2082_v11 = vrot.slane %v2081_v1, 4 }
  0xb6   : > { %v6193_v39 = vpop.f32.mrf.mxu2 }
  0xb7   : > { %v6195_v40 = vpop.f32.mrf.mxu3  ;;  %v1338_v34 = vpack.c.b16 %v1313_v51, %v1312_v18  ;;  %v5547_v18 = vld [vmem:[%s7228_s1 + $0x158] sm:$0xff]  ;;  %v2087_v36 = vsel %vm5751_vm2, %v2082_v11, %v2086_v13 }
  0xb8   : > { %v6198_v45 = vpop.f32.mrf.mxu1  ;;  %2839 = vmatpush.bf16.msra.mxu1 %v5547_v18  ;;  %v2312_v35 = vunpack.c.l.b16 %v2087_v36 }
  0xbb   : > { %1064 = vmatmul.bf16.gmra.mxu1 %v5477_v41  ;;  %v1222_v41 = vrot.slane %v5981_v52, 5 }
  0xbc   : > { %v6209_v57 = vpop.f32.mrf.mxu0  ;;  %1445 = vmatmul.bf16.gmra.mxu2 %v1337_v46  ;;  %v2309_v46 = vunpack.c.l.b16 %v2053_v32 }
  0xbd   : > { %v1224_v19 = vrot.slane %v1222_v41, 4  ;;  %v1223_v14 = vsel %vm6051_vm5, %v4771_v12, %v1222_v41  ;;  %v4772_v12 = vrot.slane %v1128_v42, 9 }
  0xbe   : > { %v6213_v2 = vpop.f32.mrf.mxu2  ;;  %v2335_v60 = vpack.c.b16 %v2310_v47, %v2309_v46  ;;  %v1314_v7 = vunpack.c.l.b16 %v1223_v14  ;;  %v2102_v46 = vshrl.u32 %v4997_v21, 16  ;;  %v5587_v47 = vld [vmem:[%s7228_s1 + $0x218] sm:$0xff] }
  0xbf   : > { %v6216_v6 = vpop.f32.mrf.mxu3  ;;  %v1226_v53 = vsel %vm6051_vm5, %v1224_v19, %v1225_v31  ;;  %4262 = vmatpush.bf16.msra.mxu0 %v5587_v47  ;;  %v1231_v19 = vrot.slane %v1229_v38, 4  ;;  %v5632_v31 = vld [vmem:[%s5736_s26 + $0x68] sm:$0x1]  ;;  %v1230_v5 = vsel %vm6051_vm5, %v4772_v12, %v1229_v38  ;;  %v5000_v21 = vld [vmem:[%s5736_s26 + $0x7c] sm:$0xf] }
  0xc0   : > { %v6218_v9 = vpop.f32.mrf.mxu1  ;;  %v1232_v55 = vrot.slane %v5632_v31, 5  ;;  %v2104_v62 = vrot.slane %v2102_v46, 4  ;;  %v1316_v18 = vunpack.c.l.b16 %v1230_v5  ;;  %v2122_v42 = vshll.u32 %v5000_v21, 16  ;;  %v5633_v47 = vld [vmem:[%s5736_s26 + $0x70] sm:$0xf] }
  0xc1   : > { %1760 = vmatmul.bf16.gmra.mxu3 %v5517_v63 }
  0xc4   : > { %v6226_v24 = vpop.f32.mrf.mxu0 }
  0xc5   : > { %2442 = vmatmul.bf16.gmra.mxu0 %v2334_v8  ;;  %v1315_v8 = vunpack.c.l.b16 %v1226_v53  ;;  %v4998_v53 = vld [vmem:[%s5736_s26 + $0x74] sm:$0x1] }
  0xc6   : > { %v6228_v25 = vpop.f32.mrf.mxu2  ;;  %v2108_v13 = vshll.u32 %v4998_v53, 16 }
  0xc7   : > { %v6230_v28 = vpop.f32.mrf.mxu3  ;;  %v1339_v23 = vpack.c.b16 %v1315_v8, %v1314_v7  ;;  %v1233_v7 = vsel %vm6051_vm5, %v1231_v19, %v1232_v55 }
  0xc8   : > { %v6235_v33 = vpop.f32.mrf.mxu1 }
  0xcb   : > { %1069 = vmatmul.bf16.gmra.mxu1 %v5478_v29  ;;  %v2089_v29 = vshrl.u32 %v4996_v59, 16  ;;  %v4999_v59 = vld [vmem:[%s5736_s26 + $0x78] sm:$0xf] }
  0xcc   : > { %1450 = vmatmul.bf16.gmra.mxu2 %v1338_v34  ;;  %v2077_v34 = vsel %vm5751_vm2, %v2072_v10, %v2076_v49  ;;  %v2113_v36 = vshrl.u32 %v4999_v59, 16  ;;  %v2116_v37 = vshll.u32 %v4999_v59, 16 }
  0xcd   : > { %v2311_v48 = vunpack.c.l.b16 %v2077_v34  ;;  %v2091_v49 = vrot.slane %v2089_v29, 4  ;;  %v2110_v34 = vrot.slane %v2108_v13, 5  ;;  %v5520_v13 = vld [vmem:[%s5736_s26 + $0x6c] sm:$0xff] }
  0xce   : > { %v6243_v58 = vpop.f32.mrf.mxu2  ;;  %v2115_v55 = vrot.slane %v2113_v36, 4 }
  0xcf   : > { %v2336_v1 = vpack.c.b16 %v2312_v35, %v2311_v48  ;;  %v2095_v8 = vor.u32 %v2094_v61, %v2091_v49  ;;  %v1236_v48 = vrot.slane %v5633_v47, 5  ;;  %v2118_v61 = vrot.slane %v2116_v37, 5  ;;  %v5570_v47 = vld [vmem:[%s7228_s1 + $0x190] sm:$0xff] }
  0xd0   : > { %v6246_v52 = vpop.f32.mrf.mxu0  ;;  %v6248_v63 = vpop.f32.mrf.mxu3  ;;  %3155 = vmatpush.bf16.msra.mxu2 %v5570_v47 }
  0xd1   : > { %1765 = vmatmul.bf16.gmra.mxu3 %v5518_v54  ;;  %v6250_v0 = vpop.f32.mrf.mxu1  ;;  %v5519_v54 = vld [vmem:[%s5736_s26 + $0x60] sm:$0xff] }
  0xd5   : > { %2447 = vmatmul.bf16.gmra.mxu0 %v2335_v60  ;;  %v2100_v60 = vrot.slane %v2098_v44, 5  ;;  %v2126_v44 = vshrl.u32 %v5000_v21, 16 }
  0xd6   : > { %v6266_v51 = vpop.f32.mrf.mxu2 }
  0xd7   : > { %v2105_v11 = vor.u32 %v2104_v62, %v2100_v60  ;;  %v2124_v62 = vrot.slane %v2122_v42, 5  ;;  %v2128_v53 = vrot.slane %v2126_v44, 4 }
  0xd8   : > { %v6270_v22 = vpop.f32.mrf.mxu0  ;;  %v6279_v41 = vpop.f32.mrf.mxu3 }
  0xd9   : > { %v6272_v32 = vpop.f32.mrf.mxu1  ;;  %v2106_v29 = vrot.slane %v2105_v11, 4  ;;  %v5001_v11 = vld [vmem:[%s5736_s26 + $0x80] sm:$0x1]  ;;  %v2129_v21 = vor.u32 %v2128_v53, %v2124_v62  ;;  %v5546_v53 = vld [vmem:[%s7228_s1 + $0x150] sm:$0xff] }
  0xda   : > { %2840 = vmatpush.bf16.msra.mxu1 %v5546_v53 }
  0xdb   : > { %1074 = vmatmul.bf16.gmra.mxu1 %v5479_v20  ;;  %v1317_v20 = vunpack.c.l.b16 %v1233_v7  ;;  %v2111_v31 = vsel %vm5751_vm2, %v2106_v29, %v2110_v34  ;;  %v5634_v7 = vld [vmem:[%s5736_s26 + $0x74] sm:$0x1] }
  0xdc   : > { %1455 = vmatmul.bf16.gmra.mxu2 %v1339_v23  ;;  %v2096_v23 = vrot.slane %v2095_v8, 4  ;;  %v1239_v8 = vrot.slane %v5634_v7, 5  ;;  %v5481_v7 = vld [vmem:[%s5736_s26 + $0x6c] sm:$0xff] }
  0xdd   : > { %v1340_v46 = vpack.c.b16 %v1317_v20, %v1316_v18  ;;  %v2314_v18 = vunpack.c.l.b16 %v2111_v31  ;;  %v5002_v31 = vld [vmem:[%s5736_s26 + $0x84] sm:$0xf] }
  0xde   : > { %v2101_v49 = vsel %vm5751_vm2, %v2096_v23, %v2100_v60  ;;  %v1238_v60 = vrot.slane %v1236_v48, 4  ;;  %v2132_v23 = vshll.u32 %v5001_v11, 16 }
  0xdf   : > { %v6287_v14 = vpop.f32.mrf.mxu2  ;;  %v2313_v59 = vunpack.c.l.b16 %v2101_v49 }
  0xe0   : > { %v1240_v36 = vsel %vm6051_vm5, %v1238_v60, %v1239_v8 }
  0xe1   : > { %1770 = vmatmul.bf16.gmra.mxu3 %v5519_v54  ;;  %v6290_v3 = vpop.f32.mrf.mxu1  ;;  %v1129_v54 = vld [vmem:[%s5736_s26 + $0x6c] sm:$0xe]  ;;  %v2337_v37 = vpack.c.b16 %v2314_v18, %v2313_v59  ;;  %v1319_v49 = vunpack.c.l.b16 %v1240_v36 }
  0xe2   : > { %v6296_v10 = vpop.f32.mrf.mxu0  ;;  %v4773_v5 = vrot.slane %v1129_v54, 9  ;;  %v2130_v54 = vrot.slane %v2129_v21, 4 }
  0xe4   : > { %v6299_v15 = vpop.f32.mrf.mxu3  ;;  %v1237_v34 = vsel %vm6051_vm5, %v4773_v5, %v1236_v48  ;;  %v2134_v48 = vrot.slane %v2132_v23, 5 }
  0xe5   : > { %2452 = vmatmul.bf16.gmra.mxu0 %v2336_v1 }
  0xe6   : > { %v2135_v11 = vsel %vm5751_vm2, %v2130_v54, %v2134_v48 }
  0xe7   : > { %v6302_v38 = vpop.f32.mrf.mxu2 }
  0xe9   : > { %v1040_v35 = vpop.f32.mrf.mxu1 }
  0xea   : > { %v6309_v12 = vpop.f32.mrf.mxu0  ;;  %v1041_v19 = vadd.f32 %v1040_v35, %v6164_v4  ;;  %v2119_v4 = vor.u32 %v2118_v61, %v2115_v55  ;;  %v1318_v35 = vunpack.c.l.b16 %v1237_v34  ;;  %v5003_v61 = vld [vmem:[%s5736_s26 + $0x88] sm:$0xf] }
  0xeb   : > { %1079 = vmatmul.bf16.gmra.mxu1 %v5480_v27  ;;  %v2150_v21 = vshrl.u32 %v5003_v61, 16 }
  0xec   : > { %v6314_v1 = vpop.f32.mrf.mxu3  ;;  %1460 = vmatmul.bf16.gmra.mxu2 %v1340_v46  ;;  %v2120_v46 = vrot.slane %v2119_v4, 4  ;;  %v1341_v8 = vpack.c.b16 %v1319_v49, %v1318_v35  ;;  %v2140_v4 = vshll.u32 %v5002_v31, 16 }
  0xed   : > { %v2152_v54 = vrot.slane %v2150_v21, 4 }
  0xee   : > { %v2125_v5 = vsel %vm5751_vm2, %v2120_v46, %v2124_v62  ;;  %v2142_v35 = vrot.slane %v2140_v4, 5 }
  0xef   : > { %v1421_v20 = vpop.f32.mrf.mxu2 }
  0xf0   : > { %v1501_v29 = vadd.f32 %v1421_v20, %v1041_v19  ;;  %v2146_v20 = vshll.u32 %v5003_v61, 16 }
  0xf1   : > { %1775 = vmatmul.bf16.gmra.mxu3 %v5520_v13  ;;  %v1042_v27 = vpop.f32.mrf.mxu1  ;;  %v2137_v13 = vshrl.u32 %v5002_v31, 16 }
  0xf2   : > { %v2418_v42 = vpop.f32.mrf.mxu0  ;;  %v1043_v44 = vadd.f32 %v1042_v27, %v6183_v26  ;;  %v5578_v26 = vld [vmem:[%s7228_s1 + $0x1d0] sm:$0xff]  ;;  %v2148_v49 = vrot.slane %v2146_v20, 5 }
  0xf3   : > { %3837 = vmatpush.bf16.msra.mxu3 %v5578_v26  ;;  %v5586_v27 = vld [vmem:[%s7228_s1 + $0x210] sm:$0xff]  ;;  %v2139_v47 = vrot.slane %v2137_v13, 4  ;;  %v5004_v26 = vld [vmem:[%s5736_s26 + $0x8c] sm:$0x1] }
  0xf4   : > { %v1736_v19 = vpop.f32.mrf.mxu3  ;;  %4263 = vmatpush.bf16.msra.mxu0 %v5586_v27  ;;  %v2156_v4 = vshll.u32 %v5004_v26, 16  ;;  %v5637_v26 = vld [vmem:[%s5736_s26 + $0x88] sm:$0xf] }
  0xf5   : > { %2457 = vmatmul.bf16.gmra.mxu0 %v2337_v37  ;;  %v1816_v55 = vadd.f32 %v1736_v19, %v1501_v29  ;;  %v5635_v29 = vld [vmem:[%s5736_s26 + $0x7c] sm:$0xf]  ;;  %v1130_v37 = vld [vmem:[%s5736_s26 + $0x78] sm:$0xe] }
  0xf6   : > { %v1243_v34 = vrot.slane %v5635_v29, 5  ;;  %v5521_v19 = vld [vmem:[%s5736_s26 + $0x78] sm:$0xff] }
  0xf7   : > { %v1423_v60 = vpop.f32.mrf.mxu2  ;;  %v6340_v59 = vadd.f32 %v2418_v42, %v1816_v55  ;;  %v2315_v42 = vunpack.c.l.b16 %v2125_v5  ;;  %v5636_v55 = vld [vmem:[%s5736_s26 + $0x80] sm:$0x1] }
  0xf8   : > { %v1502_v18 = vadd.f32 %v1423_v60, %v1043_v44  ;;  %v2316_v44 = vunpack.c.l.b16 %v2135_v11  ;;  %v1245_v31 = vrot.slane %v1243_v34, 4  ;;  %v1246_v61 = vrot.slane %v5636_v55, 5 }
  0xf9   : > { %v1045_v23 = vpop.f32.mrf.mxu1 }
  0xfa   : > { %v2420_v62 = vpop.f32.mrf.mxu0  ;;  %v1046_v36 = vadd.f32 %v1045_v23, %v6209_v57  ;;  %v4774_v57 = vrot.slane %v1130_v37, 9  ;;  %v2338_v60 = vpack.c.b16 %v2316_v44, %v2315_v42  ;;  %v2143_v23 = vor.u32 %v2142_v35, %v2139_v47  ;;  %v5482_v47 = vld [vmem:[%s5736_s26 + $0x78] sm:$0xff]  ;;  %v5006_v35 = vld [vmem:[%s5736_s26 + $0x94] sm:$0xf] }
  0xfb   : > { %1084 = vmatmul.bf16.gmra.mxu1 %v5481_v7  ;;  %v1247_v13 = vsel %vm6051_vm5, %v1245_v31, %v1246_v61  ;;  %v2158_v44 = vrot.slane %v2156_v4, 5 }
  0xfc   : > { %v1738_v46 = vpop.f32.mrf.mxu3  ;;  %1465 = vmatmul.bf16.gmra.mxu2 %v1341_v8  ;;  %v1244_v11 = vsel %vm6051_vm5, %v4774_v57, %v1243_v34  ;;  %v2144_v27 = vrot.slane %v2143_v23, 4  ;;  %v5005_v34 = vld [vmem:[%s5736_s26 + $0x90] sm:$0xf]  ;;  %v1131_v23 = vld [vmem:[%s5736_s26 + $0x84] sm:$0xe] }
  0xfd   : > { %v1817_v48 = vadd.f32 %v1738_v46, %v1502_v18  ;;  %v2153_v18 = vor.u32 %v2152_v54, %v2148_v49  ;;  %v2161_v57 = vshrl.u32 %v5005_v34, 16 }
  0xfe   : > { %v2149_v55 = vsel %vm5751_vm2, %v2144_v27, %v2148_v49 }
  0xff   : > { %v1426_v53 = vpop.f32.mrf.mxu2  ;;  %v6351_v5 = vadd.f32 %v2420_v62, %v1817_v48  ;;  %v1321_v62 = vunpack.c.l.b16 %v1247_v13  ;;  %v2154_v42 = vrot.slane %v2153_v18, 4  ;;  %v2317_v18 = vunpack.c.l.b16 %v2149_v55 }
 0x100   : > { %v1503_v7 = vadd.f32 %v1426_v53, %v1046_v36  ;;  %v1320_v36 = vunpack.c.l.b16 %v1244_v11  ;;  %v1250_v53 = vrot.slane %v5637_v26, 5  ;;  %v2174_v11 = vshrl.u32 %v5006_v35, 16 }
 0x101   : > { %1780 = vmatmul.bf16.gmra.mxu3 %v5521_v19  ;;  %v1047_v8 = vpop.f32.mrf.mxu1  ;;  %v2159_v61 = vsel %vm5751_vm2, %v2154_v42, %v2158_v44  ;;  %v2163_v49 = vrot.slane %v2161_v57, 4 }
 0x102   : > { %v2423_v20 = vpop.f32.mrf.mxu0  ;;  %v1048_v21 = vadd.f32 %v1047_v8, %v6226_v24  ;;  %v1342_v19 = vpack.c.b16 %v1321_v62, %v1320_v36  ;;  %v2164_v24 = vshll.u32 %v5005_v34, 16  ;;  %v2170_v8 = vshll.u32 %v5006_v35, 16  ;;  %v5007_v34 = vld [vmem:[%s5736_s26 + $0x98] sm:$0x1] }
 0x103   : > { %v2318_v4 = vunpack.c.l.b16 %v2159_v61  ;;  %v4775_v36 = vrot.slane %v1131_v23, 9  ;;  %v1252_v62 = vrot.slane %v1250_v53, 4  ;;  %v2180_v26 = vshll.u32 %v5007_v34, 16 }
 0x104   : > { %v1741_v29 = vpop.f32.mrf.mxu3  ;;  %v6372_v42 = vrot.slane %v2170_v8, 5 }
 0x105   : > { %2462 = vmatmul.bf16.gmra.mxu0 %v2338_v60  ;;  %v1818_v37 = vadd.f32 %v1741_v29, %v1503_v7  ;;  %v5522_v29 = vld [vmem:[%s5736_s26 + $0x84] sm:$0xff]  ;;  %v2339_v35 = vpack.c.b16 %v2318_v4, %v2317_v18 }
 0x106   : > { %v5545_v4 = vld [vmem:[%s7228_s1 + $0x148] sm:$0xff] }
 0x107   : > { %v1428_v46 = vpop.f32.mrf.mxu2  ;;  %v6361_v48 = vadd.f32 %v2423_v20, %v1818_v37  ;;  %v2166_v20 = vrot.slane %v2164_v24, 5  ;;  %v5638_v37 = vld [vmem:[%s5736_s26 + $0x8c] sm:$0x1]  ;;  %2841 = vmatpush.bf16.msra.mxu1 %v5545_v4 }
 0x108   : > { %v1504_v54 = vadd.f32 %v1428_v46, %v1048_v21  ;;  %v1253_v27 = vrot.slane %v5638_v37, 5 }
 0x109   : > { %v1050_v31 = vpop.f32.mrf.mxu1  ;;  %v2167_v24 = vor.u32 %v2166_v20, %v2163_v49  ;;  %v2182_v20 = vrot.slane %v2180_v26, 5 }
 0x10a   : > { %v2425_v60 = vpop.f32.mrf.mxu0  ;;  %v1051_v7 = vadd.f32 %v1050_v31, %v6246_v52  ;;  %v2176_v52 = vrot.slane %v2174_v11, 4  ;;  %v1254_v57 = vsel %vm6051_vm5, %v1252_v62, %v1253_v27  ;;  %v5483_v62 = vld [vmem:[%s5736_s26 + $0x84] sm:$0xff] }
 0x10b   : > { %1089 = vmatmul.bf16.gmra.mxu1 %v5482_v47  ;;  %v1323_v11 = vunpack.c.l.b16 %v1254_v57  ;;  %v2168_v18 = vrot.slane %v2167_v24, 4  ;;  %v1132_v57 = vld [vmem:[%s5736_s26 + $0x90] sm:$0xe] }
 0x10c   : > { %v1743_v13 = vpop.f32.mrf.mxu3  ;;  %1470 = vmatmul.bf16.gmra.mxu2 %v1342_v19  ;;  %v2177_v61 = vor.u32 %v2176_v52, %v6372_v42 }
 0x10d   : > { %v1819_v21 = vadd.f32 %v1743_v13, %v1504_v54  ;;  %v1251_v54 = vsel %vm6051_vm5, %v4775_v36, %v1250_v53  ;;  %v5009_v53 = vld [vmem:[%s5736_s26 + $0xa0] sm:$0xf] }
 0x10e   : > { %v1322_v8 = vunpack.c.l.b16 %v1251_v54  ;;  %v2178_v49 = vrot.slane %v2177_v61, 4  ;;  %v2194_v37 = vshll.u32 %v5009_v53, 16  ;;  %v2198_v27 = vshrl.u32 %v5009_v53, 16  ;;  %v5640_v53 = vld [vmem:[%s5736_s26 + $0x98] sm:$0x1] }
 0x10f   : > { %v1431_v44 = vpop.f32.mrf.mxu2  ;;  %v6375_v47 = vadd.f32 %v2425_v60, %v1819_v21  ;;  %v5569_v60 = vld [vmem:[%s7228_s1 + $0x188] sm:$0xff]  ;;  %v2173_v54 = vsel %vm5751_vm2, %v2168_v18, %v6372_v42  ;;  %v4776_v42 = vrot.slane %v1132_v57, 9 }
 0x110   : > { %v1505_v46 = vadd.f32 %v1431_v44, %v1051_v7  ;;  %v5008_v7 = vld [vmem:[%s5736_s26 + $0x9c] sm:$0xf]  ;;  %3156 = vmatpush.bf16.msra.mxu2 %v5569_v60  ;;  %v1343_v34 = vpack.c.b16 %v1323_v11, %v1322_v8  ;;  %v2183_v26 = vsel %vm5751_vm2, %v2178_v49, %v2182_v20  ;;  %v5585_v60 = vld [vmem:[%s7228_s1 + $0x208] sm:$0xff]  ;;  %v2319_v4 = vunpack.c.l.b16 %v2173_v54 }
 0x111   : > { %1785 = vmatmul.bf16.gmra.mxu3 %v5522_v29  ;;  %v1052_v19 = vpop.f32.mrf.mxu1  ;;  %v2185_v21 = vshrl.u32 %v5008_v7, 16  ;;  %v2188_v29 = vshll.u32 %v5008_v7, 16  ;;  %v2196_v7 = vrot.slane %v2194_v37, 5  ;;  %4264 = vmatpush.bf16.msra.mxu0 %v5585_v60  ;;  %v2320_v49 = vunpack.c.l.b16 %v2183_v26 }
 0x112   : > { %v2428_v31 = vpop.f32.mrf.mxu0  ;;  %v1053_v55 = vadd.f32 %v1052_v19, %v6270_v22  ;;  %v5577_v22 = vld [vmem:[%s7228_s1 + $0x1c8] sm:$0xff] }
 0x113   : > { %3838 = vmatpush.bf16.msra.mxu3 %v5577_v22  ;;  %v5523_v22 = vld [vmem:[%s5736_s26 + $0x90] sm:$0xff] }
 0x114   : > { %v1746_v23 = vpop.f32.mrf.mxu3 }
 0x115   : > { %2467 = vmatmul.bf16.gmra.mxu0 %v2339_v35  ;;  %v1820_v13 = vadd.f32 %v1746_v23, %v1505_v46  ;;  %v5639_v46 = vld [vmem:[%s5736_s26 + $0x94] sm:$0xf]  ;;  %v2200_v23 = vrot.slane %v2198_v27, 4 }
 0x116   : > { %v1257_v35 = vrot.slane %v5639_v46, 5 }
 0x117   : > { %v1433_v36 = vpop.f32.mrf.mxu2  ;;  %v6395_v52 = vadd.f32 %v2428_v31, %v1820_v13  ;;  %v2187_v31 = vrot.slane %v2185_v21, 4  ;;  %v1260_v13 = vrot.slane %v5640_v53, 5 }
 0x118   : > { %v1506_v44 = vadd.f32 %v1433_v36, %v1053_v55  ;;  %v2190_v55 = vrot.slane %v2188_v29, 5  ;;  %v1259_v11 = vrot.slane %v1257_v35, 4  ;;  %v2201_v29 = vor.u32 %v2200_v23, %v2196_v7 }
 0x119   : > { %v1055_v19 = vpop.f32.mrf.mxu1  ;;  %v1258_v37 = vsel %vm6051_vm5, %v4776_v42, %v1257_v35  ;;  %v5011_v35 = vld [vmem:[%s5736_s26 + $0xa8] sm:$0xf] }
 0x11a   : > { %v2430_v24 = vpop.f32.mrf.mxu0  ;;  %v1056_v61 = vadd.f32 %v1055_v19, %v6296_v10  ;;  %v5010_v10 = vld [vmem:[%s5736_s26 + $0xa4] sm:$0x1]  ;;  %v2191_v20 = vor.u32 %v2190_v55, %v2187_v31  ;;  %v1261_v27 = vsel %vm6051_vm5, %v1259_v11, %v1260_v13  ;;  %v1324_v26 = vunpack.c.l.b16 %v1258_v37  ;;  %v5484_v11 = vld [vmem:[%s5736_s26 + $0x90] sm:$0xff] }
 0x11b   : > { %1094 = vmatmul.bf16.gmra.mxu1 %v5483_v62  ;;  %v2204_v36 = vshll.u32 %v5010_v10, 16  ;;  %v1325_v31 = vunpack.c.l.b16 %v1261_v27  ;;  %v2209_v13 = vshrl.u32 %v5011_v35, 16 }
 0x11c   : > { %v1748_v8 = vpop.f32.mrf.mxu3  ;;  %1475 = vmatmul.bf16.gmra.mxu2 %v1343_v34  ;;  %v2192_v57 = vrot.slane %v2191_v20, 4 }
 0x11d   : > { %v1821_v18 = vadd.f32 %v1748_v8, %v1506_v44  ;;  %v2340_v44 = vpack.c.b16 %v2320_v49, %v2319_v4  ;;  %v2206_v55 = vrot.slane %v2204_v36, 5  ;;  %v5012_v8 = vld [vmem:[%s5736_s26 + $0xac] sm:$0xf]  ;;  %v1344_v53 = vpack.c.b16 %v1325_v31, %v1324_v26  ;;  %v5524_v26 = vld [vmem:[%s5736_s26 + $0x9c] sm:$0xff] }
 0x11e   : > { %v2218_v4 = vshll.u32 %v5012_v8, 16  ;;  %v2222_v49 = vshrl.u32 %v5012_v8, 16  ;;  %v5013_v8 = vld [vmem:[%s5736_s26 + $0xb0] sm:$0x1] }
 0x11f   : > { %v1436_v21 = vpop.f32.mrf.mxu2  ;;  %v6415_v34 = vadd.f32 %v2430_v24, %v1821_v18  ;;  %v2197_v24 = vsel %vm5751_vm2, %v2192_v57, %v2196_v7  ;;  %v1133_v7 = vld [vmem:[%s5736_s26 + $0x9c] sm:$0xe] }
 0x120   : > { %v1507_v62 = vadd.f32 %v1436_v21, %v1056_v61  ;;  %v2202_v61 = vrot.slane %v2201_v29, 4  ;;  %v5641_v21 = vld [vmem:[%s5736_s26 + $0xa0] sm:$0xf]  ;;  %v4777_v31 = vrot.slane %v1133_v7, 9 }
 0x121   : > { %1790 = vmatmul.bf16.gmra.mxu3 %v5523_v22  ;;  %v1057_v46 = vpop.f32.mrf.mxu1  ;;  %v2212_v22 = vshll.u32 %v5011_v35, 16  ;;  %v1264_v29 = vrot.slane %v5641_v21, 5 }
 0x122   : > { %v2433_v19 = vpop.f32.mrf.mxu0  ;;  %v1058_v54 = vadd.f32 %v1057_v46, %v6309_v12  ;;  %v2207_v12 = vsel %vm5751_vm2, %v2202_v61, %v2206_v55  ;;  %v5642_v55 = vld [vmem:[%s5736_s26 + $0xa4] sm:$0x1] }
 0x123   : > { %v2322_v37 = vunpack.c.l.b16 %v2207_v12  ;;  %v2214_v46 = vrot.slane %v2212_v22, 5  ;;  %v1266_v61 = vrot.slane %v1264_v29, 4  ;;  %v1265_v12 = vsel %vm6051_vm5, %v4777_v31, %v1264_v29 }
 0x124   : > { %v1751_v60 = vpop.f32.mrf.mxu3 }
 0x125   : > { %2472 = vmatmul.bf16.gmra.mxu0 %v2340_v44  ;;  %v1822_v23 = vadd.f32 %v1751_v60, %v1507_v62  ;;  %v2321_v62 = vunpack.c.l.b16 %v2197_v24  ;;  %v2211_v44 = vrot.slane %v2209_v13, 4  ;;  %v1267_v60 = vrot.slane %v5642_v55, 5  ;;  %v5485_v55 = vld [vmem:[%s5736_s26 + $0x9c] sm:$0xff] }
 0x127   : > { %v1438_v42 = vpop.f32.mrf.mxu2  ;;  %v6425_v10 = vadd.f32 %v2433_v19, %v1822_v23  ;;  %v6429_v19 = vrot.slane %v2218_v4, 5  ;;  %v2341_v24 = vpack.c.b16 %v2322_v37, %v2321_v62  ;;  %v1268_v13 = vsel %vm6051_vm5, %v1266_v61, %v1267_v60  ;;  %v5015_v62 = vld [vmem:[%s5736_s26 + $0xb8] sm:$0xf] }
 0x128   : > { %v1508_v18 = vadd.f32 %v1438_v42, %v1058_v54  ;;  %v2224_v54 = vrot.slane %v2222_v49, 4  ;;  %v5568_v49 = vld [vmem:[%s7228_s1 + $0x180] sm:$0xff]  ;;  %v1327_v7 = vunpack.c.l.b16 %v1268_v13  ;;  %v2242_v60 = vshll.u32 %v5015_v62, 16 }
 0x129   : > { %v1060_v20 = vpop.f32.mrf.mxu1  ;;  %3157 = vmatpush.bf16.msra.mxu2 %v5568_v49  ;;  %v5584_v49 = vld [vmem:[%s7228_s1 + $0x200] sm:$0xff] }
 0x12a   : > { %v2435_v36 = vpop.f32.mrf.mxu0  ;;  %v1061_v35 = vadd.f32 %v1060_v20, %v6159_v56  ;;  %v2225_v22 = vor.u32 %v2224_v54, %v6429_v19  ;;  %v2228_v56 = vshll.u32 %v5013_v8, 16  ;;  %v5014_v20 = vld [vmem:[%s5736_s26 + $0xb4] sm:$0xf]  ;;  %4265 = vmatpush.bf16.msra.mxu0 %v5584_v49 }
 0x12b   : > { %1099 = vmatmul.bf16.gmra.mxu1 %v5484_v11  ;;  %v2236_v31 = vshll.u32 %v5014_v20, 16 }
 0x12c   : > { %v1753_v27 = vpop.f32.mrf.mxu3  ;;  %1480 = vmatmul.bf16.gmra.mxu2 %v1344_v53 }
 0x12d   : > { %v1823_v57 = vadd.f32 %v1753_v27, %v1508_v18  ;;  %v2215_v18 = vor.u32 %v2214_v46, %v2211_v44  ;;  %v2226_v27 = vrot.slane %v2225_v22, 4  ;;  %v5576_v44 = vld [vmem:[%s7228_s1 + $0x1c0] sm:$0xff] }
 0x12e   : > { %v5544_v46 = vld [vmem:[%s7228_s1 + $0x140] sm:$0xff]  ;;  %3839 = vmatpush.bf16.msra.mxu3 %v5576_v44 }
 0x12f   : > { %v1441_v23 = vpop.f32.mrf.mxu2  ;;  %v6435_v11 = vadd.f32 %v2435_v36, %v1823_v57  ;;  %v1326_v36 = vunpack.c.l.b16 %v1265_v12  ;;  %v2216_v37 = vrot.slane %v2215_v18, 4  ;;  %v2230_v57 = vrot.slane %v2228_v56, 5  ;;  %2842 = vmatpush.bf16.msra.mxu1 %v5544_v46  ;;  %v1134_v18 = vld [vmem:[%s5736_s26 + $0xa8] sm:$0xe] }
 0x130   : > { %v1509_v42 = vadd.f32 %v1441_v23, %v1061_v35  ;;  %v2246_v35 = vshrl.u32 %v5015_v62, 16 }
 0x131   : > { %1795 = vmatmul.bf16.gmra.mxu3 %v5524_v26  ;;  %v1062_v53 = vpop.f32.mrf.mxu1  ;;  %v2233_v26 = vshrl.u32 %v5014_v20, 16  ;;  %v2231_v22 = vsel %vm5751_vm2, %v2226_v27, %v2230_v57  ;;  %v2244_v20 = vrot.slane %v2242_v60, 5  ;;  %v5525_v27 = vld [vmem:[%s5736_s26 + $0xa8] sm:$0xff] }
 0x132   : > { %v2438_v4 = vpop.f32.mrf.mxu0  ;;  %v1063_v54 = vadd.f32 %v1062_v53, %v6174_v16  ;;  %v2221_v53 = vsel %vm5751_vm2, %v2216_v37, %v6429_v19  ;;  %v5016_v19 = vld [vmem:[%s5736_s26 + $0xbc] sm:$0x1] }
 0x133   : > { %v2235_v56 = vrot.slane %v2233_v26, 4  ;;  %v2323_v46 = vunpack.c.l.b16 %v2221_v53 }
 0x134   : > { %v1756_v21 = vpop.f32.mrf.mxu3 }
 0x135   : > { %2477 = vmatmul.bf16.gmra.mxu0 %v2341_v24  ;;  %v1824_v29 = vadd.f32 %v1756_v21, %v1509_v42  ;;  %v1345_v24 = vpack.c.b16 %v1327_v7, %v1326_v36  ;;  %v5643_v42 = vld [vmem:[%s5736_s26 + $0xac] sm:$0xf]  ;;  %v2248_v21 = vrot.slane %v2246_v35, 4  ;;  %v4778_v7 = vrot.slane %v1134_v18, 9 }
 0x136   : > { %v1271_v12 = vrot.slane %v5643_v42, 5 }
 0x137   : > { %v1443_v61 = vpop.f32.mrf.mxu2  ;;  %v6455_v23 = vadd.f32 %v2438_v4, %v1824_v29  ;;  %v2238_v4 = vrot.slane %v2236_v31, 5  ;;  %v5644_v29 = vld [vmem:[%s5736_s26 + $0xb0] sm:$0x1] }
 0x138   : > { %v1510_v8 = vadd.f32 %v1443_v61, %v1063_v54  ;;  %v1273_v62 = vrot.slane %v1271_v12, 4  ;;  %v1274_v44 = vrot.slane %v5644_v29, 5  ;;  %v2324_v54 = vunpack.c.l.b16 %v2231_v22 }
 0x139   : > { %v1065_v13 = vpop.f32.mrf.mxu1  ;;  %v2239_v26 = vor.u32 %v2238_v4, %v2235_v56  ;;  %v2249_v61 = vor.u32 %v2248_v21, %v2244_v20  ;;  %v1272_v35 = vsel %vm6051_vm5, %v4778_v7, %v1271_v12  ;;  %v5017_v21 = vld [vmem:[%s5736_s26 + $0xc0] sm:$0xf]  ;;  %v5645_v7 = vld [vmem:[%s5736_s26 + $0x10] sm:$0xf] }
 0x13a   : > { %v2440_v16 = vpop.f32.mrf.mxu0  ;;  %v1066_v57 = vadd.f32 %v1065_v13, %v6198_v45  ;;  %v2342_v42 = vpack.c.b16 %v2324_v54, %v2323_v46  ;;  %v1328_v53 = vunpack.c.l.b16 %v1272_v35  ;;  %v5647_v35 = vld [vmem:[%s5736_s26 + $0x14] sm:$0x1] }
 0x13b   : > { %1104 = vmatmul.bf16.gmra.mxu1 %v5485_v55  ;;  %v2252_v55 = vshll.u32 %v5016_v19, 16  ;;  %v2240_v13 = vrot.slane %v2239_v26, 4  ;;  %v2250_v56 = vrot.slane %v2249_v61, 4  ;;  %v2260_v26 = vshll.u32 %v5017_v21, 16 }
 0x13c   : > { %v1758_v36 = vpop.f32.mrf.mxu3  ;;  %1485 = vmatmul.bf16.gmra.mxu2 %v1345_v24  ;;  %v1275_v24 = vsel %vm6051_vm5, %v1273_v62, %v1274_v44  ;;  %v2596_v62 = vrot.slane %v5645_v7, 5  ;;  %v5486_v44 = vld [vmem:[%s5736_s26 + $0xa8] sm:$0xff]  ;;  %v5526_v7 = vld [vmem:[%s5736_s26 + $0xb4] sm:$0xff] }
 0x13d   : > { %v1825_v37 = vadd.f32 %v1758_v36, %v1510_v8  ;;  %v1329_v22 = vunpack.c.l.b16 %v1275_v24  ;;  %v2254_v4 = vrot.slane %v2252_v55, 5  ;;  %v5018_v36 = vld [vmem:[%s5736_s26 + $0xc4] sm:$0xf]  ;;  %v5646_v55 = vld [vmem:[%s5736_s26 + $0xb8] sm:$0xf]  ;;  %v2599_v24 = vrot.slane %v5647_v35, 5 }
 0x13f   : > { %v1446_v31 = vpop.f32.mrf.mxu2  ;;  %v6475_v8 = vadd.f32 %v2440_v16, %v1825_v37  ;;  %v1346_v19 = vpack.c.b16 %v1329_v22, %v1328_v53  ;;  %v2245_v37 = vsel %vm5751_vm2, %v2240_v13, %v2244_v20  ;;  %v2270_v20 = vshrl.u32 %v5018_v36, 16  ;;  %v5068_v53 = vld [vmem:[%s5736_s26 + $0xc] sm:$0xe] }
 0x140   : > { %v1511_v60 = vadd.f32 %v1446_v31, %v1066_v57  ;;  %v2257_v57 = vshrl.u32 %v5017_v21, 16  ;;  %v2266_v31 = vshll.u32 %v5018_v36, 16  ;;  %v2325_v13 = vunpack.c.l.b16 %v2245_v37 }
 0x141   : > { %1800 = vmatmul.bf16.gmra.mxu3 %v5525_v27  ;;  %v1067_v18 = vpop.f32.mrf.mxu1  ;;  %v2255_v27 = vsel %vm5751_vm2, %v2250_v56, %v2254_v4  ;;  %v2262_v4 = vrot.slane %v2260_v26, 5 }
 0x142   : > { %v2443_v45 = vpop.f32.mrf.mxu0  ;;  %v1068_v16 = vadd.f32 %v1067_v18, %v6218_v9  ;;  %v1278_v9 = vrot.slane %v5646_v55, 5  ;;  %v1135_v18 = vld [vmem:[%s5736_s26 + $0xb4] sm:$0xe]  ;;  %v2259_v56 = vrot.slane %v2257_v57, 4  ;;  %v5648_v55 = vld [vmem:[%s5736_s26 + $0xbc] sm:$0x1] }
 0x143   : > { %v1281_v35 = vrot.slane %v5648_v55, 5  ;;  %v5019_v57 = vld [vmem:[%s5736_s26 + $0xc8] sm:$0x1] }
 0x144   : > { %v1761_v49 = vpop.f32.mrf.mxu3 }
 0x145   : > { %2482 = vmatmul.bf16.gmra.mxu0 %v2342_v42  ;;  %v1826_v12 = vadd.f32 %v1761_v49, %v1511_v60  ;;  %v2598_v60 = vrot.slane %v2596_v62, 4  ;;  %v6492_v49 = vrot.slane %v2266_v31, 5 }
 0x147   : > { %v1448_v29 = vpop.f32.mrf.mxu2  ;;  %v6486_v46 = vadd.f32 %v2443_v45, %v1826_v12  ;;  %v2326_v45 = vunpack.c.l.b16 %v2255_v27  ;;  %v5084_v12 = vrot.slane %v5068_v53, 9  ;;  %v2600_v37 = vsel %vm6051_vm5, %v2598_v60, %v2599_v24 }
 0x148   : > { %v1512_v54 = vadd.f32 %v1448_v29, %v1068_v16  ;;  %v4779_v16 = vrot.slane %v1135_v18, 9  ;;  %v1280_v29 = vrot.slane %v1278_v9, 4  ;;  %v5292_v18 = vld [vmem:[%s5736_s26 + $0x18] sm:$0xf] }
 0x149   : > { %7236 = vst [vmem:[#allocation2_spill] sm:$0xff] %v6486_v46  ;;  %v1070_v61 = vpop.f32.mrf.mxu1  ;;  %v2343_v31 = vpack.c.b16 %v2326_v45, %v2325_v13  ;;  %v2276_v45 = vshll.u32 %v5019_v57, 16  ;;  %v3323_v55 = vshll.u32 %v5292_v18, 16 }
 0x14a   : > { %v2445_v42 = vpop.f32.mrf.mxu0  ;;  %v1071_v36 = vadd.f32 %v1070_v61, %v6235_v33  ;;  %v1279_v33 = vsel %vm6051_vm5, %v4779_v16, %v1278_v9  ;;  %v1282_v61 = vsel %vm6051_vm5, %v1280_v29, %v1281_v35 }
 0x14b   : > { %1109 = vmatmul.bf16.gmra.mxu1 %v5486_v44  ;;  %v2272_v44 = vrot.slane %v2270_v20, 4  ;;  %v1331_v9 = vunpack.c.l.b16 %v1282_v61  ;;  %v3325_v57 = vrot.slane %v3323_v55, 5 }
 0x14c   : > { %v1763_v22 = vpop.f32.mrf.mxu3  ;;  %1490 = vmatmul.bf16.gmra.mxu2 %v1346_v19  ;;  %v2597_v19 = vsel %vm6051_vm5, %v5084_v12, %v2596_v62  ;;  %v6510_v62 = vld [vmem:[%s5736_s26 + $0x1c] sm:$0xf]  ;;  %v2263_v12 = vor.u32 %v2262_v4, %v2259_v56  ;;  %v2278_v4 = vrot.slane %v2276_v45, 5 }
 0x14d   : > { %v1827_v21 = vadd.f32 %v1763_v22, %v1512_v54  ;;  %v2723_v26 = vunpack.c.l.b16 %v2597_v19  ;;  %v2724_v54 = vunpack.c.l.b16 %v2600_v37  ;;  %v2273_v13 = vor.u32 %v2272_v44, %v6492_v49  ;;  %v5487_v37 = vld [vmem:[%s5736_s26 + $0xb4] sm:$0xff] }
 0x14e   : > { %v1330_v19 = vunpack.c.l.b16 %v1279_v33  ;;  %v3329_v16 = vshll.u32 %v6510_v62, 16  ;;  %v3333_v29 = vshrl.u32 %v6510_v62, 16 }
 0x14f   : > { %v1451_v27 = vpop.f32.mrf.mxu2  ;;  %v6507_v20 = vpack.c.b16 %v2724_v54, %v2723_v26  ;;  %v6512_v60 = vadd.f32 %v2445_v42, %v1827_v21  ;;  %v2264_v21 = vrot.slane %v2263_v12, 4  ;;  %v2274_v56 = vrot.slane %v2273_v13, 4 }
 0x150   : > { %v1513_v53 = vadd.f32 %v1451_v27, %v1071_v36  ;;  %v3331_v33 = vrot.slane %v3329_v16, 5  ;;  %v3335_v61 = vrot.slane %v3333_v29, 4 }
 0x151   : > { %1805 = vmatmul.bf16.gmra.mxu3 %v5526_v7  ;;  %v1072_v22 = vpop.f32.mrf.mxu1  ;;  %7237 = vst [vmem:[#allocation3_spill] sm:$0xff] %v6512_v60  ;;  %v3320_v7 = vshrl.u32 %v5292_v18, 16  ;;  %v1347_v18 = vpack.c.b16 %v1331_v9, %v1330_v19 }
 0x152   : > { %v2448_v24 = vpop.f32.mrf.mxu0  ;;  %v1073_v42 = vadd.f32 %v1072_v22, %v6250_v0  ;;  %v2269_v0 = vsel %vm5751_vm2, %v2264_v21, %v6492_v49  ;;  %v3336_v12 = vor.u32 %v3335_v61, %v3331_v33  ;;  %v4019_v21 = vrot.slane %v6510_v62, 5 }
 0x153   : > { %v3322_v27 = vrot.slane %v3320_v7, 4  ;;  %v5527_v7 = vld [vmem:[%s5736_s26 + $0xc0] sm:$0xff]  ;;  %v2327_v55 = vunpack.c.l.b16 %v2269_v0 }
 0x154   : > { %v1766_v36 = vpop.f32.mrf.mxu3  ;;  %v3337_v29 = vrot.slane %v3336_v12, 4  ;;  %v4021_v62 = vrot.slane %v4019_v21, 4 }
 0x155   : > { %2487 = vmatmul.bf16.gmra.mxu0 %v2343_v31  ;;  %v1828_v35 = vadd.f32 %v1766_v36, %v1513_v53  ;;  %v5294_v31 = vld [vmem:[%s5736_s26 + $0x20] sm:$0x1]  ;;  %v2279_v53 = vsel %vm5751_vm2, %v2274_v56, %v2278_v4  ;;  %v3326_v22 = vor.u32 %v3325_v57, %v3322_v27  ;;  %v6535_v57 = vld [vmem:[%s5736_s26 + $0x28] sm:$0xf] }
 0x156   : > { %v3339_v13 = vshll.u32 %v5294_v31, 16  ;;  %v2328_v36 = vunpack.c.l.b16 %v2279_v53  ;;  %v4022_v53 = vrot.slane %v5294_v31, 5 }
 0x157   : > { %v1453_v44 = vpop.f32.mrf.mxu2  ;;  %v6519_v26 = vadd.f32 %v2448_v24, %v1828_v35  ;;  %v3327_v49 = vrot.slane %v3326_v22, 4  ;;  %v3353_v22 = vshll.u32 %v6535_v57, 16 }
 0x158   : > { %v1514_v54 = vadd.f32 %v1453_v44, %v1073_v42  ;;  %v3341_v35 = vrot.slane %v3339_v13, 5  ;;  %v5388_v42 = vld [vmem:[%s5736_s26 + $0x18] sm:$0xe]  ;;  %v2344_v56 = vpack.c.b16 %v2328_v36, %v2327_v55  ;;  %v5295_v44 = vld [vmem:[%s5736_s26 + $0x24] sm:$0xf] }
 0x159   : > { %v1075_v60 = vpop.f32.mrf.mxu1  ;;  %v3344_v61 = vshrl.u32 %v5295_v44, 16  ;;  %v3347_v0 = vshll.u32 %v5295_v44, 16  ;;  %v6556_v44 = vld [vmem:[%s5736_s26 + $0x2c] sm:$0x1] }
 0x15a   : > { %v2450_v46 = vpop.f32.mrf.mxu0  ;;  %v1076_v19 = vadd.f32 %v1075_v60, %v6272_v32  ;;  %v3332_v32 = vsel %vm5751_vm2, %v3327_v49, %v3331_v33  ;;  %v5404_v60 = vrot.slane %v5388_v42, 9  ;;  %v5069_v49 = vld [vmem:[%s5736_s26 + $0x18] sm:$0xe]  ;;  %v6553_v42 = vrot.slane %v3353_v22, 5 }
 0x15b   : > { %1114 = vmatmul.bf16.gmra.mxu1 %v5487_v37  ;;  %v3720_v13 = vunpack.c.l.b16 %v3332_v32  ;;  %v3349_v31 = vrot.slane %v3347_v0, 5  ;;  %v3363_v22 = vshll.u32 %v6556_v44, 16 }
 0x15c   : > { %v1768_v24 = vpop.f32.mrf.mxu3  ;;  %1495 = vmatmul.bf16.gmra.mxu2 %v1347_v18  ;;  %v3342_v18 = vsel %vm5751_vm2, %v3337_v29, %v3341_v35  ;;  %v4020_v35 = vsel %vm6051_vm5, %v5404_v60, %v4019_v21 }
 0x15d   : > { %v1829_v45 = vadd.f32 %v1768_v24, %v1514_v54  ;;  %v3357_v24 = vshrl.u32 %v6535_v57, 16  ;;  %v4146_v21 = vunpack.c.l.b16 %v4020_v35 }
 0x15f   : > { %v1456_v9 = vpop.f32.mrf.mxu2  ;;  %v6532_v37 = vadd.f32 %v2450_v46, %v1829_v45  ;;  %v5649_v45 = vld [vmem:[%s5736_s26 + $0x1c] sm:$0xf] }
 0x160   : > { %v1515_v16 = vadd.f32 %v1456_v9, %v1076_v19  ;;  %v5552_v19 = vld [vmem:[%s5736_s26 + $0x18] sm:$0xff]  ;;  %v3721_v9 = vunpack.c.l.b16 %v3342_v18 }
 0x161   : > { %1810 = vmatmul.bf16.gmra.mxu3 %v5527_v7  ;;  %v1077_v4 = vpop.f32.mrf.mxu1  ;;  %v2603_v7 = vrot.slane %v5649_v45, 5  ;;  %v5298_v45 = vld [vmem:[%s5736_s26 + $0x30] sm:$0xf] }
 0x162   : > { %v2453_v27 = vpop.f32.mrf.mxu0  ;;  %v1078_v12 = vadd.f32 %v1077_v4, %v6290_v3  ;;  %v4023_v3 = vsel %vm6051_vm5, %v4021_v62, %v4022_v53 }
 0x163   : > { %v2605_v32 = vrot.slane %v2603_v7, 4  ;;  %v4147_v60 = vunpack.c.l.b16 %v4023_v3 }
 0x164   : > { %v1771_v54 = vpop.f32.mrf.mxu3 }
 0x165   : > { %2492 = vmatmul.bf16.gmra.mxu0 %v2344_v56  ;;  %v1830_v46 = vadd.f32 %v1771_v54, %v1515_v16  ;;  %v3346_v16 = vrot.slane %v3344_v61, 4  ;;  %v3359_v56 = vrot.slane %v3357_v24, 4  ;;  %v5650_v54 = vld [vmem:[%s5736_s26 + $0x20] sm:$0x1] }
 0x166   : > { %v2606_v18 = vrot.slane %v5650_v54, 5 }
 0x167   : > { %v1458_v33 = vpop.f32.mrf.mxu2  ;;  %v6545_v55 = vadd.f32 %v2453_v27, %v1830_v46  ;;  %v5085_v27 = vrot.slane %v5069_v49, 9  ;;  %v3350_v0 = vor.u32 %v3349_v31, %v3346_v16  ;;  %v3752_v46 = vpack.c.b16 %v3721_v9, %v3720_v13 }
 0x168   : > { %v1516_v36 = vadd.f32 %v1458_v33, %v1078_v12  ;;  %v3360_v53 = vor.u32 %v3359_v56, %v6553_v42  ;;  %v2607_v33 = vsel %vm6051_vm5, %v2605_v32, %v2606_v18  ;;  %v3365_v31 = vrot.slane %v3363_v22, 5  ;;  %v5389_v56 = vld [vmem:[%s5736_s26 + $0x24] sm:$0xe] }
 0x169   : > { %v1080_v29 = vpop.f32.mrf.mxu1  ;;  %v2604_v12 = vsel %vm6051_vm5, %v5085_v27, %v2603_v7  ;;  %v3351_v16 = vrot.slane %v3350_v0, 4  ;;  %v2726_v3 = vunpack.c.l.b16 %v2607_v33  ;;  %v3368_v27 = vshrl.u32 %v5298_v45, 16 }
 0x16a   : > { %v2455_v4 = vpop.f32.mrf.mxu0  ;;  %v1081_v24 = vadd.f32 %v1080_v29, %v6169_v17  ;;  %v3361_v9 = vrot.slane %v3360_v53, 4  ;;  %v4026_v17 = vrot.slane %v6535_v57, 5  ;;  %v2725_v7 = vunpack.c.l.b16 %v2604_v12 }
 0x16b   : > { %2843 = vmatmul.bf16.vlgmr.msra.gmra.mxu1 %v6507_v20  ;;  %v3371_v32 = vshll.u32 %v5298_v45, 16  ;;  %v4029_v53 = vrot.slane %v6556_v44, 5  ;;  %v3370_v22 = vrot.slane %v3368_v27, 4 }
 0x16c   : > { %v1773_v61 = vpop.f32.mrf.mxu3  ;;  %3158 = vmatmul.bf16.vlgmr.msra.gmra.mxu2 %v5552_v19  ;;  %v4178_v19 = vpack.c.b16 %v4147_v60, %v4146_v21  ;;  %v3356_v21 = vsel %vm5751_vm2, %v3351_v16, %v6553_v42  ;;  %v5405_v60 = vrot.slane %v5389_v56, 9  ;;  %v4028_v0 = vrot.slane %v4026_v17, 4 }
 0x16d   : > { %v1831_v62 = vadd.f32 %v1773_v61, %v1516_v36  ;;  %v6569_v36 = vld [vmem:[%s5736_s26 + $0x34] sm:$0xf] }
 0x16e   : > { %v3377_v54 = vshll.u32 %v6569_v36, 16  ;;  %v3381_v18 = vshrl.u32 %v6569_v36, 16  ;;  %v4030_v56 = vsel %vm6051_vm5, %v4028_v0, %v4029_v53 }
 0x16f   : > { %v1461_v20 = vpop.f32.mrf.mxu2  ;;  %v6572_v29 = vadd.f32 %v2455_v4, %v1831_v62  ;;  %v3366_v4 = vsel %vm5751_vm2, %v3361_v9, %v3365_v31  ;;  %v6591_v9 = vld [vmem:[%s5736_s26 + $0x38] sm:$0x1] }
 0x170   : > { %v1517_v49 = vadd.f32 %v1461_v20, %v1081_v24  ;;  %v3373_v20 = vrot.slane %v3371_v32, 5  ;;  %v6584_v42 = vrot.slane %v3377_v54, 5  ;;  %v3383_v12 = vrot.slane %v3381_v18, 4 }
 0x171   : > { %3840 = vmatmul.bf16.vlgmr.msra.gmra.mxu3 %v3752_v46  ;;  %v1082_v13 = vpop.f32.mrf.mxu1  ;;  %v2756_v46 = vpack.c.b16 %v2726_v3, %v2725_v7  ;;  %v3723_v31 = vunpack.c.l.b16 %v3366_v4  ;;  %v5070_v7 = vld [vmem:[%s5736_s26 + $0x24] sm:$0xe]  ;;  %v4027_v3 = vsel %vm6051_vm5, %v5405_v60, %v4026_v17  ;;  %v3387_v32 = vshll.u32 %v6591_v9, 16 }
 0x172   : > { %v2458_v35 = vpop.f32.mrf.mxu0  ;;  %v1083_v62 = vadd.f32 %v1082_v13, %v6193_v39  ;;  %v3722_v13 = vunpack.c.l.b16 %v3356_v21  ;;  %v3384_v27 = vor.u32 %v3383_v12, %v6584_v42  ;;  %v5086_v18 = vrot.slane %v5070_v7, 9  ;;  %v5652_v21 = vld [vmem:[%s5736_s26 + $0x2c] sm:$0x1]  ;;  %v5301_v7 = vld [vmem:[%s5736_s26 + $0x3c] sm:$0xf] }
 0x173   : > { %v4148_v17 = vunpack.c.l.b16 %v4027_v3  ;;  %v4149_v60 = vunpack.c.l.b16 %v4030_v56  ;;  %v6612_v3 = vld [vmem:[%s5736_s26 + $0x40] sm:$0xf] }
 0x174   : > { %v1776_v61 = vpop.f32.mrf.mxu3 }
 0x175   : > { %4266 = vmatmul.bf16.vlgmr.msra.gmra.mxu0 %v4178_v19  ;;  %v1832_v57 = vadd.f32 %v1776_v61, %v1517_v49  ;;  %v5553_v19 = vld [vmem:[%s5736_s26 + $0x24] sm:$0xff] }
 0x176   : > { %v5651_v49 = vld [vmem:[%s5736_s26 + $0x28] sm:$0xf] }
 0x177   : > { %v1463_v24 = vpop.f32.mrf.mxu2  ;;  %v6586_v33 = vadd.f32 %v2458_v35, %v1832_v57  ;;  %v2610_v16 = vrot.slane %v5651_v49, 5  ;;  %v3374_v35 = vor.u32 %v3373_v20, %v3370_v22  ;;  %v2613_v57 = vrot.slane %v5652_v21, 5  ;;  %v5390_v49 = vld [vmem:[%s5736_s26 + $0x30] sm:$0xe] }
 0x178   : > { %v1518_v45 = vadd.f32 %v1463_v24, %v1083_v62  ;;  %v3753_v62 = vpack.c.b16 %v3723_v31, %v3722_v13  ;;  %v3385_v22 = vrot.slane %v3384_v27, 4  ;;  %v3389_v24 = vrot.slane %v3387_v32, 5 }
 0x179   : > { %v1085_v39 = vpop.f32.mrf.mxu1  ;;  %v2612_v61 = vrot.slane %v2610_v16, 4  ;;  %v3375_v53 = vrot.slane %v3374_v35, 4  ;;  %v2611_v12 = vsel %vm6051_vm5, %v5086_v18, %v2610_v16  ;;  %v4179_v13 = vpack.c.b16 %v4149_v60, %v4148_v17 }
 0x17a   : > { %v2460_v44 = vpop.f32.mrf.mxu0  ;;  %v1086_v0 = vadd.f32 %v1085_v39, %v6213_v2  ;;  %v2727_v56 = vunpack.c.l.b16 %v2611_v12  ;;  %v5406_v27 = vrot.slane %v5390_v49, 9  ;;  %v3392_v18 = vshrl.u32 %v5301_v7, 16  ;;  %v5071_v12 = vld [vmem:[%s5736_s26 + $0x30] sm:$0xe] }
 0x17b   : > { %2848 = vmatmul.bf16.gmra.mxu1 %v2756_v46  ;;  %v3380_v16 = vsel %vm5751_vm2, %v3375_v53, %v6584_v42  ;;  %v4036_v21 = vrot.slane %v6591_v9, 5 }
 0x17c   : > { %v1778_v54 = vpop.f32.mrf.mxu3  ;;  %3163 = vmatmul.bf16.gmra.mxu2 %v5553_v19  ;;  %v2614_v19 = vsel %vm6051_vm5, %v2612_v61, %v2613_v57  ;;  %v3401_v57 = vshll.u32 %v6612_v3, 16  ;;  %v3724_v60 = vunpack.c.l.b16 %v3380_v16  ;;  %v3394_v9 = vrot.slane %v3392_v18, 4 }
 0x17d   : > { %v1833_v4 = vadd.f32 %v1778_v54, %v1518_v45  ;;  %v4033_v45 = vrot.slane %v6569_v36, 5  ;;  %v2728_v35 = vunpack.c.l.b16 %v2614_v19  ;;  %v3390_v36 = vsel %vm5751_vm2, %v3385_v22, %v3389_v24  ;;  %v5554_v24 = vld [vmem:[%s5736_s26 + $0x30] sm:$0xff] }
 0x17f   : > { %v1466_v46 = vpop.f32.mrf.mxu2  ;;  %v6609_v2 = vadd.f32 %v2460_v44, %v1833_v4  ;;  %v4035_v54 = vrot.slane %v4033_v45, 4  ;;  %v3395_v44 = vshll.u32 %v5301_v7, 16  ;;  %v3405_v4 = vshrl.u32 %v6612_v3, 16 }
 0x180   : > { %v1519_v20 = vadd.f32 %v1466_v46, %v1086_v0  ;;  %v2757_v17 = vpack.c.b16 %v2728_v35, %v2727_v56  ;;  %v5653_v0 = vld [vmem:[%s5736_s26 + $0x34] sm:$0xf]  ;;  %v5087_v35 = vrot.slane %v5071_v12, 9 }
 0x181   : > { %3845 = vmatmul.bf16.gmra.mxu3 %v3753_v62  ;;  %v1087_v31 = vpop.f32.mrf.mxu1  ;;  %v2617_v46 = vrot.slane %v5653_v0, 5  ;;  %v3397_v19 = vrot.slane %v3395_v44, 5  ;;  %v3407_v7 = vrot.slane %v3405_v4, 4  ;;  %v5304_v0 = vld [vmem:[%s5736_s26 + $0x48] sm:$0xf] }
 0x182   : > { %v2463_v39 = vpop.f32.mrf.mxu0  ;;  %v1088_v42 = vadd.f32 %v1087_v31, %v6228_v25  ;;  %v4037_v25 = vsel %vm6051_vm5, %v4035_v54, %v4036_v21  ;;  %v6632_v31 = vrot.slane %v3401_v57, 5 }
 0x183   : > { %v2619_v16 = vrot.slane %v2617_v46, 4 }
 0x184   : > { %v1781_v32 = vpop.f32.mrf.mxu3  ;;  %v3408_v21 = vor.u32 %v3407_v7, %v6632_v31  ;;  %v5391_v7 = vld [vmem:[%s5736_s26 + $0x3c] sm:$0xe] }
 0x185   : > { %4271 = vmatmul.bf16.gmra.mxu0 %v4179_v13  ;;  %v1834_v61 = vadd.f32 %v1781_v32, %v1519_v20  ;;  %v3725_v20 = vunpack.c.l.b16 %v3390_v36  ;;  %v4034_v13 = vsel %vm6051_vm5, %v5406_v27, %v4033_v45  ;;  %v5654_v32 = vld [vmem:[%s5736_s26 + $0x38] sm:$0x1]  ;;  %v4151_v45 = vunpack.c.l.b16 %v4037_v25 }
 0x186   : > { %v2620_v36 = vrot.slane %v5654_v32, 5  ;;  %v4150_v44 = vunpack.c.l.b16 %v4034_v13  ;;  %v3398_v27 = vor.u32 %v3397_v19, %v3394_v9 }
 0x187   : > { %v1468_v62 = vpop.f32.mrf.mxu2  ;;  %v6624_v53 = vadd.f32 %v2463_v39, %v1834_v61  ;;  %v6635_v39 = vld [vmem:[%s5736_s26 + $0x44] sm:$0x1]  ;;  %v3754_v54 = vpack.c.b16 %v3725_v20, %v3724_v60  ;;  %v3409_v20 = vrot.slane %v3408_v21, 4 }
 0x188   : > { %v1520_v22 = vadd.f32 %v1468_v62, %v1088_v42  ;;  %v3411_v57 = vshll.u32 %v6635_v39, 16  ;;  %v2618_v62 = vsel %vm6051_vm5, %v5087_v35, %v2617_v46  ;;  %v3399_v9 = vrot.slane %v3398_v27, 4 }
 0x189   : > { %v1090_v49 = vpop.f32.mrf.mxu1  ;;  %v2729_v46 = vunpack.c.l.b16 %v2618_v62  ;;  %v3416_v35 = vshrl.u32 %v5304_v0, 16  ;;  %v4043_v21 = vrot.slane %v6635_v39, 5 }
 0x18a   : > { %v2465_v56 = vpop.f32.mrf.mxu0  ;;  %v1091_v4 = vadd.f32 %v1090_v49, %v6243_v58  ;;  %v3413_v19 = vrot.slane %v3411_v57, 5  ;;  %v4040_v58 = vrot.slane %v6612_v3, 5 }
 0x18b   : > { %2853 = vmatmul.bf16.gmra.mxu1 %v2757_v17  ;;  %v2621_v17 = vsel %vm6051_vm5, %v2619_v16, %v2620_v36  ;;  %v3419_v16 = vshll.u32 %v5304_v0, 16  ;;  %v3418_v57 = vrot.slane %v3416_v35, 4 }
 0x18c   : > { %v1783_v18 = vpop.f32.mrf.mxu3  ;;  %3168 = vmatmul.bf16.gmra.mxu2 %v5554_v24  ;;  %v4180_v24 = vpack.c.b16 %v4151_v45, %v4150_v44  ;;  %v2730_v25 = vunpack.c.l.b16 %v2621_v17  ;;  %v3404_v44 = vsel %vm5751_vm2, %v3399_v9, %v6632_v31  ;;  %v5407_v45 = vrot.slane %v5391_v7, 9 }
 0x18d   : > { %v1835_v61 = vadd.f32 %v1783_v18, %v1520_v22  ;;  %v6647_v22 = vld [vmem:[%s5736_s26 + $0x4c] sm:$0xf]  ;;  %v4042_v27 = vrot.slane %v4040_v58, 4 }
 0x18e   : > { %v3425_v32 = vshll.u32 %v6647_v22, 16  ;;  %v3429_v36 = vshrl.u32 %v6647_v22, 16 }
 0x18f   : > { %v1471_v42 = vpop.f32.mrf.mxu2  ;;  %v6650_v49 = vadd.f32 %v2465_v56, %v1835_v61  ;;  %v3414_v56 = vsel %vm5751_vm2, %v3409_v20, %v3413_v19  ;;  %v6669_v20 = vld [vmem:[%s5736_s26 + $0x50] sm:$0x1]  ;;  %v4044_v7 = vsel %vm6051_vm5, %v4042_v27, %v4043_v21 }
 0x190   : > { %v1521_v12 = vadd.f32 %v1471_v42, %v1091_v4  ;;  %v3421_v42 = vrot.slane %v3419_v16, 5  ;;  %v6662_v31 = vrot.slane %v3425_v32, 5  ;;  %v3431_v62 = vrot.slane %v3429_v36, 4 }
 0x191   : > { %3850 = vmatmul.bf16.gmra.mxu3 %v3754_v54  ;;  %v1092_v60 = vpop.f32.mrf.mxu1  ;;  %v2758_v54 = vpack.c.b16 %v2730_v25, %v2729_v46  ;;  %v3727_v19 = vunpack.c.l.b16 %v3414_v56  ;;  %v5072_v46 = vld [vmem:[%s5736_s26 + $0x3c] sm:$0xe]  ;;  %v4041_v25 = vsel %vm6051_vm5, %v5407_v45, %v4040_v58  ;;  %v3435_v16 = vshll.u32 %v6669_v20, 16 }
 0x192   : > { %v2468_v13 = vpop.f32.mrf.mxu0  ;;  %v1093_v61 = vadd.f32 %v1092_v60, %v6266_v51  ;;  %v3726_v60 = vunpack.c.l.b16 %v3404_v44  ;;  %v3432_v35 = vor.u32 %v3431_v62, %v6662_v31  ;;  %v5088_v36 = vrot.slane %v5072_v46, 9  ;;  %v5656_v44 = vld [vmem:[%s5736_s26 + $0x44] sm:$0x1]  ;;  %v5307_v46 = vld [vmem:[%s5736_s26 + $0x54] sm:$0xf] }
 0x193   : > { %v4152_v58 = vunpack.c.l.b16 %v4041_v25  ;;  %v4153_v45 = vunpack.c.l.b16 %v4044_v7  ;;  %v6690_v25 = vld [vmem:[%s5736_s26 + $0x58] sm:$0xf] }
 0x194   : > { %v1786_v18 = vpop.f32.mrf.mxu3 }
 0x195   : > { %4276 = vmatmul.bf16.gmra.mxu0 %v4180_v24  ;;  %v1836_v3 = vadd.f32 %v1786_v18, %v1521_v12  ;;  %v5555_v24 = vld [vmem:[%s5736_s26 + $0x3c] sm:$0xff] }
 0x196   : > { %v5655_v12 = vld [vmem:[%s5736_s26 + $0x40] sm:$0xf] }
 0x197   : > { %v1473_v4 = vpop.f32.mrf.mxu2  ;;  %v6664_v17 = vadd.f32 %v2468_v13, %v1836_v3  ;;  %v2624_v9 = vrot.slane %v5655_v12, 5  ;;  %v3422_v13 = vor.u32 %v3421_v42, %v3418_v57  ;;  %v2627_v3 = vrot.slane %v5656_v44, 5  ;;  %v5392_v12 = vld [vmem:[%s5736_s26 + $0x48] sm:$0xe] }
 0x198   : > { %v1522_v0 = vadd.f32 %v1473_v4, %v1093_v61  ;;  %v3755_v61 = vpack.c.b16 %v3727_v19, %v3726_v60  ;;  %v3433_v57 = vrot.slane %v3432_v35, 4  ;;  %v3437_v4 = vrot.slane %v3435_v16, 5 }
 0x199   : > { %v1095_v51 = vpop.f32.mrf.mxu1  ;;  %v2626_v18 = vrot.slane %v2624_v9, 4  ;;  %v3423_v21 = vrot.slane %v3422_v13, 4  ;;  %v2625_v62 = vsel %vm6051_vm5, %v5088_v36, %v2624_v9  ;;  %v4181_v60 = vpack.c.b16 %v4153_v45, %v4152_v58 }
 0x19a   : > { %v2470_v39 = vpop.f32.mrf.mxu0  ;;  %v1096_v27 = vadd.f32 %v1095_v51, %v6287_v14  ;;  %v2731_v7 = vunpack.c.l.b16 %v2625_v62  ;;  %v5408_v35 = vrot.slane %v5392_v12, 9  ;;  %v3440_v36 = vshrl.u32 %v5307_v46, 16  ;;  %v5073_v62 = vld [vmem:[%s5736_s26 + $0x48] sm:$0xe] }
 0x19b   : > { %2858 = vmatmul.bf16.gmra.mxu1 %v2758_v54  ;;  %v3428_v9 = vsel %vm5751_vm2, %v3423_v21, %v6662_v31  ;;  %v4050_v44 = vrot.slane %v6669_v20, 5 }
 0x19c   : > { %v1788_v32 = vpop.f32.mrf.mxu3  ;;  %3173 = vmatmul.bf16.gmra.mxu2 %v5555_v24  ;;  %v2628_v24 = vsel %vm6051_vm5, %v2626_v18, %v2627_v3  ;;  %v3449_v3 = vshll.u32 %v6690_v25, 16  ;;  %v3728_v45 = vunpack.c.l.b16 %v3428_v9  ;;  %v3442_v20 = vrot.slane %v3440_v36, 4 }
 0x19d   : > { %v1837_v56 = vadd.f32 %v1788_v32, %v1522_v0  ;;  %v4047_v0 = vrot.slane %v6647_v22, 5  ;;  %v2732_v13 = vunpack.c.l.b16 %v2628_v24  ;;  %v3438_v22 = vsel %vm5751_vm2, %v3433_v57, %v3437_v4  ;;  %v5556_v4 = vld [vmem:[%s5736_s26 + $0x48] sm:$0xff] }
 0x19f   : > { %v1476_v54 = vpop.f32.mrf.mxu2  ;;  %v6687_v14 = vadd.f32 %v2470_v39, %v1837_v56  ;;  %v4049_v32 = vrot.slane %v4047_v0, 4  ;;  %v3443_v39 = vshll.u32 %v5307_v46, 16  ;;  %v3453_v56 = vshrl.u32 %v6690_v25, 16 }
 0x1a0   : > { %v1523_v42 = vadd.f32 %v1476_v54, %v1096_v27  ;;  %v2759_v58 = vpack.c.b16 %v2732_v13, %v2731_v7  ;;  %v5657_v27 = vld [vmem:[%s5736_s26 + $0x4c] sm:$0xf]  ;;  %v6711_v13 = vld [vmem:[%s5736_s26 + $0x5c] sm:$0x1] }
 0x1a1   : > { %3855 = vmatmul.bf16.gmra.mxu3 %v3755_v61  ;;  %v1097_v19 = vpop.f32.mrf.mxu1  ;;  %v2631_v54 = vrot.slane %v5657_v27, 5  ;;  %v3445_v24 = vrot.slane %v3443_v39, 5  ;;  %v3455_v46 = vrot.slane %v3453_v56, 4  ;;  %v5310_v27 = vld [vmem:[%s5736_s26 + $0x60] sm:$0xf] }
 0x1a2   : > { %v2473_v51 = vpop.f32.mrf.mxu0  ;;  %v1098_v31 = vadd.f32 %v1097_v19, %v6302_v38  ;;  %v4051_v38 = vsel %vm6051_vm5, %v4049_v32, %v4050_v44  ;;  %v3451_v19 = vrot.slane %v3449_v3, 5  ;;  %v3459_v44 = vshll.u32 %v6711_v13, 16 }
 0x1a3   : > { %v2633_v9 = vrot.slane %v2631_v54, 4 }
 0x1a4   : > { %v1791_v16 = vpop.f32.mrf.mxu3  ;;  %v3456_v32 = vor.u32 %v3455_v46, %v3451_v19  ;;  %v5393_v46 = vld [vmem:[%s5736_s26 + $0x54] sm:$0xe] }
 0x1a5   : > { %4281 = vmatmul.bf16.gmra.mxu0 %v4181_v60  ;;  %v1838_v18 = vadd.f32 %v1791_v16, %v1523_v42  ;;  %v3729_v42 = vunpack.c.l.b16 %v3438_v22  ;;  %v4048_v60 = vsel %vm6051_vm5, %v5408_v35, %v4047_v0  ;;  %v5658_v16 = vld [vmem:[%s5736_s26 + $0x50] sm:$0x1]  ;;  %v3446_v0 = vor.u32 %v3445_v24, %v3442_v20  ;;  %v6722_v20 = vld [vmem:[%s5736_s26 + $0x64] sm:$0xf] }
 0x1a6   : > { %v2634_v22 = vrot.slane %v5658_v16, 5  ;;  %v4154_v39 = vunpack.c.l.b16 %v4048_v60  ;;  %v3473_v16 = vshll.u32 %v6722_v20, 16 }
 0x1a7   : > { %v1478_v61 = vpop.f32.mrf.mxu2  ;;  %v6702_v21 = vadd.f32 %v2473_v51, %v1838_v18  ;;  %v5089_v51 = vrot.slane %v5073_v62, 9  ;;  %v4155_v18 = vunpack.c.l.b16 %v4051_v38  ;;  %v3447_v60 = vrot.slane %v3446_v0, 4 }
 0x1a8   : > { %v1524_v57 = vadd.f32 %v1478_v61, %v1098_v31  ;;  %v3756_v31 = vpack.c.b16 %v3729_v42, %v3728_v45  ;;  %v3461_v42 = vrot.slane %v3459_v44, 5 }
 0x1a9   : > { %v1100_v12 = vpop.f32.mrf.mxu1  ;;  %v2632_v61 = vsel %vm6051_vm5, %v5089_v51, %v2631_v54  ;;  %v3464_v51 = vshrl.u32 %v5310_v27, 16 }
 0x1aa   : > { %v2475_v7 = vpop.f32.mrf.mxu0  ;;  %v1101_v3 = vadd.f32 %v1100_v12, %v6172_v50  ;;  %v4054_v50 = vrot.slane %v6690_v25, 5  ;;  %v2733_v54 = vunpack.c.l.b16 %v2632_v61 }
 0x1ab   : > { %2863 = vmatmul.bf16.gmra.mxu1 %v2759_v58  ;;  %v2635_v58 = vsel %vm6051_vm5, %v2633_v9, %v2634_v22  ;;  %v3467_v9 = vshll.u32 %v5310_v27, 16  ;;  %v3477_v22 = vshrl.u32 %v6722_v20, 16  ;;  %v3466_v44 = vrot.slane %v3464_v51, 4 }
 0x1ac   : > { %v1793_v36 = vpop.f32.mrf.mxu3  ;;  %3178 = vmatmul.bf16.gmra.mxu2 %v5556_v4  ;;  %v4182_v4 = vpack.c.b16 %v4155_v18, %v4154_v39  ;;  %v2734_v38 = vunpack.c.l.b16 %v2635_v58  ;;  %v3452_v39 = vsel %vm5751_vm2, %v3447_v60, %v3451_v19  ;;  %v5409_v18 = vrot.slane %v5393_v46, 9 }
 0x1ad   : > { %v1839_v35 = vadd.f32 %v1793_v36, %v1524_v57  ;;  %v3457_v57 = vrot.slane %v3456_v32, 4  ;;  %v4056_v0 = vrot.slane %v4054_v50, 4  ;;  %v4057_v32 = vrot.slane %v6711_v13, 5 }
 0x1ae   : > { %v6736_v19 = vrot.slane %v3473_v16, 5  ;;  %v3479_v61 = vrot.slane %v3477_v22, 4 }
 0x1af   : > { %v1481_v56 = vpop.f32.mrf.mxu2  ;;  %v6725_v24 = vadd.f32 %v2475_v7, %v1839_v35  ;;  %v3462_v7 = vsel %vm5751_vm2, %v3457_v57, %v3461_v42  ;;  %v5074_v42 = vld [vmem:[%s5736_s26 + $0x54] sm:$0xe]  ;;  %v4058_v46 = vsel %vm6051_vm5, %v4056_v0, %v4057_v32 }
 0x1b0   : > { %v1525_v62 = vadd.f32 %v1481_v56, %v1101_v3  ;;  %v3469_v56 = vrot.slane %v3467_v9, 5  ;;  %v3480_v51 = vor.u32 %v3479_v61, %v6736_v19  ;;  %v5090_v16 = vrot.slane %v5074_v42, 9 }
 0x1b1   : > { %3860 = vmatmul.bf16.gmra.mxu3 %v3756_v31  ;;  %v1102_v45 = vpop.f32.mrf.mxu1  ;;  %v2760_v31 = vpack.c.b16 %v2734_v38, %v2733_v54  ;;  %v6744_v54 = vld [vmem:[%s5736_s26 + $0x68] sm:$0x1]  ;;  %v4055_v38 = vsel %vm6051_vm5, %v5409_v18, %v4054_v50  ;;  %v4157_v50 = vunpack.c.l.b16 %v4058_v46 }
 0x1b2   : > { %v2478_v12 = vpop.f32.mrf.mxu0  ;;  %v1103_v35 = vadd.f32 %v1102_v45, %v6195_v40  ;;  %v3730_v40 = vunpack.c.l.b16 %v3452_v39  ;;  %v3731_v45 = vunpack.c.l.b16 %v3462_v7  ;;  %v3481_v32 = vrot.slane %v3480_v51, 4 }
 0x1b4   : > { %v1796_v36 = vpop.f32.mrf.mxu3 }
 0x1b5   : > { %4286 = vmatmul.bf16.gmra.mxu0 %v4182_v4  ;;  %v1840_v25 = vadd.f32 %v1796_v36, %v1525_v62  ;;  %v5557_v4 = vld [vmem:[%s5736_s26 + $0x54] sm:$0xff]  ;;  %v5660_v36 = vld [vmem:[%s5736_s26 + $0x5c] sm:$0x1] }
 0x1b6   : > { %v5659_v62 = vld [vmem:[%s5736_s26 + $0x58] sm:$0xf]  ;;  %v2641_v39 = vrot.slane %v5660_v36, 5 }
 0x1b7   : > { %v1483_v3 = vpop.f32.mrf.mxu2  ;;  %v6738_v58 = vadd.f32 %v2478_v12, %v1840_v25  ;;  %v2638_v60 = vrot.slane %v5659_v62, 5  ;;  %v3470_v12 = vor.u32 %v3469_v56, %v3466_v44  ;;  %v3483_v25 = vshll.u32 %v6744_v54, 16 }
 0x1b8   : > { %v1526_v27 = vadd.f32 %v1483_v3, %v1103_v35  ;;  %v3757_v35 = vpack.c.b16 %v3731_v45, %v3730_v40  ;;  %v4156_v3 = vunpack.c.l.b16 %v4055_v38  ;;  %v5394_v40 = vld [vmem:[%s5736_s26 + $0x60] sm:$0xe]  ;;  %v4061_v45 = vrot.slane %v6722_v20, 5 }
 0x1b9   : > { %v1105_v57 = vpop.f32.mrf.mxu1  ;;  %v2640_v22 = vrot.slane %v2638_v60, 4  ;;  %v2639_v56 = vsel %vm6051_vm5, %v5090_v16, %v2638_v60  ;;  %v5410_v16 = vrot.slane %v5394_v40, 9 }
 0x1ba   : > { %v2480_v13 = vpop.f32.mrf.mxu0  ;;  %v1106_v18 = vadd.f32 %v1105_v57, %v6216_v6  ;;  %v5313_v57 = vld [vmem:[%s5736_s26 + $0x6c] sm:$0xf]  ;;  %v2735_v38 = vunpack.c.l.b16 %v2639_v56 }
 0x1bb   : > { %2868 = vmatmul.bf16.gmra.mxu1 %v2760_v31  ;;  %v3471_v31 = vrot.slane %v3470_v12, 4  ;;  %v2642_v61 = vsel %vm6051_vm5, %v2640_v22, %v2641_v39  ;;  %v6764_v12 = vld [vmem:[%s5736_s26 + $0x70] sm:$0xf]  ;;  %v4064_v22 = vrot.slane %v6744_v54, 5  ;;  %v3488_v36 = vshrl.u32 %v5313_v57, 16 }
 0x1bc   : > { %v1798_v9 = vpop.f32.mrf.mxu3  ;;  %3183 = vmatmul.bf16.gmra.mxu2 %v5557_v4  ;;  %v3485_v4 = vrot.slane %v3483_v25, 5  ;;  %v2736_v46 = vunpack.c.l.b16 %v2642_v61  ;;  %v3491_v25 = vshll.u32 %v5313_v57, 16 }
 0x1bd   : > { %v1841_v7 = vadd.f32 %v1798_v9, %v1526_v27  ;;  %v4183_v27 = vpack.c.b16 %v4157_v50, %v4156_v3  ;;  %v3476_v60 = vsel %vm5751_vm2, %v3471_v31, %v6736_v19  ;;  %v3501_v19 = vshrl.u32 %v6764_v12, 16  ;;  %v5661_v31 = vld [vmem:[%s5736_s26 + $0x64] sm:$0xf] }
 0x1be   : > { %v3486_v9 = vsel %vm5751_vm2, %v3481_v32, %v3485_v4  ;;  %v2761_v3 = vpack.c.b16 %v2736_v46, %v2735_v38  ;;  %v2645_v32 = vrot.slane %v5661_v31, 5  ;;  %v3732_v54 = vunpack.c.l.b16 %v3476_v60  ;;  %v5075_v4 = vld [vmem:[%s5736_s26 + $0x60] sm:$0xe]  ;;  %v5315_v38 = vld [vmem:[%s5736_s26 + $0x74] sm:$0x1] }
 0x1bf   : > { %v1486_v0 = vpop.f32.mrf.mxu2  ;;  %v6760_v42 = vadd.f32 %v2480_v13, %v1841_v7  ;;  %v4063_v13 = vrot.slane %v4061_v45, 4  ;;  %v3497_v7 = vshll.u32 %v6764_v12, 16  ;;  %v3733_v56 = vunpack.c.l.b16 %v3486_v9  ;;  %v5662_v9 = vld [vmem:[%s5736_s26 + $0x68] sm:$0x1] }
 0x1c0   : > { %v1527_v44 = vadd.f32 %v1486_v0, %v1106_v18  ;;  %v5558_v0 = vld [vmem:[%s5736_s26 + $0x60] sm:$0xff]  ;;  %v3493_v40 = vrot.slane %v3491_v25, 5  ;;  %v3503_v57 = vrot.slane %v3501_v19, 4  ;;  %v2647_v60 = vrot.slane %v2645_v32, 4 }
 0x1c1   : > { %3865 = vmatmul.bf16.gmra.mxu3 %v3757_v35  ;;  %v1107_v62 = vpop.f32.mrf.mxu1  ;;  %v4065_v61 = vsel %vm6051_vm5, %v4063_v13, %v4064_v22 }
 0x1c2   : > { %v2483_v6 = vpop.f32.mrf.mxu0  ;;  %v1108_v39 = vadd.f32 %v1107_v62, %v6230_v28  ;;  %v4062_v28 = vsel %vm6051_vm5, %v5410_v16, %v4061_v45  ;;  %v3490_v62 = vrot.slane %v3488_v36, 4  ;;  %v3758_v45 = vpack.c.b16 %v3733_v56, %v3732_v54 }
 0x1c3   : > { %v4158_v16 = vunpack.c.l.b16 %v4062_v28  ;;  %v4159_v13 = vunpack.c.l.b16 %v4065_v61  ;;  %v5316_v28 = vld [vmem:[%s5736_s26 + $0x78] sm:$0xf] }
 0x1c4   : > { %v1801_v51 = vpop.f32.mrf.mxu3  ;;  %v3494_v36 = vor.u32 %v3493_v40, %v3490_v62 }
 0x1c5   : > { %4291 = vmatmul.bf16.gmra.mxu0 %v4183_v27  ;;  %v1842_v20 = vadd.f32 %v1801_v51, %v1527_v44  ;;  %v5091_v51 = vrot.slane %v5075_v4, 9  ;;  %v4184_v54 = vpack.c.b16 %v4159_v13, %v4158_v16 }
 0x1c6   : > { %v3495_v61 = vrot.slane %v3494_v36, 4 }
 0x1c7   : > { %v1488_v35 = vpop.f32.mrf.mxu2  ;;  %v6775_v50 = vadd.f32 %v2483_v6, %v1842_v20  ;;  %v3499_v6 = vrot.slane %v3497_v7, 5  ;;  %v2648_v20 = vrot.slane %v5662_v9, 5  ;;  %v3507_v7 = vshll.u32 %v5315_v38, 16 }
 0x1c8   : > { %v1528_v18 = vadd.f32 %v1488_v35, %v1108_v39  ;;  %v5395_v35 = vld [vmem:[%s5736_s26 + $0x6c] sm:$0xe]  ;;  %v2646_v31 = vsel %vm6051_vm5, %v5091_v51, %v2645_v32  ;;  %v4071_v32 = vrot.slane %v5315_v38, 5 }
 0x1c9   : > { %v1110_v44 = vpop.f32.mrf.mxu1  ;;  %v3504_v25 = vor.u32 %v3503_v57, %v3499_v6  ;;  %v3509_v62 = vrot.slane %v3507_v7, 5  ;;  %v5411_v40 = vrot.slane %v5395_v35, 9  ;;  %v6797_v57 = vld [vmem:[%s5736_s26 + $0x7c] sm:$0xf]  ;;  %v3500_v13 = vsel %vm5751_vm2, %v3495_v61, %v3499_v6  ;;  %v5076_v61 = vld [vmem:[%s5736_s26 + $0x6c] sm:$0xe] }
 0x1ca   : > { %v2485_v27 = vpop.f32.mrf.mxu0  ;;  %v1111_v22 = vadd.f32 %v1110_v44, %v6248_v63 }
 0x1cb   : > { %2873 = vmatmul.bf16.gmra.mxu1 %v2761_v3  ;;  %v4068_v3 = vrot.slane %v6764_v12, 5  ;;  %v3505_v4 = vrot.slane %v3504_v25, 4  ;;  %v2737_v12 = vunpack.c.l.b16 %v2646_v31 }
 0x1cc   : > { %v1803_v46 = vpop.f32.mrf.mxu3  ;;  %3188 = vmatmul.bf16.gmra.mxu2 %v5558_v0 }
 0x1cd   : > { %v1843_v39 = vadd.f32 %v1803_v46, %v1528_v18  ;;  %v2649_v18 = vsel %vm6051_vm5, %v2647_v60, %v2648_v20  ;;  %v4070_v9 = vrot.slane %v4068_v3, 4  ;;  %v3512_v60 = vshrl.u32 %v5316_v28, 16 }
 0x1ce   : > { %v2738_v46 = vunpack.c.l.b16 %v2649_v18  ;;  %v3515_v20 = vshll.u32 %v5316_v28, 16  ;;  %v3510_v38 = vsel %vm5751_vm2, %v3505_v4, %v3509_v62  ;;  %v4069_v25 = vsel %vm6051_vm5, %v5411_v40, %v4068_v3  ;;  %v6818_v40 = vld [vmem:[%s5736_s26 + $0x80] sm:$0x1] }
 0x1cf   : > { %v1491_v19 = vpop.f32.mrf.mxu2  ;;  %v6794_v63 = vadd.f32 %v2485_v27, %v1843_v39  ;;  %v3521_v27 = vshll.u32 %v6797_v57, 16  ;;  %v3525_v39 = vshrl.u32 %v6797_v57, 16  ;;  %v4072_v7 = vsel %vm6051_vm5, %v4070_v9, %v4071_v32 }
 0x1d0   : > { %v1529_v0 = vadd.f32 %v1491_v19, %v1111_v22  ;;  %v2762_v36 = vpack.c.b16 %v2738_v46, %v2737_v12  ;;  %v3514_v6 = vrot.slane %v3512_v60, 4  ;;  %v3517_v18 = vrot.slane %v3515_v20, 5 }
 0x1d1   : > { %3870 = vmatmul.bf16.gmra.mxu3 %v3758_v45  ;;  %v1112_v56 = vpop.f32.mrf.mxu1  ;;  %v3735_v28 = vunpack.c.l.b16 %v3510_v38  ;;  %v6815_v4 = vrot.slane %v3521_v27, 5  ;;  %v3527_v3 = vrot.slane %v3525_v39, 4  ;;  %v4161_v12 = vunpack.c.l.b16 %v4072_v7 }
 0x1d2   : > { %v2488_v44 = vpop.f32.mrf.mxu0  ;;  %v1113_v16 = vadd.f32 %v1112_v56, %v6279_v41  ;;  %v5559_v41 = vld [vmem:[%s5736_s26 + $0x6c] sm:$0xff]  ;;  %v3734_v56 = vunpack.c.l.b16 %v3500_v13  ;;  %v5092_v9 = vrot.slane %v5076_v61, 9  ;;  %v3518_v20 = vor.u32 %v3517_v18, %v3514_v6  ;;  %v5396_v61 = vld [vmem:[%s5736_s26 + $0x78] sm:$0xe] }
 0x1d3   : > { %v3528_v27 = vor.u32 %v3527_v3, %v6815_v4  ;;  %v3531_v39 = vshll.u32 %v6818_v40, 16 }
 0x1d4   : > { %v1806_v51 = vpop.f32.mrf.mxu3 }
 0x1d5   : > { %4296 = vmatmul.bf16.gmra.mxu0 %v4184_v54  ;;  %v1844_v45 = vadd.f32 %v1806_v51, %v1529_v0  ;;  %v5663_v0 = vld [vmem:[%s5736_s26 + $0x70] sm:$0xf]  ;;  %v5664_v51 = vld [vmem:[%s5736_s26 + $0x74] sm:$0x1]  ;;  %v3529_v18 = vrot.slane %v3528_v27, 4 }
 0x1d6   : > { %v2652_v31 = vrot.slane %v5663_v0, 5  ;;  %v2655_v60 = vrot.slane %v5664_v51, 5  ;;  %v3519_v0 = vrot.slane %v3518_v20, 4 }
 0x1d7   : > { %v1493_v22 = vpop.f32.mrf.mxu2  ;;  %v6810_v19 = vadd.f32 %v2488_v44, %v1844_v45  ;;  %v4160_v44 = vunpack.c.l.b16 %v4069_v25 }
 0x1d8   : > { %v1530_v35 = vadd.f32 %v1493_v22, %v1113_v16  ;;  %v2654_v32 = vrot.slane %v2652_v31, 4  ;;  %v3759_v16 = vpack.c.b16 %v3735_v28, %v3734_v56  ;;  %v2653_v7 = vsel %vm6051_vm5, %v5092_v9, %v2652_v31 }
 0x1d9   : > { %v1115_v54 = vpop.f32.mrf.mxu1  ;;  %v4185_v38 = vpack.c.b16 %v4161_v12, %v4160_v44  ;;  %v3533_v56 = vrot.slane %v3531_v39, 5  ;;  %v2739_v12 = vunpack.c.l.b16 %v2653_v7  ;;  %v3524_v51 = vsel %vm5751_vm2, %v3519_v0, %v6815_v4  ;;  %v5560_v7 = vld [vmem:[%s5736_s26 + $0x78] sm:$0xff] }
 0x1da   : > { %v2490_v62 = vpop.f32.mrf.mxu0  ;;  %v1116_v13 = vadd.f32 %v1115_v54, %v6299_v15  ;;  %v4075_v15 = vrot.slane %v6797_v57, 5 }
 0x1db   : > { %2878 = vmatmul.bf16.gmra.mxu1 %v2762_v36  ;;  %v5319_v36 = vld [vmem:[%s5736_s26 + $0x84] sm:$0xf] }
 0x1dc   : > { %v1808_v46 = vpop.f32.mrf.mxu3  ;;  %3193 = vmatmul.bf16.gmra.mxu2 %v5559_v41  ;;  %v2656_v41 = vsel %vm6051_vm5, %v2654_v32, %v2655_v60  ;;  %v3536_v3 = vshrl.u32 %v5319_v36, 16  ;;  %v3539_v44 = vshll.u32 %v5319_v36, 16  ;;  %v5412_v60 = vrot.slane %v5396_v61, 9 }
 0x1dd   : > { %v1845_v45 = vadd.f32 %v1808_v46, %v1530_v35  ;;  %v6830_v35 = vld [vmem:[%s5736_s26 + $0x88] sm:$0xf]  ;;  %v2740_v31 = vunpack.c.l.b16 %v2656_v41  ;;  %v4077_v20 = vrot.slane %v4075_v15, 4  ;;  %v5665_v41 = vld [vmem:[%s5736_s26 + $0x7c] sm:$0xf] }
 0x1de   : > { %v3545_v46 = vshll.u32 %v6830_v35, 16  ;;  %v3549_v9 = vshrl.u32 %v6830_v35, 16  ;;  %v3538_v27 = vrot.slane %v3536_v3, 4  ;;  %v3541_v39 = vrot.slane %v3539_v44, 5 }
 0x1df   : > { %v1496_v22 = vpop.f32.mrf.mxu2  ;;  %v6833_v54 = vadd.f32 %v2490_v62, %v1845_v45  ;;  %v3534_v62 = vsel %vm5751_vm2, %v3529_v18, %v3533_v56  ;;  %v2659_v0 = vrot.slane %v5665_v41, 5  ;;  %v6852_v18 = vld [vmem:[%s5736_s26 + $0x8c] sm:$0x1]  ;;  %v5077_v56 = vld [vmem:[%s5736_s26 + $0x78] sm:$0xe]  ;;  %v4076_v3 = vsel %vm6051_vm5, %v5412_v60, %v4075_v15 }
 0x1e0   : > { %v1531_v25 = vadd.f32 %v1496_v22, %v1116_v13  ;;  %v2763_v22 = vpack.c.b16 %v2740_v31, %v2739_v12  ;;  %v6845_v4 = vrot.slane %v3545_v46, 5  ;;  %v3555_v31 = vshll.u32 %v6852_v18, 16 }
 0x1e1   : > { %3875 = vmatmul.bf16.gmra.mxu3 %v3759_v16  ;;  %v1117_v6 = vpop.f32.mrf.mxu1  ;;  %v4078_v16 = vrot.slane %v6818_v40, 5  ;;  %v3737_v40 = vunpack.c.l.b16 %v3534_v62  ;;  %v4162_v15 = vunpack.c.l.b16 %v4076_v3  ;;  %v6877_v3 = vld [vmem:[%s5736_s26 + $0x94] sm:$0xf] }
 0x1e2   : > { %v2493_v28 = vpop.f32.mrf.mxu0  ;;  %v1118_v45 = vadd.f32 %v1117_v6, %v6314_v1  ;;  %v3736_v6 = vunpack.c.l.b16 %v3524_v51  ;;  %v5666_v51 = vld [vmem:[%s5736_s26 + $0x80] sm:$0x1] }
 0x1e3   : > { %v4079_v44 = vsel %vm6051_vm5, %v4077_v20, %v4078_v16 }
 0x1e4   : > { %v1811_v32 = vpop.f32.mrf.mxu3  ;;  %v4163_v60 = vunpack.c.l.b16 %v4079_v44 }
 0x1e5   : > { %4301 = vmatmul.bf16.gmra.mxu0 %v4185_v38  ;;  %v1846_v57 = vadd.f32 %v1811_v32, %v1531_v25  ;;  %v3551_v38 = vrot.slane %v3549_v9, 4  ;;  %v5093_v9 = vrot.slane %v5077_v56, 9  ;;  %v2661_v32 = vrot.slane %v2659_v0, 4  ;;  %v5322_v56 = vld [vmem:[%s5736_s26 + $0x90] sm:$0xf] }
 0x1e6   : > { %v4186_v41 = vpack.c.b16 %v4163_v60, %v4162_v15 }
 0x1e7   : > { %v1498_v13 = vpop.f32.mrf.mxu2  ;;  %v6847_v36 = vadd.f32 %v2493_v28, %v1846_v57  ;;  %v3542_v28 = vor.u32 %v3541_v39, %v3538_v27  ;;  %v3552_v12 = vor.u32 %v3551_v38, %v6845_v4  ;;  %v2662_v57 = vrot.slane %v5666_v51, 5  ;;  %v6892_v51 = vld [vmem:[%s7229_s2] ss:$0 sm:$0xff] }
 0x1e8   : > { %v1532_v25 = vadd.f32 %v1498_v13, %v1118_v45  ;;  %v3760_v45 = vpack.c.b16 %v3737_v40, %v3736_v6  ;;  %v3557_v39 = vrot.slane %v3555_v31, 5 }
 0x1e9   : > { %v2844_v1 = vpop.f32.mrf.mxu1  ;;  %v3543_v13 = vrot.slane %v3542_v28, 4  ;;  %v3553_v27 = vrot.slane %v3552_v12, 4  ;;  %v2663_v38 = vsel %vm6051_vm5, %v2661_v32, %v2662_v57  ;;  %v3563_v32 = vshll.u32 %v5322_v56, 16 }
 0x1ea   : > { %v2495_v61 = vpop.f32.mrf.mxu0  ;;  %v2924_v20 = vadd.f32 %v2844_v1, %v6340_v59  ;;  %v2742_v28 = vunpack.c.l.b16 %v2663_v38  ;;  %v3573_v57 = vshrl.u32 %v6877_v3, 16 }
 0x1eb   : > { %2883 = vmatmul.bf16.gmra.mxu1 %v2763_v22  ;;  %v2660_v22 = vsel %vm6051_vm5, %v5093_v9, %v2659_v0  ;;  %v3548_v0 = vsel %vm5751_vm2, %v3543_v13, %v6845_v4  ;;  %v3560_v9 = vshrl.u32 %v5322_v56, 16  ;;  %v3565_v56 = vrot.slane %v3563_v32, 5 }
 0x1ec   : > { %v1813_v46 = vpop.f32.mrf.mxu3  ;;  %3198 = vmatmul.bf16.gmra.mxu2 %v5560_v7  ;;  %v5397_v7 = vld [vmem:[%s5736_s26 + $0x84] sm:$0xe]  ;;  %v2741_v44 = vunpack.c.l.b16 %v2660_v22 }
 0x1ed   : > { %v1847_v62 = vadd.f32 %v1813_v46, %v1532_v25  ;;  %v4082_v25 = vrot.slane %v6830_v35, 5  ;;  %v3558_v35 = vsel %vm5751_vm2, %v3553_v27, %v3557_v39  ;;  %v5413_v12 = vrot.slane %v5397_v7, 9  ;;  %v4415_v39 = vld [vmem:[%s6887_s30] sm:$0xff] }
 0x1ee   : > { %v5561_v22 = vld [vmem:[%s5736_s26 + $0x84] sm:$0xff] }
 0x1ef   : > { %v3159_v16 = vpop.f32.mrf.mxu2  ;;  %v6870_v59 = vadd.f32 %v2495_v61, %v1847_v62  ;;  %v4084_v46 = vrot.slane %v4082_v25, 4  ;;  %v4085_v61 = vrot.slane %v6852_v18, 5  ;;  %v3569_v18 = vshll.u32 %v6877_v3, 16 }
 0x1f0   : > { %v3239_v6 = vadd.f32 %v3159_v16, %v2924_v20  ;;  %v3738_v62 = vunpack.c.l.b16 %v3548_v0  ;;  %v2764_v20 = vpack.c.b16 %v2742_v28, %v2741_v44  ;;  %v5667_v16 = vld [vmem:[%s5736_s26 + $0x88] sm:$0xf]  ;;  %v4083_v38 = vsel %vm6051_vm5, %v5413_v12, %v4082_v25  ;;  %v5668_v12 = vld [vmem:[%s5736_s26 + $0x8c] sm:$0x1] }
 0x1f1   : > { %3880 = vmatmul.bf16.gmra.mxu3 %v3760_v45  ;;  %v2846_v40 = vpop.f32.mrf.mxu1  ;;  %v3739_v45 = vunpack.c.l.b16 %v3558_v35  ;;  %v2666_v27 = vrot.slane %v5667_v16, 5  ;;  %v4086_v7 = vsel %vm6051_vm5, %v4084_v46, %v4085_v61  ;;  %v6906_v0 = vrot.slane %v3569_v18, 5  ;;  %v6910_v46 = vld [vmem:[%s5736_s26 + $0x98] sm:$0x1] }
 0x1f2   : > { %v4267_v1 = vpop.f32.mrf.mxu0  ;;  %v2925_v60 = vadd.f32 %v2846_v40, %v6351_v5  ;;  %v3575_v44 = vrot.slane %v3573_v57, 4  ;;  %v4164_v32 = vunpack.c.l.b16 %v4083_v38  ;;  %v4165_v18 = vunpack.c.l.b16 %v4086_v7  ;;  %v5325_v7 = vld [vmem:[%s5736_s26 + $0x9c] sm:$0xf] }
 0x1f3   : > { %v2668_v25 = vrot.slane %v2666_v27, 4 }
 0x1f4   : > { %v3841_v31 = vpop.f32.mrf.mxu3  ;;  %v4187_v38 = vpack.c.b16 %v4165_v18, %v4164_v32 }
 0x1f5   : > { %4306 = vmatmul.bf16.gmra.mxu0 %v4186_v41  ;;  %v3921_v4 = vadd.f32 %v3841_v31, %v3239_v6  ;;  %v5078_v41 = vld [vmem:[%s5736_s26 + $0x84] sm:$0xe]  ;;  %v3562_v6 = vrot.slane %v3560_v9, 4  ;;  %v3761_v9 = vpack.c.b16 %v3739_v45, %v3738_v62 }
 0x1f6   : > { %v5094_v31 = vrot.slane %v5078_v41, 9 }
 0x1f7   : > { %v4347_v15 = vadd.f32 %v4267_v1, %v3921_v4  ;;  %v3161_v13 = vpop.f32.mrf.mxu2  ;;  %v2669_v4 = vrot.slane %v5668_v12, 5 }
 0x1f8   : > { %v3240_v40 = vadd.f32 %v3161_v13, %v2925_v60  ;;  %v3566_v60 = vor.u32 %v3565_v56, %v3562_v6  ;;  %v3576_v13 = vor.u32 %v3575_v44, %v6906_v0  ;;  %v2667_v62 = vsel %vm6051_vm5, %v5094_v31, %v2666_v27 }
 0x1f9   : > { %v4383_v5 = vadd.f32 %v6892_v51, %v4347_v15  ;;  %v2849_v1 = vpop.f32.mrf.mxu1  ;;  %v2670_v45 = vsel %vm6051_vm5, %v2668_v25, %v2669_v4  ;;  %v4089_v31 = vrot.slane %v6877_v3, 5  ;;  %v3584_v4 = vshrl.u32 %v5325_v7, 16 }
 0x1fa   : > { %v4269_v28 = vpop.f32.mrf.mxu0  ;;  %v3577_v44 = vrot.slane %v3576_v13, 4  ;;  %v2744_v12 = vunpack.c.l.b16 %v2670_v45 }
 0x1fb   : > { %v4447_v35 = vadd.f32 %v4415_v39, %v4383_v5  ;;  %2888 = vmatmul.bf16.gmra.mxu1 %v2764_v20  ;;  %v3579_v20 = vshll.u32 %v6910_v46, 16  ;;  %v2926_v39 = vadd.f32 %v2849_v1, %v6361_v48  ;;  %v2743_v1 = vunpack.c.l.b16 %v2667_v62  ;;  %v4417_v62 = vld [vmem:[%s6887_s30 + $0x10] sm:$0xff] }
 0x1fc   : > { %v3843_v61 = vpop.f32.mrf.mxu3  ;;  %3203 = vmatmul.bf16.gmra.mxu2 %v5561_v22  ;;  %v4416_v22 = vld [vmem:[%s6887_s30 + $0x8] sm:$0xff] }
 0x1fd   : > { %v4479_v57 = vmax.f32 %v4447_v35, 0.0  ;;  %v3922_v15 = vadd.f32 %v3843_v61, %v3240_v40  ;;  %v3567_v40 = vrot.slane %v3566_v60, 4  ;;  %v6932_v35 = vld [vmem:[%s5736_s26 + $0xa0] sm:$0xf]  ;;  %v3581_v27 = vrot.slane %v3579_v20, 5 }
 0x1fe   : > { %v3587_v61 = vshll.u32 %v5325_v7, 16  ;;  %v3593_v18 = vshll.u32 %v6932_v35, 16  ;;  %v2765_v13 = vpack.c.b16 %v2744_v12, %v2743_v1 }
 0x1ff   : > { %4511 = vst [vmem:[%s6917_s9] sm:$0xff] %v4479_v57  ;;  %v4348_v16 = vadd.f32 %v4269_v28, %v3922_v15  ;;  %v3164_v41 = vpop.f32.mrf.mxu2  ;;  %v5398_v28 = vld [vmem:[%s5736_s26 + $0x90] sm:$0xe]  ;;  %v3597_v57 = vshrl.u32 %v6932_v35, 16  ;;  %v3572_v3 = vsel %vm5751_vm2, %v3567_v40, %v6906_v0  ;;  %v3582_v20 = vsel %vm5751_vm2, %v3577_v44, %v3581_v27 }
 0x200   : > { %v3241_v56 = vadd.f32 %v3164_v41, %v2926_v39  ;;  %v4092_v39 = vrot.slane %v6910_v46, 5  ;;  %v3589_v7 = vrot.slane %v3587_v61, 5  ;;  %v6953_v44 = vrot.slane %v3593_v18, 5  ;;  %v5079_v27 = vld [vmem:[%s5736_s26 + $0x90] sm:$0xe] }
 0x201   : > { %v4384_v6 = vadd.f32 %v6892_v51, %v4348_v16  ;;  %3885 = vmatmul.bf16.gmra.mxu3 %v3761_v9  ;;  %v2851_v5 = vpop.f32.mrf.mxu1  ;;  %v5414_v9 = vrot.slane %v5398_v28, 9  ;;  %v4091_v16 = vrot.slane %v4089_v31, 4  ;;  %v6951_v28 = vld [vmem:[%s5736_s26 + $0xa4] sm:$0x1]  ;;  %v3599_v46 = vrot.slane %v3597_v57, 4 }
 0x202   : > { %v4272_v48 = vpop.f32.mrf.mxu0  ;;  %v2927_v45 = vadd.f32 %v2851_v5, %v6375_v47  ;;  %v3740_v5 = vunpack.c.l.b16 %v3572_v3  ;;  %v3741_v12 = vunpack.c.l.b16 %v3582_v20  ;;  %v5095_v57 = vrot.slane %v5079_v27, 9 }
 0x203   : > { %v4448_v25 = vadd.f32 %v4416_v22, %v4384_v6  ;;  %v5562_v6 = vld [vmem:[%s5736_s26 + $0x90] sm:$0xff]  ;;  %v4090_v0 = vsel %vm6051_vm5, %v5414_v9, %v4089_v31  ;;  %v3603_v9 = vshll.u32 %v6951_v28, 16  ;;  %v3600_v20 = vor.u32 %v3599_v46, %v6953_v44 }
 0x204   : > { %v3846_v32 = vpop.f32.mrf.mxu3  ;;  %v4166_v61 = vunpack.c.l.b16 %v4090_v0 }
 0x205   : > { %v4480_v15 = vmax.f32 %v4448_v25, 0.0  ;;  %4311 = vmatmul.bf16.gmra.mxu0 %v4187_v38  ;;  %v3923_v60 = vadd.f32 %v3846_v32, %v3241_v56  ;;  %v3586_v38 = vrot.slane %v3584_v4, 4  ;;  %v5669_v56 = vld [vmem:[%s5736_s26 + $0x94] sm:$0xf]  ;;  %v4093_v4 = vsel %vm6051_vm5, %v4091_v16, %v4092_v39 }
 0x206   : > { %v2673_v40 = vrot.slane %v5669_v56, 5  ;;  %v3762_v16 = vpack.c.b16 %v3741_v12, %v3740_v5  ;;  %v4167_v39 = vunpack.c.l.b16 %v4093_v4  ;;  %v3601_v46 = vrot.slane %v3600_v20, 4 }
 0x207   : > { %4512 = vst [vmem:[%s6917_s9 + $0x8] sm:$0xff] %v4480_v15  ;;  %v4349_v41 = vadd.f32 %v4272_v48, %v3923_v60  ;;  %v3166_v22 = vpop.f32.mrf.mxu2  ;;  %v3590_v32 = vor.u32 %v3589_v7, %v3586_v38  ;;  %v5670_v60 = vld [vmem:[%s5736_s26 + $0x98] sm:$0x1]  ;;  %v5328_v7 = vld [vmem:[%s5736_s26 + $0xa8] sm:$0xf] }
 0x208   : > { %v3242_v1 = vadd.f32 %v3166_v22, %v2927_v45  ;;  %v2675_v15 = vrot.slane %v2673_v40, 4  ;;  %v2676_v3 = vrot.slane %v5670_v60, 5  ;;  %v2674_v0 = vsel %vm6051_vm5, %v5095_v57, %v2673_v40  ;;  %v6974_v57 = vld [vmem:[%s5736_s26 + $0xac] sm:$0xf] }
 0x209   : > { %v4385_v48 = vadd.f32 %v6892_v51, %v4349_v41  ;;  %v2854_v47 = vpop.f32.mrf.mxu1  ;;  %v3591_v38 = vrot.slane %v3590_v32, 4  ;;  %v4188_v5 = vpack.c.b16 %v4167_v39, %v4166_v61  ;;  %v3608_v4 = vshrl.u32 %v5328_v7, 16 }
 0x20a   : > { %v4274_v25 = vpop.f32.mrf.mxu0  ;;  %v2677_v56 = vsel %vm6051_vm5, %v2675_v15, %v2676_v3  ;;  %v2745_v40 = vunpack.c.l.b16 %v2674_v0  ;;  %v3617_v39 = vshll.u32 %v6974_v57, 16 }
 0x20b   : > { %v4449_v31 = vadd.f32 %v4417_v62, %v4385_v48  ;;  %2893 = vmatmul.bf16.gmra.mxu1 %v2765_v13  ;;  %v2928_v62 = vadd.f32 %v2854_v47, %v6395_v52  ;;  %v3605_v48 = vrot.slane %v3603_v9, 5  ;;  %v5399_v52 = vld [vmem:[%s5736_s26 + $0x9c] sm:$0xe]  ;;  %v4096_v47 = vrot.slane %v6932_v35, 5 }
 0x20c   : > { %v3848_v18 = vpop.f32.mrf.mxu3  ;;  %3208 = vmatmul.bf16.gmra.mxu2 %v5562_v6  ;;  %v4418_v6 = vld [vmem:[%s6887_s30 + $0x18] sm:$0xff]  ;;  %v3596_v9 = vsel %vm5751_vm2, %v3591_v38, %v6953_v44  ;;  %v5415_v60 = vrot.slane %v5399_v52, 9 }
 0x20d   : > { %v4481_v41 = vmax.f32 %v4449_v31, 0.0  ;;  %v3924_v45 = vadd.f32 %v3848_v18, %v3242_v1  ;;  %v3611_v31 = vshll.u32 %v5328_v7, 16  ;;  %v2746_v18 = vunpack.c.l.b16 %v2677_v56  ;;  %v4419_v7 = vld [vmem:[%s6887_s30 + $0x20] sm:$0xff]  ;;  %v5080_v52 = vld [vmem:[%s5736_s26 + $0x9c] sm:$0xe] }
 0x20e   : > { %v3606_v61 = vsel %vm5751_vm2, %v3601_v46, %v3605_v48  ;;  %v4098_v20 = vrot.slane %v4096_v47, 4  ;;  %v3742_v0 = vunpack.c.l.b16 %v3596_v9  ;;  %v5671_v46 = vld [vmem:[%s5736_s26 + $0xa0] sm:$0xf]  ;;  %v5096_v9 = vrot.slane %v5080_v52, 9  ;;  %v7012_v52 = vld [vmem:[%s5736_s26 + $0xb8] sm:$0xf] }
 0x20f   : > { %4513 = vst [vmem:[%s6917_s9 + $0x10] sm:$0xff] %v4481_v41  ;;  %v4350_v13 = vadd.f32 %v4274_v25, %v3924_v45  ;;  %v3169_v22 = vpop.f32.mrf.mxu2  ;;  %v4099_v41 = vrot.slane %v6951_v28, 5  ;;  %v3610_v45 = vrot.slane %v3608_v4, 4  ;;  %v2766_v38 = vpack.c.b16 %v2746_v18, %v2745_v40  ;;  %v6996_v40 = vld [vmem:[%s5736_s26 + $0xb0] sm:$0x1] }
 0x210   : > { %v3243_v12 = vadd.f32 %v3169_v22, %v2928_v62  ;;  %v3743_v56 = vunpack.c.l.b16 %v3606_v61  ;;  %v2680_v28 = vrot.slane %v5671_v46, 5  ;;  %v3619_v4 = vrot.slane %v3617_v39, 5 }
 0x211   : > { %v4386_v1 = vadd.f32 %v6892_v51, %v4350_v13  ;;  %3890 = vmatmul.bf16.gmra.mxu3 %v3762_v16  ;;  %v2856_v27 = vpop.f32.mrf.mxu1  ;;  %v3613_v16 = vrot.slane %v3611_v31, 5  ;;  %v3621_v13 = vshrl.u32 %v6974_v57, 16  ;;  %v3627_v39 = vshll.u32 %v6996_v40, 16 }
 0x212   : > { %v4277_v25 = vpop.f32.mrf.mxu0  ;;  %v2929_v62 = vadd.f32 %v2856_v27, %v6415_v34  ;;  %v4100_v34 = vsel %vm6051_vm5, %v4098_v20, %v4099_v41  ;;  %v2682_v61 = vrot.slane %v2680_v28, 4 }
 0x213   : > { %v4450_v32 = vadd.f32 %v4418_v6, %v4386_v1  ;;  %v5563_v6 = vld [vmem:[%s5736_s26 + $0x9c] sm:$0xff]  ;;  %v3614_v27 = vor.u32 %v3613_v16, %v3610_v45  ;;  %v3623_v31 = vrot.slane %v3621_v13, 4  ;;  %v4169_v41 = vunpack.c.l.b16 %v4100_v34 }
 0x214   : > { %v3851_v15 = vpop.f32.mrf.mxu3 }
 0x215   : > { %v4482_v35 = vmax.f32 %v4450_v32, 0.0  ;;  %4316 = vmatmul.bf16.gmra.mxu0 %v4188_v5  ;;  %v3925_v3 = vadd.f32 %v3851_v15, %v3243_v12  ;;  %v4097_v12 = vsel %vm6051_vm5, %v5415_v60, %v4096_v47  ;;  %v3763_v15 = vpack.c.b16 %v3743_v56, %v3742_v0  ;;  %v5672_v47 = vld [vmem:[%s5736_s26 + $0xa4] sm:$0x1] }
 0x216   : > { %v2683_v60 = vrot.slane %v5672_v47, 5  ;;  %v4168_v20 = vunpack.c.l.b16 %v4097_v12  ;;  %v3615_v45 = vrot.slane %v3614_v27, 4  ;;  %v3624_v16 = vor.u32 %v3623_v31, %v3619_v4  ;;  %v5331_v12 = vld [vmem:[%s5736_s26 + $0xb4] sm:$0xf] }
 0x217   : > { %4514 = vst [vmem:[%s6917_s9 + $0x18] sm:$0xff] %v4482_v35  ;;  %v4351_v44 = vadd.f32 %v4277_v25, %v3925_v3  ;;  %v3171_v22 = vpop.f32.mrf.mxu2 }
 0x218   : > { %v3244_v1 = vadd.f32 %v3171_v22, %v2929_v62  ;;  %v4420_v22 = vld [vmem:[%s6887_s30 + $0x28] sm:$0xff]  ;;  %v4189_v56 = vpack.c.b16 %v4169_v41, %v4168_v20 }
 0x219   : > { %v4387_v48 = vadd.f32 %v6892_v51, %v4351_v44  ;;  %v2859_v5 = vpop.f32.mrf.mxu1  ;;  %v5673_v41 = vld [vmem:[%s5736_s26 + $0xac] sm:$0xf] }
 0x21a   : > { %v4279_v25 = vpop.f32.mrf.mxu0  ;;  %v2930_v44 = vadd.f32 %v2859_v5, %v6425_v10  ;;  %v3620_v5 = vsel %vm5751_vm2, %v3615_v45, %v3619_v4  ;;  %v2687_v45 = vrot.slane %v5673_v41, 5 }
 0x21b   : > { %v4451_v32 = vadd.f32 %v4419_v7, %v4387_v48  ;;  %2898 = vmatmul.bf16.gmra.mxu1 %v2766_v38  ;;  %v2681_v38 = vsel %vm6051_vm5, %v5096_v9, %v2680_v28  ;;  %v2684_v7 = vsel %vm6051_vm5, %v2682_v61, %v2683_v60  ;;  %v3625_v28 = vrot.slane %v3624_v16, 4 }
 0x21c   : > { %v3853_v18 = vpop.f32.mrf.mxu3  ;;  %3213 = vmatmul.bf16.gmra.mxu2 %v5563_v6  ;;  %v5400_v6 = vld [vmem:[%s5736_s26 + $0xa8] sm:$0xe]  ;;  %v2747_v27 = vunpack.c.l.b16 %v2681_v38  ;;  %v2748_v31 = vunpack.c.l.b16 %v2684_v7  ;;  %v3635_v9 = vshll.u32 %v5331_v12, 16  ;;  %v3645_v61 = vshrl.u32 %v7012_v52, 16  ;;  %v4421_v38 = vld [vmem:[%s6887_s30 + $0x30] sm:$0xff] }
 0x21d   : > { %v4483_v35 = vmax.f32 %v4451_v32, 0.0  ;;  %v3926_v3 = vadd.f32 %v3853_v18, %v3244_v1  ;;  %v4103_v1 = vrot.slane %v6974_v57, 5  ;;  %v5416_v32 = vrot.slane %v5400_v6, 9 }
 0x21e   : > { %v3641_v57 = vshll.u32 %v7012_v52, 16  ;;  %v3744_v20 = vunpack.c.l.b16 %v3620_v5  ;;  %v3637_v6 = vrot.slane %v3635_v9, 5  ;;  %v7035_v5 = vld [vmem:[%s5736_s26 + $0xbc] sm:$0x1] }
 0x21f   : > { %4515 = vst [vmem:[%s6917_s9 + $0x20] sm:$0xff] %v4483_v35  ;;  %v4352_v13 = vadd.f32 %v4279_v25, %v3926_v3  ;;  %v3174_v62 = vpop.f32.mrf.mxu2  ;;  %v3629_v25 = vrot.slane %v3627_v39, 5  ;;  %v4105_v60 = vrot.slane %v4103_v1, 4  ;;  %v4106_v35 = vrot.slane %v6996_v40, 5  ;;  %v5564_v40 = vld [vmem:[%s5736_s26 + $0xa8] sm:$0xff] }
 0x220   : > { %v3245_v46 = vadd.f32 %v3174_v62, %v2930_v44  ;;  %v2767_v44 = vpack.c.b16 %v2748_v31, %v2747_v27  ;;  %v4104_v62 = vsel %vm6051_vm5, %v5416_v32, %v4103_v1 }
 0x221   : > { %v4388_v0 = vadd.f32 %v6892_v51, %v4352_v13  ;;  %3895 = vmatmul.bf16.gmra.mxu3 %v3763_v15  ;;  %v2861_v48 = vpop.f32.mrf.mxu1  ;;  %v3632_v15 = vshrl.u32 %v5331_v12, 16  ;;  %v3630_v3 = vsel %vm5751_vm2, %v3625_v28, %v3629_v25  ;;  %v2689_v25 = vrot.slane %v2687_v45, 4 }
 0x222   : > { %v4282_v10 = vpop.f32.mrf.mxu0  ;;  %v2931_v39 = vadd.f32 %v2861_v48, %v6435_v11  ;;  %v3745_v11 = vunpack.c.l.b16 %v3630_v3  ;;  %v4107_v48 = vsel %vm6051_vm5, %v4105_v60, %v4106_v35  ;;  %v4170_v32 = vunpack.c.l.b16 %v4104_v62 }
 0x223   : > { %v4452_v34 = vadd.f32 %v4420_v22, %v4388_v0  ;;  %v5081_v22 = vld [vmem:[%s5736_s26 + $0xa8] sm:$0xe]  ;;  %v3634_v7 = vrot.slane %v3632_v15, 4  ;;  %v7029_v0 = vrot.slane %v3641_v57, 5  ;;  %v4171_v15 = vunpack.c.l.b16 %v4107_v48 }
 0x224   : > { %v3856_v18 = vpop.f32.mrf.mxu3  ;;  %v5097_v28 = vrot.slane %v5081_v22, 9  ;;  %v3764_v60 = vpack.c.b16 %v3745_v11, %v3744_v20 }
 0x225   : > { %v4484_v47 = vmax.f32 %v4452_v34, 0.0  ;;  %4321 = vmatmul.bf16.gmra.mxu0 %v4189_v56  ;;  %v3927_v4 = vadd.f32 %v3856_v18, %v3245_v46  ;;  %v3647_v56 = vrot.slane %v3645_v61, 4  ;;  %v5674_v34 = vld [vmem:[%s5736_s26 + $0xb0] sm:$0x1]  ;;  %v3638_v9 = vor.u32 %v3637_v6, %v3634_v7  ;;  %v7049_v7 = vld [vmem:[%s5736_s26 + $0xc4] sm:$0xf] }
 0x226   : > { %v2690_v27 = vrot.slane %v5674_v34, 5  ;;  %v3651_v61 = vshll.u32 %v7035_v5, 16  ;;  %v2688_v35 = vsel %vm6051_vm5, %v5097_v28, %v2687_v45  ;;  %v4190_v62 = vpack.c.b16 %v4171_v15, %v4170_v32 }
 0x227   : > { %4516 = vst [vmem:[%s6917_s9 + $0x28] sm:$0xff] %v4484_v47  ;;  %v4353_v16 = vadd.f32 %v4282_v10, %v3927_v4  ;;  %v3176_v13 = vpop.f32.mrf.mxu2  ;;  %v3648_v57 = vor.u32 %v3647_v56, %v7029_v0  ;;  %v3639_v22 = vrot.slane %v3638_v9, 4  ;;  %v2749_v56 = vunpack.c.l.b16 %v2688_v35 }
 0x228   : > { %v3246_v12 = vadd.f32 %v3176_v13, %v2931_v39  ;;  %v2691_v3 = vsel %vm6051_vm5, %v2689_v25, %v2690_v27  ;;  %v5334_v13 = vld [vmem:[%s5736_s26 + $0xc0] sm:$0xf]  ;;  %v3665_v28 = vshll.u32 %v7049_v7, 16  ;;  %v3669_v25 = vshrl.u32 %v7049_v7, 16 }
 0x229   : > { %v4389_v46 = vadd.f32 %v6892_v51, %v4353_v16  ;;  %v2864_v10 = vpop.f32.mrf.mxu1  ;;  %v3659_v48 = vshll.u32 %v5334_v13, 16  ;;  %v3644_v27 = vsel %vm5751_vm2, %v3639_v22, %v7029_v0  ;;  %v7070_v22 = vld [vmem:[%s5736_s26 + $0xc8] sm:$0x1] }
 0x22a   : > { %v4284_v1 = vpop.f32.mrf.mxu0  ;;  %v2932_v16 = vadd.f32 %v2864_v10, %v6455_v23  ;;  %v4110_v23 = vrot.slane %v7012_v52, 5  ;;  %v3656_v10 = vshrl.u32 %v5334_v13, 16  ;;  %v7064_v35 = vrot.slane %v3665_v28, 5 }
 0x22b   : > { %v4453_v31 = vadd.f32 %v4421_v38, %v4389_v46  ;;  %2903 = vmatmul.bf16.gmra.mxu1 %v2767_v44  ;;  %v4422_v44 = vld [vmem:[%s6887_s30 + $0x38] sm:$0xff]  ;;  %v3649_v38 = vrot.slane %v3648_v57, 4  ;;  %v2750_v46 = vunpack.c.l.b16 %v2691_v3  ;;  %v4113_v57 = vrot.slane %v7035_v5, 5 }
 0x22c   : > { %v3858_v18 = vpop.f32.mrf.mxu3  ;;  %3218 = vmatmul.bf16.gmra.mxu2 %v5564_v40  ;;  %v3653_v40 = vrot.slane %v3651_v61, 5  ;;  %v4112_v9 = vrot.slane %v4110_v23, 4  ;;  %v3658_v61 = vrot.slane %v3656_v10, 4  ;;  %v3671_v3 = vrot.slane %v3669_v25, 4  ;;  %v5676_v25 = vld [vmem:[%s5736_s26 + $0xbc] sm:$0x1] }
 0x22d   : > { %v4485_v47 = vmax.f32 %v4453_v31, 0.0  ;;  %v3928_v4 = vadd.f32 %v3858_v18, %v3246_v12  ;;  %v5401_v12 = vld [vmem:[%s5736_s26 + $0xb4] sm:$0xe]  ;;  %v2768_v52 = vpack.c.b16 %v2750_v46, %v2749_v56 }
 0x22e   : > { %v5417_v31 = vrot.slane %v5401_v12, 9  ;;  %v3654_v15 = vsel %vm5751_vm2, %v3649_v38, %v3653_v40  ;;  %v3672_v12 = vor.u32 %v3671_v3, %v7064_v35 }
 0x22f   : > { %4517 = vst [vmem:[%s6917_s9 + $0x30] sm:$0xff] %v4485_v47  ;;  %v4354_v41 = vadd.f32 %v4284_v1, %v3928_v4  ;;  %v3179_v39 = vpop.f32.mrf.mxu2  ;;  %v3661_v47 = vrot.slane %v3659_v48, 5  ;;  %v3747_v13 = vunpack.c.l.b16 %v3654_v15  ;;  %v7238_v15 = vld [vmem:[#allocation2_spill] sm:$0xff] }
 0x230   : > { %v3247_v45 = vadd.f32 %v3179_v39, %v2932_v16  ;;  %v5565_v16 = vld [vmem:[%s5736_s26 + $0xb4] sm:$0xff]  ;;  %v3746_v39 = vunpack.c.l.b16 %v3644_v27 }
 0x231   : > { %v4390_v20 = vadd.f32 %v6892_v51, %v4354_v41  ;;  %3900 = vmatmul.bf16.gmra.mxu3 %v3764_v60  ;;  %v2866_v6 = vpop.f32.mrf.mxu1  ;;  %v4423_v41 = vld [vmem:[%s6887_s30 + $0x40] sm:$0xff]  ;;  %v3662_v56 = vor.u32 %v3661_v47, %v3658_v61  ;;  %v3673_v61 = vrot.slane %v3672_v12, 4  ;;  %v4120_v12 = vrot.slane %v7070_v22, 5 }
 0x232   : > { %v4287_v11 = vpop.f32.mrf.mxu0  ;;  %v2933_v4 = vadd.f32 %v2866_v6, %v6475_v8  ;;  %v4111_v8 = vsel %vm6051_vm5, %v5417_v31, %v4110_v23  ;;  %v4114_v6 = vsel %vm6051_vm5, %v4112_v9, %v4113_v57  ;;  %v3765_v48 = vpack.c.b16 %v3747_v13, %v3746_v39 }
 0x233   : > { %v4454_v1 = vadd.f32 %v4422_v44, %v4390_v20  ;;  %v5675_v44 = vld [vmem:[%s5736_s26 + $0xb8] sm:$0xf]  ;;  %v5082_v20 = vld [vmem:[%s5736_s26 + $0xb4] sm:$0xe]  ;;  %v2697_v23 = vrot.slane %v5676_v25, 5  ;;  %v4172_v31 = vunpack.c.l.b16 %v4111_v8 }
 0x234   : > { %v3861_v34 = vpop.f32.mrf.mxu3 }
 0x235   : > { %v4486_v32 = vmax.f32 %v4454_v1, 0.0  ;;  %4326 = vmatmul.bf16.gmra.mxu0 %v4190_v62  ;;  %v3929_v18 = vadd.f32 %v3861_v34, %v3247_v45  ;;  %v2694_v62 = vrot.slane %v5675_v44, 5  ;;  %v5098_v1 = vrot.slane %v5082_v20, 9 }
 0x237   : > { %4518 = vst [vmem:[%s6917_s9 + $0x38] sm:$0xff] %v4486_v32  ;;  %v4355_v0 = vadd.f32 %v4287_v11, %v3929_v18  ;;  %v3181_v60 = vpop.f32.mrf.mxu2  ;;  %v3675_v11 = vshll.u32 %v7070_v22, 16  ;;  %v2696_v28 = vrot.slane %v2694_v62, 4  ;;  %v4173_v32 = vunpack.c.l.b16 %v4114_v6 }
 0x238   : > { %v3248_v38 = vadd.f32 %v3181_v60, %v2933_v4  ;;  %v3663_v18 = vrot.slane %v3662_v56, 4  ;;  %v4424_v4 = vld [vmem:[%s6887_s30 + $0x48] sm:$0xff]  ;;  %v2695_v60 = vsel %vm6051_vm5, %v5098_v1, %v2694_v62 }
 0x239   : > { %v4391_v5 = vadd.f32 %v6892_v51, %v4355_v0  ;;  %v2869_v40 = vpop.f32.mrf.mxu1  ;;  %v3677_v47 = vrot.slane %v3675_v11, 5  ;;  %v5402_v0 = vld [vmem:[%s5736_s26 + $0xc0] sm:$0xe]  ;;  %v2698_v3 = vsel %vm6051_vm5, %v2696_v28, %v2697_v23  ;;  %v4191_v39 = vpack.c.b16 %v4173_v32, %v4172_v31 }
 0x23a   : > { %v4289_v45 = vpop.f32.mrf.mxu0  ;;  %v2934_v9 = vadd.f32 %v2869_v40, %v7238_v15  ;;  %v3668_v40 = vsel %vm5751_vm2, %v3663_v18, %v7064_v35  ;;  %v5418_v20 = vrot.slane %v5402_v0, 9  ;;  %v2751_v8 = vunpack.c.l.b16 %v2695_v60  ;;  %v5566_v15 = vld [vmem:[%s5736_s26 + $0xc0] sm:$0xff] }
 0x23b   : > { %v4455_v46 = vadd.f32 %v4423_v41, %v4391_v5  ;;  %2908 = vmatmul.bf16.gmra.mxu1 %v2768_v52  ;;  %v4117_v41 = vrot.slane %v7049_v7, 5  ;;  %v5337_v5 = vld [vmem:[%s5736_s26 + $0xcc] sm:$0xf]  ;;  %v2752_v6 = vunpack.c.l.b16 %v2698_v3  ;;  %v3678_v7 = vsel %vm5751_vm2, %v3673_v61, %v3677_v47 }
 0x23c   : > { %v3863_v10 = vpop.f32.mrf.mxu3  ;;  %3223 = vmatmul.bf16.gmra.mxu2 %v5565_v16  ;;  %v3680_v11 = vshrl.u32 %v5337_v5, 16  ;;  %v3748_v25 = vunpack.c.l.b16 %v3668_v40  ;;  %v3749_v23 = vunpack.c.l.b16 %v3678_v7  ;;  %v5678_v7 = vld [vmem:[%s5736_s26 + $0xc8] sm:$0x1] }
 0x23d   : > { %v4487_v34 = vmax.f32 %v4455_v46, 0.0  ;;  %v3930_v27 = vadd.f32 %v3863_v10, %v3248_v38  ;;  %v4119_v46 = vrot.slane %v4117_v41, 4  ;;  %v3683_v10 = vshll.u32 %v5337_v5, 16  ;;  %v7115_v5 = vld [vmem:[%s5736_s26 + $0xd4] sm:$0x1] }
 0x23e   : > { %v2769_v32 = vpack.c.b16 %v2752_v6, %v2751_v8  ;;  %v4118_v18 = vsel %vm6051_vm5, %v5418_v20, %v4117_v41  ;;  %v3682_v47 = vrot.slane %v3680_v11, 4 }
 0x23f   : > { %4519 = vst [vmem:[%s6917_s9 + $0x40] sm:$0xff] %v4487_v34  ;;  %v4356_v52 = vadd.f32 %v4289_v45, %v3930_v27  ;;  %v3184_v57 = vpop.f32.mrf.mxu2  ;;  %v7096_v45 = vld [vmem:[%s5736_s26 + $0xd0] sm:$0xf]  ;;  %v7239_v27 = vld [vmem:[#allocation3_spill] sm:$0xff]  ;;  %v3685_v0 = vrot.slane %v3683_v10, 5  ;;  %v4174_v40 = vunpack.c.l.b16 %v4118_v18 }
 0x240   : > { %v3249_v13 = vadd.f32 %v3184_v57, %v2934_v9  ;;  %v3689_v1 = vshll.u32 %v7096_v45, 16  ;;  %v3693_v28 = vshrl.u32 %v7096_v45, 16  ;;  %v4121_v9 = vsel %vm6051_vm5, %v4119_v46, %v4120_v12  ;;  %v5677_v57 = vld [vmem:[%s5736_s26 + $0xc4] sm:$0xf] }
 0x241   : > { %v4392_v16 = vadd.f32 %v6892_v51, %v4356_v52  ;;  %3905 = vmatmul.bf16.gmra.mxu3 %v3765_v48  ;;  %v2871_v44 = vpop.f32.mrf.mxu1  ;;  %v4425_v52 = vld [vmem:[%s6887_s30 + $0x50] sm:$0xff]  ;;  %v2701_v61 = vrot.slane %v5677_v57, 5  ;;  %v4175_v20 = vunpack.c.l.b16 %v4121_v9  ;;  %v3686_v46 = vor.u32 %v3685_v0, %v3682_v47 }
 0x242   : > { %v4292_v38 = vpop.f32.mrf.mxu0  ;;  %v2935_v31 = vadd.f32 %v2871_v44, %v7239_v27  ;;  %v4124_v9 = vrot.slane %v7096_v45, 5  ;;  %v4127_v45 = vrot.slane %v7115_v5, 5 }
 0x243   : > { %v4456_v62 = vadd.f32 %v4424_v4, %v4392_v16  ;;  %v5083_v16 = vld [vmem:[%s5736_s26 + $0xc0] sm:$0xe]  ;;  %v2703_v6 = vrot.slane %v2701_v61, 4 }
 0x244   : > { %v3866_v56 = vpop.f32.mrf.mxu3  ;;  %v5099_v8 = vrot.slane %v5083_v16, 9 }
 0x245   : > { %v4488_v48 = vmax.f32 %v4456_v62, 0.0  ;;  %4331 = vmatmul.bf16.gmra.mxu0 %v4191_v39  ;;  %v3931_v35 = vadd.f32 %v3866_v56, %v3249_v13  ;;  %v3691_v39 = vrot.slane %v3689_v1, 5  ;;  %v3695_v13 = vrot.slane %v3693_v28, 4 }
 0x246   : > { %v2704_v56 = vrot.slane %v5678_v7, 5 }
 0x247   : > { %4520 = vst [vmem:[%s6917_s9 + $0x48] sm:$0xff] %v4488_v48  ;;  %v4357_v34 = vadd.f32 %v4292_v38, %v3931_v35  ;;  %v3186_v22 = vpop.f32.mrf.mxu2  ;;  %v3766_v38 = vpack.c.b16 %v3749_v23, %v3748_v25  ;;  %v3696_v10 = vor.u32 %v3695_v13, %v3691_v39  ;;  %v3699_v48 = vshll.u32 %v7115_v5, 16  ;;  %v4426_v25 = vld [vmem:[%s6887_s30 + $0x58] sm:$0xff] }
 0x248   : > { %v3250_v60 = vadd.f32 %v3186_v22, %v2935_v31  ;;  %v4192_v23 = vpack.c.b16 %v4175_v20, %v4174_v40  ;;  %v2705_v27 = vsel %vm6051_vm5, %v2703_v6, %v2704_v56  ;;  %v3687_v31 = vrot.slane %v3686_v46, 4  ;;  %v5567_v6 = vld [vmem:[%s5736_s26 + $0xcc] sm:$0xff] }
 0x249   : > { %v4393_v4 = vadd.f32 %v6892_v51, %v4357_v34  ;;  %v2874_v3 = vpop.f32.mrf.mxu1  ;;  %v2702_v34 = vsel %vm6051_vm5, %v5099_v8, %v2701_v61  ;;  %v2754_v0 = vunpack.c.l.b16 %v2705_v27  ;;  %v5403_v61 = vld [vmem:[%s5736_s26 + $0xcc] sm:$0xe]  ;;  %v4427_v8 = vld [vmem:[%s6887_s30 + $0x60] sm:$0xff] }
 0x24a   : > { %v4294_v44 = vpop.f32.mrf.mxu0  ;;  %v2936_v1 = vadd.f32 %v2874_v3, %v6519_v26  ;;  %v2753_v47 = vunpack.c.l.b16 %v2702_v34  ;;  %v3692_v16 = vsel %vm5751_vm2, %v3687_v31, %v3691_v39  ;;  %v4428_v31 = vld [vmem:[%s6887_s30 + $0x68] sm:$0xff] }
 0x24b   : > { %v4457_v41 = vadd.f32 %v4425_v52, %v4393_v4  ;;  %2913 = vmatmul.bf16.gmra.mxu1 %v2769_v32  ;;  %v3697_v52 = vrot.slane %v3696_v10, 4  ;;  %v3750_v7 = vunpack.c.l.b16 %v3692_v16 }
 0x24c   : > { %v3868_v62 = vpop.f32.mrf.mxu3  ;;  %3228 = vmatmul.bf16.gmra.mxu2 %v5566_v15  ;;  %v3701_v15 = vrot.slane %v3699_v48, 5 }
 0x24d   : > { %v4489_v12 = vmax.f32 %v4457_v41, 0.0  ;;  %v3932_v11 = vadd.f32 %v3868_v62, %v3250_v60  ;;  %v4126_v41 = vrot.slane %v4124_v9, 4  ;;  %v2770_v62 = vpack.c.b16 %v2754_v0, %v2753_v47 }
 0x24e   : > { %v3702_v13 = vsel %vm5751_vm2, %v3697_v52, %v3701_v15 }
 0x24f   : > { %4521 = vst [vmem:[%s6917_s9 + $0x50] sm:$0xff] %v4489_v12  ;;  %v4358_v35 = vadd.f32 %v4294_v44, %v3932_v11  ;;  %v3189_v28 = vpop.f32.mrf.mxu2  ;;  %v5419_v44 = vrot.slane %v5403_v61, 9  ;;  %v3751_v56 = vunpack.c.l.b16 %v3702_v13  ;;  %v4128_v11 = vsel %vm6051_vm5, %v4126_v41, %v4127_v45  ;;  %v4429_v61 = vld [vmem:[%s6887_s30 + $0x70] sm:$0xff] }
 0x250   : > { %v3251_v32 = vadd.f32 %v3189_v28, %v2936_v1 }
 0x251   : > { %v4394_v22 = vadd.f32 %v6892_v51, %v4358_v35  ;;  %3910 = vmatmul.bf16.gmra.mxu3 %v3766_v38  ;;  %v2876_v18 = vpop.f32.mrf.mxu1  ;;  %v4125_v5 = vsel %vm6051_vm5, %v5419_v44, %v4124_v9  ;;  %v3767_v48 = vpack.c.b16 %v3751_v56, %v3750_v7 }
 0x252   : > { %v4297_v26 = vpop.f32.mrf.mxu0  ;;  %v2937_v40 = vadd.f32 %v2876_v18, %v6532_v37  ;;  %v4176_v28 = vunpack.c.l.b16 %v4125_v5 }
 0x253   : > { %v4458_v57 = vadd.f32 %v4426_v25, %v4394_v22  ;;  %v4177_v25 = vunpack.c.l.b16 %v4128_v11 }
 0x254   : > { %v3871_v4 = vpop.f32.mrf.mxu3 }
 0x255   : > { %v4490_v60 = vmax.f32 %v4458_v57, 0.0  ;;  %4336 = vmatmul.bf16.gmra.mxu0 %v4192_v23  ;;  %v3933_v3 = vadd.f32 %v3871_v4, %v3251_v32  ;;  %v4193_v22 = vpack.c.b16 %v4177_v25, %v4176_v28 }
 0x257   : > { %4522 = vst [vmem:[%s6917_s9 + $0x58] sm:$0xff] %v4490_v60  ;;  %v4359_v38 = vadd.f32 %v4297_v26, %v3933_v3  ;;  %v3191_v20 = vpop.f32.mrf.mxu2 }
 0x258   : > { %v3252_v46 = vadd.f32 %v3191_v20, %v2937_v40 }
 0x259   : > { %v4395_v39 = vadd.f32 %v6892_v51, %v4359_v38  ;;  %v2879_v30 = vpop.f32.mrf.mxu1 }
 0x25a   : > { %v4299_v12 = vpop.f32.mrf.mxu0  ;;  %v2938_v34 = vadd.f32 %v2879_v30, %v6545_v55 }
 0x25b   : > { %v4459_v37 = vadd.f32 %v4427_v8, %v4395_v39  ;;  %2918 = vmatmul.bf16.gmra.mxu1 %v2770_v62  ;;  %v4430_v62 = vld [vmem:[%s6887_s30 + $0x78] sm:$0xff] }
 0x25c   : > { %v3873_v10 = vpop.f32.mrf.mxu3  ;;  %3233 = vmatmul.bf16.gmra.mxu2 %v5567_v6 }
 0x25d   : > { %v4491_v35 = vmax.f32 %v4459_v37, 0.0  ;;  %v3934_v1 = vadd.f32 %v3873_v10, %v3252_v46  ;;  %v4431_v37 = vld [vmem:[%s6887_s30 + $0x80] sm:$0xff] }
 0x25f   : > { %4523 = vst [vmem:[%s6917_s9 + $0x60] sm:$0xff] %v4491_v35  ;;  %v4360_v23 = vadd.f32 %v4299_v12, %v3934_v1  ;;  %v3194_v27 = vpop.f32.mrf.mxu2 }
 0x260   : > { %v3253_v32 = vadd.f32 %v3194_v27, %v2938_v34 }
 0x261   : > { %v4396_v43 = vadd.f32 %v6892_v51, %v4360_v23  ;;  %3915 = vmatmul.bf16.gmra.mxu3 %v3767_v48  ;;  %v2881_v18 = vpop.f32.mrf.mxu1 }
 0x262   : > { %v4302_v52 = vpop.f32.mrf.mxu0  ;;  %v2939_v55 = vadd.f32 %v2881_v18, %v6572_v29 }
 0x263   : > { %v4460_v15 = vadd.f32 %v4428_v31, %v4396_v43  ;;  %v4432_v43 = vld [vmem:[%s6887_s30 + $0x88] sm:$0xff] }
 0x264   : > { %v3876_v26 = vpop.f32.mrf.mxu3 }
 0x265   : > { %v4492_v9 = vmax.f32 %v4460_v15, 0.0  ;;  %4341 = vmatmul.bf16.gmra.mxu0 %v4193_v22  ;;  %v3935_v57 = vadd.f32 %v3876_v26, %v3253_v32 }
 0x267   : > { %4524 = vst [vmem:[%s6917_s9 + $0x68] sm:$0xff] %v4492_v9  ;;  %v4361_v47 = vadd.f32 %v4302_v52, %v3935_v57  ;;  %v3196_v0 = vpop.f32.mrf.mxu2 }
 0x268   : > { %v3254_v60 = vadd.f32 %v3196_v0, %v2939_v55  ;;  %v4433_v55 = vld [vmem:[%s6887_s30 + $0x90] sm:$0xff] }
 0x269   : > { %v4397_v4 = vadd.f32 %v6892_v51, %v4361_v47  ;;  %v2884_v3 = vpop.f32.mrf.mxu1 }
 0x26a   : > { %v4304_v16 = vpop.f32.mrf.mxu0  ;;  %v2940_v40 = vadd.f32 %v2884_v3, %v6586_v33 }
 0x26b   : > { %v4461_v13 = vadd.f32 %v4429_v61, %v4397_v4 }
 0x26c   : > { %v3878_v44 = vpop.f32.mrf.mxu3 }
 0x26d   : > { %v4493_v41 = vmax.f32 %v4461_v13, 0.0  ;;  %v3936_v45 = vadd.f32 %v3878_v44, %v3254_v60 }
 0x26f   : > { %4525 = vst [vmem:[%s6917_s9 + $0x70] sm:$0xff] %v4493_v41  ;;  %v4362_v38 = vadd.f32 %v4304_v16, %v3936_v45  ;;  %v3199_v20 = vpop.f32.mrf.mxu2 }
 0x270   : > { %v3255_v8 = vadd.f32 %v3199_v20, %v2940_v40  ;;  %v4434_v40 = vld [vmem:[%s6887_s30 + $0x98] sm:$0xff] }
 0x271   : > { %v4398_v29 = vadd.f32 %v6892_v51, %v4362_v38  ;;  %v2886_v6 = vpop.f32.mrf.mxu1 }
 0x272   : > { %v4307_v7 = vpop.f32.mrf.mxu0  ;;  %v2941_v5 = vadd.f32 %v2886_v6, %v6609_v2  ;;  %v7165_v2 = vld [vmem:[%s7229_s2] ss:$0 sm:$0xff] }
 0x273   : > { %v4462_v56 = vadd.f32 %v4430_v62, %v4398_v29 }
 0x274   : > { %v3881_v39 = vpop.f32.mrf.mxu3 }
 0x275   : > { %v4494_v46 = vmax.f32 %v4462_v56, 0.0  ;;  %v3937_v30 = vadd.f32 %v3881_v39, %v3255_v8 }
 0x277   : > { %4526 = vst [vmem:[%s6917_s9 + $0x78] sm:$0xff] %v4494_v46  ;;  %v4363_v12 = vadd.f32 %v4307_v7, %v3937_v30  ;;  %v3201_v11 = vpop.f32.mrf.mxu2 }
 0x278   : > { %v3256_v10 = vadd.f32 %v3201_v11, %v2941_v5 }
 0x279   : > { %v4399_v33 = vadd.f32 %v6892_v51, %v4363_v12  ;;  %v2889_v48 = vpop.f32.mrf.mxu1  ;;  %v4435_v12 = vld [vmem:[%s6887_s30 + $0xa0] sm:$0xff] }
 0x27a   : > { %v4309_v35 = vpop.f32.mrf.mxu0  ;;  %v2942_v27 = vadd.f32 %v2889_v48, %v6624_v53 }
 0x27b   : > { %v4463_v1 = vadd.f32 %v4431_v37, %v4399_v33 }
 0x27c   : > { %v3883_v28 = vpop.f32.mrf.mxu3 }
 0x27d   : > { %v4495_v25 = vmax.f32 %v4463_v1, 0.0  ;;  %v3938_v23 = vadd.f32 %v3883_v28, %v3256_v10 }
 0x27f   : > { %4527 = vst [vmem:[%s6917_s9 + $0x80] sm:$0xff] %v4495_v25  ;;  %v4364_v34 = vadd.f32 %v4309_v35, %v3938_v23  ;;  %v3204_v31 = vpop.f32.mrf.mxu2  ;;  %v4436_v23 = vld [vmem:[%s6887_s30 + $0xa8] sm:$0xff] }
 0x280   : > { %v3257_v22 = vadd.f32 %v3204_v31, %v2942_v27 }
 0x281   : > { %v4400_v51 = vadd.f32 %v7165_v2, %v4364_v34  ;;  %v2891_v32 = vpop.f32.mrf.mxu1 }
 0x282   : > { %v4312_v18 = vpop.f32.mrf.mxu0  ;;  %v2943_v57 = vadd.f32 %v2891_v32, %v6650_v49 }
 0x283   : > { %v4464_v52 = vadd.f32 %v4432_v43, %v4400_v51 }
 0x284   : > { %v3886_v15 = vpop.f32.mrf.mxu3 }
 0x285   : > { %v4496_v26 = vmax.f32 %v4464_v52, 0.0  ;;  %v3939_v9 = vadd.f32 %v3886_v15, %v3257_v22 }
 0x287   : > { %4528 = vst [vmem:[%s6917_s9 + $0x88] sm:$0xff] %v4496_v26  ;;  %v4365_v53 = vadd.f32 %v4312_v18, %v3939_v9  ;;  %v3206_v47 = vpop.f32.mrf.mxu2  ;;  %v4437_v26 = vld [vmem:[%s6887_s30 + $0xb0] sm:$0xff] }
 0x288   : > { %v3258_v61 = vadd.f32 %v3206_v47, %v2943_v57 }
 0x289   : > { %v4401_v0 = vadd.f32 %v7165_v2, %v4365_v53  ;;  %v2894_v4 = vpop.f32.mrf.mxu1 }
 0x28a   : > { %v4314_v60 = vpop.f32.mrf.mxu0  ;;  %v2944_v45 = vadd.f32 %v2894_v4, %v6664_v17 }
 0x28b   : > { %v4465_v3 = vadd.f32 %v4433_v55, %v4401_v0 }
 0x28c   : > { %v3888_v16 = vpop.f32.mrf.mxu3 }
 0x28d   : > { %v4497_v13 = vmax.f32 %v4465_v3, 0.0  ;;  %v3940_v44 = vadd.f32 %v3888_v16, %v3258_v61  ;;  %v4438_v16 = vld [vmem:[%s6887_s30 + $0xb8] sm:$0xff] }
 0x28f   : > { %4529 = vst [vmem:[%s6917_s9 + $0x90] sm:$0xff] %v4497_v13  ;;  %v4366_v41 = vadd.f32 %v4314_v60, %v3940_v44  ;;  %v3209_v38 = vpop.f32.mrf.mxu2 }
 0x290   : > { %v3259_v20 = vadd.f32 %v3209_v38, %v2944_v45 }
 0x291   : > { %v4402_v49 = vadd.f32 %v7165_v2, %v4366_v41  ;;  %v2896_v62 = vpop.f32.mrf.mxu1 }
 0x292   : > { %v4317_v29 = vpop.f32.mrf.mxu0  ;;  %v2945_v46 = vadd.f32 %v2896_v62, %v6687_v14 }
 0x293   : > { %v4466_v8 = vadd.f32 %v4434_v40, %v4402_v49 }
 0x294   : > { %v3891_v6 = vpop.f32.mrf.mxu3 }
 0x295   : > { %v4498_v7 = vmax.f32 %v4466_v8, 0.0  ;;  %v3941_v56 = vadd.f32 %v3891_v6, %v3259_v20  ;;  %v4439_v8 = vld [vmem:[%s6887_s30 + $0xc0] sm:$0xff] }
 0x297   : > { %4530 = vst [vmem:[%s6917_s9 + $0x98] sm:$0xff] %v4498_v7  ;;  %v4367_v39 = vadd.f32 %v4317_v29, %v3941_v56  ;;  %v3211_v30 = vpop.f32.mrf.mxu2 }
 0x298   : > { %v3260_v5 = vadd.f32 %v3211_v30, %v2945_v46 }
 0x299   : > { %v4403_v17 = vadd.f32 %v7165_v2, %v4367_v39  ;;  %v2899_v11 = vpop.f32.mrf.mxu1 }
 0x29a   : > { %v4319_v37 = vpop.f32.mrf.mxu0  ;;  %v2946_v28 = vadd.f32 %v2899_v11, %v6702_v21 }
 0x29b   : > { %v4467_v33 = vadd.f32 %v4435_v12, %v4403_v17 }
 0x29c   : > { %v3893_v10 = vpop.f32.mrf.mxu3 }
 0x29d   : > { %v4499_v48 = vmax.f32 %v4467_v33, 0.0  ;;  %v3942_v35 = vadd.f32 %v3893_v10, %v3260_v5 }
 0x29f   : > { %4531 = vst [vmem:[%s6917_s9 + $0xa0] sm:$0xff] %v4499_v48  ;;  %v4368_v1 = vadd.f32 %v4319_v37, %v3942_v35  ;;  %v3214_v25 = vpop.f32.mrf.mxu2  ;;  %v4440_v37 = vld [vmem:[%s6887_s30 + $0xc8] sm:$0xff] }
 0x2a0   : > { %v3261_v34 = vadd.f32 %v3214_v25, %v2946_v28 }
 0x2a1   : > { %v4404_v14 = vadd.f32 %v7165_v2, %v4368_v1  ;;  %v2901_v27 = vpop.f32.mrf.mxu1 }
 0x2a2   : > { %v4322_v31 = vpop.f32.mrf.mxu0  ;;  %v2947_v52 = vadd.f32 %v2901_v27, %v6725_v24  ;;  %v4441_v27 = vld [vmem:[%s6887_s30 + $0xd0] sm:$0xff] }
 0x2a3   : > { %v4468_v43 = vadd.f32 %v4436_v23, %v4404_v14 }
 0x2a4   : > { %v3896_v51 = vpop.f32.mrf.mxu3 }
 0x2a5   : > { %v4500_v22 = vmax.f32 %v4468_v43, 0.0  ;;  %v3943_v32 = vadd.f32 %v3896_v51, %v3261_v34 }
 0x2a7   : > { %4532 = vst [vmem:[%s6917_s9 + $0xa8] sm:$0xff] %v4500_v22  ;;  %v4369_v18 = vadd.f32 %v4322_v31, %v3943_v32  ;;  %v3216_v15 = vpop.f32.mrf.mxu2 }
 0x2a8   : > { %v3262_v9 = vadd.f32 %v3216_v15, %v2947_v52 }
 0x2a9   : > { %v4405_v21 = vadd.f32 %v7165_v2, %v4369_v18  ;;  %v2904_v53 = vpop.f32.mrf.mxu1 }
 0x2aa   : > { %v4324_v57 = vpop.f32.mrf.mxu0  ;;  %v2948_v60 = vadd.f32 %v2904_v53, %v6738_v58 }
 0x2ab   : > { %v4469_v47 = vadd.f32 %v4437_v26, %v4405_v21 }
 0x2ac   : > { %v3898_v55 = vpop.f32.mrf.mxu3 }
 0x2ad   : > { %v4501_v0 = vmax.f32 %v4469_v47, 0.0  ;;  %v3944_v61 = vadd.f32 %v3898_v55, %v3262_v9  ;;  %v4442_v9 = vld [vmem:[%s6887_s30 + $0xd8] sm:$0xff] }
 0x2af   : > { %4533 = vst [vmem:[%s6917_s9 + $0xb0] sm:$0xff] %v4501_v0  ;;  %v4370_v4 = vadd.f32 %v4324_v57, %v3944_v61  ;;  %v3219_v3 = vpop.f32.mrf.mxu2 }
 0x2b0   : > { %v3263_v13 = vadd.f32 %v3219_v3, %v2948_v60 }
 0x2b1   : > { %v4406_v24 = vadd.f32 %v7165_v2, %v4370_v4  ;;  %v2906_v44 = vpop.f32.mrf.mxu1 }
 0x2b2   : > { %v4327_v41 = vpop.f32.mrf.mxu0  ;;  %v2949_v62 = vadd.f32 %v2906_v44, %v6760_v42 }
 0x2b3   : > { %v4470_v45 = vadd.f32 %v4438_v16, %v4406_v24  ;;  %v4443_v24 = vld [vmem:[%s6887_s30 + $0xe0] sm:$0xff] }
 0x2b4   : > { %v3901_v38 = vpop.f32.mrf.mxu3 }
 0x2b5   : > { %v4502_v40 = vmax.f32 %v4470_v45, 0.0  ;;  %v3945_v49 = vadd.f32 %v3901_v38, %v3263_v13 }
 0x2b7   : > { %4534 = vst [vmem:[%s6917_s9 + $0xb8] sm:$0xff] %v4502_v40  ;;  %v4371_v20 = vadd.f32 %v4327_v41, %v3945_v49  ;;  %v3221_v29 = vpop.f32.mrf.mxu2 }
 0x2b8   : > { %v3264_v6 = vadd.f32 %v3221_v29, %v2949_v62 }
 0x2b9   : > { %v4407_v58 = vadd.f32 %v7165_v2, %v4371_v20  ;;  %v2909_v7 = vpop.f32.mrf.mxu1 }
 0x2ba   : > { %v4329_v56 = vpop.f32.mrf.mxu0  ;;  %v2950_v5 = vadd.f32 %v2909_v7, %v6775_v50 }
 0x2bb   : > { %v4471_v39 = vadd.f32 %v4439_v8, %v4407_v58  ;;  %v4444_v8 = vld [vmem:[%s6887_s30 + $0xe8] sm:$0xff] }
 0x2bc   : > { %v3903_v46 = vpop.f32.mrf.mxu3 }
 0x2bd   : > { %v4503_v30 = vmax.f32 %v4471_v39, 0.0  ;;  %v3946_v12 = vadd.f32 %v3903_v46, %v3264_v6 }
 0x2bf   : > { %4535 = vst [vmem:[%s6917_s9 + $0xc0] sm:$0xff] %v4503_v30  ;;  %v4372_v17 = vadd.f32 %v4329_v56, %v3946_v12  ;;  %v3224_v11 = vpop.f32.mrf.mxu2 }
 0x2c0   : > { %v3265_v33 = vadd.f32 %v3224_v11, %v2950_v5 }
 0x2c1   : > { %v4408_v42 = vadd.f32 %v7165_v2, %v4372_v17  ;;  %v2911_v10 = vpop.f32.mrf.mxu1 }
 0x2c2   : > { %v4332_v48 = vpop.f32.mrf.mxu0  ;;  %v2951_v14 = vadd.f32 %v2911_v10, %v6794_v63 }
 0x2c3   : > { %v4472_v35 = vadd.f32 %v4440_v37, %v4408_v42 }
 0x2c4   : > { %v3906_v1 = vpop.f32.mrf.mxu3 }
 0x2c5   : > { %v4504_v28 = vmax.f32 %v4472_v35, 0.0  ;;  %v3947_v25 = vadd.f32 %v3906_v1, %v3265_v33 }
 0x2c7   : > { %4536 = vst [vmem:[%s6917_s9 + $0xc8] sm:$0xff] %v4504_v28  ;;  %v4373_v23 = vadd.f32 %v4332_v48, %v3947_v25  ;;  %v3226_v34 = vpop.f32.mrf.mxu2  ;;  %v4446_v28 = vld [vmem:[%s6887_s30 + $0xf8] sm:$0xff] }
 0x2c8   : > { %v3266_v31 = vadd.f32 %v3226_v34, %v2951_v14 }
 0x2c9   : > { %v4409_v50 = vadd.f32 %v7165_v2, %v4373_v23  ;;  %v2914_v43 = vpop.f32.mrf.mxu1 }
 0x2ca   : > { %v4334_v51 = vpop.f32.mrf.mxu0  ;;  %v2952_v26 = vadd.f32 %v2914_v43, %v6810_v19 }
 0x2cb   : > { %v4473_v22 = vadd.f32 %v4441_v27, %v4409_v50 }
 0x2cc   : > { %v3908_v32 = vpop.f32.mrf.mxu3 }
 0x2cd   : > { %v4505_v18 = vmax.f32 %v4473_v22, 0.0  ;;  %v3948_v52 = vadd.f32 %v3908_v32, %v3266_v31 }
 0x2cf   : > { %4537 = vst [vmem:[%s6917_s9 + $0xd0] sm:$0xff] %v4505_v18  ;;  %v4374_v15 = vadd.f32 %v4334_v51, %v3948_v52  ;;  %v3229_v21 = vpop.f32.mrf.mxu2 }
 0x2d0   : > { %v3267_v53 = vadd.f32 %v3229_v21, %v2952_v26 }
 0x2d1   : > { %v4410_v63 = vadd.f32 %v7165_v2, %v4374_v15  ;;  %v2916_v57 = vpop.f32.mrf.mxu1 }
 0x2d2   : > { %v4337_v47 = vpop.f32.mrf.mxu0  ;;  %v2953_v3 = vadd.f32 %v2916_v57, %v6833_v54 }
 0x2d3   : > { %v4474_v55 = vadd.f32 %v4442_v9, %v4410_v63 }
 0x2d4   : > { %v3911_v0 = vpop.f32.mrf.mxu3 }
 0x2d5   : > { %v4506_v61 = vmax.f32 %v4474_v55, 0.0  ;;  %v3949_v4 = vadd.f32 %v3911_v0, %v3267_v53 }
 0x2d7   : > { %4538 = vst [vmem:[%s6917_s9 + $0xd8] sm:$0xff] %v4506_v61  ;;  %v4375_v60 = vadd.f32 %v4337_v47, %v3949_v4  ;;  %v3231_v16 = vpop.f32.mrf.mxu2 }
 0x2d8   : > { %v3268_v13 = vadd.f32 %v3231_v16, %v2953_v3 }
 0x2d9   : > { %v4411_v19 = vadd.f32 %v7165_v2, %v4375_v60  ;;  %v2919_v44 = vpop.f32.mrf.mxu1 }
 0x2da   : > { %v4339_v41 = vpop.f32.mrf.mxu0  ;;  %v2954_v62 = vadd.f32 %v2919_v44, %v6847_v36  ;;  %v4445_v36 = vld [vmem:[%s6887_s30 + $0xf0] sm:$0xff] }
 0x2db   : > { %v4475_v45 = vadd.f32 %v4443_v24, %v4411_v19 }
 0x2dc   : > { %v3913_v38 = vpop.f32.mrf.mxu3 }
 0x2dd   : > { %v4507_v40 = vmax.f32 %v4475_v45, 0.0  ;;  %v3950_v49 = vadd.f32 %v3913_v38, %v3268_v13 }
 0x2df   : > { %4539 = vst [vmem:[%s6917_s9 + $0xe0] sm:$0xff] %v4507_v40  ;;  %v4376_v20 = vadd.f32 %v4339_v41, %v3950_v49  ;;  %v3234_v29 = vpop.f32.mrf.mxu2 }
 0x2e0   : > { %v3269_v58 = vadd.f32 %v3234_v29, %v2954_v62 }
 0x2e1   : > { %v4412_v54 = vadd.f32 %v7165_v2, %v4376_v20  ;;  %v2921_v7 = vpop.f32.mrf.mxu1 }
 0x2e2   : > { %v4342_v56 = vpop.f32.mrf.mxu0  ;;  %v2955_v17 = vadd.f32 %v2921_v7, %v6870_v59 }
 0x2e3   : > { %v4476_v6 = vadd.f32 %v4444_v8, %v4412_v54 }
 0x2e4   : > { %v3916_v39 = vpop.f32.mrf.mxu3 }
 0x2e5   : > { %v4508_v46 = vmax.f32 %v4476_v6, 0.0  ;;  %v3951_v30 = vadd.f32 %v3916_v39, %v3269_v58 }
 0x2e7   : > { %4540 = vst [vmem:[%s6917_s9 + $0xe8] sm:$0xff] %v4508_v46  ;;  %v4377_v12 = vadd.f32 %v4342_v56, %v3951_v30  ;;  %v3236_v5 = vpop.f32.mrf.mxu2 }
 0x2e8   : > { %v3270_v37 = vadd.f32 %v3236_v5, %v2955_v17 }
 0x2e9   : > { %v4413_v11 = vadd.f32 %v7165_v2, %v4377_v12 }
 0x2ea   : > { %v4344_v35 = vpop.f32.mrf.mxu0 }
 0x2eb   : > { %v4477_v42 = vadd.f32 %v4445_v36, %v4413_v11 }
 0x2ec   : > { %v3918_v33 = vpop.f32.mrf.mxu3 }
 0x2ed   : > { %v4509_v10 = vmax.f32 %v4477_v42, 0.0  ;;  %v3952_v48 = vadd.f32 %v3918_v33, %v3270_v37 }
 0x2ef   : > { %4541 = vst [vmem:[%s6917_s9 + $0xf0] sm:$0xff] %v4509_v10  ;;  %v4378_v1 = vadd.f32 %v4344_v35, %v3952_v48 }
 0x2f1   : > { %v4414_v25 = vadd.f32 %v7165_v2, %v4378_v1 }
 0x2f3   : > { %v4478_v23 = vadd.f32 %v4446_v28, %v4414_v25 }
 0x2f5   : > { %v4510_v14 = vmax.f32 %v4478_v23, 0.0 }
 0x2f7   : > { %4542 = vst [vmem:[%s6917_s9 + $0xf8] sm:$0xff] %v4510_v14 }
 0x2f8 PF: > { %s14_s15 = sadd.s32 1, %s5686_s15  }
 0x2f9   : > { %p11_p4 = scmp.ge.s32.totalorder %s14_s15, 4  }
 0x2fb   :  { %13 = sbr.rel (!%p11_p4) target bundleno = 1 (0x1), region = 79 }

// kernel: neko_reslayer_sd_forward.7
= control target key start
LH: loop header
LB: loop body
LE: loop exit
PB: predicated region body
PF: predicated region fallthrough
CT: control target
= control target key end

     0   :  { %s1282_s12 = smov 0   ;;  %s1284_s13 = smov 0   ;;  %s1543_s0 = inlined_call_operand.vmem [shape: bf16[512,1152], index: 0, kind: input, shape index: {}]   ;;  %s1544_s1 = inlined_call_operand.vmem [shape: bf16[1152,128], index: 1, kind: input, shape index: {}]   ;;  %s1545_s2 = inlined_call_operand.vmem [shape: f32[1,128], index: 2, kind: input, shape index: {}]   ;;  %s1546_s3 = inlined_call_operand.vmem [shape: f32[512,128], index: 3, kind: output, shape index: {}]  }
   0x1   :  { %s1286_s14 = smov 0   ;;  %s1288_s15 = smov 0  }
   0x2   :  { %s1290_s16 = smov 0   ;;  %s1292_s17 = smov 0  }
   0x3   :  { %s1294_s18 = smov 0  }
   0x4 LB: > { %s22_s19 = sadd.s32 1, %s1251_s16  ;;  %s25_s20 = sadd.s32 1, %s1255_s17  ;;  %s1259_s18 = sphi %s1294_s18, %s13_s18   ;;  %s1255_s17 = sphi %s1292_s17, %s1552_s17   ;;  %s1251_s16 = sphi %s1290_s16, %s1551_s16   ;;  %s1247_s15 = sphi %s1288_s15, %s1550_s15   ;;  %s1243_s14 = sphi %s1286_s14, %s1549_s14   ;;  %s1239_s13 = sphi %s1284_s13, %s1548_s13   ;;  %s1235_s12 = sphi %s1282_s12, %s1547_s12  }
   0x5   : > { %p23_p0 = scmp.ge.s32.totalorder %s22_s19, 9  ;;  %p41_p1 = scmp.ne.s32.totalorder %s1239_s13, %s1235_s12 }
   0x6   : > { %p42_p2 = scmp.eq.s32.totalorder %s1259_s18, 0  ;;  %s34_s24 = sadd.s32 1, %s1239_s13 }
   0x7   : > { %s1554_s19 = smov (%p23_p0, %s22_s19), 0  ;;  %s1556_s20 = smov (!%p23_p0, %s25_s20), %s1255_s17 }
   0x8   : > { %p43_p3 = por %p42_p2, %p41_p1  ;;  %p27_p4 = scmp.ge.s32.totalorder %s1556_s20, 2 }
   0x9   : > { %s30_s21 = ssub.s32 %s1251_s16, %s1554_s19  ;;  %p987_p6 = scmp.ge.s32.totalorder %s1259_s18, 18 }
   0xa   : > { %s1558_s20 = smov (%p27_p4, %s1556_s20), 0 }
   0xb   : > { %s29_s22 = ssub.s32 %s1255_s17, %s1558_s20  ;;  %143 = sbr.rel (%p987_p6) target bundleno = 55 (0x37), region = 20 }
   0xc   : > { %s31_s23 = sor.u32 %s30_s21, %s29_s22 }
   0xd   : > { %p32_p5 = scmp.eq.s32.totalorder %s31_s23, 0 }
   0xf   : > { %s1333_s25 = scalar_select %p32_p5, %s1239_s13, %s34_s24  }
  0x10   : > { %146 = sbr.rel (!%p43_p3) target bundleno = 55 (0x37), region = 24  ;;  %s148_s26 = sand.u32 (%p43_p3), 1, %s1239_s13  }
  0x11   : > { %s1146_s27 = smul.u32 (%p43_p3), 288, %s1255_s17  ;;  %s988_s28 = sshll.u32 (%p43_p3), %s148_s26, 7 }
  0x12   : > { %s1347_s7 = scalar_lea.vmem (%p43_p3), [#allocation3], %s988_s28 }
  0x13   : > { %s153_s29 = sadd.s32 (%p43_p3), %s1251_s16, %s1146_s27 }
  0x14   : > { %s991_s30 = sshll.u32 (%p43_p3), %s153_s29, 2 }
  0x15   : > { %s1342_s6 = scalar_lea.vmem %s1543_s0, %s991_s30 }
  0x16   : > { %v172_v0 = vld [vmem:[%s1342_s6] sm:$0xf]  ;;  %v174_v1 = vld [vmem:[%s1342_s6 + $0x24] sm:$0xf]  ;;  %v176_v2 = vld [vmem:[%s1342_s6 + $0x48] sm:$0xf] }
  0x17   : > { %173 = vst [vmem:[%s1347_s7] sm:$0xf] %v172_v0  ;;  %v178_v3 = vld [vmem:[%s1342_s6 + $0x6c] sm:$0xf]  ;;  %v180_v4 = vld [vmem:[%s1342_s6 + $0x90] sm:$0xf] }
  0x18   : > { %175 = vst [vmem:[%s1347_s7 + $0x4] sm:$0xf] %v174_v1  ;;  %v182_v5 = vld [vmem:[%s1342_s6 + $0xb4] sm:$0xf]  ;;  %v184_v6 = vld [vmem:[%s1342_s6 + $0xd8] sm:$0xf] }
  0x19   : > { %177 = vst [vmem:[%s1347_s7 + $0x8] sm:$0xf] %v176_v2  ;;  %v186_v7 = vld [vmem:[%s1342_s6 + $0xfc] sm:$0xf]  ;;  %v188_v8 = vld [vmem:[%s1342_s6 + $0x120] sm:$0xf] }
  0x1a   : > { %179 = vst [vmem:[%s1347_s7 + $0xc] sm:$0xf] %v178_v3  ;;  %v190_v9 = vld [vmem:[%s1342_s6 + $0x144] sm:$0xf]  ;;  %v192_v10 = vld [vmem:[%s1342_s6 + $0x168] sm:$0xf] }
  0x1b   : > { %181 = vst [vmem:[%s1347_s7 + $0x10] sm:$0xf] %v180_v4  ;;  %v194_v11 = vld [vmem:[%s1342_s6 + $0x18c] sm:$0xf]  ;;  %v196_v12 = vld [vmem:[%s1342_s6 + $0x1b0] sm:$0xf] }
  0x1c   : > { %183 = vst [vmem:[%s1347_s7 + $0x14] sm:$0xf] %v182_v5  ;;  %v198_v13 = vld [vmem:[%s1342_s6 + $0x1d4] sm:$0xf]  ;;  %v200_v14 = vld [vmem:[%s1342_s6 + $0x1f8] sm:$0xf] }
  0x1d   : > { %185 = vst [vmem:[%s1347_s7 + $0x18] sm:$0xf] %v184_v6  ;;  %v202_v15 = vld [vmem:[%s1342_s6 + $0x21c] sm:$0xf]  ;;  %v204_v16 = vld [vmem:[%s1342_s6 + $0x240] sm:$0xf] }
  0x1e   : > { %187 = vst [vmem:[%s1347_s7 + $0x1c] sm:$0xf] %v186_v7  ;;  %v206_v17 = vld [vmem:[%s1342_s6 + $0x264] sm:$0xf]  ;;  %v208_v18 = vld [vmem:[%s1342_s6 + $0x288] sm:$0xf] }
  0x1f   : > { %189 = vst [vmem:[%s1347_s7 + $0x20] sm:$0xf] %v188_v8  ;;  %v210_v19 = vld [vmem:[%s1342_s6 + $0x2ac] sm:$0xf]  ;;  %v212_v20 = vld [vmem:[%s1342_s6 + $0x2d0] sm:$0xf] }
  0x20   : > { %191 = vst [vmem:[%s1347_s7 + $0x24] sm:$0xf] %v190_v9  ;;  %v214_v21 = vld [vmem:[%s1342_s6 + $0x2f4] sm:$0xf]  ;;  %v216_v22 = vld [vmem:[%s1342_s6 + $0x318] sm:$0xf] }
  0x21   : > { %193 = vst [vmem:[%s1347_s7 + $0x28] sm:$0xf] %v192_v10  ;;  %v218_v23 = vld [vmem:[%s1342_s6 + $0x33c] sm:$0xf]  ;;  %v220_v24 = vld [vmem:[%s1342_s6 + $0x360] sm:$0xf] }
  0x22   : > { %195 = vst [vmem:[%s1347_s7 + $0x2c] sm:$0xf] %v194_v11  ;;  %v222_v25 = vld [vmem:[%s1342_s6 + $0x384] sm:$0xf]  ;;  %v224_v26 = vld [vmem:[%s1342_s6 + $0x3a8] sm:$0xf] }
  0x23   : > { %197 = vst [vmem:[%s1347_s7 + $0x30] sm:$0xf] %v196_v12  ;;  %v226_v27 = vld [vmem:[%s1342_s6 + $0x3cc] sm:$0xf]  ;;  %v228_v28 = vld [vmem:[%s1342_s6 + $0x3f0] sm:$0xf] }
  0x24   : > { %199 = vst [vmem:[%s1347_s7 + $0x34] sm:$0xf] %v198_v13  ;;  %v230_v29 = vld [vmem:[%s1342_s6 + $0x414] sm:$0xf]  ;;  %v232_v30 = vld [vmem:[%s1342_s6 + $0x438] sm:$0xf] }
  0x25   : > { %201 = vst [vmem:[%s1347_s7 + $0x38] sm:$0xf] %v200_v14  ;;  %v234_v31 = vld [vmem:[%s1342_s6 + $0x45c] sm:$0xf] }
  0x26   : > { %203 = vst [vmem:[%s1347_s7 + $0x3c] sm:$0xf] %v202_v15 }
  0x27   : > { %205 = vst [vmem:[%s1347_s7 + $0x40] sm:$0xf] %v204_v16 }
  0x28   : > { %207 = vst [vmem:[%s1347_s7 + $0x44] sm:$0xf] %v206_v17 }
  0x29   : > { %209 = vst [vmem:[%s1347_s7 + $0x48] sm:$0xf] %v208_v18 }
  0x2a   : > { %211 = vst [vmem:[%s1347_s7 + $0x4c] sm:$0xf] %v210_v19 }
  0x2b   : > { %213 = vst [vmem:[%s1347_s7 + $0x50] sm:$0xf] %v212_v20 }
  0x2c   : > { %215 = vst [vmem:[%s1347_s7 + $0x54] sm:$0xf] %v214_v21 }
  0x2d   : > { %217 = vst [vmem:[%s1347_s7 + $0x58] sm:$0xf] %v216_v22 }
  0x2e   : > { %219 = vst [vmem:[%s1347_s7 + $0x5c] sm:$0xf] %v218_v23 }
  0x2f   : > { %221 = vst [vmem:[%s1347_s7 + $0x60] sm:$0xf] %v220_v24 }
  0x30   : > { %223 = vst [vmem:[%s1347_s7 + $0x64] sm:$0xf] %v222_v25 }
  0x31   : > { %225 = vst [vmem:[%s1347_s7 + $0x68] sm:$0xf] %v224_v26 }
  0x32   : > { %227 = vst [vmem:[%s1347_s7 + $0x6c] sm:$0xf] %v226_v27 }
  0x33   : > { %229 = vst [vmem:[%s1347_s7 + $0x70] sm:$0xf] %v228_v28 }
  0x34   : > { %231 = vst [vmem:[%s1347_s7 + $0x74] sm:$0xf] %v230_v29 }
  0x35   : > { %233 = vst [vmem:[%s1347_s7 + $0x78] sm:$0xf] %v232_v30 }
  0x36   : > { %235 = vst [vmem:[%s1347_s7 + $0x7c] sm:$0xf] %v234_v31 }
  0x37 PF: > { %p992_p7 = scmp.ge.s32.totalorder %s1259_s18, 1  ;;  %p331_p8 = scmp.lt.s32.totalorder %s1259_s18, 19 }
  0x39   : > { %p332_p9 = pnand %p992_p7, %p331_p8 }
  0x3a   : > { %s338_s8 = sand.u32 (!%p332_p9), 1, %s1235_s12   ;;  %s994_s9 = sshll.u32 (!%p332_p9), %s1243_s14, 4 }
  0x3b   : > { %335 = sbr.rel (%p332_p9) target bundleno = 365 (0x16d), region = 69  ;;  %s993_s10 = sshll.u32 (!%p332_p9), %s338_s8, 7 }
  0x3c   : > { %p368_p10 = scmp.lt.s32.totalorder (!%p332_p9), %s994_s9, 143  ;;  %s996_s11 = sshll.u32 (!%p332_p9), %s1247_s15, 5 }
  0x3d   : > { %p374_p11 = scmp.lt.s32.totalorder (!%p332_p9), %s996_s11, 63  ;;  %s1425_s12 = scalar_lea.vmem (!%p332_p9), [#allocation3], %s993_s10 }
  0x3e   : > { %p998_p12 = scmp.ne.s32.totalorder (!%p332_p9), %s1243_s14, 0 }
  0x40   : > { %s1560_s9 = smov (!%p368_p10, %s994_s9), 143  ;;  %s1562_s11 = smov (!%p374_p11, %s996_s11), 63 }
  0x41   : > { %s995_s21 = sshll.u32 %s1560_s9, 2  ;;  %s997_s26 = sshll.u32 %s1562_s11, 3 }
  0x42   : > { %s1418_s24 = scalar_lea.vmem %s1544_s1, %s995_s21  ;;  %s1423_s29 = scalar_lea.vmem %s1546_s3, %s997_s26 }
  0x43   : > { %382 = sbr.rel (%p998_p12) target bundleno = 105 (0x69), region = 77 }
  0x48   : > { %v1261_v32 = vmov 0.0  }
  0x49   : > { %383 = vst [vmem:[#allocation2 + $0xb0] sm:$0xff] %v1261_v32 }
  0x4a   : > { %384 = vst [vmem:[#allocation2] sm:$0xff] %v1261_v32 }
  0x4b   : > { %385 = vst [vmem:[#allocation2 + $0xd8] sm:$0xff] %v1261_v32 }
  0x4c   : > { %386 = vst [vmem:[#allocation2 + $0x18] sm:$0xff] %v1261_v32 }
  0x4d   : > { %387 = vst [vmem:[#allocation2 + $0x50] sm:$0xff] %v1261_v32 }
  0x4e   : > { %388 = vst [vmem:[#allocation2 + $0x68] sm:$0xff] %v1261_v32 }
  0x4f   : > { %389 = vst [vmem:[#allocation2 + $0x30] sm:$0xff] %v1261_v32 }
  0x50   : > { %390 = vst [vmem:[#allocation2 + $0x48] sm:$0xff] %v1261_v32 }
  0x51   : > { %391 = vst [vmem:[#allocation2 + $0x80] sm:$0xff] %v1261_v32 }
  0x52   : > { %392 = vst [vmem:[#allocation2 + $0x88] sm:$0xff] %v1261_v32 }
  0x53   : > { %393 = vst [vmem:[#allocation2 + $0xe8] sm:$0xff] %v1261_v32 }
  0x54   : > { %394 = vst [vmem:[#allocation2 + $0xb8] sm:$0xff] %v1261_v32 }
  0x55   : > { %395 = vst [vmem:[#allocation2 + $0x60] sm:$0xff] %v1261_v32 }
  0x56   : > { %396 = vst [vmem:[#allocation2 + $0xf0] sm:$0xff] %v1261_v32 }
  0x57   : > { %397 = vst [vmem:[#allocation2 + $0x8] sm:$0xff] %v1261_v32 }
  0x58   : > { %398 = vst [vmem:[#allocation2 + $0x78] sm:$0xff] %v1261_v32 }
  0x59   : > { %399 = vst [vmem:[#allocation2 + $0x38] sm:$0xff] %v1261_v32 }
  0x5a   : > { %400 = vst [vmem:[#allocation2 + $0x58] sm:$0xff] %v1261_v32 }
  0x5b   : > { %401 = vst [vmem:[#allocation2 + $0x40] sm:$0xff] %v1261_v32 }
  0x5c   : > { %402 = vst [vmem:[#allocation2 + $0xc8] sm:$0xff] %v1261_v32 }
  0x5d   : > { %403 = vst [vmem:[#allocation2 + $0xe0] sm:$0xff] %v1261_v32 }
  0x5e   : > { %404 = vst [vmem:[#allocation2 + $0x90] sm:$0xff] %v1261_v32 }
  0x5f   : > { %405 = vst [vmem:[#allocation2 + $0x70] sm:$0xff] %v1261_v32 }
  0x60   : > { %406 = vst [vmem:[#allocation2 + $0xc0] sm:$0xff] %v1261_v32 }
  0x61   : > { %407 = vst [vmem:[#allocation2 + $0xa8] sm:$0xff] %v1261_v32 }
  0x62   : > { %408 = vst [vmem:[#allocation2 + $0xd0] sm:$0xff] %v1261_v32 }
  0x63   : > { %409 = vst [vmem:[#allocation2 + $0x10] sm:$0xff] %v1261_v32 }
  0x64   : > { %410 = vst [vmem:[#allocation2 + $0x28] sm:$0xff] %v1261_v32 }
  0x65   : > { %411 = vst [vmem:[#allocation2 + $0xa0] sm:$0xff] %v1261_v32 }
  0x66   : > { %412 = vst [vmem:[#allocation2 + $0xf8] sm:$0xff] %v1261_v32 }
  0x67   : > { %413 = vst [vmem:[#allocation2 + $0x20] sm:$0xff] %v1261_v32 }
  0x68   : > { %414 = vst [vmem:[#allocation2 + $0x98] sm:$0xff] %v1261_v32 }
  0x69 PF: > { %v1121_v33 = vld [vmem:[%s1418_s24 + $0x38] sm:$0xff]  ;;  %v1120_v34 = vld [vmem:[%s1418_s24 + $0x30] sm:$0xff]  ;;  %v1119_v35 = vld [vmem:[%s1418_s24 + $0x28] sm:$0xff]  ;;  %p1095_p13 = scmp.ne.s32.totalorder %s1243_s14, 8 }
  0x6a   : > { %639 = vmatpush.bf16.msra.mxu0 %v1121_v33  ;;  %1122 = vmatpush.bf16.msra.mxu1 %v1121_v33  ;;  %v1118_v36 = vld [vmem:[%s1418_s24 + $0x20] sm:$0xff]  ;;  %v1117_v37 = vld [vmem:[%s1418_s24 + $0x18] sm:$0xff]  ;;  %v1116_v38 = vld [vmem:[%s1418_s24 + $0x10] sm:$0xff] }
  0x6b   : > { %1123 = vmatpush.bf16.msra.mxu2 %v1121_v33  ;;  %1124 = vmatpush.bf16.msra.mxu3 %v1121_v33  ;;  %v1115_v39 = vld [vmem:[%s1418_s24 + $0x8] sm:$0xff]  ;;  %v1114_v40 = vld [vmem:[%s1418_s24] sm:$0xff]  ;;  %v1100_v49 = vld [vmem:[%s1425_s12 + $0x10] sm:$0xff] }
  0x6c   : > { %v1098_v41 = vld [vmem:[%s1425_s12] sm:$0xff]  ;;  %v1099_v45 = vld [vmem:[%s1425_s12 + $0x8] sm:$0xff]  ;;  %v1104_v50 = vld [vmem:[%s1425_s12 + $0x30] sm:$0xff] }
  0x6d   : > { %v1102_v42 = vld [vmem:[%s1425_s12 + $0x20] sm:$0xff]  ;;  %v1103_v46 = vld [vmem:[%s1425_s12 + $0x28] sm:$0xff]  ;;  %v1108_v51 = vld [vmem:[%s1425_s12 + $0x50] sm:$0xff] }
  0x6e   : > { %640 = vmatpush.bf16.msra.mxu0 %v1120_v34  ;;  %1125 = vmatpush.bf16.msra.mxu1 %v1120_v34  ;;  %v1106_v43 = vld [vmem:[%s1425_s12 + $0x40] sm:$0xff]  ;;  %v1107_v47 = vld [vmem:[%s1425_s12 + $0x48] sm:$0xff]  ;;  %v1112_v52 = vld [vmem:[%s1425_s12 + $0x70] sm:$0xff] }
  0x6f   : > { %1126 = vmatpush.bf16.msra.mxu2 %v1120_v34  ;;  %1127 = vmatpush.bf16.msra.mxu3 %v1120_v34  ;;  %v1110_v44 = vld [vmem:[%s1425_s12 + $0x60] sm:$0xff]  ;;  %v1111_v48 = vld [vmem:[%s1425_s12 + $0x68] sm:$0xff]  ;;  %v1101_v53 = vld [vmem:[%s1425_s12 + $0x18] sm:$0xff] }
  0x70   : > { %v1105_v54 = vld [vmem:[%s1425_s12 + $0x38] sm:$0xff]  ;;  %v415_v57 = vld [vmem:[#allocation2 + $0xb0] sm:$0xff]  ;;  %v423_v58 = vld [vmem:[#allocation2 + $0x80] sm:$0xff] }
  0x71   : > { %v1109_v55 = vld [vmem:[%s1425_s12 + $0x58] sm:$0xff]  ;;  %v439_v0 = vld [vmem:[#allocation2 + $0xa8] sm:$0xff]  ;;  %v416_v1 = vld [vmem:[#allocation2] sm:$0xff] }
  0x72   : > { %641 = vmatpush.bf16.msra.mxu0 %v1119_v35  ;;  %1128 = vmatpush.bf16.msra.mxu1 %v1119_v35  ;;  %v1113_v56 = vld [vmem:[%s1425_s12 + $0x78] sm:$0xff]  ;;  %v424_v2 = vld [vmem:[#allocation2 + $0x88] sm:$0xff]  ;;  %v440_v12 = vld [vmem:[#allocation2 + $0xd0] sm:$0xff] }
  0x73   : > { %1129 = vmatpush.bf16.msra.mxu2 %v1119_v35  ;;  %1130 = vmatpush.bf16.msra.mxu3 %v1119_v35  ;;  %v431_v63 = vld [vmem:[#allocation2 + $0x38] sm:$0xff]  ;;  %v425_v14 = vld [vmem:[#allocation2 + $0xe8] sm:$0xff]  ;;  %v433_v23 = vld [vmem:[#allocation2 + $0x40] sm:$0xff] }
  0x74   : > { %v432_v11 = vld [vmem:[#allocation2 + $0x58] sm:$0xff]  ;;  %v441_v24 = vld [vmem:[#allocation2 + $0x10] sm:$0xff]  ;;  %v434_v35 = vld [vmem:[#allocation2 + $0xc8] sm:$0xff] }
  0x75   : > { %v417_v13 = vld [vmem:[#allocation2 + $0xd8] sm:$0xff] }
  0x76   : > { %642 = vmatpush.bf16.msra.mxu0 %v1118_v36  ;;  %1131 = vmatpush.bf16.msra.mxu1 %v1118_v36  ;;  %v418_v25 = vld [vmem:[#allocation2 + $0x18] sm:$0xff] }
  0x77   : > { %1132 = vmatpush.bf16.msra.mxu2 %v1118_v36  ;;  %1133 = vmatpush.bf16.msra.mxu3 %v1118_v36  ;;  %v426_v26 = vld [vmem:[#allocation2 + $0xb8] sm:$0xff]  ;;  %v442_v36 = vld [vmem:[#allocation2 + $0x28] sm:$0xff] }
  0x7a   : > { %643 = vmatpush.bf16.msra.mxu0 %v1117_v37  ;;  %1134 = vmatpush.bf16.msra.mxu1 %v1117_v37 }
  0x7b   : > { %1135 = vmatpush.bf16.msra.mxu2 %v1117_v37  ;;  %1136 = vmatpush.bf16.msra.mxu3 %v1117_v37  ;;  %v419_v37 = vld [vmem:[#allocation2 + $0x50] sm:$0xff] }
  0x7e   : > { %644 = vmatpush.bf16.msra.mxu0 %v1116_v38  ;;  %1137 = vmatpush.bf16.msra.mxu1 %v1116_v38 }
  0x7f   : > { %1138 = vmatpush.bf16.msra.mxu2 %v1116_v38  ;;  %1139 = vmatpush.bf16.msra.mxu3 %v1116_v38  ;;  %v427_v38 = vld [vmem:[#allocation2 + $0x60] sm:$0xff] }
  0x82   : > { %645 = vmatpush.bf16.msra.mxu0 %v1115_v39  ;;  %1140 = vmatpush.bf16.msra.mxu1 %v1115_v39 }
  0x83   : > { %1141 = vmatpush.bf16.msra.mxu2 %v1115_v39  ;;  %1142 = vmatpush.bf16.msra.mxu3 %v1115_v39 }
  0x86   : > { %646 = vmatpush.bf16.msra.mxu0 %v1114_v40  ;;  %1143 = vmatpush.bf16.msra.mxu1 %v1114_v40 }
  0x87   : > { %1144 = vmatpush.bf16.msra.mxu2 %v1114_v40  ;;  %1145 = vmatpush.bf16.msra.mxu3 %v1114_v40 }
  0x89   : > { %647 = vmatmul.bf16.vlgmr.msra.gmra.mxu0 %v1098_v41  ;;  %667 = vmatmul.bf16.vlgmr.msra.gmra.mxu1 %v1102_v42 }
  0x8a   : > { %687 = vmatmul.bf16.vlgmr.msra.gmra.mxu2 %v1106_v43  ;;  %707 = vmatmul.bf16.vlgmr.msra.gmra.mxu3 %v1110_v44 }
  0x99   : > { %652 = vmatmul.bf16.gmra.mxu0 %v1099_v45  ;;  %672 = vmatmul.bf16.gmra.mxu1 %v1103_v46 }
  0x9a   : > { %692 = vmatmul.bf16.gmra.mxu2 %v1107_v47  ;;  %712 = vmatmul.bf16.gmra.mxu3 %v1111_v48  ;;  %v435_v47 = vld [vmem:[#allocation2 + $0xe0] sm:$0xff] }
  0x9b   : > { %v443_v48 = vld [vmem:[#allocation2 + $0xa0] sm:$0xff] }
  0xa9   : > { %657 = vmatmul.bf16.gmra.mxu0 %v1100_v49  ;;  %677 = vmatmul.bf16.gmra.mxu1 %v1104_v50  ;;  %v420_v49 = vld [vmem:[#allocation2 + $0x68] sm:$0xff]  ;;  %v428_v50 = vld [vmem:[#allocation2 + $0xf0] sm:$0xff] }
  0xaa   : > { %697 = vmatmul.bf16.gmra.mxu2 %v1108_v51  ;;  %717 = vmatmul.bf16.gmra.mxu3 %v1112_v52 }
  0xb9   : > { %662 = vmatmul.bf16.gmra.mxu0 %v1101_v53  ;;  %682 = vmatmul.bf16.gmra.mxu1 %v1105_v54 }
  0xba   : > { %702 = vmatmul.bf16.gmra.mxu2 %v1109_v55  ;;  %722 = vmatmul.bf16.gmra.mxu3 %v1113_v56 }
 0x106   : > { %v648_v59 = vpop.f32.mrf.mxu0  ;;  %v668_v60 = vpop.f32.mrf.mxu1 }
 0x107   : > { %v728_v61 = vadd.f32 %v648_v59, %v415_v57  ;;  %v736_v62 = vadd.f32 %v668_v60, %v423_v58  ;;  %v436_v59 = vld [vmem:[#allocation2 + $0x90] sm:$0xff]  ;;  %v444_v60 = vld [vmem:[#allocation2 + $0xf8] sm:$0xff] }
 0x109   : > { %760 = vst [vmem:[#allocation2 + $0xb0] sm:$0xff] %v728_v61  ;;  %v421_v61 = vld [vmem:[#allocation2 + $0x30] sm:$0xff] }
 0x10a   : > { %768 = vst [vmem:[#allocation2 + $0x80] sm:$0xff] %v736_v62  ;;  %v429_v62 = vld [vmem:[#allocation2 + $0x8] sm:$0xff] }
 0x10d   : > { %v688_v3 = vpop.f32.mrf.mxu2  ;;  %v708_v4 = vpop.f32.mrf.mxu3 }
 0x10e   : > { %v744_v5 = vadd.f32 %v688_v3, %v431_v63  ;;  %v752_v6 = vadd.f32 %v708_v4, %v439_v0  ;;  %v650_v7 = vpop.f32.mrf.mxu0  ;;  %v670_v8 = vpop.f32.mrf.mxu1 }
 0x10f   : > { %v729_v9 = vadd.f32 %v650_v7, %v416_v1  ;;  %v737_v10 = vadd.f32 %v670_v8, %v424_v2  ;;  %v437_v7 = vld [vmem:[#allocation2 + $0x70] sm:$0xff]  ;;  %v445_v8 = vld [vmem:[#allocation2 + $0x20] sm:$0xff] }
 0x110   : > { %776 = vst [vmem:[#allocation2 + $0x38] sm:$0xff] %v744_v5 }
 0x111   : > { %784 = vst [vmem:[#allocation2 + $0xa8] sm:$0xff] %v752_v6 }
 0x112   : > { %761 = vst [vmem:[#allocation2] sm:$0xff] %v729_v9  ;;  %v422_v9 = vld [vmem:[#allocation2 + $0x48] sm:$0xff] }
 0x113   : > { %769 = vst [vmem:[#allocation2 + $0x88] sm:$0xff] %v737_v10  ;;  %v430_v10 = vld [vmem:[#allocation2 + $0x78] sm:$0xff] }
 0x115   : > { %v690_v15 = vpop.f32.mrf.mxu2  ;;  %v710_v16 = vpop.f32.mrf.mxu3 }
 0x116   : > { %v745_v17 = vadd.f32 %v690_v15, %v432_v11  ;;  %v753_v18 = vadd.f32 %v710_v16, %v440_v12  ;;  %v653_v19 = vpop.f32.mrf.mxu0  ;;  %v673_v20 = vpop.f32.mrf.mxu1 }
 0x117   : > { %v730_v21 = vadd.f32 %v653_v19, %v417_v13  ;;  %v738_v22 = vadd.f32 %v673_v20, %v425_v14  ;;  %v438_v19 = vld [vmem:[#allocation2 + $0xc0] sm:$0xff]  ;;  %v446_v20 = vld [vmem:[#allocation2 + $0x98] sm:$0xff] }
 0x118   : > { %777 = vst [vmem:[#allocation2 + $0x58] sm:$0xff] %v745_v17 }
 0x119   : > { %785 = vst [vmem:[#allocation2 + $0xd0] sm:$0xff] %v753_v18 }
 0x11a   : > { %762 = vst [vmem:[#allocation2 + $0xd8] sm:$0xff] %v730_v21 }
 0x11b   : > { %770 = vst [vmem:[#allocation2 + $0xe8] sm:$0xff] %v738_v22 }
 0x11d   : > { %v693_v27 = vpop.f32.mrf.mxu2  ;;  %v713_v28 = vpop.f32.mrf.mxu3 }
 0x11e   : > { %v746_v29 = vadd.f32 %v693_v27, %v433_v23  ;;  %v754_v30 = vadd.f32 %v713_v28, %v441_v24  ;;  %v655_v31 = vpop.f32.mrf.mxu0  ;;  %v675_v32 = vpop.f32.mrf.mxu1 }
 0x11f   : > { %v731_v33 = vadd.f32 %v655_v31, %v418_v25  ;;  %v739_v34 = vadd.f32 %v675_v32, %v426_v26 }
 0x120   : > { %778 = vst [vmem:[#allocation2 + $0x40] sm:$0xff] %v746_v29 }
 0x121   : > { %786 = vst [vmem:[#allocation2 + $0x10] sm:$0xff] %v754_v30 }
 0x122   : > { %763 = vst [vmem:[#allocation2 + $0x18] sm:$0xff] %v731_v33 }
 0x123   : > { %771 = vst [vmem:[#allocation2 + $0xb8] sm:$0xff] %v739_v34 }
 0x125   : > { %v695_v39 = vpop.f32.mrf.mxu2  ;;  %v715_v40 = vpop.f32.mrf.mxu3 }
 0x126   : > { %v747_v41 = vadd.f32 %v695_v39, %v434_v35  ;;  %v755_v42 = vadd.f32 %v715_v40, %v442_v36  ;;  %v658_v43 = vpop.f32.mrf.mxu0  ;;  %v678_v44 = vpop.f32.mrf.mxu1 }
 0x127   : > { %v732_v45 = vadd.f32 %v658_v43, %v419_v37  ;;  %v740_v46 = vadd.f32 %v678_v44, %v427_v38 }
 0x128   : > { %779 = vst [vmem:[#allocation2 + $0xc8] sm:$0xff] %v747_v41 }
 0x129   : > { %787 = vst [vmem:[#allocation2 + $0x28] sm:$0xff] %v755_v42 }
 0x12a   : > { %764 = vst [vmem:[#allocation2 + $0x50] sm:$0xff] %v732_v45 }
 0x12b   : > { %772 = vst [vmem:[#allocation2 + $0x60] sm:$0xff] %v740_v46 }
 0x12d   : > { %v698_v51 = vpop.f32.mrf.mxu2  ;;  %v718_v52 = vpop.f32.mrf.mxu3 }
 0x12e   : > { %v748_v53 = vadd.f32 %v698_v51, %v435_v47  ;;  %v756_v54 = vadd.f32 %v718_v52, %v443_v48  ;;  %v660_v55 = vpop.f32.mrf.mxu0  ;;  %v680_v56 = vpop.f32.mrf.mxu1 }
 0x12f   : > { %v733_v57 = vadd.f32 %v660_v55, %v420_v49  ;;  %v741_v58 = vadd.f32 %v680_v56, %v428_v50 }
 0x130   : > { %780 = vst [vmem:[#allocation2 + $0xe0] sm:$0xff] %v748_v53 }
 0x131   : > { %788 = vst [vmem:[#allocation2 + $0xa0] sm:$0xff] %v756_v54 }
 0x132   : > { %765 = vst [vmem:[#allocation2 + $0x68] sm:$0xff] %v733_v57 }
 0x133   : > { %773 = vst [vmem:[#allocation2 + $0xf0] sm:$0xff] %v741_v58 }
 0x135   : > { %v700_v63 = vpop.f32.mrf.mxu2  ;;  %v720_v0 = vpop.f32.mrf.mxu3 }
 0x136   : > { %v749_v1 = vadd.f32 %v700_v63, %v436_v59  ;;  %v757_v2 = vadd.f32 %v720_v0, %v444_v60  ;;  %v663_v3 = vpop.f32.mrf.mxu0  ;;  %v683_v4 = vpop.f32.mrf.mxu1 }
 0x137   : > { %v734_v5 = vadd.f32 %v663_v3, %v421_v61  ;;  %v742_v6 = vadd.f32 %v683_v4, %v429_v62 }
 0x138   : > { %781 = vst [vmem:[#allocation2 + $0x90] sm:$0xff] %v749_v1 }
 0x139   : > { %789 = vst [vmem:[#allocation2 + $0xf8] sm:$0xff] %v757_v2 }
 0x13a   : > { %766 = vst [vmem:[#allocation2 + $0x30] sm:$0xff] %v734_v5 }
 0x13b   : > { %774 = vst [vmem:[#allocation2 + $0x8] sm:$0xff] %v742_v6 }
 0x13d   : > { %v703_v11 = vpop.f32.mrf.mxu2  ;;  %v723_v12 = vpop.f32.mrf.mxu3 }
 0x13e   : > { %v750_v13 = vadd.f32 %v703_v11, %v437_v7  ;;  %v758_v14 = vadd.f32 %v723_v12, %v445_v8  ;;  %v665_v15 = vpop.f32.mrf.mxu0  ;;  %v685_v16 = vpop.f32.mrf.mxu1 }
 0x13f   : > { %v735_v17 = vadd.f32 %v665_v15, %v422_v9  ;;  %v743_v18 = vadd.f32 %v685_v16, %v430_v10 }
 0x140   : > { %782 = vst [vmem:[#allocation2 + $0x70] sm:$0xff] %v750_v13 }
 0x141   : > { %790 = vst [vmem:[#allocation2 + $0x20] sm:$0xff] %v758_v14 }
 0x142   : > { %767 = vst [vmem:[#allocation2 + $0x48] sm:$0xff] %v735_v17 }
 0x143   : > { %775 = vst [vmem:[#allocation2 + $0x78] sm:$0xff] %v743_v18 }
 0x145   : > { %v705_v21 = vpop.f32.mrf.mxu2  ;;  %v725_v22 = vpop.f32.mrf.mxu3  ;;  %795 = sbr.rel (%p1095_p13) target bundleno = 365 (0x16d), region = 81 }
 0x146   : > { %v751_v23 = vadd.f32 %v705_v21, %v438_v19  ;;  %v759_v24 = vadd.f32 %v725_v22, %v446_v20 }
 0x148   : > { %783 = vst [vmem:[#allocation2 + $0xc0] sm:$0xff] %v751_v23 }
 0x149   : > { %791 = vst [vmem:[#allocation2 + $0x98] sm:$0xff] %v759_v24 }
 0x14a   : > { %v796_v25 = vld [vmem:[#allocation2 + $0xb0] sm:$0xff]  ;;  %v1456_v26 = vld [vmem:[%s1545_s2] ss:$0 sm:$0xff]  ;;  %v798_v28 = vld [vmem:[#allocation2 + $0xd8] sm:$0xff] }
 0x14b   : > { %v797_v27 = vld [vmem:[#allocation2] sm:$0xff]  ;;  %v799_v29 = vld [vmem:[#allocation2 + $0x18] sm:$0xff]  ;;  %v832_v30 = vadd.f32 %v1456_v26, %v796_v25  ;;  %v834_v32 = vadd.f32 %v1456_v26, %v798_v28  ;;  %v800_v33 = vld [vmem:[#allocation2 + $0x50] sm:$0xff] }
 0x14c   : > { %v833_v31 = vadd.f32 %v1456_v26, %v797_v27  ;;  %v801_v34 = vld [vmem:[#allocation2 + $0x68] sm:$0xff]  ;;  %v835_v35 = vadd.f32 %v1456_v26, %v799_v29  ;;  %v802_v36 = vld [vmem:[#allocation2 + $0x30] sm:$0xff]  ;;  %v836_v37 = vadd.f32 %v1456_v26, %v800_v33  ;;  %v804_v40 = vld [vmem:[#allocation2 + $0x80] sm:$0xff] }
 0x14d   : > { %864 = vst [vmem:[%s1423_s29] sm:$0xff] %v832_v30  ;;  %v803_v38 = vld [vmem:[#allocation2 + $0x48] sm:$0xff]  ;;  %v837_v39 = vadd.f32 %v1456_v26, %v801_v34  ;;  %v838_v41 = vadd.f32 %v1456_v26, %v802_v36  ;;  %v840_v45 = vadd.f32 %v1456_v26, %v804_v40  ;;  %v807_v46 = vld [vmem:[#allocation2 + $0xb8] sm:$0xff]  ;;  %v808_v48 = vld [vmem:[#allocation2 + $0x60] sm:$0xff] }
 0x14e   : > { %865 = vst [vmem:[%s1423_s29 + $0x8] sm:$0xff] %v833_v31  ;;  %v805_v42 = vld [vmem:[#allocation2 + $0x88] sm:$0xff]  ;;  %v839_v43 = vadd.f32 %v1456_v26, %v803_v38  ;;  %v809_v50 = vld [vmem:[#allocation2 + $0xf0] sm:$0xff]  ;;  %v843_v51 = vadd.f32 %v1456_v26, %v807_v46  ;;  %v844_v53 = vadd.f32 %v1456_v26, %v808_v48  ;;  %v811_v54 = vld [vmem:[#allocation2 + $0x78] sm:$0xff] }
 0x14f   : > { %866 = vst [vmem:[%s1423_s29 + $0x10] sm:$0xff] %v834_v32  ;;  %v806_v44 = vld [vmem:[#allocation2 + $0xe8] sm:$0xff]  ;;  %v841_v47 = vadd.f32 %v1456_v26, %v805_v42  ;;  %v845_v55 = vadd.f32 %v1456_v26, %v809_v50  ;;  %v812_v56 = vld [vmem:[#allocation2 + $0x38] sm:$0xff]  ;;  %v847_v59 = vadd.f32 %v1456_v26, %v811_v54  ;;  %v814_v60 = vld [vmem:[#allocation2 + $0x40] sm:$0xff] }
 0x150   : > { %867 = vst [vmem:[%s1423_s29 + $0x18] sm:$0xff] %v835_v35  ;;  %v842_v49 = vadd.f32 %v1456_v26, %v806_v44  ;;  %v810_v52 = vld [vmem:[#allocation2 + $0x8] sm:$0xff]  ;;  %v813_v58 = vld [vmem:[#allocation2 + $0x58] sm:$0xff]  ;;  %v848_v61 = vadd.f32 %v1456_v26, %v812_v56  ;;  %v816_v0 = vld [vmem:[#allocation2 + $0xe0] sm:$0xff]  ;;  %v850_v1 = vadd.f32 %v1456_v26, %v814_v60 }
 0x151   : > { %868 = vst [vmem:[%s1423_s29 + $0x20] sm:$0xff] %v836_v37  ;;  %v846_v57 = vadd.f32 %v1456_v26, %v810_v52  ;;  %v815_v62 = vld [vmem:[#allocation2 + $0xc8] sm:$0xff]  ;;  %v849_v63 = vadd.f32 %v1456_v26, %v813_v58  ;;  %v817_v2 = vld [vmem:[#allocation2 + $0x90] sm:$0xff]  ;;  %v852_v5 = vadd.f32 %v1456_v26, %v816_v0  ;;  %v819_v6 = vld [vmem:[#allocation2 + $0xc0] sm:$0xff] }
 0x152   : > { %869 = vst [vmem:[%s1423_s29 + $0x28] sm:$0xff] %v837_v39  ;;  %v851_v3 = vadd.f32 %v1456_v26, %v815_v62  ;;  %v818_v4 = vld [vmem:[#allocation2 + $0x70] sm:$0xff]  ;;  %v853_v7 = vadd.f32 %v1456_v26, %v817_v2  ;;  %v820_v8 = vld [vmem:[#allocation2 + $0xa8] sm:$0xff]  ;;  %v855_v11 = vadd.f32 %v1456_v26, %v819_v6  ;;  %v824_v16 = vld [vmem:[#allocation2 + $0xa0] sm:$0xff] }
 0x153   : > { %870 = vst [vmem:[%s1423_s29 + $0x30] sm:$0xff] %v838_v41  ;;  %v854_v9 = vadd.f32 %v1456_v26, %v818_v4  ;;  %v821_v10 = vld [vmem:[#allocation2 + $0xd0] sm:$0xff]  ;;  %v856_v13 = vadd.f32 %v1456_v26, %v820_v8  ;;  %v823_v14 = vld [vmem:[#allocation2 + $0x28] sm:$0xff]  ;;  %v825_v18 = vld [vmem:[#allocation2 + $0xf8] sm:$0xff]  ;;  %v860_v21 = vadd.f32 %v1456_v26, %v824_v16 }
 0x154   : > { %871 = vst [vmem:[%s1423_s29 + $0x38] sm:$0xff] %v839_v43  ;;  %v822_v12 = vld [vmem:[#allocation2 + $0x10] sm:$0xff]  ;;  %v857_v15 = vadd.f32 %v1456_v26, %v821_v10  ;;  %v859_v19 = vadd.f32 %v1456_v26, %v823_v14  ;;  %v826_v20 = vld [vmem:[#allocation2 + $0x20] sm:$0xff]  ;;  %v827_v22 = vld [vmem:[#allocation2 + $0x98] sm:$0xff]  ;;  %v861_v23 = vadd.f32 %v1456_v26, %v825_v18 }
 0x155   : > { %872 = vst [vmem:[%s1423_s29 + $0x40] sm:$0xff] %v840_v45  ;;  %v858_v17 = vadd.f32 %v1456_v26, %v822_v12  ;;  %v862_v24 = vadd.f32 %v1456_v26, %v826_v20  ;;  %v863_v25 = vadd.f32 %v1456_v26, %v827_v22 }
 0x156   : > { %873 = vst [vmem:[%s1423_s29 + $0x48] sm:$0xff] %v841_v47 }
 0x157   : > { %874 = vst [vmem:[%s1423_s29 + $0x50] sm:$0xff] %v842_v49 }
 0x158   : > { %875 = vst [vmem:[%s1423_s29 + $0x58] sm:$0xff] %v843_v51 }
 0x159   : > { %876 = vst [vmem:[%s1423_s29 + $0x60] sm:$0xff] %v844_v53 }
 0x15a   : > { %877 = vst [vmem:[%s1423_s29 + $0x68] sm:$0xff] %v845_v55 }
 0x15b   : > { %878 = vst [vmem:[%s1423_s29 + $0x70] sm:$0xff] %v846_v57 }
 0x15c   : > { %879 = vst [vmem:[%s1423_s29 + $0x78] sm:$0xff] %v847_v59 }
 0x15d   : > { %880 = vst [vmem:[%s1423_s29 + $0x80] sm:$0xff] %v848_v61 }
 0x15e   : > { %881 = vst [vmem:[%s1423_s29 + $0x88] sm:$0xff] %v849_v63 }
 0x15f   : > { %882 = vst [vmem:[%s1423_s29 + $0x90] sm:$0xff] %v850_v1 }
 0x160   : > { %883 = vst [vmem:[%s1423_s29 + $0x98] sm:$0xff] %v851_v3 }
 0x161   : > { %884 = vst [vmem:[%s1423_s29 + $0xa0] sm:$0xff] %v852_v5 }
 0x162   : > { %885 = vst [vmem:[%s1423_s29 + $0xa8] sm:$0xff] %v853_v7 }
 0x163   : > { %886 = vst [vmem:[%s1423_s29 + $0xb0] sm:$0xff] %v854_v9 }
 0x164   : > { %887 = vst [vmem:[%s1423_s29 + $0xb8] sm:$0xff] %v855_v11 }
 0x165   : > { %888 = vst [vmem:[%s1423_s29 + $0xc0] sm:$0xff] %v856_v13 }
 0x166   : > { %889 = vst [vmem:[%s1423_s29 + $0xc8] sm:$0xff] %v857_v15 }
 0x167   : > { %890 = vst [vmem:[%s1423_s29 + $0xd0] sm:$0xff] %v858_v17 }
 0x168   : > { %891 = vst [vmem:[%s1423_s29 + $0xd8] sm:$0xff] %v859_v19 }
 0x169   : > { %892 = vst [vmem:[%s1423_s29 + $0xe0] sm:$0xff] %v860_v21 }
 0x16a   : > { %893 = vst [vmem:[%s1423_s29 + $0xe8] sm:$0xff] %v861_v23 }
 0x16b   : > { %894 = vst [vmem:[%s1423_s29 + $0xf0] sm:$0xff] %v862_v24 }
 0x16c   : > { %895 = vst [vmem:[%s1423_s29 + $0xf8] sm:$0xff] %v863_v25 }
 0x16d PF: > { %s13_s18 = sadd.s32 1, %s1259_s18   ;;  %s1547_s12 = smov %s1239_s13 }
 0x16e   : > { %p10_p0 = scmp.ge.s32.totalorder %s13_s18, 20   ;;  %s1548_s13 = smov %s1333_s25 }
 0x16f   : > { %s1549_s14 = smov %s1251_s16  ;;  %s1550_s15 = smov %s1255_s17 }
 0x170   : > { %s1551_s16 = smov %s1554_s19  ;;  %s1552_s17 = smov %s1558_s20 }
 0x171   :  { %12 = sbr.rel (!%p10_p0) target bundleno = 4 (0x4), region = 119 }

</bundles_post_ra>
